<compile_context>
chip_gen: v7x
topology: tpu7x:2x2x1
jax: 0.10.0
libtpu: 0.0.40
codegen_flags: <defaults>
</compile_context>

<pallas_src>
import functools

import jax
import jax.numpy as jnp
from jax import lax
from jax.experimental import pallas as pl
from jax.experimental.pallas import tpu as pltpu


# ------------------------------ fused kernel ------------------------------ #
def unet_kernel(x_ref, w_ref, b_ref, mask_ref, o_ref, *, WP, NT):
    # x_ref   : (1, 1, NT)   NT = B*NPP; B flattened zero-haloed frames per row
    # w_ref   : (9, 72, 32)  packed per-tap weights:
    #                        rows  0:32 lanes 0:16 -> layer 2 (32,16)
    #                        rows 32:48 lanes 0:32 -> layer 3 (16,32)
    #                        rows 48:56 lanes 0:16 -> layer 4 (Cout 1->8, 16)
    #                        rows 56:72 lanes 0: 1 -> layer 1 (16,1)
    # b_ref   : (32, 4)      column l = layer-(l+1) bias, zero padded
    # mask_ref: (1, NT)      1.0 at interior pixels, 0.0 at halo/lane padding
    # o_ref   : (1, 1, NT)   layer-4 output in the same flattened-frame layout
    mask = mask_ref[...]
    bias = b_ref[...]

    # Tap (dy, dx) reads flattened frame position q + s, s = (dy-1)*WP+(dx-1).
    shifts = [(dy - 1) * WP + (dx - 1) for dy in range(3) for dx in range(3)]

    def tap(a, s):  # shifted copy via a cheap lane roll (XLU slot, not VPU)
        return a if s == 0 else pltpu.roll(a, (-s) % NT, axis=1)

    def conv(a, w_of_t, b, *, relu, apply_mask):
        # One small MXU dot per tap, accumulated -> no im2col patch / concat.
        acc = None
        for t, s in enumerate(shifts):
            z = jnp.dot(w_of_t(t), tap(a, s), preferred_element_type=jnp.float32)
            acc = z if acc is None else acc + z
        acc = acc + b
        if apply_mask:
            acc = acc * mask                       # re-zero halo + lane padding
        if relu:
            acc = jnp.maximum(acc, 0.0)
        return acc

    # ---- layer 1 (Cin=1 -> 16): nine broadcast FMAs on the VPU ----
    a0 = x_ref[0]                                  # (1, NT)
    acc = None
    for t, s in enumerate(shifts):
        z = w_ref[t, 56:72, 0:1] * tap(a0, s)      # (16,1)*(1,NT) -> (16,NT)
        acc = z if acc is None else acc + z
    a1 = jnp.maximum((acc + bias[0:16, 0:1]) * mask, 0.0)            # (16, NT)

    # ---- layers 2..4: per-tap accumulate dots on the MXU ----
    a2 = conv(a1, lambda t: w_ref[t, 0:32, 0:16], bias[0:32, 1:2],
              relu=True, apply_mask=True)                             # (32, NT)
    a3 = conv(a2, lambda t: w_ref[t, 32:48, 0:32], bias[0:16, 2:3],
              relu=True, apply_mask=True)                             # (16, NT)
    a4 = conv(a3, lambda t: w_ref[t, 48:56, 0:16], bias[0:8, 3:4],
              relu=False, apply_mask=False)                           # (8, NT)
    o_ref[0] = a4[0:1, :]                          # real Cout == 1


# ------------------------------- wrapper ----------------------------------- #
def _per_tap(w_oihw):
    # OIHW (Cout, Cin, 3, 3) -> (9, Cout, Cin); tap index t = dy*3 + dx.
    co, ci = w_oihw.shape[0], w_oihw.shape[1]
    return jnp.transpose(w_oihw, (2, 3, 0, 1)).reshape(9, co, ci)


def _pad_block(w9, rows, lanes):
    return jnp.pad(w9, ((0, 0), (0, rows - w9.shape[1]), (0, lanes - w9.shape[2])))


def simple_unet_forward(x_nchw, params, *, images_per_step=8):
    """Pallas implementation of SimpleUnet.forward; input/output are NCHW."""
    N, Cin, H, W = x_nchw.shape
    assert Cin == 1
    HP, WP = H + 2, W + 2
    NP = HP * WP                                   # flattened padded frame
    NPP = ((NP + 127) // 128) * 128                # lane-aligned frame width

    # Images per grid step: keep >= 2 grid steps when N >= 2 (v7x: 2 TCs),
    # and a working set of a few MiB (safe on v5e/v6e/v7x default scoped VMEM).
    B = 1 if N < 2 else max(1, min(images_per_step, N // 2))
    G = (N + B - 1) // B                           # grid length
    N_pad = G * B
    NT = B * NPP                                   # lanes per grid step

    x = x_nchw.astype(jnp.float32)
    if N_pad != N:
        x = jnp.pad(x, ((0, N_pad - N), (0, 0), (0, 0), (0, 0)))
    # -> flattened zero-haloed frames, B images side by side per grid row.
    x_pf = jnp.pad(x, ((0, 0), (0, 0), (1, 1), (1, 1))).reshape(N_pad, NP)
    x_pf = jnp.pad(x_pf, ((0, 0), (0, NPP - NP))).reshape(G, 1, NT)

    # Interior mask (1 at real pixels, 0 at halo / lane padding), tiled x B.
    m2d = jnp.zeros((HP, WP), jnp.float32).at[1:H + 1, 1:W + 1].set(1.0)
    mask = jnp.zeros((1, NPP), jnp.float32).at[0, :NP].set(m2d.reshape(-1))
    mask = jnp.tile(mask, (1, B))                  # (1, NT)

    # Pack the four weights into one resident slab (9, 72, 32) and the four
    # biases into one (32, 4) slab -> only 4 pipelined operands total.
    (w1, b1), (w2, b2), (w3, b3), (w4, b4) = params        # OIHW weights
    w_slab = jnp.concatenate([
        _pad_block(_per_tap(w2), 32, 32),
        _pad_block(_per_tap(w3), 16, 32),
        _pad_block(_per_tap(w4), 8, 32),           # Cout padded 1 -> 8
        _pad_block(_per_tap(w1), 16, 32),
    ], axis=1).astype(jnp.float32)                 # (9, 72, 32)

    def bcol(b):
        return jnp.pad(b.reshape(-1, 1), ((0, 32 - b.shape[0]), (0, 0)))
    b_slab = jnp.concatenate([bcol(b1), bcol(b2), bcol(b3), bcol(b4)],
                             axis=1).astype(jnp.float32)   # (32, 4)

    kernel = functools.partial(unet_kernel, WP=WP, NT=NT)
    resident = lambda a: pl.BlockSpec(a.shape, lambda g, _nd=None: (0,) * a.ndim)

    out = pl.pallas_call(
        kernel,
        out_shape=jax.ShapeDtypeStruct((G, 1, NT), jnp.float32),
        grid_spec=pltpu.PrefetchScalarGridSpec(
            num_scalar_prefetch=0,
            grid=(G,),                             # B images per step
            in_specs=[
                pl.BlockSpec((1, 1, NT), lambda g: (g, 0, 0)),
                resident(w_slab), resident(b_slab), resident(mask),
            ],
            out_specs=pl.BlockSpec((1, 1, NT), lambda g: (g, 0, 0)),
        ),
        compiler_params=pltpu.CompilerParams(
            dimension_semantics=("parallel",),     # v7x: 2 TCs split the grid
            vmem_limit_bytes=32 * 1024 * 1024,     # safe on v5e / v6e / v7x
        ),
    )(x_pf, w_slab, b_slab, mask)

    # Crop halo / lane padding / batch padding and return NCHW.
    y = out.reshape(N_pad, NPP)[:N, :NP].reshape(N, HP, WP)[:, 1:H + 1, 1:W + 1]
    return y[:, None, :, :]


# ------------------------- parameters & reference -------------------------- #
def init_params(key):
    """PyTorch Conv2d default init (U[-1/sqrt(fan_in), +...]), OIHW layout."""
    channels = [1, 16, 32, 16, 1]
    params = []
    for i in range(4):
        cin, cout = channels[i], channels[i + 1]
        key, kw, kb = jax.random.split(key, 3)
        bound = float(cin * 9) ** -0.5
        w = jax.random.uniform(kw, (cout, cin, 3, 3), jnp.float32, -bound, bound)
        b = jax.random.uniform(kb, (cout,), jnp.float32, -bound, bound)
        params.append((w, b))
    return params


def ref_forward(x_nchw, params):
    """Pure-JAX reference (same semantics as the PyTorch module)."""
    x = x_nchw.astype(jnp.float32)
    relus = [True, True, True, False]
    for (w, b), r in zip(params, relus):
        x = lax.conv_general_dilated(
            x, w, window_strides=(1, 1), padding="SAME",
            dimension_numbers=("NCHW", "OIHW", "NCHW"),
            precision=lax.Precision.HIGHEST)
        x = x + b[None, :, None, None]
        if r:
            x = jnp.maximum(x, 0.0)
    return x


# --------------------------------- main ------------------------------------ #
if __name__ == "__main__":
    key = jax.random.PRNGKey(0)
    key, kx = jax.random.split(key)
    x = jax.random.normal(kx, (8, 1, 16, 16), jnp.float32)   # NCHW like PyTorch

    params = init_params(jax.random.PRNGKey(42))

    out = jax.jit(simple_unet_forward)(x, params)
    out = jax.block_until_ready(out)

    ref = ref_forward(x, params)
    assert out.shape == (8, 1, 16, 16), out.shape
    # Tolerance covers MXU f32 multi-pass rounding differences vs the XLA
    # HIGHEST-precision reference; structural bugs would be >> this.
    err = float(jnp.max(jnp.abs(out - ref)))
    assert err < 5e-3, err

    print("KERNEL_OK")
</pallas_src>

<mosaic_0001>
module attributes {stable_mosaic.version = 11 : i64} {
  func.func @unet_kernel(%arg0: i32, %arg1: memref<1x1x1536xf32, #tpu.memory_space<vmem>>, %arg2: memref<9x72x32xf32, #tpu.memory_space<vmem>>, %arg3: memref<32x4xf32, #tpu.memory_space<vmem>>, %arg4: memref<1x1536xf32, #tpu.memory_space<vmem>>, %arg5: memref<1x1x1536xf32, #tpu.memory_space<vmem>>) attributes {dimension_semantics = [#tpu.dimension_semantics<parallel>], iteration_bounds = array<i64: 2>, scalar_prefetch = 0 : i64, scratch_operands = 0 : i64, tpu.core_type = #tpu.core_type<tc>, window_params = [{transform_indices = @transform_0, window_bounds = array<i64: 1, 1, 1536>}, {pipeline_mode = #tpu.pipeline_mode<synchronous>, transform_indices = @transform_1, window_bounds = array<i64: 9, 72, 32>}, {pipeline_mode = #tpu.pipeline_mode<synchronous>, transform_indices = @transform_2, window_bounds = array<i64: 32, 4>}, {pipeline_mode = #tpu.pipeline_mode<synchronous>, transform_indices = @transform_3, window_bounds = array<i64: 1, 1536>}, {transform_indices = @transform_4, window_bounds = array<i64: 1, 1, 1536>}]} {
    %c0 = arith.constant 0 : index
    %c0_0 = arith.constant 0 : index
    %0 = vector.load %arg4[%c0, %c0_0] : memref<1x1536xf32, #tpu.memory_space<vmem>>, vector<1x1536xf32>
    %c0_1 = arith.constant 0 : index
    %c0_2 = arith.constant 0 : index
    %1 = vector.load %arg3[%c0_1, %c0_2] : memref<32x4xf32, #tpu.memory_space<vmem>>, vector<32x4xf32>
    %c0_3 = arith.constant 0 : index
    %c0_4 = arith.constant 0 : index
    %c0_5 = arith.constant 0 : index
    %2 = vector.load %arg1[%c0_3, %c0_4, %c0_5] : memref<1x1x1536xf32, #tpu.memory_space<vmem>>, vector<1x1x1536xf32>
    %3 = vector.shape_cast %2 : vector<1x1x1536xf32> to vector<1x1536xf32>
    %c0_6 = arith.constant 0 : index
    %c56 = arith.constant 56 : index
    %c0_7 = arith.constant 0 : index
    %4 = vector.load %arg2[%c0_6, %c56, %c0_7] : memref<9x72x32xf32, #tpu.memory_space<vmem>>, vector<1x16x1xf32>
    %5 = vector.shape_cast %4 : vector<1x16x1xf32> to vector<16x1xf32>
    %c19_i32 = arith.constant 19 : i32
    %6 = tpu.dynamic_rotate %3 by %c19_i32 dim 1 : vector<1x1536xf32>, i32 -> vector<1x1536xf32>
    %7 = vector.broadcast %5 : vector<16x1xf32> to vector<16x1536xf32>
    %8 = vector.broadcast %6 : vector<1x1536xf32> to vector<16x1536xf32>
    %9 = arith.mulf %7, %8 : vector<16x1536xf32>
    %c1 = arith.constant 1 : index
    %c56_8 = arith.constant 56 : index
    %c0_9 = arith.constant 0 : index
    %10 = vector.load %arg2[%c1, %c56_8, %c0_9] : memref<9x72x32xf32, #tpu.memory_space<vmem>>, vector<1x16x1xf32>
    %11 = vector.shape_cast %10 : vector<1x16x1xf32> to vector<16x1xf32>
    %c18_i32 = arith.constant 18 : i32
    %12 = tpu.dynamic_rotate %3 by %c18_i32 dim 1 : vector<1x1536xf32>, i32 -> vector<1x1536xf32>
    %13 = vector.broadcast %11 : vector<16x1xf32> to vector<16x1536xf32>
    %14 = vector.broadcast %12 : vector<1x1536xf32> to vector<16x1536xf32>
    %15 = arith.mulf %13, %14 : vector<16x1536xf32>
    %16 = arith.addf %9, %15 : vector<16x1536xf32>
    %c2 = arith.constant 2 : index
    %c56_10 = arith.constant 56 : index
    %c0_11 = arith.constant 0 : index
    %17 = vector.load %arg2[%c2, %c56_10, %c0_11] : memref<9x72x32xf32, #tpu.memory_space<vmem>>, vector<1x16x1xf32>
    %18 = vector.shape_cast %17 : vector<1x16x1xf32> to vector<16x1xf32>
    %c17_i32 = arith.constant 17 : i32
    %19 = tpu.dynamic_rotate %3 by %c17_i32 dim 1 : vector<1x1536xf32>, i32 -> vector<1x1536xf32>
    %20 = vector.broadcast %18 : vector<16x1xf32> to vector<16x1536xf32>
    %21 = vector.broadcast %19 : vector<1x1536xf32> to vector<16x1536xf32>
    %22 = arith.mulf %20, %21 : vector<16x1536xf32>
    %23 = arith.addf %16, %22 : vector<16x1536xf32>
    %c3 = arith.constant 3 : index
    %c56_12 = arith.constant 56 : index
    %c0_13 = arith.constant 0 : index
    %24 = vector.load %arg2[%c3, %c56_12, %c0_13] : memref<9x72x32xf32, #tpu.memory_space<vmem>>, vector<1x16x1xf32>
    %25 = vector.shape_cast %24 : vector<1x16x1xf32> to vector<16x1xf32>
    %c1_i32 = arith.constant 1 : i32
    %26 = tpu.dynamic_rotate %3 by %c1_i32 dim 1 : vector<1x1536xf32>, i32 -> vector<1x1536xf32>
    %27 = vector.broadcast %25 : vector<16x1xf32> to vector<16x1536xf32>
    %28 = vector.broadcast %26 : vector<1x1536xf32> to vector<16x1536xf32>
    %29 = arith.mulf %27, %28 : vector<16x1536xf32>
    %30 = arith.addf %23, %29 : vector<16x1536xf32>
    %c4 = arith.constant 4 : index
    %c56_14 = arith.constant 56 : index
    %c0_15 = arith.constant 0 : index
    %31 = vector.load %arg2[%c4, %c56_14, %c0_15] : memref<9x72x32xf32, #tpu.memory_space<vmem>>, vector<1x16x1xf32>
    %32 = vector.shape_cast %31 : vector<1x16x1xf32> to vector<16x1xf32>
    %33 = vector.broadcast %32 : vector<16x1xf32> to vector<16x1536xf32>
    %34 = vector.broadcast %3 : vector<1x1536xf32> to vector<16x1536xf32>
    %35 = arith.mulf %33, %34 : vector<16x1536xf32>
    %36 = arith.addf %30, %35 : vector<16x1536xf32>
    %c5 = arith.constant 5 : index
    %c56_16 = arith.constant 56 : index
    %c0_17 = arith.constant 0 : index
    %37 = vector.load %arg2[%c5, %c56_16, %c0_17] : memref<9x72x32xf32, #tpu.memory_space<vmem>>, vector<1x16x1xf32>
    %38 = vector.shape_cast %37 : vector<1x16x1xf32> to vector<16x1xf32>
    %c1535_i32 = arith.constant 1535 : i32
    %39 = tpu.dynamic_rotate %3 by %c1535_i32 dim 1 : vector<1x1536xf32>, i32 -> vector<1x1536xf32>
    %40 = vector.broadcast %38 : vector<16x1xf32> to vector<16x1536xf32>
    %41 = vector.broadcast %39 : vector<1x1536xf32> to vector<16x1536xf32>
    %42 = arith.mulf %40, %41 : vector<16x1536xf32>
    %43 = arith.addf %36, %42 : vector<16x1536xf32>
    %c6 = arith.constant 6 : index
    %c56_18 = arith.constant 56 : index
    %c0_19 = arith.constant 0 : index
    %44 = vector.load %arg2[%c6, %c56_18, %c0_19] : memref<9x72x32xf32, #tpu.memory_space<vmem>>, vector<1x16x1xf32>
    %45 = vector.shape_cast %44 : vector<1x16x1xf32> to vector<16x1xf32>
    %c1519_i32 = arith.constant 1519 : i32
    %46 = tpu.dynamic_rotate %3 by %c1519_i32 dim 1 : vector<1x1536xf32>, i32 -> vector<1x1536xf32>
    %47 = vector.broadcast %45 : vector<16x1xf32> to vector<16x1536xf32>
    %48 = vector.broadcast %46 : vector<1x1536xf32> to vector<16x1536xf32>
    %49 = arith.mulf %47, %48 : vector<16x1536xf32>
    %50 = arith.addf %43, %49 : vector<16x1536xf32>
    %c7 = arith.constant 7 : index
    %c56_20 = arith.constant 56 : index
    %c0_21 = arith.constant 0 : index
    %51 = vector.load %arg2[%c7, %c56_20, %c0_21] : memref<9x72x32xf32, #tpu.memory_space<vmem>>, vector<1x16x1xf32>
    %52 = vector.shape_cast %51 : vector<1x16x1xf32> to vector<16x1xf32>
    %c1518_i32 = arith.constant 1518 : i32
    %53 = tpu.dynamic_rotate %3 by %c1518_i32 dim 1 : vector<1x1536xf32>, i32 -> vector<1x1536xf32>
    %54 = vector.broadcast %52 : vector<16x1xf32> to vector<16x1536xf32>
    %55 = vector.broadcast %53 : vector<1x1536xf32> to vector<16x1536xf32>
    %56 = arith.mulf %54, %55 : vector<16x1536xf32>
    %57 = arith.addf %50, %56 : vector<16x1536xf32>
    %c8 = arith.constant 8 : index
    %c56_22 = arith.constant 56 : index
    %c0_23 = arith.constant 0 : index
    %58 = vector.load %arg2[%c8, %c56_22, %c0_23] : memref<9x72x32xf32, #tpu.memory_space<vmem>>, vector<1x16x1xf32>
    %59 = vector.shape_cast %58 : vector<1x16x1xf32> to vector<16x1xf32>
    %c1517_i32 = arith.constant 1517 : i32
    %60 = tpu.dynamic_rotate %3 by %c1517_i32 dim 1 : vector<1x1536xf32>, i32 -> vector<1x1536xf32>
    %61 = vector.broadcast %59 : vector<16x1xf32> to vector<16x1536xf32>
    %62 = vector.broadcast %60 : vector<1x1536xf32> to vector<16x1536xf32>
    %63 = arith.mulf %61, %62 : vector<16x1536xf32>
    %64 = arith.addf %57, %63 : vector<16x1536xf32>
    %65 = vector.extract_strided_slice %1 {offsets = [0, 0], sizes = [16, 1], strides = [1, 1]} : vector<32x4xf32> to vector<16x1xf32>
    %66 = vector.broadcast %65 : vector<16x1xf32> to vector<16x1536xf32>
    %67 = arith.addf %64, %66 : vector<16x1536xf32>
    %68 = vector.broadcast %0 : vector<1x1536xf32> to vector<16x1536xf32>
    %69 = arith.mulf %67, %68 : vector<16x1536xf32>
    %cst = arith.constant 0.000000e+00 : f32
    %70 = vector.broadcast %cst : f32 to vector<16x1536xf32>
    %71 = arith.maximumf %69, %70 : vector<16x1536xf32>
    %72 = vector.extract_strided_slice %1 {offsets = [0, 1], sizes = [32, 1], strides = [1, 1]} : vector<32x4xf32> to vector<32x1xf32>
    %c0_24 = arith.constant 0 : index
    %c0_25 = arith.constant 0 : index
    %c0_26 = arith.constant 0 : index
    %73 = vector.load %arg2[%c0_24, %c0_25, %c0_26] : memref<9x72x32xf32, #tpu.memory_space<vmem>>, vector<1x32x16xf32>
    %74 = vector.shape_cast %73 : vector<1x32x16xf32> to vector<32x16xf32>
    %c19_i32_27 = arith.constant 19 : i32
    %75 = tpu.dynamic_rotate %71 by %c19_i32_27 dim 1 : vector<16x1536xf32>, i32 -> vector<16x1536xf32>
    %cst_28 = arith.constant dense<0.000000e+00> : vector<32x1536xf32>
    %76 = tpu.matmul %74, %75, %cst_28 {dimension_numbers = #tpu.dot_dimension_numbers<[1], [0], [0], [1], [0, 0, 1, 1], [], []>} : vector<32x16xf32>, vector<16x1536xf32>, vector<32x1536xf32> -> vector<32x1536xf32>
    %c1_29 = arith.constant 1 : index
    %c0_30 = arith.constant 0 : index
    %c0_31 = arith.constant 0 : index
    %77 = vector.load %arg2[%c1_29, %c0_30, %c0_31] : memref<9x72x32xf32, #tpu.memory_space<vmem>>, vector<1x32x16xf32>
    %78 = vector.shape_cast %77 : vector<1x32x16xf32> to vector<32x16xf32>
    %c18_i32_32 = arith.constant 18 : i32
    %79 = tpu.dynamic_rotate %71 by %c18_i32_32 dim 1 : vector<16x1536xf32>, i32 -> vector<16x1536xf32>
    %cst_33 = arith.constant dense<0.000000e+00> : vector<32x1536xf32>
    %80 = tpu.matmul %78, %79, %cst_33 {dimension_numbers = #tpu.dot_dimension_numbers<[1], [0], [0], [1], [0, 0, 1, 1], [], []>} : vector<32x16xf32>, vector<16x1536xf32>, vector<32x1536xf32> -> vector<32x1536xf32>
    %81 = arith.addf %76, %80 : vector<32x1536xf32>
    %c2_34 = arith.constant 2 : index
    %c0_35 = arith.constant 0 : index
    %c0_36 = arith.constant 0 : index
    %82 = vector.load %arg2[%c2_34, %c0_35, %c0_36] : memref<9x72x32xf32, #tpu.memory_space<vmem>>, vector<1x32x16xf32>
    %83 = vector.shape_cast %82 : vector<1x32x16xf32> to vector<32x16xf32>
    %c17_i32_37 = arith.constant 17 : i32
    %84 = tpu.dynamic_rotate %71 by %c17_i32_37 dim 1 : vector<16x1536xf32>, i32 -> vector<16x1536xf32>
    %cst_38 = arith.constant dense<0.000000e+00> : vector<32x1536xf32>
    %85 = tpu.matmul %83, %84, %cst_38 {dimension_numbers = #tpu.dot_dimension_numbers<[1], [0], [0], [1], [0, 0, 1, 1], [], []>} : vector<32x16xf32>, vector<16x1536xf32>, vector<32x1536xf32> -> vector<32x1536xf32>
    %86 = arith.addf %81, %85 : vector<32x1536xf32>
    %c3_39 = arith.constant 3 : index
    %c0_40 = arith.constant 0 : index
    %c0_41 = arith.constant 0 : index
    %87 = vector.load %arg2[%c3_39, %c0_40, %c0_41] : memref<9x72x32xf32, #tpu.memory_space<vmem>>, vector<1x32x16xf32>
    %88 = vector.shape_cast %87 : vector<1x32x16xf32> to vector<32x16xf32>
    %c1_i32_42 = arith.constant 1 : i32
    %89 = tpu.dynamic_rotate %71 by %c1_i32_42 dim 1 : vector<16x1536xf32>, i32 -> vector<16x1536xf32>
    %cst_43 = arith.constant dense<0.000000e+00> : vector<32x1536xf32>
    %90 = tpu.matmul %88, %89, %cst_43 {dimension_numbers = #tpu.dot_dimension_numbers<[1], [0], [0], [1], [0, 0, 1, 1], [], []>} : vector<32x16xf32>, vector<16x1536xf32>, vector<32x1536xf32> -> vector<32x1536xf32>
    %91 = arith.addf %86, %90 : vector<32x1536xf32>
    %c4_44 = arith.constant 4 : index
    %c0_45 = arith.constant 0 : index
    %c0_46 = arith.constant 0 : index
    %92 = vector.load %arg2[%c4_44, %c0_45, %c0_46] : memref<9x72x32xf32, #tpu.memory_space<vmem>>, vector<1x32x16xf32>
    %93 = vector.shape_cast %92 : vector<1x32x16xf32> to vector<32x16xf32>
    %cst_47 = arith.constant dense<0.000000e+00> : vector<32x1536xf32>
    %94 = tpu.matmul %93, %71, %cst_47 {dimension_numbers = #tpu.dot_dimension_numbers<[1], [0], [0], [1], [0, 0, 1, 1], [], []>} : vector<32x16xf32>, vector<16x1536xf32>, vector<32x1536xf32> -> vector<32x1536xf32>
    %95 = arith.addf %91, %94 : vector<32x1536xf32>
    %c5_48 = arith.constant 5 : index
    %c0_49 = arith.constant 0 : index
    %c0_50 = arith.constant 0 : index
    %96 = vector.load %arg2[%c5_48, %c0_49, %c0_50] : memref<9x72x32xf32, #tpu.memory_space<vmem>>, vector<1x32x16xf32>
    %97 = vector.shape_cast %96 : vector<1x32x16xf32> to vector<32x16xf32>
    %c1535_i32_51 = arith.constant 1535 : i32
    %98 = tpu.dynamic_rotate %71 by %c1535_i32_51 dim 1 : vector<16x1536xf32>, i32 -> vector<16x1536xf32>
    %cst_52 = arith.constant dense<0.000000e+00> : vector<32x1536xf32>
    %99 = tpu.matmul %97, %98, %cst_52 {dimension_numbers = #tpu.dot_dimension_numbers<[1], [0], [0], [1], [0, 0, 1, 1], [], []>} : vector<32x16xf32>, vector<16x1536xf32>, vector<32x1536xf32> -> vector<32x1536xf32>
    %100 = arith.addf %95, %99 : vector<32x1536xf32>
    %c6_53 = arith.constant 6 : index
    %c0_54 = arith.constant 0 : index
    %c0_55 = arith.constant 0 : index
    %101 = vector.load %arg2[%c6_53, %c0_54, %c0_55] : memref<9x72x32xf32, #tpu.memory_space<vmem>>, vector<1x32x16xf32>
    %102 = vector.shape_cast %101 : vector<1x32x16xf32> to vector<32x16xf32>
    %c1519_i32_56 = arith.constant 1519 : i32
    %103 = tpu.dynamic_rotate %71 by %c1519_i32_56 dim 1 : vector<16x1536xf32>, i32 -> vector<16x1536xf32>
    %cst_57 = arith.constant dense<0.000000e+00> : vector<32x1536xf32>
    %104 = tpu.matmul %102, %103, %cst_57 {dimension_numbers = #tpu.dot_dimension_numbers<[1], [0], [0], [1], [0, 0, 1, 1], [], []>} : vector<32x16xf32>, vector<16x1536xf32>, vector<32x1536xf32> -> vector<32x1536xf32>
    %105 = arith.addf %100, %104 : vector<32x1536xf32>
    %c7_58 = arith.constant 7 : index
    %c0_59 = arith.constant 0 : index
    %c0_60 = arith.constant 0 : index
    %106 = vector.load %arg2[%c7_58, %c0_59, %c0_60] : memref<9x72x32xf32, #tpu.memory_space<vmem>>, vector<1x32x16xf32>
    %107 = vector.shape_cast %106 : vector<1x32x16xf32> to vector<32x16xf32>
    %c1518_i32_61 = arith.constant 1518 : i32
    %108 = tpu.dynamic_rotate %71 by %c1518_i32_61 dim 1 : vector<16x1536xf32>, i32 -> vector<16x1536xf32>
    %cst_62 = arith.constant dense<0.000000e+00> : vector<32x1536xf32>
    %109 = tpu.matmul %107, %108, %cst_62 {dimension_numbers = #tpu.dot_dimension_numbers<[1], [0], [0], [1], [0, 0, 1, 1], [], []>} : vector<32x16xf32>, vector<16x1536xf32>, vector<32x1536xf32> -> vector<32x1536xf32>
    %110 = arith.addf %105, %109 : vector<32x1536xf32>
    %c8_63 = arith.constant 8 : index
    %c0_64 = arith.constant 0 : index
    %c0_65 = arith.constant 0 : index
    %111 = vector.load %arg2[%c8_63, %c0_64, %c0_65] : memref<9x72x32xf32, #tpu.memory_space<vmem>>, vector<1x32x16xf32>
    %112 = vector.shape_cast %111 : vector<1x32x16xf32> to vector<32x16xf32>
    %c1517_i32_66 = arith.constant 1517 : i32
    %113 = tpu.dynamic_rotate %71 by %c1517_i32_66 dim 1 : vector<16x1536xf32>, i32 -> vector<16x1536xf32>
    %cst_67 = arith.constant dense<0.000000e+00> : vector<32x1536xf32>
    %114 = tpu.matmul %112, %113, %cst_67 {dimension_numbers = #tpu.dot_dimension_numbers<[1], [0], [0], [1], [0, 0, 1, 1], [], []>} : vector<32x16xf32>, vector<16x1536xf32>, vector<32x1536xf32> -> vector<32x1536xf32>
    %115 = arith.addf %110, %114 : vector<32x1536xf32>
    %116 = vector.broadcast %72 : vector<32x1xf32> to vector<32x1536xf32>
    %117 = arith.addf %115, %116 : vector<32x1536xf32>
    %118 = vector.broadcast %0 : vector<1x1536xf32> to vector<32x1536xf32>
    %119 = arith.mulf %117, %118 : vector<32x1536xf32>
    %cst_68 = arith.constant 0.000000e+00 : f32
    %120 = vector.broadcast %cst_68 : f32 to vector<32x1536xf32>
    %121 = arith.maximumf %119, %120 : vector<32x1536xf32>
    %122 = vector.extract_strided_slice %1 {offsets = [0, 2], sizes = [16, 1], strides = [1, 1]} : vector<32x4xf32> to vector<16x1xf32>
    %c0_69 = arith.constant 0 : index
    %c32 = arith.constant 32 : index
    %c0_70 = arith.constant 0 : index
    %123 = vector.load %arg2[%c0_69, %c32, %c0_70] : memref<9x72x32xf32, #tpu.memory_space<vmem>>, vector<1x16x32xf32>
    %124 = vector.shape_cast %123 : vector<1x16x32xf32> to vector<16x32xf32>
    %c19_i32_71 = arith.constant 19 : i32
    %125 = tpu.dynamic_rotate %121 by %c19_i32_71 dim 1 : vector<32x1536xf32>, i32 -> vector<32x1536xf32>
    %cst_72 = arith.constant dense<0.000000e+00> : vector<16x1536xf32>
    %126 = tpu.matmul %124, %125, %cst_72 {dimension_numbers = #tpu.dot_dimension_numbers<[1], [0], [0], [1], [0, 0, 1, 1], [], []>} : vector<16x32xf32>, vector<32x1536xf32>, vector<16x1536xf32> -> vector<16x1536xf32>
    %c1_73 = arith.constant 1 : index
    %c32_74 = arith.constant 32 : index
    %c0_75 = arith.constant 0 : index
    %127 = vector.load %arg2[%c1_73, %c32_74, %c0_75] : memref<9x72x32xf32, #tpu.memory_space<vmem>>, vector<1x16x32xf32>
    %128 = vector.shape_cast %127 : vector<1x16x32xf32> to vector<16x32xf32>
    %c18_i32_76 = arith.constant 18 : i32
    %129 = tpu.dynamic_rotate %121 by %c18_i32_76 dim 1 : vector<32x1536xf32>, i32 -> vector<32x1536xf32>
    %cst_77 = arith.constant dense<0.000000e+00> : vector<16x1536xf32>
    %130 = tpu.matmul %128, %129, %cst_77 {dimension_numbers = #tpu.dot_dimension_numbers<[1], [0], [0], [1], [0, 0, 1, 1], [], []>} : vector<16x32xf32>, vector<32x1536xf32>, vector<16x1536xf32> -> vector<16x1536xf32>
    %131 = arith.addf %126, %130 : vector<16x1536xf32>
    %c2_78 = arith.constant 2 : index
    %c32_79 = arith.constant 32 : index
    %c0_80 = arith.constant 0 : index
    %132 = vector.load %arg2[%c2_78, %c32_79, %c0_80] : memref<9x72x32xf32, #tpu.memory_space<vmem>>, vector<1x16x32xf32>
    %133 = vector.shape_cast %132 : vector<1x16x32xf32> to vector<16x32xf32>
    %c17_i32_81 = arith.constant 17 : i32
    %134 = tpu.dynamic_rotate %121 by %c17_i32_81 dim 1 : vector<32x1536xf32>, i32 -> vector<32x1536xf32>
    %cst_82 = arith.constant dense<0.000000e+00> : vector<16x1536xf32>
    %135 = tpu.matmul %133, %134, %cst_82 {dimension_numbers = #tpu.dot_dimension_numbers<[1], [0], [0], [1], [0, 0, 1, 1], [], []>} : vector<16x32xf32>, vector<32x1536xf32>, vector<16x1536xf32> -> vector<16x1536xf32>
    %136 = arith.addf %131, %135 : vector<16x1536xf32>
    %c3_83 = arith.constant 3 : index
    %c32_84 = arith.constant 32 : index
    %c0_85 = arith.constant 0 : index
    %137 = vector.load %arg2[%c3_83, %c32_84, %c0_85] : memref<9x72x32xf32, #tpu.memory_space<vmem>>, vector<1x16x32xf32>
    %138 = vector.shape_cast %137 : vector<1x16x32xf32> to vector<16x32xf32>
    %c1_i32_86 = arith.constant 1 : i32
    %139 = tpu.dynamic_rotate %121 by %c1_i32_86 dim 1 : vector<32x1536xf32>, i32 -> vector<32x1536xf32>
    %cst_87 = arith.constant dense<0.000000e+00> : vector<16x1536xf32>
    %140 = tpu.matmul %138, %139, %cst_87 {dimension_numbers = #tpu.dot_dimension_numbers<[1], [0], [0], [1], [0, 0, 1, 1], [], []>} : vector<16x32xf32>, vector<32x1536xf32>, vector<16x1536xf32> -> vector<16x1536xf32>
    %141 = arith.addf %136, %140 : vector<16x1536xf32>
    %c4_88 = arith.constant 4 : index
    %c32_89 = arith.constant 32 : index
    %c0_90 = arith.constant 0 : index
    %142 = vector.load %arg2[%c4_88, %c32_89, %c0_90] : memref<9x72x32xf32, #tpu.memory_space<vmem>>, vector<1x16x32xf32>
    %143 = vector.shape_cast %142 : vector<1x16x32xf32> to vector<16x32xf32>
    %cst_91 = arith.constant dense<0.000000e+00> : vector<16x1536xf32>
    %144 = tpu.matmul %143, %121, %cst_91 {dimension_numbers = #tpu.dot_dimension_numbers<[1], [0], [0], [1], [0, 0, 1, 1], [], []>} : vector<16x32xf32>, vector<32x1536xf32>, vector<16x1536xf32> -> vector<16x1536xf32>
    %145 = arith.addf %141, %144 : vector<16x1536xf32>
    %c5_92 = arith.constant 5 : index
    %c32_93 = arith.constant 32 : index
    %c0_94 = arith.constant 0 : index
    %146 = vector.load %arg2[%c5_92, %c32_93, %c0_94] : memref<9x72x32xf32, #tpu.memory_space<vmem>>, vector<1x16x32xf32>
    %147 = vector.shape_cast %146 : vector<1x16x32xf32> to vector<16x32xf32>
    %c1535_i32_95 = arith.constant 1535 : i32
    %148 = tpu.dynamic_rotate %121 by %c1535_i32_95 dim 1 : vector<32x1536xf32>, i32 -> vector<32x1536xf32>
    %cst_96 = arith.constant dense<0.000000e+00> : vector<16x1536xf32>
    %149 = tpu.matmul %147, %148, %cst_96 {dimension_numbers = #tpu.dot_dimension_numbers<[1], [0], [0], [1], [0, 0, 1, 1], [], []>} : vector<16x32xf32>, vector<32x1536xf32>, vector<16x1536xf32> -> vector<16x1536xf32>
    %150 = arith.addf %145, %149 : vector<16x1536xf32>
    %c6_97 = arith.constant 6 : index
    %c32_98 = arith.constant 32 : index
    %c0_99 = arith.constant 0 : index
    %151 = vector.load %arg2[%c6_97, %c32_98, %c0_99] : memref<9x72x32xf32, #tpu.memory_space<vmem>>, vector<1x16x32xf32>
    %152 = vector.shape_cast %151 : vector<1x16x32xf32> to vector<16x32xf32>
    %c1519_i32_100 = arith.constant 1519 : i32
    %153 = tpu.dynamic_rotate %121 by %c1519_i32_100 dim 1 : vector<32x1536xf32>, i32 -> vector<32x1536xf32>
    %cst_101 = arith.constant dense<0.000000e+00> : vector<16x1536xf32>
    %154 = tpu.matmul %152, %153, %cst_101 {dimension_numbers = #tpu.dot_dimension_numbers<[1], [0], [0], [1], [0, 0, 1, 1], [], []>} : vector<16x32xf32>, vector<32x1536xf32>, vector<16x1536xf32> -> vector<16x1536xf32>
    %155 = arith.addf %150, %154 : vector<16x1536xf32>
    %c7_102 = arith.constant 7 : index
    %c32_103 = arith.constant 32 : index
    %c0_104 = arith.constant 0 : index
    %156 = vector.load %arg2[%c7_102, %c32_103, %c0_104] : memref<9x72x32xf32, #tpu.memory_space<vmem>>, vector<1x16x32xf32>
    %157 = vector.shape_cast %156 : vector<1x16x32xf32> to vector<16x32xf32>
    %c1518_i32_105 = arith.constant 1518 : i32
    %158 = tpu.dynamic_rotate %121 by %c1518_i32_105 dim 1 : vector<32x1536xf32>, i32 -> vector<32x1536xf32>
    %cst_106 = arith.constant dense<0.000000e+00> : vector<16x1536xf32>
    %159 = tpu.matmul %157, %158, %cst_106 {dimension_numbers = #tpu.dot_dimension_numbers<[1], [0], [0], [1], [0, 0, 1, 1], [], []>} : vector<16x32xf32>, vector<32x1536xf32>, vector<16x1536xf32> -> vector<16x1536xf32>
    %160 = arith.addf %155, %159 : vector<16x1536xf32>
    %c8_107 = arith.constant 8 : index
    %c32_108 = arith.constant 32 : index
    %c0_109 = arith.constant 0 : index
    %161 = vector.load %arg2[%c8_107, %c32_108, %c0_109] : memref<9x72x32xf32, #tpu.memory_space<vmem>>, vector<1x16x32xf32>
    %162 = vector.shape_cast %161 : vector<1x16x32xf32> to vector<16x32xf32>
    %c1517_i32_110 = arith.constant 1517 : i32
    %163 = tpu.dynamic_rotate %121 by %c1517_i32_110 dim 1 : vector<32x1536xf32>, i32 -> vector<32x1536xf32>
    %cst_111 = arith.constant dense<0.000000e+00> : vector<16x1536xf32>
    %164 = tpu.matmul %162, %163, %cst_111 {dimension_numbers = #tpu.dot_dimension_numbers<[1], [0], [0], [1], [0, 0, 1, 1], [], []>} : vector<16x32xf32>, vector<32x1536xf32>, vector<16x1536xf32> -> vector<16x1536xf32>
    %165 = arith.addf %160, %164 : vector<16x1536xf32>
    %166 = vector.broadcast %122 : vector<16x1xf32> to vector<16x1536xf32>
    %167 = arith.addf %165, %166 : vector<16x1536xf32>
    %168 = vector.broadcast %0 : vector<1x1536xf32> to vector<16x1536xf32>
    %169 = arith.mulf %167, %168 : vector<16x1536xf32>
    %cst_112 = arith.constant 0.000000e+00 : f32
    %170 = vector.broadcast %cst_112 : f32 to vector<16x1536xf32>
    %171 = arith.maximumf %169, %170 : vector<16x1536xf32>
    %172 = vector.extract_strided_slice %1 {offsets = [0, 3], sizes = [8, 1], strides = [1, 1]} : vector<32x4xf32> to vector<8x1xf32>
    %c0_113 = arith.constant 0 : index
    %c48 = arith.constant 48 : index
    %c0_114 = arith.constant 0 : index
    %173 = vector.load %arg2[%c0_113, %c48, %c0_114] : memref<9x72x32xf32, #tpu.memory_space<vmem>>, vector<1x8x16xf32>
    %174 = vector.shape_cast %173 : vector<1x8x16xf32> to vector<8x16xf32>
    %c19_i32_115 = arith.constant 19 : i32
    %175 = tpu.dynamic_rotate %171 by %c19_i32_115 dim 1 : vector<16x1536xf32>, i32 -> vector<16x1536xf32>
    %cst_116 = arith.constant dense<0.000000e+00> : vector<8x1536xf32>
    %176 = tpu.matmul %174, %175, %cst_116 {dimension_numbers = #tpu.dot_dimension_numbers<[1], [0], [0], [1], [0, 0, 1, 1], [], []>} : vector<8x16xf32>, vector<16x1536xf32>, vector<8x1536xf32> -> vector<8x1536xf32>
    %c1_117 = arith.constant 1 : index
    %c48_118 = arith.constant 48 : index
    %c0_119 = arith.constant 0 : index
    %177 = vector.load %arg2[%c1_117, %c48_118, %c0_119] : memref<9x72x32xf32, #tpu.memory_space<vmem>>, vector<1x8x16xf32>
    %178 = vector.shape_cast %177 : vector<1x8x16xf32> to vector<8x16xf32>
    %c18_i32_120 = arith.constant 18 : i32
    %179 = tpu.dynamic_rotate %171 by %c18_i32_120 dim 1 : vector<16x1536xf32>, i32 -> vector<16x1536xf32>
    %cst_121 = arith.constant dense<0.000000e+00> : vector<8x1536xf32>
    %180 = tpu.matmul %178, %179, %cst_121 {dimension_numbers = #tpu.dot_dimension_numbers<[1], [0], [0], [1], [0, 0, 1, 1], [], []>} : vector<8x16xf32>, vector<16x1536xf32>, vector<8x1536xf32> -> vector<8x1536xf32>
    %181 = arith.addf %176, %180 : vector<8x1536xf32>
    %c2_122 = arith.constant 2 : index
    %c48_123 = arith.constant 48 : index
    %c0_124 = arith.constant 0 : index
    %182 = vector.load %arg2[%c2_122, %c48_123, %c0_124] : memref<9x72x32xf32, #tpu.memory_space<vmem>>, vector<1x8x16xf32>
    %183 = vector.shape_cast %182 : vector<1x8x16xf32> to vector<8x16xf32>
    %c17_i32_125 = arith.constant 17 : i32
    %184 = tpu.dynamic_rotate %171 by %c17_i32_125 dim 1 : vector<16x1536xf32>, i32 -> vector<16x1536xf32>
    %cst_126 = arith.constant dense<0.000000e+00> : vector<8x1536xf32>
    %185 = tpu.matmul %183, %184, %cst_126 {dimension_numbers = #tpu.dot_dimension_numbers<[1], [0], [0], [1], [0, 0, 1, 1], [], []>} : vector<8x16xf32>, vector<16x1536xf32>, vector<8x1536xf32> -> vector<8x1536xf32>
    %186 = arith.addf %181, %185 : vector<8x1536xf32>
    %c3_127 = arith.constant 3 : index
    %c48_128 = arith.constant 48 : index
    %c0_129 = arith.constant 0 : index
    %187 = vector.load %arg2[%c3_127, %c48_128, %c0_129] : memref<9x72x32xf32, #tpu.memory_space<vmem>>, vector<1x8x16xf32>
    %188 = vector.shape_cast %187 : vector<1x8x16xf32> to vector<8x16xf32>
    %c1_i32_130 = arith.constant 1 : i32
    %189 = tpu.dynamic_rotate %171 by %c1_i32_130 dim 1 : vector<16x1536xf32>, i32 -> vector<16x1536xf32>
    %cst_131 = arith.constant dense<0.000000e+00> : vector<8x1536xf32>
    %190 = tpu.matmul %188, %189, %cst_131 {dimension_numbers = #tpu.dot_dimension_numbers<[1], [0], [0], [1], [0, 0, 1, 1], [], []>} : vector<8x16xf32>, vector<16x1536xf32>, vector<8x1536xf32> -> vector<8x1536xf32>
    %191 = arith.addf %186, %190 : vector<8x1536xf32>
    %c4_132 = arith.constant 4 : index
    %c48_133 = arith.constant 48 : index
    %c0_134 = arith.constant 0 : index
    %192 = vector.load %arg2[%c4_132, %c48_133, %c0_134] : memref<9x72x32xf32, #tpu.memory_space<vmem>>, vector<1x8x16xf32>
    %193 = vector.shape_cast %192 : vector<1x8x16xf32> to vector<8x16xf32>
    %cst_135 = arith.constant dense<0.000000e+00> : vector<8x1536xf32>
    %194 = tpu.matmul %193, %171, %cst_135 {dimension_numbers = #tpu.dot_dimension_numbers<[1], [0], [0], [1], [0, 0, 1, 1], [], []>} : vector<8x16xf32>, vector<16x1536xf32>, vector<8x1536xf32> -> vector<8x1536xf32>
    %195 = arith.addf %191, %194 : vector<8x1536xf32>
    %c5_136 = arith.constant 5 : index
    %c48_137 = arith.constant 48 : index
    %c0_138 = arith.constant 0 : index
    %196 = vector.load %arg2[%c5_136, %c48_137, %c0_138] : memref<9x72x32xf32, #tpu.memory_space<vmem>>, vector<1x8x16xf32>
    %197 = vector.shape_cast %196 : vector<1x8x16xf32> to vector<8x16xf32>
    %c1535_i32_139 = arith.constant 1535 : i32
    %198 = tpu.dynamic_rotate %171 by %c1535_i32_139 dim 1 : vector<16x1536xf32>, i32 -> vector<16x1536xf32>
    %cst_140 = arith.constant dense<0.000000e+00> : vector<8x1536xf32>
    %199 = tpu.matmul %197, %198, %cst_140 {dimension_numbers = #tpu.dot_dimension_numbers<[1], [0], [0], [1], [0, 0, 1, 1], [], []>} : vector<8x16xf32>, vector<16x1536xf32>, vector<8x1536xf32> -> vector<8x1536xf32>
    %200 = arith.addf %195, %199 : vector<8x1536xf32>
    %c6_141 = arith.constant 6 : index
    %c48_142 = arith.constant 48 : index
    %c0_143 = arith.constant 0 : index
    %201 = vector.load %arg2[%c6_141, %c48_142, %c0_143] : memref<9x72x32xf32, #tpu.memory_space<vmem>>, vector<1x8x16xf32>
    %202 = vector.shape_cast %201 : vector<1x8x16xf32> to vector<8x16xf32>
    %c1519_i32_144 = arith.constant 1519 : i32
    %203 = tpu.dynamic_rotate %171 by %c1519_i32_144 dim 1 : vector<16x1536xf32>, i32 -> vector<16x1536xf32>
    %cst_145 = arith.constant dense<0.000000e+00> : vector<8x1536xf32>
    %204 = tpu.matmul %202, %203, %cst_145 {dimension_numbers = #tpu.dot_dimension_numbers<[1], [0], [0], [1], [0, 0, 1, 1], [], []>} : vector<8x16xf32>, vector<16x1536xf32>, vector<8x1536xf32> -> vector<8x1536xf32>
    %205 = arith.addf %200, %204 : vector<8x1536xf32>
    %c7_146 = arith.constant 7 : index
    %c48_147 = arith.constant 48 : index
    %c0_148 = arith.constant 0 : index
    %206 = vector.load %arg2[%c7_146, %c48_147, %c0_148] : memref<9x72x32xf32, #tpu.memory_space<vmem>>, vector<1x8x16xf32>
    %207 = vector.shape_cast %206 : vector<1x8x16xf32> to vector<8x16xf32>
    %c1518_i32_149 = arith.constant 1518 : i32
    %208 = tpu.dynamic_rotate %171 by %c1518_i32_149 dim 1 : vector<16x1536xf32>, i32 -> vector<16x1536xf32>
    %cst_150 = arith.constant dense<0.000000e+00> : vector<8x1536xf32>
    %209 = tpu.matmul %207, %208, %cst_150 {dimension_numbers = #tpu.dot_dimension_numbers<[1], [0], [0], [1], [0, 0, 1, 1], [], []>} : vector<8x16xf32>, vector<16x1536xf32>, vector<8x1536xf32> -> vector<8x1536xf32>
    %210 = arith.addf %205, %209 : vector<8x1536xf32>
    %c8_151 = arith.constant 8 : index
    %c48_152 = arith.constant 48 : index
    %c0_153 = arith.constant 0 : index
    %211 = vector.load %arg2[%c8_151, %c48_152, %c0_153] : memref<9x72x32xf32, #tpu.memory_space<vmem>>, vector<1x8x16xf32>
    %212 = vector.shape_cast %211 : vector<1x8x16xf32> to vector<8x16xf32>
    %c1517_i32_154 = arith.constant 1517 : i32
    %213 = tpu.dynamic_rotate %171 by %c1517_i32_154 dim 1 : vector<16x1536xf32>, i32 -> vector<16x1536xf32>
    %cst_155 = arith.constant dense<0.000000e+00> : vector<8x1536xf32>
    %214 = tpu.matmul %212, %213, %cst_155 {dimension_numbers = #tpu.dot_dimension_numbers<[1], [0], [0], [1], [0, 0, 1, 1], [], []>} : vector<8x16xf32>, vector<16x1536xf32>, vector<8x1536xf32> -> vector<8x1536xf32>
    %215 = arith.addf %210, %214 : vector<8x1536xf32>
    %216 = vector.broadcast %172 : vector<8x1xf32> to vector<8x1536xf32>
    %217 = arith.addf %215, %216 : vector<8x1536xf32>
    %218 = vector.extract_strided_slice %217 {offsets = [0, 0], sizes = [1, 1536], strides = [1, 1]} : vector<8x1536xf32> to vector<1x1536xf32>
    %c0_156 = arith.constant 0 : index
    %c0_157 = arith.constant 0 : index
    %c0_158 = arith.constant 0 : index
    %219 = vector.load %arg5[%c0_156, %c0_157, %c0_158] : memref<1x1x1536xf32, #tpu.memory_space<vmem>>, vector<1x1x1536xf32>
    %220 = vector.shape_cast %219 : vector<1x1x1536xf32> to vector<1x1536xf32>
    %221 = vector.shape_cast %218 : vector<1x1536xf32> to vector<1x1x1536xf32>
    tpu.vector_store %arg5[%c0_156, %c0_157, %c0_158], %221 {strides = array<i32>} : memref<1x1x1536xf32, #tpu.memory_space<vmem>>, vector<1x1x1536xf32>,
    return
  }
  func.func @transform_0(%arg0: i32) -> (i32, i32, i32) {
    %c0_i32 = arith.constant 0 : i32
    %c0_i32_0 = arith.constant 0 : i32
    %c0_i32_1 = arith.constant 0 : i32
    return %arg0, %c0_i32, %c0_i32_0 : i32, i32, i32
  }
  func.func @transform_1(%arg0: i32) -> (i32, i32, i32) {
    %c0_i32 = arith.constant 0 : i32
    %c0_i32_0 = arith.constant 0 : i32
    %c0_i32_1 = arith.constant 0 : i32
    %c0_i32_2 = arith.constant 0 : i32
    return %c0_i32, %c0_i32_0, %c0_i32_1 : i32, i32, i32
  }
  func.func @transform_2(%arg0: i32) -> (i32, i32) {
    %c0_i32 = arith.constant 0 : i32
    %c0_i32_0 = arith.constant 0 : i32
    %c0_i32_1 = arith.constant 0 : i32
    return %c0_i32, %c0_i32_0 : i32, i32
  }
  func.func @transform_3(%arg0: i32) -> (i32, i32) {
    %c0_i32 = arith.constant 0 : i32
    %c0_i32_0 = arith.constant 0 : i32
    %c0_i32_1 = arith.constant 0 : i32
    return %c0_i32, %c0_i32_0 : i32, i32
  }
  func.func @transform_4(%arg0: i32) -> (i32, i32, i32) {
    %c0_i32 = arith.constant 0 : i32
    %c0_i32_0 = arith.constant 0 : i32
    %c0_i32_1 = arith.constant 0 : i32
    return %arg0, %c0_i32, %c0_i32_0 : i32, i32, i32
  }
}

</mosaic_0001>

<bundles_post_ra>
// kernel: simple_unet_forward.1
= control target key start
LH: loop header
LB: loop body
LE: loop exit
PB: predicated region body
PF: predicated region fallthrough
CT: control target
= control target key end

     0   :  { %s21957_s15 = smov 0   ;;  %s31473_s0 = inlined_call_operand.vmem [shape: f32[2,1,1536], index: 0, kind: input, shape index: {}]   ;;  %s31474_s1 = inlined_call_operand.vmem [shape: f32[9,72,32], index: 1, kind: input, shape index: {}]   ;;  %s31475_s2 = inlined_call_operand.vmem [shape: f32[32,4], index: 2, kind: input, shape index: {}]   ;;  %s31476_s3 = inlined_call_operand.vmem [shape: f32[1,1536], index: 3, kind: input, shape index: {}]   ;;  %s31477_s4 = inlined_call_operand.vmem [shape: f32[2,1,1536], index: 4, kind: output, shape index: {}]  }
   0x1 LB: > { %s17961_s16 = sadd.s32 4294967295, %s21916_s15   ;;  %p17965_p0 = scmp.ge.s32.totalorder %s21916_s15, 1  ;;  %s21916_s15 = sphi %s21957_s15, %s14_s15  }
   0x2   : > { %p161_p1 = scmp.lt.s32.totalorder %s21916_s15, 3 }
   0x4   : > { %p162_p2 = pnand %p17965_p0, %p161_p1 }
   0x6   : > { %165 = sbr.rel (%p162_p2) target bundleno = 2426 (0x97a), region = 36 }
   0xd   : > { %p185_p3 = scmp.lt.s32.totalorder %s17961_s16, 1  ;;  %v31478_v0 = vlaneseq  ;;  %v21918_v1 = vmov 0   ;;  %s21919_s21 = smov 19   ;;  %v202_v25 = vld [vmem:[%s31474_s1 + $0x40] sm:$0xff]  ;;  %v201_v26 = vld [vmem:[%s31474_s1 + $0x38] sm:$0xff]  ;;  %v17967_v28 = vld [vmem:[%s31474_s1 + $0x88] sm:$0xff] }
   0xe   : > { %19978 = vset.pattern.permute.xlu1 %v21918_v1  ;;  %19977 = vset.pattern.permute.xlu0 %v21918_v1  ;;  %s21920_s26 = smov 18   ;;  %v17966_v27 = vld [vmem:[%s31474_s1 + $0x80] sm:$0xff]  ;;  %s21921_s5 = smov 17   ;;  %v17968_v29 = vld [vmem:[%s31474_s1 + $0xc8] sm:$0xff]  ;;  %v17969_v30 = vld [vmem:[%s31474_s1 + $0xd0] sm:$0xff]  ;;  %vm1765_vm8 = vcmask 130048  }
   0xf   : > { %s32841_s16 = smov (!%p185_p3, %s17961_s16), 1  ;;  %v21968_v2 = vshrl.u32 %v31478_v0, 7  ;;  %s21922_s10 = smov 1   ;;  %v17970_v31 = vld [vmem:[%s31474_s1 + $0x110] sm:$0xff]  ;;  %v17971_v32 = vld [vmem:[%s31474_s1 + $0x118] sm:$0xff]  ;;  %v17973_v34 = vld [vmem:[%s31474_s1 + $0x160] sm:$0xff] }
  0x10   : > { %s19954_s17 = smul.u32 12, %s32841_s16  ;;  %v17972_v33 = vld [vmem:[%s31474_s1 + $0x158] sm:$0xff]  ;;  %s21923_s23 = smov 127   ;;  %v17974_v43 = vld [vmem:[%s31474_s1 + $0x1a0] sm:$0xff]  ;;  %v17975_v44 = vld [vmem:[%s31474_s1 + $0x1a8] sm:$0xff]  ;;  %vm7930_vm9 = vcmask 261120  }
  0x11   : > { %31872 = vst [vmem:[#allocation2_spill] sm:$0xff] %v21968_v2  ;;  %v21972_v3 = vsub.s32 0, %v21968_v2  ;;  %v21975_v4 = vsub.s32 2, %v21968_v2  ;;  %v21983_v5 = vsub.s32 3, %v21968_v2  ;;  %v21986_v6 = vsub.s32 1, %v21968_v2  ;;  %v17976_v47 = vld [vmem:[%s31474_s1 + $0x1e8] sm:$0xff] }
  0x12   : > { %s188_s20 = scalar_lea.vmem %s31473_s0, %s19954_s17  ;;  %v31479_v12 = vsub.s32 5, %v21968_v2  ;;  %v31480_v13 = vsub.s32 4, %v21968_v2  ;;  %v31481_v16 = vsub.s32 7, %v21968_v2  ;;  %v31482_v17 = vsub.s32 6, %v21968_v2  ;;  %v17977_v48 = vld [vmem:[%s31474_s1 + $0x1f0] sm:$0xff]  ;;  %v17979_v50 = vld [vmem:[%s31474_s1 + $0x238] sm:$0xff]  ;;  %s192_s8 = scalar_lea.vmem %s31477_s4, %s19954_s17 }
  0x13   : > { %31873 = vst [vmem:[#allocation3_spill] sm:$0xff] %v21975_v4  ;;  %31874 = vst [vmem:[#allocation4_spill] sm:$0xff] %v21986_v6  ;;  %v199_v7 = vld [vmem:[%s188_s20] sm:$0xff]  ;;  %v200_v20 = vld [vmem:[%s188_s20 + $0x8] sm:$0xf]  ;;  %s21924_s13 = smov 111  }
  0x14   : > { %v21989_v8 = vrot.slane %v199_v7, %v21975_v4  ;;  %v21992_v9 = vrot.slane %v199_v7, %v21972_v3  ;;  %v21999_v10 = vrot.slane %v199_v7, %v21983_v5  ;;  %v22002_v11 = vrot.slane %v199_v7, %v21986_v6  ;;  %v17978_v49 = vld [vmem:[%s31474_s1 + $0x230] sm:$0xff]  ;;  %v17980_v55 = vld [vmem:[%s31474_s1 + $0x278] sm:$0xff]  ;;  %v17981_v58 = vld [vmem:[%s31474_s1 + $0x280] sm:$0xff]  ;;  %s21925_s22 = smov 110   ;;  %s21926_s24 = smov 109  }
  0x15   : > { %v22012_v14 = vrot.slane %v199_v7, %v31479_v12  ;;  %v22016_v15 = vrot.slane %v199_v7, %v31480_v13  ;;  %v22026_v18 = vrot.slane %v199_v7, %v31481_v16  ;;  %v22030_v19 = vrot.slane %v199_v7, %v31482_v17 }
  0x16   : > { %31875 = vst [vmem:[#allocation5_spill] sm:$0xff] %v21989_v8  ;;  %31876 = vst [vmem:[#allocation6_spill] sm:$0xff] %v21992_v9  ;;  %269 = vrot.lane.b32.xlu1 %v21989_v8, %s21919_s21  ;;  %265 = vrot.lane.b32.xlu0 %v21992_v9, %s21919_s21  ;;  %v22037_v21 = vrot.slane %v200_v20, %v21986_v6  ;;  %v22040_v22 = vrot.slane %v200_v20, %v21972_v3 }
  0x17   : > { %31877 = vst [vmem:[#allocation7_spill] sm:$0xff] %v21999_v10  ;;  %31878 = vst [vmem:[#allocation8_spill] sm:$0xff] %v22002_v11  ;;  %v22047_v23 = vrot.slane %v200_v20, %v21983_v5  ;;  %v22050_v24 = vrot.slane %v200_v20, %v21975_v4 }
  0x18   : > { %31879 = vst [vmem:[#allocation9_spill] sm:$0xff] %v22012_v14  ;;  %31880 = vst [vmem:[#allocation10_spill] sm:$0xff] %v22016_v15 }
  0x19   : > { %31881 = vst [vmem:[#allocation11_spill] sm:$0xff] %v22026_v18  ;;  %31882 = vst [vmem:[#allocation12_spill] sm:$0xff] %v22030_v19 }
  0x1a   : > { %271 = vrot.lane.b32.xlu1 %v21999_v10, %s21919_s21  ;;  %267 = vrot.lane.b32.xlu0 %v22002_v11, %s21919_s21  ;;  %31883 = vst [vmem:[#allocation13_spill] sm:$0xff] %v22037_v21  ;;  %31884 = vst [vmem:[#allocation14_spill] sm:$0xff] %v22040_v22 }
  0x1b   : > { %31885 = vst [vmem:[#allocation15_spill] sm:$0xff] %v22047_v23  ;;  %31886 = vst [vmem:[#allocation16_spill] sm:$0xff] %v22050_v24 }
  0x1e   : > { %275 = vrot.lane.b32.xlu1 %v22012_v14, %s21919_s21  ;;  %273 = vrot.lane.b32.xlu0 %v22016_v15, %s21919_s21 }
  0x22   : > { %279 = vrot.lane.b32.xlu1 %v22026_v18, %s21919_s21  ;;  %277 = vrot.lane.b32.xlu0 %v22030_v19, %s21919_s21 }
  0x26   : > { %283 = vrot.lane.b32.xlu1 %v22037_v21, %s21919_s21  ;;  %281 = vrot.lane.b32.xlu0 %v22040_v22, %s21919_s21 }
  0x2a   : > { %287 = vrot.lane.b32.xlu1 %v22047_v23, %s21919_s21  ;;  %285 = vrot.lane.b32.xlu0 %v22050_v24, %s21919_s21 }
  0x2e   : > { %311 = vperm.xlu1 %19978, %v202_v25   ;;  %306 = vperm.xlu0 %19977, %v201_v26   ;;  %v195_v25 = vld [vmem:[%s31475_s2] sm:$0xff] }
  0x32   : > { %389 = vrot.lane.b32.xlu1 %v21992_v9, %s21920_s26  ;;  %391 = vrot.lane.b32.xlu0 %v22002_v11, %s21920_s26 }
  0x36   : > { %393 = vrot.lane.b32.xlu1 %v21989_v8, %s21920_s26  ;;  %395 = vrot.lane.b32.xlu0 %v21999_v10, %s21920_s26 }
  0x3a   : > { %397 = vrot.lane.b32.xlu1 %v22016_v15, %s21920_s26  ;;  %399 = vrot.lane.b32.xlu0 %v22012_v14, %s21920_s26 }
  0x3e   : > { %401 = vrot.lane.b32.xlu1 %v22030_v19, %s21920_s26  ;;  %403 = vrot.lane.b32.xlu0 %v22026_v18, %s21920_s26 }
  0x42   : > { %405 = vrot.lane.b32.xlu1 %v22040_v22, %s21920_s26  ;;  %407 = vrot.lane.b32.xlu0 %v22037_v21, %s21920_s26 }
  0x46   : > { %409 = vrot.lane.b32.xlu1 %v22050_v24, %s21920_s26  ;;  %411 = vrot.lane.b32.xlu0 %v22047_v23, %s21920_s26 }
  0x4a   : > { %428 = vperm.xlu1 %19978, %v17966_v27   ;;  %433 = vperm.xlu0 %19977, %v17967_v28   ;;  %v196_v28 = vld [vmem:[%s31475_s2 + $0x8] sm:$0xff] }
  0x4e   : > { %535 = vrot.lane.b32.xlu1 %v21992_v9, %s21921_s5  ;;  %537 = vrot.lane.b32.xlu0 %v22002_v11, %s21921_s5 }
  0x52   : > { %539 = vrot.lane.b32.xlu1 %v21989_v8, %s21921_s5  ;;  %541 = vrot.lane.b32.xlu0 %v21999_v10, %s21921_s5 }
  0x56   : > { %543 = vrot.lane.b32.xlu1 %v22016_v15, %s21921_s5  ;;  %545 = vrot.lane.b32.xlu0 %v22012_v14, %s21921_s5 }
  0x5a   : > { %547 = vrot.lane.b32.xlu1 %v22030_v19, %s21921_s5  ;;  %549 = vrot.lane.b32.xlu0 %v22026_v18, %s21921_s5 }
  0x5e   : > { %551 = vrot.lane.b32.xlu1 %v22040_v22, %s21921_s5  ;;  %553 = vrot.lane.b32.xlu0 %v22037_v21, %s21921_s5 }
  0x62   : > { %555 = vrot.lane.b32.xlu1 %v22050_v24, %s21921_s5  ;;  %557 = vrot.lane.b32.xlu0 %v22047_v23, %s21921_s5 }
  0x66   : > { %574 = vperm.xlu1 %19978, %v17968_v29   ;;  %579 = vperm.xlu0 %19977, %v17969_v30  }
  0x6a   : > { %681 = vrot.lane.b32.xlu1 %v21992_v9, %s21922_s10  ;;  %683 = vrot.lane.b32.xlu0 %v22002_v11, %s21922_s10 }
  0x6e   : > { %685 = vrot.lane.b32.xlu1 %v21989_v8, %s21922_s10  ;;  %687 = vrot.lane.b32.xlu0 %v21999_v10, %s21922_s10 }
  0x72   : > { %689 = vrot.lane.b32.xlu1 %v22016_v15, %s21922_s10  ;;  %691 = vrot.lane.b32.xlu0 %v22012_v14, %s21922_s10 }
  0x76   : > { %693 = vrot.lane.b32.xlu1 %v22030_v19, %s21922_s10  ;;  %695 = vrot.lane.b32.xlu0 %v22026_v18, %s21922_s10 }
  0x7a   : > { %697 = vrot.lane.b32.xlu1 %v22040_v22, %s21922_s10  ;;  %699 = vrot.lane.b32.xlu0 %v22037_v21, %s21922_s10 }
  0x7e   : > { %701 = vrot.lane.b32.xlu1 %v22050_v24, %s21922_s10  ;;  %703 = vrot.lane.b32.xlu0 %v22047_v23, %s21922_s10 }
  0x82   : > { %720 = vperm.xlu1 %19978, %v17970_v31   ;;  %725 = vperm.xlu0 %19977, %v17971_v32  }
  0x86   : > { %829 = vperm.xlu1 %19978, %v17972_v33   ;;  %834 = vperm.xlu0 %19977, %v17973_v34  }
  0x88   : > { %v22162_v35 = vpop.permute.xlu1 %269  ;;  %v22164_v36 = vpop.permute.xlu0 %265 }
  0x8a   : > { %888 = vrot.lane.b32.xlu1 %v21992_v9, %s21923_s23  ;;  %890 = vrot.lane.b32.xlu0 %v22002_v11, %s21923_s23 }
  0x8c   : > { %v22170_v37 = vpop.permute.xlu1 %271  ;;  %v22172_v38 = vpop.permute.xlu0 %267 }
  0x8e   : > { %892 = vrot.lane.b32.xlu1 %v21989_v8, %s21923_s23  ;;  %894 = vrot.lane.b32.xlu0 %v21999_v10, %s21923_s23 }
  0x90   : > { %v22182_v39 = vpop.permute.xlu1 %275  ;;  %v22184_v40 = vpop.permute.xlu0 %273 }
  0x92   : > { %896 = vrot.lane.b32.xlu1 %v22016_v15, %s21923_s23  ;;  %898 = vrot.lane.b32.xlu0 %v22012_v14, %s21923_s23 }
  0x94   : > { %v22190_v41 = vpop.permute.xlu1 %279  ;;  %v22192_v42 = vpop.permute.xlu0 %277 }
  0x96   : > { %900 = vrot.lane.b32.xlu1 %v22030_v19, %s21923_s23  ;;  %902 = vrot.lane.b32.xlu0 %v22026_v18, %s21923_s23 }
  0x98   : > { %v22204_v45 = vpop.permute.xlu1 %283  ;;  %v22206_v46 = vpop.permute.xlu0 %281 }
  0x9a   : > { %904 = vrot.lane.b32.xlu1 %v22040_v22, %s21923_s23  ;;  %906 = vrot.lane.b32.xlu0 %v22037_v21, %s21923_s23 }
  0x9c   : > { %v22220_v51 = vpop.permute.xlu1 %287  ;;  %v22222_v52 = vpop.permute.xlu0 %285 }
  0x9e   : > { %908 = vrot.lane.b32.xlu1 %v22050_v24, %s21923_s23  ;;  %910 = vrot.lane.b32.xlu0 %v22047_v23, %s21923_s23 }
  0xa2   : > { %927 = vperm.xlu1 %19978, %v17974_v43   ;;  %932 = vperm.xlu0 %19977, %v17975_v44   ;;  %v22309_v43 = vand.u32 127, %v31478_v0 }
  0xa4   : > { %vm291_vm0 = vcmp.lt.s32.totalorder %v22309_v43, 19  ;;  %vm413_vm1 = vcmp.lt.s32.totalorder %v22309_v43, 18  ;;  %vm559_vm2 = vcmp.lt.s32.totalorder %v22309_v43, 17  ;;  %vm705_vm3 = vcmp.lt.s32.totalorder %v22309_v43, 1 }
  0xa5   : > { %v301_v0 = vsel %vm291_vm0, %v22172_v38, %v22162_v35  ;;  %v298_v12 = vsel %vm291_vm0, %v22184_v40, %v22182_v39  ;;  %v299_v13 = vsel %vm291_vm0, %v22170_v37, %v22184_v40  ;;  %v303_v16 = vsel %vm291_vm0, %v22220_v51, %v22164_v36 }
  0xa6   : > { %1073 = vperm.xlu1 %19978, %v17976_v47   ;;  %1078 = vperm.xlu0 %19977, %v17977_v48   ;;  %vm912_vm4 = vcmp.lt.s32.totalorder %v22309_v43, 127  ;;  %vm1058_vm5 = vcmp.lt.s32.totalorder %v22309_v43, 111  ;;  %vm1204_vm6 = vcmp.lt.s32.totalorder %v22309_v43, 110  ;;  %vm1350_vm7 = vcmp.lt.s32.totalorder %v22309_v43, 109 }
  0xa7   : > { %v21931_v43 = vmov 1966171168  }
  0xaa   : > { %1219 = vperm.xlu1 %19978, %v17978_v49   ;;  %1224 = vperm.xlu0 %19977, %v17979_v50   ;;  %v300_v50 = vsel %vm291_vm0, %v22162_v35, %v22170_v37  ;;  %v297_v35 = vsel %vm291_vm0, %v22182_v39, %v22192_v42  ;;  %v295_v37 = vsel %vm291_vm0, %v22190_v41, %v22206_v46 }
  0xab   : > { %v292_v39 = vsel %vm291_vm0, %v22222_v52, %v22220_v51 }
  0xad   : > { %v22224_v53 = vpop.permute.xlu1 %311  ;;  %v22226_v54 = vpop.permute.xlu0 %306 }
  0xae   : > { %1038 = vrot.lane.b32.xlu1 %v21989_v8, %s21924_s13  ;;  %1040 = vrot.lane.b32.xlu0 %v21999_v10, %s21924_s13 }
  0xb1   : > { %v22235_v56 = vpop.permute.xlu1 %389  ;;  %v22237_v57 = vpop.permute.xlu0 %391 }
  0xb2   : > { %1042 = vrot.lane.b32.xlu1 %v22016_v15, %s21924_s13  ;;  %1365 = vperm.xlu0 %19977, %v17980_v55  }
  0xb5   : > { %v22244_v59 = vpop.permute.xlu1 %393  ;;  %v22246_v60 = vpop.permute.xlu0 %395 }
  0xb6   : > { %1370 = vperm.xlu1 %19978, %v17981_v58   ;;  %1036 = vrot.lane.b32.xlu0 %v22002_v11, %s21924_s13 }
  0xb9   : > { %v22250_v61 = vpop.permute.xlu1 %397  ;;  %v22252_v62 = vpop.permute.xlu0 %399 }
  0xba   : > { %1184 = vrot.lane.b32.xlu1 %v21989_v8, %s21925_s22  ;;  %1186 = vrot.lane.b32.xlu0 %v21999_v10, %s21925_s22 }
  0xbd   : > { %v22258_v63 = vpop.permute.xlu1 %401  ;;  %v22260_v1 = vpop.permute.xlu0 %403 }
  0xbe   : > { %1188 = vrot.lane.b32.xlu1 %v22016_v15, %s21925_s22  ;;  %1182 = vrot.lane.b32.xlu0 %v22002_v11, %s21925_s22 }
  0xc1   : > { %v22266_v7 = vpop.permute.xlu1 %405  ;;  %v22268_v20 = vpop.permute.xlu0 %407 }
  0xc2   : > { %1330 = vrot.lane.b32.xlu1 %v21989_v8, %s21926_s24  ;;  %1332 = vrot.lane.b32.xlu0 %v21999_v10, %s21926_s24 }
  0xc5   : > { %v22277_v26 = vpop.permute.xlu1 %409  ;;  %v22279_v27 = vpop.permute.xlu0 %411 }
  0xc6   : > { %1334 = vrot.lane.b32.xlu1 %v22016_v15, %s21926_s24  ;;  %1471 = vperm.xlu0 %19977, %v195_v25   ;;  %v302_v25 = vsel %vm291_vm0, %v22164_v36, %v22172_v38  ;;  %v294_v38 = vsel %vm291_vm0, %v22206_v46, %v22204_v45  ;;  %v325_v46 = vrot.slane %v301_v0, %v21972_v3 }
  0xc7   : > { %v321_v40 = vrot.slane %v302_v25, %v21972_v3  ;;  %v333_v36 = vrot.slane %v299_v13, %v21972_v3  ;;  %v337_v25 = vrot.slane %v298_v12, %v21972_v3  ;;  %v353_v15 = vrot.slane %v294_v38, %v21972_v3 }
  0xc8   : > { %v317_v0 = vrot.slane %v303_v16, %v21972_v3  ;;  %v361_v12 = vrot.slane %v292_v39, %v21972_v3 }
  0xc9   : > { %v22286_v29 = vpop.permute.xlu1 %428  ;;  %v22288_v30 = vpop.permute.xlu0 %433  ;;  %v22422_v16 = vmul.f32 %v321_v40, %v22226_v54  ;;  %v22433_v39 = vmul.f32 %v321_v40, %v22224_v53 }
  0xca   : > { %1476 = vperm.xlu1 %19978, %v196_v28   ;;  %1328 = vrot.lane.b32.xlu0 %v22002_v11, %s21926_s24  ;;  %v329_v28 = vrot.slane %v300_v50, %v21972_v3  ;;  %v296_v50 = vsel %vm291_vm0, %v22192_v42, %v22190_v41  ;;  %v293_v42 = vsel %vm291_vm0, %v22204_v45, %v22222_v52 }
  0xcb   : > { %v341_v45 = vrot.slane %v297_v35, %v21972_v3  ;;  %v345_v51 = vrot.slane %v296_v50, %v21972_v3  ;;  %v349_v52 = vrot.slane %v295_v37, %v21972_v3  ;;  %v357_v13 = vrot.slane %v293_v42, %v21972_v3 }
  0xcc   : > { %v22413_v35 = vmul.f32 %v325_v46, %v22224_v53  ;;  %v22416_v50 = vmul.f32 %v329_v28, %v22224_v53  ;;  %v22419_v38 = vmul.f32 %v329_v28, %v22226_v54  ;;  %v424_v37 = vsel %vm413_vm1, %v22235_v56, %v22237_v57 }
  0xcd   : > { %v22292_v31 = vpop.permute.xlu1 %535  ;;  %v22294_v32 = vpop.permute.xlu0 %537  ;;  %v22436_v28 = vmul.f32 %v317_v0, %v22226_v54  ;;  %v22439_v42 = vmul.f32 %v317_v0, %v22224_v53  ;;  %v22445_v10 = vmul.f32 %v361_v12, %v22224_v53  ;;  %v22448_v8 = vmul.f32 %v341_v45, %v22226_v54 }
  0xce   : > { %1034 = vrot.lane.b32.xlu1 %v21992_v9, %s21924_s13  ;;  %1056 = vrot.lane.b32.xlu0 %v22047_v23, %s21924_s13  ;;  %v22451_v2 = vmul.f32 %v341_v45, %v22224_v53  ;;  %v22454_v40 = vmul.f32 %v345_v51, %v22226_v54  ;;  %v22460_v0 = vmul.f32 %v333_v36, %v22226_v54 }
  0xcf   : > { %v22471_v45 = vmul.f32 %v333_v36, %v22224_v53  ;;  %v22489_v36 = vmul.f32 %v357_v13, %v22226_v54 }
  0xd1   : > { %v22300_v33 = vpop.permute.xlu1 %539  ;;  %v22302_v34 = vpop.permute.xlu0 %541 }
  0xd2   : > { %1180 = vrot.lane.b32.xlu1 %v21992_v9, %s21925_s22  ;;  %1202 = vrot.lane.b32.xlu0 %v22047_v23, %s21925_s22 }
  0xd5   : > { %v22311_v44 = vpop.permute.xlu1 %543  ;;  %v22313_v47 = vpop.permute.xlu0 %545 }
  0xd6   : > { %1326 = vrot.lane.b32.xlu1 %v21992_v9, %s21926_s24  ;;  %1348 = vrot.lane.b32.xlu0 %v22047_v23, %s21926_s24  ;;  %v22406_v23 = vmul.f32 %v325_v46, %v22226_v54  ;;  %v22442_v46 = vmul.f32 %v361_v12, %v22226_v54 }
  0xd9   : > { %v22320_v48 = vpop.permute.xlu1 %547  ;;  %v22322_v49 = vpop.permute.xlu0 %549 }
  0xda   : > { %1046 = vrot.lane.b32.xlu1 %v22030_v19, %s21924_s13  ;;  %1048 = vrot.lane.b32.xlu0 %v22026_v18, %s21924_s13 }
  0xdd   : > { %v22332_v55 = vpop.permute.xlu1 %551  ;;  %v22334_v58 = vpop.permute.xlu0 %553 }
  0xde   : > { %31887 = vst [vmem:[#allocation17_spill] sm:$0xff] %v22332_v55  ;;  %31888 = vst [vmem:[#allocation18_spill] sm:$0xff] %v22334_v58  ;;  %1050 = vrot.lane.b32.xlu1 %v22040_v22, %s21924_s13  ;;  %1044 = vrot.lane.b32.xlu0 %v22012_v14, %s21924_s13  ;;  %v22468_v55 = vmul.f32 %v337_v25, %v22226_v54 }
  0xe1   : > { %v22386_v17 = vpop.permute.xlu1 %555  ;;  %v22388_v41 = vpop.permute.xlu0 %557 }
  0xe2   : > { %31889 = vst [vmem:[#allocation19_spill] sm:$0xff] %v22386_v17  ;;  %1192 = vrot.lane.b32.xlu1 %v22030_v19, %s21925_s22  ;;  %1194 = vrot.lane.b32.xlu0 %v22026_v18, %s21925_s22  ;;  %v22474_v17 = vmul.f32 %v337_v25, %v22224_v53  ;;  %v421_v25 = vsel %vm413_vm1, %v22246_v60, %v22250_v61 }
  0xe5   : > { %v22408_v9 = vpop.permute.xlu1 %574  ;;  %v22410_v11 = vpop.permute.xlu0 %579 }
  0xe6   : > { %31890 = vst [vmem:[#allocation20_spill] sm:$0xff] %v22408_v9  ;;  %31891 = vst [vmem:[#allocation21_spill] sm:$0xff] %v22410_v11  ;;  %1196 = vrot.lane.b32.xlu1 %v22040_v22, %s21925_s22  ;;  %1190 = vrot.lane.b32.xlu0 %v22012_v14, %s21925_s22  ;;  %v22457_v11 = vmul.f32 %v345_v51, %v22224_v53  ;;  %v443_v9 = vrot.slane %v424_v37, %v21972_v3 }
  0xe7   : > { %v423_v51 = vsel %vm413_vm1, %v22237_v57, %v22244_v59  ;;  %v422_v37 = vsel %vm413_vm1, %v22244_v59, %v22246_v60  ;;  %v420_v57 = vsel %vm413_vm1, %v22250_v61, %v22252_v62  ;;  %v22500_v59 = vmul.f32 %v357_v13, %v22224_v53 }
  0xe8   : > { %v22513_v60 = vmul.f32 %v349_v52, %v22224_v53  ;;  %v447_v61 = vrot.slane %v423_v51, %v21972_v3  ;;  %v451_v13 = vrot.slane %v422_v37, %v21972_v3  ;;  %v416_v51 = vsel %vm413_vm1, %v22266_v7, %v22268_v20 }
  0xe9   : > { %v22463_v58 = vpop.permute.xlu1 %681  ;;  %v22465_v12 = vpop.permute.xlu0 %683 }
  0xea   : > { %31892 = vst [vmem:[#allocation22_spill] sm:$0xff] %v22463_v58  ;;  %31893 = vst [vmem:[#allocation23_spill] sm:$0xff] %v22465_v12  ;;  %1338 = vrot.lane.b32.xlu1 %v22030_v19, %s21926_s24  ;;  %1340 = vrot.lane.b32.xlu0 %v22026_v18, %s21926_s24  ;;  %v22503_v19 = vmul.f32 %v349_v52, %v22226_v54  ;;  %v425_v18 = vsel %vm413_vm1, %v22279_v27, %v22235_v56 }
  0xeb   : > { %v22510_v58 = vmul.f32 %v353_v15, %v22226_v54  ;;  %v22516_v12 = vmul.f32 %v353_v15, %v22224_v53  ;;  %v414_v54 = vsel %vm413_vm1, %v22277_v26, %v22279_v27  ;;  %v22534_v15 = vrot.slane %v421_v25, %v21972_v3 }
  0xec   : > { %31894 = vst [vmem:[#allocation24_spill] sm:$0xff] %v22503_v19  ;;  %v419_v19 = vsel %vm413_vm1, %v22252_v62, %v22258_v63  ;;  %v22537_v53 = vrot.slane %v420_v57, %v21972_v3  ;;  %v418_v62 = vsel %vm413_vm1, %v22258_v63, %v22260_v1  ;;  %v417_v27 = vsel %vm413_vm1, %v22260_v1, %v22266_v7 }
  0xed   : > { %v22528_v56 = vpop.permute.xlu1 %685  ;;  %v22530_v52 = vpop.permute.xlu0 %687  ;;  %v439_v37 = vrot.slane %v425_v18, %v21972_v3  ;;  %v486_v63 = vmul.f32 %v447_v61, %v22286_v29  ;;  %v463_v25 = vrot.slane %v419_v19, %v21972_v3  ;;  %v415_v57 = vsel %vm413_vm1, %v22268_v20, %v22277_v26 }
  0xee   : > { %31895 = vst [vmem:[#allocation25_spill] sm:$0xff] %v22528_v56  ;;  %31896 = vst [vmem:[#allocation26_spill] sm:$0xff] %v22530_v52  ;;  %1342 = vrot.lane.b32.xlu1 %v22040_v22, %s21926_s24  ;;  %1336 = vrot.lane.b32.xlu0 %v22012_v14, %s21926_s24  ;;  %v483_v22 = vrot.slane %v414_v54, %v21972_v3  ;;  %v498_v1 = vmul.f32 %v447_v61, %v22288_v30  ;;  %v22567_v14 = vld [vmem:[%s31476_s3] sm:$0xff] }
  0xef   : > { %v467_v18 = vrot.slane %v418_v62, %v21972_v3  ;;  %v487_v19 = vmul.f32 %v451_v13, %v22286_v29  ;;  %v499_v56 = vmul.f32 %v451_v13, %v22288_v30  ;;  %v485_v20 = vmul.f32 %v443_v9, %v22286_v29 }
  0xf0   : > { %v22578_v26 = vrot.slane %v417_v27, %v21972_v3  ;;  %v22581_v61 = vrot.slane %v416_v51, %v21972_v3  ;;  %v497_v54 = vmul.f32 %v443_v9, %v22288_v30  ;;  %v479_v62 = vrot.slane %v415_v57, %v21972_v3 }
  0xf1   : > { %v22570_v7 = vpop.permute.xlu1 %689  ;;  %v22572_v52 = vpop.permute.xlu0 %691  ;;  %v22590_v13 = vadd.f32 %v486_v63, %v22406_v23  ;;  %v22594_v27 = vrot.slane %v22567_v14, %v21975_v4  ;;  %v484_v51 = vmul.f32 %v439_v37, %v22286_v29  ;;  %v496_v9 = vmul.f32 %v439_v37, %v22288_v30 }
  0xf2   : > { %31897 = vst [vmem:[#allocation27_spill] sm:$0xff] %v22570_v7  ;;  %31898 = vst [vmem:[#allocation28_spill] sm:$0xff] %v22572_v52  ;;  %1054 = vrot.lane.b32.xlu1 %v22050_v24, %s21924_s13  ;;  %1052 = vrot.lane.b32.xlu0 %v22037_v21, %s21924_s13  ;;  %v570_v52 = vsel %vm559_vm2, %v22292_v31, %v22294_v32  ;;  %v22602_v7 = vadd.f32 %v498_v1, %v22413_v35 }
  0xf3   : > { %31899 = vst [vmem:[#allocation29_spill] sm:$0xff] %v22590_v13  ;;  %31900 = vst [vmem:[#allocation30_spill] sm:$0xff] %v22594_v27  ;;  %v495_v57 = vmul.f32 %v483_v22, %v22286_v29  ;;  %v22611_v27 = vadd.f32 %v487_v19, %v22419_v38  ;;  %v22614_v4 = vadd.f32 %v499_v56, %v22416_v50 }
  0xf4   : > { %v22617_v13 = vadd.f32 %v485_v20, %v22422_v16  ;;  %v507_v35 = vmul.f32 %v483_v22, %v22288_v30  ;;  %v22625_v37 = vadd.f32 %v497_v54, %v22433_v39  ;;  %v22629_v38 = vrot.slane %v22567_v14, %v21986_v6 }
  0xf5   : > { %v22606_v23 = vpop.permute.xlu1 %693  ;;  %v22608_v63 = vpop.permute.xlu0 %695  ;;  %v490_v50 = vmul.f32 %v463_v25, %v22286_v29  ;;  %v22633_v16 = vrot.slane %v570_v52, %v21972_v3  ;;  %v569_v22 = vsel %vm559_vm2, %v22294_v32, %v22300_v33  ;;  %v22641_v56 = vrot.slane %v22567_v14, %v21983_v5 }
  0xf6   : > { %1200 = vrot.lane.b32.xlu1 %v22050_v24, %s21925_s22  ;;  %1198 = vrot.lane.b32.xlu0 %v22037_v21, %s21925_s22  ;;  %31901 = vst [vmem:[#allocation31_spill] sm:$0xff] %v22629_v38  ;;  %v22644_v39 = vadd.f32 %v484_v51, %v22436_v28  ;;  %v22647_v1 = vadd.f32 %v496_v9, %v22439_v42 }
  0xf7   : > { %31902 = vst [vmem:[#allocation32_spill] sm:$0xff] %v22641_v56  ;;  %v22650_v19 = vadd.f32 %v495_v57, %v22442_v46  ;;  %v502_v52 = vmul.f32 %v463_v25, %v22288_v30  ;;  %v491_v20 = vmul.f32 %v467_v18, %v22286_v29  ;;  %v568_v32 = vsel %vm559_vm2, %v22300_v33, %v22302_v34 }
  0xf8   : > { %v22663_v28 = vadd.f32 %v507_v35, %v22445_v10  ;;  %v503_v42 = vmul.f32 %v467_v18, %v22288_v30  ;;  %v488_v46 = vmul.f32 %v22534_v15, %v22286_v29  ;;  %v593_v25 = vrot.slane %v569_v22, %v21972_v3 }
  0xf9   : > { %v22658_v54 = vpop.permute.xlu1 %697  ;;  %v22660_v6 = vpop.permute.xlu0 %699  ;;  %v22674_v33 = vadd.f32 %v490_v50, %v22448_v8  ;;  %v489_v10 = vmul.f32 %v22537_v53, %v22286_v29  ;;  %v567_v18 = vsel %vm559_vm2, %v22302_v34, %v22311_v44  ;;  %v566_v51 = vsel %vm559_vm2, %v22311_v44, %v22313_v47 }
  0xfa   : > { %1346 = vrot.lane.b32.xlu1 %v22050_v24, %s21926_s24  ;;  %1344 = vrot.lane.b32.xlu0 %v22037_v21, %s21926_s24  ;;  %v500_v9 = vmul.f32 %v22534_v15, %v22288_v30  ;;  %v501_v8 = vmul.f32 %v22537_v53, %v22288_v30  ;;  %v597_v57 = vrot.slane %v568_v32, %v21972_v3  ;;  %v31912_v21 = vld [vmem:[#allocation29_spill] sm:$0xff] }
  0xfb   : > { %v22692_v35 = vadd.f32 %v502_v52, %v22451_v2  ;;  %v494_v50 = vmul.f32 %v479_v62, %v22286_v29  ;;  %v506_v34 = vmul.f32 %v479_v62, %v22288_v30  ;;  %v22701_v44 = vadd.f32 %v491_v20, %v22454_v40 }
  0xfc   : > { %v22704_v15 = vadd.f32 %v503_v42, %v22457_v11  ;;  %v22707_v53 = vadd.f32 %v488_v46, %v22460_v0  ;;  %v492_v2 = vmul.f32 %v22578_v26, %v22286_v29  ;;  %v22713_v62 = vrot.slane %v567_v18, %v21972_v3  ;;  %v31906_v18 = vld [vmem:[#allocation17_spill] sm:$0xff] }
  0xfd   : > { %v22696_v22 = vpop.permute.xlu1 %701  ;;  %v22698_v38 = vpop.permute.xlu0 %703  ;;  %v22716_v52 = vrot.slane %v566_v51, %v21972_v3  ;;  %v22719_v40 = vadd.f32 %v489_v10, %v22468_v55  ;;  %v493_v11 = vmul.f32 %v22581_v61, %v22286_v29  ;;  %v571_v0 = vsel %vm559_vm2, %v22388_v41, %v22292_v31  ;;  %v31907_v51 = vld [vmem:[#allocation18_spill] sm:$0xff] }
  0xfe   : > { %v22729_v20 = vrot.slane %v22567_v14, %v21972_v3  ;;  %v22732_v32 = vadd.f32 %v500_v9, %v22471_v45  ;;  %v22735_v42 = vadd.f32 %v501_v8, %v22474_v17  ;;  %v22738_v55 = vadd.f32 %v494_v50, %v22489_v36  ;;  %v31904_v36 = vld [vmem:[#allocation19_spill] sm:$0xff]  ;;  %v31908_v50 = vld [vmem:[#allocation20_spill] sm:$0xff] }
  0xff   : > { %v22741_v29 = vadd.f32 %v506_v34, %v22500_v59  ;;  %v504_v46 = vmul.f32 %v22578_v26, %v22288_v30  ;;  %v505_v31 = vmul.f32 %v22581_v61, %v22288_v30  ;;  %v565_v45 = vsel %vm559_vm2, %v22313_v47, %v22320_v48  ;;  %v31905_v30 = vld [vmem:[#allocation24_spill] sm:$0xff] }
 0x100   : > { %31903 = vst [vmem:[#allocation33_spill] sm:$0xff] %v22729_v20  ;;  %v564_v17 = vsel %vm559_vm2, %v22320_v48, %v22322_v49  ;;  %v560_v59 = vsel %vm559_vm2, %v31904_v36, %v22388_v41  ;;  %v22764_v61 = vadd.f32 %v492_v2, %v31905_v30  ;;  %v563_v47 = vsel %vm559_vm2, %v22322_v49, %v31906_v18  ;;  %v31909_v2 = vld [vmem:[#allocation21_spill] sm:$0xff] }
 0x101   : > { %v22759_v10 = vpop.permute.xlu1 %720  ;;  %v22761_v26 = vpop.permute.xlu0 %725  ;;  %v562_v48 = vsel %vm559_vm2, %v31906_v18, %v31907_v51  ;;  %v585_v9 = vrot.slane %v571_v0, %v21972_v3  ;;  %v22776_v41 = vadd.f32 %v493_v11, %v22510_v58  ;;  %v561_v8 = vsel %vm559_vm2, %v31907_v51, %v31904_v36  ;;  %v22792_v11 = vld [vmem:[%s31476_s3 + $0x8] sm:$0xf] }
 0x102   : > { %v632_v34 = vmul.f32 %v593_v25, %v31908_v50  ;;  %v644_v30 = vmul.f32 %v593_v25, %v31909_v2  ;;  %v633_v49 = vmul.f32 %v597_v57, %v31908_v50  ;;  %v609_v20 = vrot.slane %v565_v45, %v21972_v3  ;;  %31910 = vst [vmem:[#allocation19_spill] sm:$0xff] %v22792_v11 }
 0x103   : > { %v613_v18 = vrot.slane %v564_v17, %v21972_v3  ;;  %v629_v0 = vrot.slane %v560_v59, %v21972_v3  ;;  %v645_v58 = vmul.f32 %v597_v57, %v31909_v2  ;;  %v617_v36 = vrot.slane %v563_v47, %v21972_v3 }
 0x104   : > { %v621_v51 = vrot.slane %v562_v48, %v21972_v3  ;;  %v22801_v45 = vadd.f32 %v504_v46, %v22513_v60  ;;  %v22804_v17 = vadd.f32 %v505_v31, %v22516_v12  ;;  %v625_v57 = vrot.slane %v561_v8, %v21972_v3  ;;  %v31914_v8 = vld [vmem:[#allocation23_spill] sm:$0xff] }
 0x105   : > { %v22796_v25 = vpop.permute.xlu1 %829  ;;  %v22798_v56 = vpop.permute.xlu0 %834  ;;  %v631_v59 = vmul.f32 %v22633_v16, %v31908_v50  ;;  %v643_v47 = vmul.f32 %v22633_v16, %v31909_v2  ;;  %v630_v48 = vmul.f32 %v585_v9, %v31908_v50  ;;  %v22813_v24 = vadd.f32 %v632_v34, %v31912_v21  ;;  %v31915_v34 = vld [vmem:[#allocation22_spill] sm:$0xff] }
 0x106   : > { %31911 = vst [vmem:[#allocation24_spill] sm:$0xff] %v22798_v56  ;;  %v22816_v56 = vadd.f32 %v644_v30, %v22602_v7  ;;  %v22819_v60 = vadd.f32 %v633_v49, %v22611_v27  ;;  %v22823_v12 = vrot.slane %v22792_v11, %v21983_v5  ;;  %v22826_v46 = vadd.f32 %v645_v58, %v22614_v4  ;;  %v31919_v11 = vld [vmem:[#allocation25_spill] sm:$0xff] }
 0x107   : > { %v642_v16 = vmul.f32 %v585_v9, %v31909_v2  ;;  %v641_v31 = vmul.f32 %v629_v0, %v31908_v50  ;;  %v653_v21 = vmul.f32 %v629_v0, %v31909_v2  ;;  %v716_v7 = vsel %vm705_vm3, %v31915_v34, %v31914_v8 }
 0x108   : > { %31913 = vst [vmem:[#allocation17_spill] sm:$0xff] %v22823_v12  ;;  %v636_v5 = vmul.f32 %v609_v20, %v31908_v50  ;;  %v648_v4 = vmul.f32 %v609_v20, %v31909_v2  ;;  %v637_v49 = vmul.f32 %v613_v18, %v31908_v50  ;;  %v22843_v9 = vadd.f32 %v631_v59, %v22617_v13 }
 0x109   : > { %v22835_v27 = vpop.permute.xlu1 %888  ;;  %v22837_v30 = vpop.permute.xlu0 %890  ;;  %v22846_v0 = vadd.f32 %v643_v47, %v22625_v37  ;;  %v22849_v58 = vadd.f32 %v630_v48, %v22644_v39  ;;  %v649_v12 = vmul.f32 %v613_v18, %v31909_v2  ;;  %v634_v13 = vmul.f32 %v22713_v62, %v31908_v50 }
 0x10a   : > { %31916 = vst [vmem:[#allocation18_spill] sm:$0xff] %v22835_v27  ;;  %31917 = vst [vmem:[#allocation20_spill] sm:$0xff] %v22837_v30  ;;  %v715_v27 = vsel %vm705_vm3, %v31914_v8, %v31919_v11  ;;  %v31920_v30 = vld [vmem:[#allocation26_spill] sm:$0xff]  ;;  %v635_v37 = vmul.f32 %v22716_v52, %v31908_v50  ;;  %v735_v39 = vrot.slane %v716_v7, %v21972_v3 }
 0x10b   : > { %31918 = vst [vmem:[#allocation21_spill] sm:$0xff] %v22849_v58  ;;  %v714_v20 = vsel %vm705_vm3, %v31919_v11, %v31920_v30  ;;  %v22866_v18 = vadd.f32 %v642_v16, %v22647_v1  ;;  %v22869_v59 = vadd.f32 %v641_v31, %v22650_v19  ;;  %v22872_v47 = vadd.f32 %v653_v21, %v22663_v28  ;;  %v31921_v21 = vld [vmem:[#allocation27_spill] sm:$0xff] }
 0x10c   : > { %v22879_v8 = vadd.f32 %v636_v5, %v22674_v33  ;;  %v22882_v58 = vadd.f32 %v648_v4, %v22692_v35  ;;  %v22885_v7 = vadd.f32 %v637_v49, %v22701_v44  ;;  %v646_v1 = vmul.f32 %v22713_v62, %v31909_v2 }
 0x10d   : > { %v22874_v48 = vpop.permute.xlu1 %892  ;;  %v22876_v11 = vpop.permute.xlu0 %894  ;;  %v739_v19 = vrot.slane %v715_v27, %v21972_v3  ;;  %v743_v28 = vrot.slane %v714_v20, %v21972_v3  ;;  %v22892_v16 = vadd.f32 %v649_v12, %v22704_v15  ;;  %v647_v33 = vmul.f32 %v22716_v52, %v31909_v2  ;;  %v31922_v15 = vld [vmem:[#allocation28_spill] sm:$0xff]  ;;  %v31923_v12 = vld [vmem:[#allocation2_spill] sm:$0xff] }
 0x10e   : > { %v22897_v31 = vadd.f32 %v634_v13, %v22707_v53  ;;  %v22900_v35 = vadd.f32 %v635_v37, %v22719_v40  ;;  %v640_v44 = vmul.f32 %v625_v57, %v31908_v50  ;;  %v652_v62 = vmul.f32 %v625_v57, %v31909_v2 }
 0x10f   : > { %v713_v27 = vsel %vm705_vm3, %v31920_v30, %v31921_v21  ;;  %v712_v52 = vsel %vm705_vm3, %v31921_v21, %v31922_v15  ;;  %v31924_v53 = vsub.s32 6, %v31923_v12  ;;  %v638_v40 = vmul.f32 %v617_v36, %v31908_v50 }
 0x110   : > { %v711_v57 = vsel %vm705_vm3, %v31922_v15, %v22606_v23  ;;  %v710_v30 = vsel %vm705_vm3, %v22606_v23, %v22608_v63  ;;  %v22931_v20 = vadd.f32 %v646_v1, %v22732_v32  ;;  %v639_v13 = vmul.f32 %v621_v51, %v31908_v50 }
 0x111   : > { %v22915_v5 = vrot.slane %v22567_v14, %v31924_v53  ;;  %v22926_v4 = vpop.permute.xlu1 %896  ;;  %v22928_v49 = vpop.permute.xlu0 %898  ;;  %v717_v37 = vsel %vm705_vm3, %v22698_v38, %v31915_v34  ;;  %v22939_v21 = vadd.f32 %v647_v33, %v22735_v42  ;;  %v650_v15 = vmul.f32 %v617_v36, %v31909_v2 }
 0x112   : > { %v651_v23 = vmul.f32 %v621_v51, %v31909_v2  ;;  %v22944_v53 = vrot.slane %v713_v27, %v21972_v3  ;;  %v22947_v32 = vrot.slane %v712_v52, %v21972_v3  ;;  %v22950_v50 = vadd.f32 %v640_v44, %v22738_v55 }
 0x113   : > { %31925 = vst [vmem:[#allocation29_spill] sm:$0xff] %v22915_v5  ;;  %v22953_v1 = vadd.f32 %v652_v62, %v22741_v29  ;;  %v755_v42 = vrot.slane %v711_v57, %v21972_v3  ;;  %v22958_v36 = vrot.slane %v710_v30, %v21972_v3  ;;  %v31926_v2 = vsub.s32 7, %v31923_v12 }
 0x114   : > { %v22966_v34 = vadd.f32 %v638_v40, %v22764_v61  ;;  %v709_v55 = vsel %vm705_vm3, %v22608_v63, %v22658_v54  ;;  %v708_v29 = vsel %vm705_vm3, %v22658_v54, %v22660_v6  ;;  %v731_v33 = vrot.slane %v717_v37, %v21972_v3 }
 0x115   : > { %v22963_v51 = vrot.slane %v22567_v14, %v31926_v2  ;;  %v22977_v44 = vpop.permute.xlu1 %900  ;;  %v22979_v62 = vpop.permute.xlu0 %902  ;;  %v22982_v27 = vadd.f32 %v639_v13, %v22776_v41  ;;  %v707_v61 = vsel %vm705_vm3, %v22660_v6, %v22696_v22  ;;  %v778_v63 = vmul.f32 %v739_v19, %v22759_v10 }
 0x116   : > { %v22990_v52 = vadd.f32 %v650_v15, %v22801_v45  ;;  %v22993_v54 = vadd.f32 %v651_v23, %v22804_v17  ;;  %v706_v40 = vsel %vm705_vm3, %v22696_v22, %v22698_v38  ;;  %v790_v41 = vmul.f32 %v739_v19, %v22761_v26 }
 0x117   : > { %31927 = vst [vmem:[#allocation23_spill] sm:$0xff] %v22963_v51  ;;  %v779_v57 = vmul.f32 %v743_v28, %v22759_v10  ;;  %v31930_v30 = vsub.s32 4, %v31923_v12  ;;  %v23007_v45 = vrot.slane %v709_v55, %v21972_v3  ;;  %v23010_v17 = vrot.slane %v708_v29, %v21972_v3 }
 0x118   : > { %31928 = vst [vmem:[#allocation22_spill] sm:$0xff] %v22990_v52  ;;  %31929 = vst [vmem:[#allocation25_spill] sm:$0xff] %v22993_v54  ;;  %v791_v13 = vmul.f32 %v743_v28, %v22761_v26  ;;  %v777_v37 = vmul.f32 %v735_v39, %v22759_v10  ;;  %v23015_v38 = vrot.slane %v707_v61, %v21972_v3  ;;  %v31932_v2 = vsub.s32 5, %v31923_v12  ;;  %v31936_v54 = vld [vmem:[#allocation7_spill] sm:$0xff]  ;;  %v31943_v52 = vld [vmem:[#allocation20_spill] sm:$0xff] }
 0x119   : > { %v23004_v6 = vrot.slane %v22567_v14, %v31930_v30  ;;  %v23017_v22 = vpop.permute.xlu1 %904  ;;  %v23019_v19 = vpop.permute.xlu0 %906  ;;  %v789_v15 = vmul.f32 %v735_v39, %v22761_v26  ;;  %v776_v23 = vmul.f32 %v731_v33, %v22759_v10  ;;  %v775_v28 = vrot.slane %v706_v40, %v21972_v3  ;;  %v31934_v30 = vld [vmem:[#allocation5_spill] sm:$0xff]  ;;  %v31935_v39 = vld [vmem:[#allocation24_spill] sm:$0xff] }
 0x11a   : > { %v23026_v55 = vrot.slane %v22567_v14, %v31932_v2  ;;  %v802_v29 = vadd.f32 %v778_v63, %v22813_v24  ;;  %v839_v61 = vmul.f32 %v22796_v25, %v31934_v30  ;;  %v814_v51 = vadd.f32 %v790_v41, %v22816_v56  ;;  %v31937_v40 = vld [vmem:[#allocation8_spill] sm:$0xff] }
 0x11b   : > { %31931 = vst [vmem:[#allocation26_spill] sm:$0xff] %v23004_v6  ;;  %v788_v6 = vmul.f32 %v731_v33, %v22761_v26  ;;  %v851_v5 = vmul.f32 %v31935_v39, %v31934_v30  ;;  %v840_v12 = vmul.f32 %v22796_v25, %v31936_v54  ;;  %v803_v14 = vadd.f32 %v779_v57, %v22819_v60  ;;  %v31940_v60 = vld [vmem:[#allocation6_spill] sm:$0xff]  ;;  %v31941_v57 = vld [vmem:[#allocation21_spill] sm:$0xff] }
 0x11c   : > { %31933 = vst [vmem:[#allocation27_spill] sm:$0xff] %v23026_v55  ;;  %v815_v2 = vadd.f32 %v791_v13, %v22826_v46  ;;  %v852_v24 = vmul.f32 %v31935_v39, %v31936_v54  ;;  %v801_v63 = vadd.f32 %v777_v37, %v22843_v9  ;;  %v838_v33 = vmul.f32 %v22796_v25, %v31937_v40 }
 0x11d   : > { %v23045_v55 = vpop.permute.xlu1 %908  ;;  %v23047_v56 = vpop.permute.xlu0 %910  ;;  %v813_v41 = vadd.f32 %v789_v15, %v22846_v0  ;;  %v850_v30 = vmul.f32 %v31935_v39, %v31937_v40  ;;  %v837_v46 = vmul.f32 %v22796_v25, %v31940_v60  ;;  %v800_v13 = vadd.f32 %v776_v23, %v31941_v57 }
 0x11e   : > { %31938 = vst [vmem:[#allocation28_spill] sm:$0xff] %v23045_v55  ;;  %31939 = vst [vmem:[#allocation5_spill] sm:$0xff] %v23047_v56  ;;  %v23055_v54 = vadd.f32 %v839_v61, %v802_v29  ;;  %v812_v9 = vadd.f32 %v788_v6, %v22866_v18  ;;  %v849_v37 = vmul.f32 %v31935_v39, %v31940_v60  ;;  %v31944_v56 = vld [vmem:[#allocation18_spill] sm:$0xff] }
 0x11f   : > { %v787_v55 = vmul.f32 %v775_v28, %v22759_v10  ;;  %v923_v0 = vsel %vm912_vm4, %v31944_v56, %v31943_v52  ;;  %v23065_v15 = vadd.f32 %v851_v5, %v814_v51  ;;  %v23067_v40 = vadd.f32 %v840_v12, %v803_v14  ;;  %v31945_v12 = vld [vmem:[#allocation15_spill] sm:$0xff] }
 0x120   : > { %31942 = vst [vmem:[#allocation24_spill] sm:$0xff] %v23055_v54  ;;  %v799_v23 = vmul.f32 %v775_v28, %v22761_v26  ;;  %v23070_v29 = vadd.f32 %v852_v24, %v815_v2  ;;  %v23072_v61 = vadd.f32 %v838_v33, %v801_v63  ;;  %v782_v18 = vmul.f32 %v755_v42, %v22759_v10  ;;  %v31946_v33 = vld [vmem:[#allocation12_spill] sm:$0xff] }
 0x121   : > { %v794_v6 = vmul.f32 %v755_v42, %v22761_v26  ;;  %v23076_v60 = vpop.permute.xlu1 %927  ;;  %v23078_v57 = vpop.permute.xlu0 %932  ;;  %v23080_v54 = vadd.f32 %v850_v30, %v813_v41  ;;  %v23082_v5 = vadd.f32 %v837_v46, %v800_v13  ;;  %v848_v51 = vmul.f32 %v22796_v25, %v31945_v12 }
 0x122   : > { %v860_v28 = vmul.f32 %v31935_v39, %v31945_v12  ;;  %v23089_v14 = vrot.slane %v923_v0, %v21972_v3  ;;  %v922_v42 = vsel %vm912_vm4, %v31943_v52, %v22874_v48  ;;  %v23095_v2 = vadd.f32 %v849_v37, %v812_v9  ;;  %v31947_v52 = vld [vmem:[#allocation11_spill] sm:$0xff] }
 0x123   : > { %v811_v24 = vadd.f32 %v787_v55, %v22869_v59  ;;  %v823_v63 = vadd.f32 %v799_v23, %v22872_v47  ;;  %v843_v41 = vmul.f32 %v22796_v25, %v31946_v33  ;;  %v855_v30 = vmul.f32 %v31935_v39, %v31946_v33  ;;  %v31949_v33 = vld [vmem:[#allocation10_spill] sm:$0xff] }
 0x124   : > { %v783_v46 = vmul.f32 %v22958_v36, %v22759_v10  ;;  %v806_v13 = vadd.f32 %v782_v18, %v22879_v8  ;;  %v818_v0 = vadd.f32 %v794_v6, %v22882_v58  ;;  %v844_v9 = vmul.f32 %v22796_v25, %v31947_v52 }
 0x125   : > { %v795_v59 = vmul.f32 %v22958_v36, %v22761_v26  ;;  %v23112_v47 = vrot.slane %v922_v42, %v21972_v3  ;;  %v921_v55 = vsel %vm912_vm4, %v22874_v48, %v22876_v11  ;;  %v23118_v37 = vpop.permute.xlu1 %1073  ;;  %v23120_v23 = vpop.permute.xlu0 %1078  ;;  %v23122_v8 = vadd.f32 %v848_v51, %v811_v24 }
 0x126   : > { %31948 = vst [vmem:[#allocation7_spill] sm:$0xff] %v23120_v23  ;;  %v23124_v58 = vadd.f32 %v860_v28, %v823_v63  ;;  %v920_v36 = vsel %vm912_vm4, %v22876_v11, %v22926_v4  ;;  %v856_v18 = vmul.f32 %v31935_v39, %v31947_v52  ;;  %v780_v6 = vmul.f32 %v22944_v53, %v22759_v10 }
 0x127   : > { %v781_v48 = vmul.f32 %v22947_v32, %v22759_v10  ;;  %v919_v12 = vsel %vm912_vm4, %v22926_v4, %v22928_v49  ;;  %v807_v51 = vadd.f32 %v783_v46, %v22885_v7  ;;  %v792_v28 = vmul.f32 %v22944_v53, %v22761_v26 }
 0x128   : > { %v793_v11 = vmul.f32 %v22947_v32, %v22761_v26  ;;  %v946_v42 = vrot.slane %v921_v55, %v21972_v3  ;;  %v23146_v24 = vadd.f32 %v843_v41, %v806_v13  ;;  %v819_v63 = vadd.f32 %v795_v59, %v22892_v16  ;;  %v31951_v32 = vld [vmem:[#allocation9_spill] sm:$0xff] }
 0x129   : > { %v841_v52 = vmul.f32 %v22796_v25, %v31949_v33  ;;  %v23152_v23 = vrot.slane %v920_v36, %v21972_v3  ;;  %v23154_v4 = vpop.permute.xlu1 %1219  ;;  %v23156_v7 = vpop.permute.xlu0 %1224  ;;  %v23158_v53 = vadd.f32 %v855_v30, %v818_v0  ;;  %v23160_v46 = vadd.f32 %v844_v9, %v807_v51 }
 0x12a   : > { %31950 = vst [vmem:[#allocation8_spill] sm:$0xff] %v23156_v7  ;;  %v842_v41 = vmul.f32 %v22796_v25, %v31951_v32  ;;  %v23165_v13 = vrot.slane %v919_v12, %v21972_v3  ;;  %v23167_v16 = vadd.f32 %v856_v18, %v819_v63  ;;  %v804_v59 = vadd.f32 %v780_v6, %v22897_v31 }
 0x12b   : > { %v805_v55 = vadd.f32 %v781_v48, %v22900_v35  ;;  %v816_v36 = vadd.f32 %v792_v28, %v22931_v20  ;;  %v817_v7 = vadd.f32 %v793_v11, %v22939_v21  ;;  %v853_v30 = vmul.f32 %v31935_v39, %v31949_v33  ;;  %v31952_v48 = vld [vmem:[#allocation16_spill] sm:$0xff] }
 0x12c   : > { %v786_v0 = vmul.f32 %v23015_v38, %v22759_v10  ;;  %v918_v9 = vsel %vm912_vm4, %v22928_v49, %v22977_v44  ;;  %v854_v31 = vmul.f32 %v31935_v39, %v31951_v32  ;;  %v23183_v18 = vadd.f32 %v841_v52, %v804_v59 }
 0x12d   : > { %v798_v35 = vmul.f32 %v23015_v38, %v22761_v26  ;;  %v917_v20 = vsel %vm912_vm4, %v22977_v44, %v22979_v62  ;;  %v23192_v21 = vpop.permute.xlu1 %1038  ;;  %v23194_v6 = vpop.permute.xlu0 %1040  ;;  %v23196_v49 = vadd.f32 %v842_v41, %v805_v55  ;;  %v847_v12 = vmul.f32 %v22796_v25, %v31952_v48 }
 0x12e   : > { %v859_v51 = vmul.f32 %v31935_v39, %v31952_v48  ;;  %v916_v38 = vsel %vm912_vm4, %v22979_v62, %v23017_v22  ;;  %v915_v44 = vsel %vm912_vm4, %v23017_v22, %v23019_v19  ;;  %v784_v28 = vmul.f32 %v23007_v45, %v22759_v10 }
 0x12f   : > { %v785_v11 = vmul.f32 %v23010_v17, %v22759_v10  ;;  %v23216_v63 = vrot.slane %v918_v9, %v21972_v3  ;;  %v810_v33 = vadd.f32 %v786_v0, %v22950_v50  ;;  %v796_v62 = vmul.f32 %v23007_v45, %v22761_v26  ;;  %v31953_v10 = vld [vmem:[#allocation14_spill] sm:$0xff] }
 0x130   : > { %v797_v52 = vmul.f32 %v23010_v17, %v22761_v26  ;;  %v962_v22 = vrot.slane %v917_v20, %v21972_v3  ;;  %v23224_v32 = vadd.f32 %v853_v30, %v816_v36  ;;  %v822_v41 = vadd.f32 %v798_v35, %v22953_v1  ;;  %v31954_v30 = vld [vmem:[#allocation13_spill] sm:$0xff] }
 0x131   : > { %v845_v59 = vmul.f32 %v22796_v25, %v31953_v10  ;;  %v966_v55 = vrot.slane %v916_v38, %v21972_v3  ;;  %v23231_v9 = vrot.slane %v915_v44, %v21972_v3  ;;  %v23233_v50 = vpop.permute.xlu1 %1042  ;;  %v23235_v45 = vpop.permute.xlu0 %1365  ;;  %v23237_v0 = vadd.f32 %v854_v31, %v817_v7  ;;  %v31955_v20 = vld [vmem:[#allocation5_spill] sm:$0xff]  ;;  %v31956_v38 = vld [vmem:[#allocation22_spill] sm:$0xff] }
 0x132   : > { %v23239_v26 = vadd.f32 %v847_v12, %v810_v33  ;;  %v23241_v17 = vadd.f32 %v859_v51, %v822_v41  ;;  %v808_v1 = vadd.f32 %v784_v28, %v22966_v34  ;;  %v809_v36 = vadd.f32 %v785_v11, %v22982_v27  ;;  %v31957_v7 = vld [vmem:[#allocation25_spill] sm:$0xff]  ;;  %v31958_v51 = vld [vmem:[#allocation28_spill] sm:$0xff]  ;;  %v31960_v41 = vld [vmem:[#allocation19_spill] sm:$0xff] }
 0x133   : > { %v846_v35 = vmul.f32 %v22796_v25, %v31954_v30  ;;  %v924_v48 = vsel %vm912_vm4, %v31955_v20, %v31944_v56  ;;  %v820_v44 = vadd.f32 %v796_v62, %v31956_v38  ;;  %v821_v31 = vadd.f32 %v797_v52, %v31957_v7  ;;  %v31959_v52 = vld [vmem:[#allocation3_spill] sm:$0xff] }
 0x134   : > { %v857_v12 = vmul.f32 %v31935_v39, %v31953_v10  ;;  %v914_v34 = vsel %vm912_vm4, %v23019_v19, %v31958_v51  ;;  %v913_v25 = vsel %vm912_vm4, %v31958_v51, %v31955_v20  ;;  %v858_v27 = vmul.f32 %v31935_v39, %v31954_v30  ;;  %v31966_v51 = vld [vmem:[#allocation24_spill] sm:$0xff] }
 0x135   : > { %v23265_v56 = vadd.f32 %v845_v59, %v808_v1  ;;  %v985_v28 = vmul.f32 %v946_v42, %v23076_v60  ;;  %v997_v11 = vmul.f32 %v946_v42, %v23078_v57  ;;  %v986_v33 = vmul.f32 %v23152_v23, %v23076_v60  ;;  %v23271_v62 = vpop.permute.xlu1 %1370  ;;  %v23273_v19 = vpop.permute.xlu0 %1036 }
 0x136   : > { %v23277_v10 = vrot.slane %v31960_v41, %v31959_v52  ;;  %v982_v20 = vrot.slane %v924_v48, %v21972_v3  ;;  %v998_v39 = vmul.f32 %v23152_v23, %v23078_v57  ;;  %v984_v59 = vmul.f32 %v23112_v47, %v23076_v60 }
 0x137   : > { %v23284_v42 = vadd.f32 %v846_v35, %v809_v36  ;;  %v23288_v1 = vrot.slane %v914_v34, %v21972_v3  ;;  %v23291_v30 = vrot.slane %v913_v25, %v21972_v3  ;;  %v996_v38 = vmul.f32 %v23112_v47, %v23078_v57 }
 0x138   : > { %31961 = vst [vmem:[#allocation6_spill] sm:$0xff] %v23277_v10  ;;  %v23295_v48 = vadd.f32 %v857_v12, %v820_v44  ;;  %v1067_v23 = vsel %vm1058_vm5, %v23192_v21, %v23194_v6  ;;  %v983_v36 = vmul.f32 %v23089_v14, %v23076_v60  ;;  %v23303_v35 = vadd.f32 %v858_v27, %v821_v31 }
 0x139   : > { %31962 = vst [vmem:[#allocation21_spill] sm:$0xff] %v23284_v42  ;;  %v23307_v7 = vrot.slane %v31960_v41, %v21972_v3  ;;  %v1009_v34 = vadd.f32 %v985_v28, %v31966_v51  ;;  %v1021_v47 = vadd.f32 %v997_v11, %v23065_v15  ;;  %v23312_v44 = vadd.f32 %v986_v33, %v23067_v40  ;;  %v1185_v12 = vpop.permute.xlu1 %1184  ;;  %v1187_v25 = vpop.permute.xlu0 %1186 }
 0x13a   : > { %31963 = vst [vmem:[#allocation20_spill] sm:$0xff] %v23295_v48  ;;  %31964 = vst [vmem:[#allocation18_spill] sm:$0xff] %v23303_v35  ;;  %v995_v52 = vmul.f32 %v23089_v14, %v23078_v57  ;;  %v1022_v10 = vadd.f32 %v998_v39, %v23070_v29  ;;  %v1008_v31 = vadd.f32 %v984_v59, %v23072_v61 }
 0x13b   : > { %31965 = vst [vmem:[#allocation15_spill] sm:$0xff] %v23307_v7  ;;  %v1213_v27 = vsel %vm1204_vm6, %v1185_v12, %v1187_v25  ;;  %v994_v41 = vmul.f32 %v982_v20, %v23076_v60  ;;  %v1092_v28 = vrot.slane %v1067_v23, %v21972_v3  ;;  %v23323_v15 = vadd.f32 %v996_v38, %v23080_v54 }
 0x13c   : > { %v1006_v40 = vmul.f32 %v982_v20, %v23078_v57  ;;  %v989_v11 = vmul.f32 %v962_v22, %v23076_v60  ;;  %v1066_v29 = vsel %vm1058_vm5, %v23194_v6, %v23233_v50  ;;  %v1068_v61 = vsel %vm1058_vm5, %v23273_v19, %v23192_v21 }
 0x13d   : > { %v1001_v14 = vmul.f32 %v962_v22, %v23078_v57  ;;  %v990_v33 = vmul.f32 %v966_v55, %v23076_v60  ;;  %v1238_v54 = vrot.slane %v1213_v27, %v21972_v3  ;;  %v23338_v39 = vpop.permute.xlu1 %1188  ;;  %v23340_v20 = vpop.permute.xlu0 %1182  ;;  %v23343_v59 = vadd.f32 %v983_v36, %v23082_v5 }
 0x13e   : > { %31967 = vst [vmem:[#allocation12_spill] sm:$0xff] %v23338_v39  ;;  %v23346_v6 = vadd.f32 %v995_v52, %v23095_v2  ;;  %v1002_v38 = vmul.f32 %v966_v55, %v23078_v57  ;;  %v1212_v21 = vsel %vm1204_vm6, %v1187_v25, %v23338_v39  ;;  %v23353_v22 = vadd.f32 %v994_v41, %v23122_v8  ;;  %v31968_v52 = vld [vmem:[#allocation7_spill] sm:$0xff] }
 0x13f   : > { %v987_v23 = vmul.f32 %v23165_v13, %v23076_v60  ;;  %v988_v51 = vmul.f32 %v23216_v63, %v23076_v60  ;;  %v1131_v5 = vmul.f32 %v1092_v28, %v23118_v37  ;;  %v1096_v2 = vrot.slane %v1066_v29, %v21972_v3 }
 0x140   : > { %v1088_v36 = vrot.slane %v1068_v61, %v21972_v3  ;;  %v23363_v55 = vadd.f32 %v1006_v40, %v23124_v58  ;;  %v1143_v25 = vmul.f32 %v1092_v28, %v31968_v52  ;;  %v23367_v8 = vadd.f32 %v989_v11, %v23146_v24  ;;  %v31971_v24 = vld [vmem:[#allocation8_spill] sm:$0xff] }
 0x141   : > { %v23370_v27 = vadd.f32 %v1001_v14, %v23158_v53  ;;  %v23373_v41 = vadd.f32 %v990_v33, %v23160_v46  ;;  %v1277_v7 = vmul.f32 %v1238_v54, %v23154_v4  ;;  %v1242_v29 = vrot.slane %v1212_v21, %v21972_v3  ;;  %v1331_v40 = vpop.permute.xlu1 %1330  ;;  %v1333_v61 = vpop.permute.xlu0 %1332 }
 0x142   : > { %v1214_v58 = vsel %vm1204_vm6, %v23340_v20, %v1185_v12  ;;  %v23381_v28 = vadd.f32 %v1002_v38, %v23167_v16  ;;  %v1289_v11 = vmul.f32 %v1238_v54, %v31971_v24  ;;  %v1359_v53 = vsel %vm1350_vm7, %v1331_v40, %v1333_v61 }
 0x143   : > { %31969 = vst [vmem:[#allocation11_spill] sm:$0xff] %v23373_v41  ;;  %v23388_v46 = vmul.f32 %v23165_v13, %v23078_v57  ;;  %v23392_v14 = vmul.f32 %v23216_v63, %v23078_v57  ;;  %v1155_v33 = vadd.f32 %v1131_v5, %v1009_v34  ;;  %v1132_v12 = vmul.f32 %v1096_v2, %v23118_v37 }
 0x144   : > { %31970 = vst [vmem:[#allocation10_spill] sm:$0xff] %v23381_v28  ;;  %v1144_v21 = vmul.f32 %v1096_v2, %v31968_v52  ;;  %v1130_v16 = vmul.f32 %v1088_v36, %v23118_v37  ;;  %v1167_v38 = vadd.f32 %v1143_v25, %v1021_v47  ;;  %v1234_v54 = vrot.slane %v1214_v58, %v21972_v3 }
 0x145   : > { %v1384_v35 = vrot.slane %v1359_v53, %v21972_v3  ;;  %v23400_v48 = vadd.f32 %v987_v23, %v23183_v18  ;;  %v1142_v13 = vmul.f32 %v1088_v36, %v31968_v52  ;;  %v1301_v42 = vadd.f32 %v1277_v7, %v1155_v33  ;;  %v23405_v5 = vpop.permute.xlu1 %1334  ;;  %v23407_v2 = vpop.permute.xlu0 %1471 }
 0x146   : > { %v1278_v63 = vmul.f32 %v1242_v29, %v23154_v4  ;;  %v1290_v34 = vmul.f32 %v1242_v29, %v31971_v24  ;;  %v1313_v39 = vadd.f32 %v1289_v11, %v1167_v38  ;;  %v1358_v18 = vsel %vm1350_vm7, %v1333_v61, %v23405_v5 }
 0x147   : > { %31972 = vst [vmem:[#allocation9_spill] sm:$0xff] %v23400_v48  ;;  %v1423_v47 = vmul.f32 %v1384_v35, %v23235_v45  ;;  %v1435_v25 = vmul.f32 %v1384_v35, %v23271_v62  ;;  %v1156_v23 = vadd.f32 %v1132_v12, %v23312_v44  ;;  %v1168_v7 = vadd.f32 %v1144_v21, %v1022_v10 }
 0x148   : > { %v1154_v36 = vadd.f32 %v1130_v16, %v1008_v31  ;;  %v1388_v58 = vrot.slane %v1358_v18, %v21972_v3  ;;  %v1276_v29 = vmul.f32 %v1234_v54, %v23154_v4  ;;  %v1288_v53 = vmul.f32 %v1234_v54, %v31971_v24 }
 0x149   : > { %v1447_v33 = vadd.f32 %v1423_v47, %v1301_v42  ;;  %v1459_v11 = vadd.f32 %v1435_v25, %v1313_v39  ;;  %v1302_v38 = vadd.f32 %v1278_v63, %v1156_v23  ;;  %v1314_v48 = vadd.f32 %v1290_v34, %v1168_v7  ;;  %v23420_v41 = vpop.permute.xlu1 %1476  ;;  %v1329_v61 = vpop.permute.xlu0 %1328  ;;  %v31973_v34 = vld [vmem:[#allocation30_spill] sm:$0xff] }
 0x14a   : > { %v1424_v35 = vmul.f32 %v1388_v58, %v23235_v45  ;;  %v1436_v28 = vmul.f32 %v1388_v58, %v23271_v62  ;;  %v1166_v10 = vadd.f32 %v1142_v13, %v23323_v15  ;;  %v1360_v12 = vsel %vm1350_vm7, %v1329_v61, %v1331_v40 }
 0x14b   : > { %v1481_v44 = vadd.f32 %v23407_v2, %v1447_v33  ;;  %v1493_v31 = vadd.f32 %v23420_v41, %v1459_v11  ;;  %v1380_v21 = vrot.slane %v1360_v12, %v21972_v3  ;;  %v23429_v16 = vadd.f32 %v988_v51, %v23196_v49 }
 0x14c   : > { %v1448_v42 = vadd.f32 %v1424_v35, %v1302_v38  ;;  %v1460_v39 = vadd.f32 %v1436_v28, %v1314_v48  ;;  %v1300_v54 = vadd.f32 %v1276_v29, %v1154_v36  ;;  %v1312_v63 = vadd.f32 %v1288_v53, %v1166_v10 }
 0x14d   : > { %v23432_v47 = vmul.f32 %v31973_v34, %v1481_v44  ;;  %v23435_v15 = vmul.f32 %v31973_v34, %v1493_v31  ;;  %v1422_v40 = vmul.f32 %v1380_v21, %v23235_v45  ;;  %v1434_v48 = vmul.f32 %v1380_v21, %v23271_v62  ;;  %v1035_v28 = vpop.permute.xlu1 %1034  ;;  %v23441_v18 = vpop.permute.xlu0 %1056 }
 0x14e   : > { %v1482_v13 = vadd.f32 %v23407_v2, %v1448_v42  ;;  %v1494_v25 = vadd.f32 %v23420_v41, %v1460_v39  ;;  %v1069_v49 = vsel %vm1058_vm5, %v1035_v28, %v23273_v19  ;;  %v1070_v51 = vsel %vm1058_vm5, %v23441_v18, %v1035_v28  ;;  %v31976_v19 = vld [vmem:[#allocation32_spill] sm:$0xff] }
 0x14f   : > { %31974 = vst [vmem:[#allocation16_spill] sm:$0xff] %v23432_v47  ;;  %31975 = vst [vmem:[#allocation14_spill] sm:$0xff] %v23435_v15  ;;  %v31545_v23 = vmax.f32 %v23432_v47, 0.0  ;;  %v31544_v7 = vmax.f32 %v23435_v15, 0.0  ;;  %v1446_v36 = vadd.f32 %v1422_v40, %v1300_v54  ;;  %v1458_v58 = vadd.f32 %v1434_v48, %v1312_v63 }
 0x150   : > { %v1084_v29 = vrot.slane %v1069_v49, %v21972_v3  ;;  %v1128_v53 = vrot.slane %v1070_v51, %v21972_v3  ;;  %v23460_v11 = vmul.f32 %v31976_v19, %v1482_v13  ;;  %v993_v38 = vmul.f32 %v23291_v30, %v23076_v60  ;;  %v31977_v13 = vld [vmem:[#allocation31_spill] sm:$0xff] }
 0x151   : > { %v23457_v33 = vpack.i.bf16 %v31544_v7, %v31545_v23  ;;  %v1005_v35 = vmul.f32 %v23291_v30, %v23078_v57  ;;  %v1480_v10 = vadd.f32 %v23407_v2, %v1446_v36  ;;  %v1492_v44 = vadd.f32 %v23420_v41, %v1458_v58  ;;  %v1181_v12 = vpop.permute.xlu1 %1180  ;;  %v23469_v42 = vpop.permute.xlu0 %1202 }
 0x152   : > { %v1129_v31 = vmul.f32 %v1084_v29, %v23118_v37  ;;  %v23472_v39 = vmul.f32 %v31976_v19, %v1494_v25  ;;  %v1215_v21 = vsel %vm1204_vm6, %v1181_v12, %v23340_v20  ;;  %v1216_v30 = vsel %vm1204_vm6, %v23469_v42, %v1181_v12 }
 0x153   : > { %19980 = vrot.lane.b32.xlu1 %v23457_v33, %s21920_s26  ;;  %v23484_v54 = vadd.f32 %v23388_v46, %v23224_v32  ;;  %v23488_v63 = vadd.f32 %v23392_v14, %v23237_v0  ;;  %v23491_v25 = vmul.f32 %v31977_v13, %v1480_v10  ;;  %v23494_v20 = vmul.f32 %v31977_v13, %v1492_v44 }
 0x154   : > { %v1141_v40 = vmul.f32 %v1084_v29, %v31968_v52  ;;  %v1140_v48 = vmul.f32 %v1128_v53, %v23118_v37  ;;  %v1153_v28 = vadd.f32 %v1129_v31, %v23343_v59  ;;  %v1152_v49 = vmul.f32 %v1128_v53, %v31968_v52 }
 0x155   : > { %31978 = vst [vmem:[#allocation13_spill] sm:$0xff] %v23491_v25  ;;  %31979 = vst [vmem:[#allocation5_spill] sm:$0xff] %v23494_v20  ;;  %v1230_v32 = vrot.slane %v1215_v21, %v21972_v3  ;;  %v1274_v46 = vrot.slane %v1216_v30, %v21972_v3  ;;  %v31549_v0 = vmax.f32 %v23491_v25, 0.0  ;;  %v31548_v14 = vmax.f32 %v23494_v20, 0.0  ;;  %v1327_v51 = vpop.permute.xlu1 %1326  ;;  %v23506_v29 = vpop.permute.xlu0 %1348 }
 0x156   : > { %v31547_v36 = vmax.f32 %v23460_v11, 0.0  ;;  %v31546_v58 = vmax.f32 %v23472_v39, 0.0  ;;  %v1361_v31 = vsel %vm1350_vm7, %v1327_v51, %v1329_v61  ;;  %v1362_v21 = vsel %vm1350_vm7, %v23506_v29, %v1327_v51 }
 0x157   : > { %v1275_v10 = vmul.f32 %v1230_v32, %v23154_v4  ;;  %v1287_v59 = vmul.f32 %v1230_v32, %v31971_v24  ;;  %v1286_v53 = vmul.f32 %v1274_v46, %v23154_v4  ;;  %v1298_v44 = vmul.f32 %v1274_v46, %v31971_v24 }
 0x158   : > { %v23518_v12 = vpack.i.bf16 %v31546_v58, %v31547_v36  ;;  %v23527_v30 = vpack.i.bf16 %v31548_v14, %v31549_v0  ;;  %v1165_v32 = vadd.f32 %v1141_v40, %v23346_v6  ;;  %v1164_v61 = vadd.f32 %v1140_v48, %v23353_v22 }
 0x159   : > { %v1176_v46 = vadd.f32 %v1152_v49, %v23363_v55  ;;  %v991_v7 = vmul.f32 %v23231_v9, %v23076_v60  ;;  %v1299_v23 = vadd.f32 %v1275_v10, %v1153_v28  ;;  %v1376_v58 = vrot.slane %v1361_v31, %v21972_v3  ;;  %v1047_v36 = vpop.permute.xlu1 %1046  ;;  %v1049_v6 = vpop.permute.xlu0 %1048 }
 0x15a   : > { %19985 = vrot.lane.b32.xlu0 %v23518_v12, %s21920_s26  ;;  %v1420_v51 = vrot.slane %v1362_v21, %v21972_v3  ;;  %19990 = vrot.lane.b32.xlu1 %v23527_v30, %s21920_s26  ;;  %v1311_v40 = vadd.f32 %v1287_v59, %v1165_v32  ;;  %v1310_v22 = vadd.f32 %v1286_v53, %v1164_v61 }
 0x15b   : > { %v1322_v48 = vadd.f32 %v1298_v44, %v1176_v46  ;;  %v1063_v55 = vsel %vm1058_vm5, %v1047_v36, %v1049_v6  ;;  %v1421_v28 = vmul.f32 %v1376_v58, %v23235_v45  ;;  %v1433_v49 = vmul.f32 %v1376_v58, %v23271_v62 }
 0x15c   : > { %v1432_v10 = vmul.f32 %v1420_v51, %v23235_v45  ;;  %v1444_v31 = vmul.f32 %v1420_v51, %v23271_v62  ;;  %v1108_v21 = vrot.slane %v1063_v55, %v21972_v3  ;;  %v23548_v14 = vadd.f32 %v993_v38, %v23239_v26  ;;  %v31981_v55 = vld [vmem:[#allocation17_spill] sm:$0xff] }
 0x15d   : > { %v23551_v59 = vadd.f32 %v1005_v35, %v23241_v17  ;;  %v23555_v53 = vmul.f32 %v23288_v1, %v23076_v60  ;;  %v1445_v44 = vadd.f32 %v1421_v28, %v1299_v23  ;;  %v1457_v32 = vadd.f32 %v1433_v49, %v1311_v40  ;;  %v23557_v46 = vpop.permute.xlu1 %1050  ;;  %v1045_v0 = vpop.permute.xlu0 %1044 }
 0x15e   : > { %v1456_v61 = vadd.f32 %v1432_v10, %v1310_v22  ;;  %v1468_v58 = vadd.f32 %v1444_v31, %v1322_v48  ;;  %v1062_v51 = vsel %vm1058_vm5, %v1049_v6, %v23557_v46  ;;  %v1064_v26 = vsel %vm1058_vm5, %v1045_v0, %v1047_v36 }
 0x15f   : > { %v23566_v17 = vmul.f32 %v23231_v9, %v23078_v57  ;;  %v23570_v60 = vmul.f32 %v23288_v1, %v23078_v57  ;;  %v1479_v23 = vadd.f32 %v23407_v2, %v1445_v44  ;;  %v1491_v38 = vadd.f32 %v23420_v41, %v1457_v32  ;;  %v31980_v57 = vld [vmem:[#allocation33_spill] sm:$0xff] }
 0x160   : > { %v1490_v35 = vadd.f32 %v23407_v2, %v1456_v61  ;;  %v1502_v40 = vadd.f32 %v23420_v41, %v1468_v58  ;;  %v1135_v6 = vmul.f32 %v1108_v21, %v23118_v37  ;;  %v1147_v36 = vmul.f32 %v1108_v21, %v31968_v52 }
 0x161   : > { %v1112_v22 = vrot.slane %v1062_v51, %v21972_v3  ;;  %v1065_v9 = vsel %vm1058_vm5, %v23233_v50, %v1045_v0  ;;  %v23583_v1 = vmul.f32 %v31980_v57, %v1479_v23  ;;  %v23586_v48 = vmul.f32 %v31980_v57, %v1491_v38  ;;  %v1193_v10 = vpop.permute.xlu1 %1192  ;;  %v1195_v31 = vpop.permute.xlu0 %1194 }
 0x162   : > { %v23589_v28 = vmul.f32 %v31981_v55, %v1490_v35  ;;  %v23592_v49 = vmul.f32 %v31981_v55, %v1502_v40  ;;  %v1100_v50 = vrot.slane %v1065_v9, %v21972_v3  ;;  %v1104_v0 = vrot.slane %v1064_v26, %v21972_v3  ;;  %v31986_v55 = vld [vmem:[#allocation9_spill] sm:$0xff] }
 0x163   : > { %v1136_v21 = vmul.f32 %v1112_v22, %v23118_v37  ;;  %v1148_v44 = vmul.f32 %v1112_v22, %v31968_v52  ;;  %v1159_v23 = vadd.f32 %v1135_v6, %v23367_v8  ;;  %v1171_v38 = vadd.f32 %v1147_v36, %v23370_v27  ;;  %v31982_v22 = vld [vmem:[#allocation11_spill] sm:$0xff] }
 0x164   : > { %v1133_v35 = vmul.f32 %v1100_v50, %v23118_v37  ;;  %v23606_v40 = vadd.f32 %v991_v7, %v23265_v56  ;;  %v1134_v26 = vmul.f32 %v1104_v0, %v23118_v37  ;;  %v1209_v61 = vsel %vm1204_vm6, %v1193_v10, %v1195_v31 }
 0x165   : > { %v1160_v9 = vadd.f32 %v1136_v21, %v31982_v22  ;;  %v23612_v32 = vpop.permute.xlu1 %1196  ;;  %v31983_v51 = vmax.f32 %v23583_v1, 0.0  ;;  %v31984_v8 = vmax.f32 %v23586_v48, 0.0  ;;  %v1191_v27 = vpop.permute.xlu0 %1190  ;;  %v1145_v36 = vmul.f32 %v1100_v50, %v31968_v52  ;;  %v31985_v22 = vld [vmem:[#allocation10_spill] sm:$0xff] }
 0x166   : > { %v1146_v56 = vmul.f32 %v1104_v0, %v31968_v52  ;;  %v1254_v7 = vrot.slane %v1209_v61, %v21972_v3  ;;  %v1208_v21 = vsel %vm1204_vm6, %v1195_v31, %v23612_v32  ;;  %v1172_v58 = vadd.f32 %v1148_v44, %v31985_v22  ;;  %v31989_v44 = vld [vmem:[#allocation12_spill] sm:$0xff] }
 0x167   : > { %v23618_v6 = vpack.i.bf16 %v31984_v8, %v31983_v51  ;;  %v1157_v13 = vadd.f32 %v1133_v35, %v31986_v55  ;;  %v1258_v57 = vrot.slane %v1208_v21, %v21972_v3  ;;  %v31987_v51 = vmax.f32 %v23589_v28, 0.0 }
 0x168   : > { %v31988_v50 = vmax.f32 %v23592_v49, 0.0  ;;  %v1281_v61 = vmul.f32 %v1254_v7, %v23154_v4  ;;  %v1293_v8 = vmul.f32 %v1254_v7, %v31971_v24  ;;  %v1210_v31 = vsel %vm1204_vm6, %v1191_v27, %v1193_v10 }
 0x169   : > { %19995 = vrot.lane.b32.xlu0 %v23618_v6, %s21920_s26  ;;  %v1211_v55 = vsel %vm1204_vm6, %v31989_v44, %v1191_v27  ;;  %v1282_v35 = vmul.f32 %v1258_v57, %v23154_v4  ;;  %v1294_v21 = vmul.f32 %v1258_v57, %v31971_v24  ;;  %v1341_v7 = vpop.permute.xlu0 %1340  ;;  %v1158_v19 = vadd.f32 %v1134_v26, %v23429_v16 }
 0x16a   : > { %v23635_v0 = vpack.i.bf16 %v31988_v50, %v31987_v51  ;;  %v1246_v22 = vrot.slane %v1211_v55, %v21972_v3  ;;  %v1250_v51 = vrot.slane %v1210_v31, %v21972_v3  ;;  %v1339_v50 = vpop.permute.xlu1 %1338  ;;  %v1169_v10 = vadd.f32 %v1145_v36, %v23484_v54 }
 0x16b   : > { %v1170_v34 = vadd.f32 %v1146_v56, %v23488_v63  ;;  %v1355_v27 = vsel %vm1350_vm7, %v1339_v50, %v1341_v7  ;;  %v1305_v44 = vadd.f32 %v1281_v61, %v1159_v23  ;;  %v1317_v57 = vadd.f32 %v1293_v8, %v1171_v38 }
 0x16c   : > { %20000 = vrot.lane.b32.xlu1 %v23635_v0, %s21920_s26  ;;  %v1279_v15 = vmul.f32 %v1246_v22, %v23154_v4  ;;  %v1280_v47 = vmul.f32 %v1250_v51, %v23154_v4  ;;  %v1306_v55 = vadd.f32 %v1282_v35, %v1160_v9  ;;  %v1291_v31 = vmul.f32 %v1246_v22, %v31971_v24 }
 0x16d   : > { %v1292_v20 = vmul.f32 %v1250_v51, %v31971_v24  ;;  %v1400_v16 = vrot.slane %v1355_v27, %v21972_v3  ;;  %v1318_v26 = vadd.f32 %v1294_v21, %v1172_v58  ;;  %v1337_v63 = vpop.permute.xlu0 %1336  ;;  %v31990_v27 = vld [vmem:[#allocation29_spill] sm:$0xff] }
 0x16e   : > { %v1303_v54 = vadd.f32 %v1279_v15, %v1157_v13  ;;  %v23660_v36 = vpop.permute.xlu1 %1342  ;;  %v1304_v56 = vadd.f32 %v1280_v47, %v1158_v19  ;;  %v1315_v25 = vadd.f32 %v1291_v31, %v1169_v10  ;;  %v1356_v8 = vsel %vm1350_vm7, %v1337_v63, %v1339_v50 }
 0x16f   : > { %v1427_v23 = vmul.f32 %v1400_v16, %v23235_v45  ;;  %v1439_v38 = vmul.f32 %v1400_v16, %v23271_v62  ;;  %v1316_v61 = vadd.f32 %v1292_v20, %v1170_v34  ;;  %v1354_v9 = vsel %vm1350_vm7, %v1341_v7, %v23660_v36 }
 0x170   : > { %v1357_v15 = vsel %vm1350_vm7, %v23405_v5, %v1337_v63  ;;  %v1404_v47 = vrot.slane %v1354_v9, %v21972_v3  ;;  %v1396_v35 = vrot.slane %v1356_v8, %v21972_v3 }
 0x171   : > { %v1451_v13 = vadd.f32 %v1427_v23, %v1305_v44  ;;  %v1463_v58 = vadd.f32 %v1439_v38, %v1317_v57  ;;  %v1392_v19 = vrot.slane %v1357_v15, %v21972_v3  ;;  %v1053_v63 = vpop.permute.xlu0 %1052 }
 0x172   : > { %v1055_v34 = vpop.permute.xlu1 %1054  ;;  %v1428_v22 = vmul.f32 %v1404_v47, %v23235_v45  ;;  %v1440_v51 = vmul.f32 %v1404_v47, %v23271_v62  ;;  %v1426_v5 = vmul.f32 %v1396_v35, %v23235_v45  ;;  %v1438_v10 = vmul.f32 %v1396_v35, %v23271_v62  ;;  %v31991_v47 = vld [vmem:[#allocation21_spill] sm:$0xff]  ;;  %v31992_v35 = vld [vmem:[#allocation20_spill] sm:$0xff] }
 0x173   : > { %v1485_v20 = vadd.f32 %v23407_v2, %v1451_v13  ;;  %v1497_v21 = vadd.f32 %v23420_v41, %v1463_v58  ;;  %v1425_v50 = vmul.f32 %v1392_v19, %v23235_v45  ;;  %v1437_v7 = vmul.f32 %v1392_v19, %v23271_v62 }
 0x174   : > { %v1452_v31 = vadd.f32 %v1428_v22, %v1306_v55  ;;  %v1464_v16 = vadd.f32 %v1440_v51, %v1318_v26  ;;  %v1450_v38 = vadd.f32 %v1426_v5, %v1304_v56  ;;  %v1462_v8 = vadd.f32 %v1438_v10, %v1316_v61  ;;  %v31994_v22 = vld [vmem:[#allocation18_spill] sm:$0xff] }
 0x175   : > { %v23684_v44 = vmul.f32 %v31990_v27, %v1485_v20  ;;  %v23687_v57 = vmul.f32 %v31990_v27, %v1497_v21  ;;  %v1449_v23 = vadd.f32 %v1425_v50, %v1303_v54  ;;  %v1461_v9 = vadd.f32 %v1437_v7, %v1315_v25  ;;  %v31993_v54 = vld [vmem:[#allocation23_spill] sm:$0xff]  ;;  %v31995_v5 = vld [vmem:[#allocation26_spill] sm:$0xff] }
 0x176   : > { %v1201_v15 = vpop.permute.xlu1 %1200  ;;  %v1486_v13 = vadd.f32 %v23407_v2, %v1452_v31  ;;  %v1498_v58 = vadd.f32 %v23420_v41, %v1464_v16  ;;  %v1016_v19 = vadd.f32 %v23555_v53, %v31991_v47  ;;  %v1027_v20 = vadd.f32 %v23566_v17, %v31992_v35  ;;  %v31996_v31 = vld [vmem:[#allocation27_spill] sm:$0xff] }
 0x177   : > { %v1483_v21 = vadd.f32 %v23407_v2, %v1449_v23  ;;  %v1484_v55 = vadd.f32 %v23407_v2, %v1450_v38  ;;  %v1495_v26 = vadd.f32 %v23420_v41, %v1461_v9  ;;  %v1496_v25 = vadd.f32 %v23420_v41, %v1462_v8  ;;  %v1199_v38 = vpop.permute.xlu0 %1198 }
 0x178   : > { %v23700_v56 = vmul.f32 %v31993_v54, %v1486_v13  ;;  %v23703_v61 = vmul.f32 %v31993_v54, %v1498_v58  ;;  %v1059_v53 = vsel %vm1058_vm5, %v1055_v34, %v23441_v18  ;;  %v1028_v17 = vadd.f32 %v23570_v60, %v31994_v22 }
 0x179   : > { %v1595_v51 = vmax.f32 %v23684_v44, 0.0  ;;  %v1607_v50 = vmax.f32 %v23687_v57, 0.0  ;;  %v23713_v7 = vmul.f32 %v31995_v5, %v1483_v21  ;;  %v1060_v10 = vsel %vm1058_vm5, %v1053_v63, %v1055_v34 }
 0x17a   : > { %v23718_v16 = vmul.f32 %v31996_v31, %v1484_v55  ;;  %v23721_v23 = vmul.f32 %v31995_v5, %v1495_v26  ;;  %v1124_v18 = vrot.slane %v1059_v53, %v21972_v3  ;;  %v1061_v60 = vsel %vm1058_vm5, %v23557_v46, %v1053_v63  ;;  %v1347_v9 = vpop.permute.xlu1 %1346 }
 0x17b   : > { %v1596_v8 = vmax.f32 %v23700_v56, 0.0  ;;  %v23730_v34 = vmul.f32 %v31996_v31, %v1496_v25  ;;  %v1116_v21 = vrot.slane %v1061_v60, %v21972_v3  ;;  %v1120_v55 = vrot.slane %v1060_v10, %v21972_v3 }
 0x17c   : > { %v1139_v47 = vmul.f32 %v1124_v18, %v23118_v37  ;;  %v1151_v35 = vmul.f32 %v1124_v18, %v31968_v52  ;;  %v1205_v46 = vsel %vm1204_vm6, %v1201_v15, %v23469_v42  ;;  %v1206_v63 = vsel %vm1204_vm6, %v1199_v38, %v1201_v15 }
 0x17d   : > { %v1207_v26 = vsel %vm1204_vm6, %v23612_v32, %v1199_v38  ;;  %v1351_v25 = vsel %vm1350_vm7, %v1347_v9, %v23506_v29  ;;  %v1137_v10 = vmul.f32 %v1116_v21, %v23118_v37  ;;  %v1138_v18 = vmul.f32 %v1120_v55, %v23118_v37 }
 0x17e   : > { %v1149_v15 = vmul.f32 %v1116_v21, %v31968_v52  ;;  %v1270_v60 = vrot.slane %v1205_v46, %v21972_v3  ;;  %v1262_v32 = vrot.slane %v1207_v26, %v21972_v3  ;;  %v1163_v38 = vadd.f32 %v1139_v47, %v23548_v14  ;;  %v1345_v47 = vpop.permute.xlu0 %1344 }
 0x17f   : > { %v1150_v29 = vmul.f32 %v1120_v55, %v31968_v52  ;;  %v1266_v58 = vrot.slane %v1206_v63, %v21972_v3  ;;  %v1416_v22 = vrot.slane %v1351_v25, %v21972_v3  ;;  %v1175_v53 = vadd.f32 %v1151_v35, %v23551_v59 }
 0x180   : > { %v1161_v37 = vadd.f32 %v1137_v10, %v23606_v40  ;;  %v1285_v42 = vmul.f32 %v1270_v60, %v23154_v4  ;;  %v1297_v21 = vmul.f32 %v1270_v60, %v31971_v24  ;;  %v1162_v13 = vadd.f32 %v1138_v18, %v1016_v19 }
 0x181   : > { %v1173_v46 = vadd.f32 %v1149_v15, %v1027_v20  ;;  %v1283_v26 = vmul.f32 %v1262_v32, %v23154_v4  ;;  %v1284_v14 = vmul.f32 %v1266_v58, %v23154_v4  ;;  %v1431_v63 = vmul.f32 %v1416_v22, %v23235_v45 }
 0x182   : > { %v1309_v52 = vadd.f32 %v1285_v42, %v1163_v38  ;;  %v1321_v55 = vadd.f32 %v1297_v21, %v1175_v53  ;;  %v1443_v25 = vmul.f32 %v1416_v22, %v23271_v62  ;;  %v1174_v59 = vadd.f32 %v1150_v29, %v1028_v17  ;;  %v32000_v21 = vld [vmem:[#allocation6_spill] sm:$0xff] }
 0x183   : > { %v1295_v40 = vmul.f32 %v1262_v32, %v31971_v24  ;;  %v1296_v35 = vmul.f32 %v1266_v58, %v31971_v24  ;;  %v1307_v10 = vadd.f32 %v1283_v26, %v1161_v37  ;;  %v23774_v4 = vpack.i.bf16 %v1607_v50, %v1595_v51 }
 0x184   : > { %v1455_v60 = vadd.f32 %v1431_v63, %v1309_v52  ;;  %v1467_v19 = vadd.f32 %v1443_v25, %v1321_v55  ;;  %v1352_v20 = vsel %vm1350_vm7, %v1345_v47, %v1347_v9  ;;  %v1308_v53 = vadd.f32 %v1284_v14, %v1162_v13  ;;  %v32001_v52 = vld [vmem:[#allocation4_spill] sm:$0xff] }
 0x185   : > { %v1353_v17 = vsel %vm1350_vm7, %v23660_v36, %v1345_v47  ;;  %v1412_v22 = vrot.slane %v1352_v20, %v21972_v3  ;;  %v31997_v24 = vmax.f32 %v23703_v61, 0.0  ;;  %20005 = vrot.lane.b32.xlu0 %v23774_v4, %s21920_s26  ;;  %v31998_v13 = vmax.f32 %v23718_v16, 0.0 }
 0x186   : > { %v1489_v18 = vadd.f32 %v23407_v2, %v1455_v60  ;;  %v1501_v42 = vadd.f32 %v23420_v41, %v1467_v19  ;;  %v1408_v9 = vrot.slane %v1353_v17, %v21972_v3  ;;  %v31999_v36 = vmax.f32 %v23730_v34, 0.0 }
 0x187   : > { %v23786_v58 = vpack.i.bf16 %v31997_v24, %v1596_v8  ;;  %v1319_v32 = vadd.f32 %v1295_v40, %v1173_v46  ;;  %v1320_v38 = vadd.f32 %v1296_v35, %v1174_v59  ;;  %v1430_v29 = vmul.f32 %v1412_v22, %v23235_v45  ;;  %v21905_v46 = vld [vmem:[%s31476_s3 + $0x8] sm:$0xf] }
 0x188   : > { %v23797_v15 = vpack.i.bf16 %v31999_v36, %v31998_v13  ;;  %v1442_v37 = vmul.f32 %v1412_v22, %v23271_v62  ;;  %v1575_v26 = vmul.f32 %v32000_v21, %v1489_v18  ;;  %v1587_v14 = vmul.f32 %v32000_v21, %v1501_v42  ;;  %v32005_v42 = vld [vmem:[#allocation15_spill] sm:$0xff] }
 0x189   : > { %20010 = vrot.lane.b32.xlu1 %v23786_v58, %s21920_s26  ;;  %v1429_v3 = vmul.f32 %v1408_v9, %v23235_v45  ;;  %v1441_v47 = vmul.f32 %v1408_v9, %v23271_v62  ;;  %v23811_v55 = vrot.slane %v21905_v46, %v32001_v52  ;;  %v1454_v63 = vadd.f32 %v1430_v29, %v1308_v53 }
 0x18a   : > { %v1466_v25 = vadd.f32 %v1442_v37, %v1320_v38  ;;  %v32003_v59 = vmax.f32 %v23713_v7, 0.0  ;;  %v32004_v40 = vmax.f32 %v23721_v23, 0.0  ;;  %v1599_v60 = vmax.f32 %v1575_v26, 0.0  ;;  %20015 = vrot.lane.b32.xlu0 %v23797_v15, %s21920_s26 }
 0x18b   : > { %32002 = vst [vmem:[#allocation22_spill] sm:$0xff] %v23811_v55  ;;  %v1611_v19 = vmax.f32 %v1587_v14, 0.0  ;;  %v1453_v45 = vadd.f32 %v1429_v3, %v1307_v10  ;;  %v1465_v20 = vadd.f32 %v1441_v47, %v1319_v32  ;;  %v1488_v62 = vadd.f32 %v23407_v2, %v1454_v63 }
 0x18c   : > { %v23817_v35 = vpack.i.bf16 %v32004_v40, %v32003_v59  ;;  %v1500_v17 = vadd.f32 %v23420_v41, %v1466_v25  ;;  %v31563_v37 = vmov 0.0   ;;  %v32006_v26 = vmax.f32 %v23703_v61, 0.0 }
 0x18d   : > { %v1487_v53 = vadd.f32 %v23407_v2, %v1453_v45  ;;  %v1499_v22 = vadd.f32 %v23420_v41, %v1465_v20  ;;  %v23827_v24 = vpack.i.bf16 %v1611_v19, %v1599_v60  ;;  %v1574_v18 = vmul.f32 %v23811_v55, %v1488_v62  ;;  %1931 = vmatprep.mubr.f32.mxu1 %v31563_v37 }
 0x18e   : > { %20020 = vrot.lane.b32.xlu1 %v23817_v35, %s21920_s26  ;;  %v1586_v10 = vmul.f32 %v23811_v55, %v1500_v17  ;;  %1842 = vmatprep.mubr.f32.mxu0 %v31563_v37  ;;  %v23861_v14 = vpack.c.bf16 %v32006_v26, %v1596_v8  ;;  %v32007_v3 = vmax.f32 %v23583_v1, 0.0  ;;  %v32008_v47 = vmax.f32 %v23586_v48, 0.0 }
 0x18f   : > { %v1573_v9 = vmul.f32 %v32005_v42, %v1487_v53  ;;  %v1585_v13 = vmul.f32 %v32005_v42, %v1499_v22  ;;  %20025 = vrot.lane.b32.xlu0 %v23827_v24, %s21920_s26  ;;  %v1598_v36 = vmax.f32 %v1574_v18, 0.0  ;;  %v32009_v52 = vmax.f32 %v23718_v16, 0.0  ;;  %v23966_v18 = vld [vmem:[%s31474_s1 + $0x48] sm:$0xff] }
 0x190   : > { %v1610_v32 = vmax.f32 %v1586_v10, 0.0  ;;  %v23867_v46 = vpack.c.bf16 %v32008_v47, %v32007_v3  ;;  %v32010_v63 = vmax.f32 %v23730_v34, 0.0  ;;  %v23879_v56 = vpack.c.bf16 %v1607_v50, %v1595_v51  ;;  %v23978_v10 = vld [vmem:[%s31474_s1 + $0x50] sm:$0xff] }
 0x191   : > { %v1597_v38 = vmax.f32 %v1573_v9, 0.0  ;;  %v1609_v29 = vmax.f32 %v1585_v13, 0.0  ;;  %v32011_v61 = vmax.f32 %v23589_v28, 0.0  ;;  %v32012_v1 = vmax.f32 %v23592_v49, 0.0 }
 0x192   : > { %v23835_v2 = vpack.i.bf16 %v1610_v32, %v1598_v36  ;;  %v23873_v25 = vpack.c.bf16 %v32010_v63, %v32009_v52  ;;  %v32013_v48 = vmov %v32003_v59  ;;  %v32014_v16 = vmov %v32004_v40 }
 0x193   : > { %v23837_v41 = vpack.i.bf16 %v1609_v29, %v1597_v38  ;;  %v23885_v8 = vpack.c.bf16 %v32012_v1, %v32011_v61  ;;  %v23891_v59 = vpack.c.bf16 %v32014_v16, %v32013_v48  ;;  %v23893_v34 = vpack.c.bf16 %v1610_v32, %v1598_v36  ;;  %v23990_v32 = vld [vmem:[%s31474_s1 + $0x58] sm:$0xff]  ;;  %v24018_v48 = vld [vmem:[%s31474_s1 + $0x60] sm:$0xff] }
 0x194   : > { %20030 = vrot.lane.b32.xlu1 %v23835_v2, %s21920_s26  ;;  %v23895_v40 = vpack.c.bf16 %v1611_v19, %v1599_v60  ;;  %v23897_v44 = vpack.c.bf16 %v1609_v29, %v1597_v38 }
 0x195   : > { %20035 = vrot.lane.b32.xlu0 %v23837_v41, %s21920_s26 }
 0x198   : > { %20040 = vrot.lane.b32.xlu1 %v23457_v33, %s21919_s21 }
 0x199   : > { %20045 = vrot.lane.b32.xlu0 %v23518_v12, %s21919_s21 }
 0x19c   : > { %20050 = vrot.lane.b32.xlu1 %v23527_v30, %s21919_s21 }
 0x19d   : > { %20055 = vrot.lane.b32.xlu0 %v23618_v6, %s21919_s21 }
 0x1a0   : > { %20060 = vrot.lane.b32.xlu1 %v23635_v0, %s21919_s21 }
 0x1a1   : > { %20065 = vrot.lane.b32.xlu0 %v23774_v4, %s21919_s21 }
 0x1a4   : > { %20070 = vrot.lane.b32.xlu1 %v23786_v58, %s21919_s21 }
 0x1a5   : > { %20075 = vrot.lane.b32.xlu0 %v23797_v15, %s21919_s21 }
 0x1a8   : > { %20080 = vrot.lane.b32.xlu1 %v23817_v35, %s21919_s21 }
 0x1a9   : > { %20085 = vrot.lane.b32.xlu0 %v23827_v24, %s21919_s21 }
 0x1ac   : > { %20090 = vrot.lane.b32.xlu1 %v23835_v2, %s21919_s21 }
 0x1ad   : > { %20095 = vrot.lane.b32.xlu0 %v23837_v41, %s21919_s21 }
 0x1b0   : > { %20100 = vrot.lane.b32.xlu1 %v23457_v33, %s21921_s5 }
 0x1b1   : > { %20105 = vrot.lane.b32.xlu0 %v23518_v12, %s21921_s5 }
 0x1b4   : > { %20110 = vrot.lane.b32.xlu1 %v23527_v30, %s21921_s5 }
 0x1b5   : > { %20115 = vrot.lane.b32.xlu0 %v23618_v6, %s21921_s5 }
 0x1b8   : > { %20120 = vrot.lane.b32.xlu1 %v23635_v0, %s21921_s5 }
 0x1b9   : > { %20125 = vrot.lane.b32.xlu0 %v23774_v4, %s21921_s5 }
 0x1bc   : > { %20130 = vrot.lane.b32.xlu1 %v23786_v58, %s21921_s5 }
 0x1bd   : > { %20135 = vrot.lane.b32.xlu0 %v23797_v15, %s21921_s5 }
 0x1c0   : > { %20140 = vrot.lane.b32.xlu1 %v23817_v35, %s21921_s5 }
 0x1c1   : > { %20145 = vrot.lane.b32.xlu0 %v23827_v24, %s21921_s5 }
 0x1c4   : > { %20150 = vrot.lane.b32.xlu1 %v23835_v2, %s21921_s5 }
 0x1c5   : > { %20155 = vrot.lane.b32.xlu0 %v23837_v41, %s21921_s5  ;;  %v19981_v28 = vpop.permute.xlu1 %19980 }
 0x1c6   : > { %v19983_v49 = vunpack.i.h.bf16 %v19981_v28  ;;  %v19982_v57 = vunpack.i.l.bf16 %v19981_v28 }
 0x1c8   : > { %20160 = vrot.lane.b32.xlu1 %v23457_v33, %s21922_s10 }
 0x1c9   : > { %20165 = vrot.lane.b32.xlu0 %v23518_v12, %s21922_s10 }
 0x1cc   : > { %v23939_v51 = vpop.permute.xlu0 %19985  ;;  %v19991_v50 = vpop.permute.xlu1 %19990  ;;  %20170 = vrot.lane.b32.xlu1 %v23527_v30, %s21922_s10 }
 0x1cd   : > { %v19988_v7 = vunpack.i.h.bf16 %v23939_v51  ;;  %v19987_v23 = vunpack.i.l.bf16 %v23939_v51  ;;  %v19993_v60 = vunpack.i.h.bf16 %v19991_v50  ;;  %v19992_v19 = vunpack.i.l.bf16 %v19991_v50  ;;  %20175 = vrot.lane.b32.xlu0 %v23618_v6, %s21922_s10 }
 0x1cf   : > { %v1757_v45 = vsel %vm413_vm1, %v19982_v57, %v19987_v23  ;;  %v1758_v20 = vsel %vm413_vm1, %v19983_v49, %v19988_v7  ;;  %v1759_v62 = vsel %vm413_vm1, %v19992_v19, %v19982_v57  ;;  %v1760_v17 = vsel %vm413_vm1, %v19993_v60, %v19983_v49 }
 0x1d0   : > { %v18422_v53 = vpack.c.bf16 %v1758_v20, %v1757_v45  ;;  %v18424_v22 = vpack.c.bf16 %v1760_v17, %v1759_v62  ;;  %20180 = vrot.lane.b32.xlu1 %v23635_v0, %s21922_s10 }
 0x1d1   : > { %20185 = vrot.lane.b32.xlu0 %v23774_v4, %s21922_s10 }
 0x1d2   : > { %18423 = vmatprep.subr.bf16.mxu1 %v18422_v53 }
 0x1d3   : > { %18425 = vmatpush1.bf16.msra.mxu1 %v18424_v22 }
 0x1d4   : > { %20190 = vrot.lane.b32.xlu1 %v23786_v58, %s21922_s10 }
 0x1d5   : > { %20195 = vrot.lane.b32.xlu0 %v23797_v15, %s21922_s10 }
 0x1d6   : > { %17990 = vmatmul.mubr.msk.f32.vlgmr.msra.gmra.mrb[0].mxu1 %vm1765_vm8, %v23966_v18 }
 0x1d7   : > { %1937 = vmatprep.mubr.f32.mxu1 %v31563_v37 }
 0x1d8   : > { %20200 = vrot.lane.b32.xlu1 %v23817_v35, %s21922_s10 }
 0x1d9   : > { %20205 = vrot.lane.b32.xlu0 %v23827_v24, %s21922_s10 }
 0x1da   : > { %17991 = vmatmul.mubr.msk.f32.gmra.mrb[2].mxu1 %vm1765_vm8, %v23978_v10 }
 0x1db   : > { %v19996_v9 = vpop.permute.xlu0 %19995  ;;  %1943 = vmatprep.mubr.f32.mxu1 %v31563_v37 }
 0x1dc   : > { %v19998_v13 = vunpack.i.h.bf16 %v19996_v9  ;;  %v19997_v36 = vunpack.i.l.bf16 %v19996_v9  ;;  %20210 = vrot.lane.b32.xlu1 %v23835_v2, %s21922_s10 }
 0x1dd   : > { %20215 = vrot.lane.b32.xlu0 %v23837_v41, %s21922_s10 }
 0x1de   : > { %v23992_v38 = vpop.permute.xlu1 %20000  ;;  %v1761_v3 = vsel %vm413_vm1, %v19997_v36, %v19992_v19  ;;  %v1762_v47 = vsel %vm413_vm1, %v19998_v13, %v19993_v60  ;;  %17992 = vmatmul.mubr.msk.f32.gmra.mrb[4].mxu1 %vm1765_vm8, %v23990_v32 }
 0x1df   : > { %v20003_v29 = vunpack.i.h.bf16 %v23992_v38  ;;  %v20002_v26 = vunpack.i.l.bf16 %v23992_v38  ;;  %v18418_v52 = vpack.c.bf16 %v1762_v47, %v1761_v3  ;;  %1949 = vmatprep.mubr.f32.mxu1 %v31563_v37 }
 0x1e0   : > { %20220 = vrot.lane.b32.xlu1 %v23618_v6, %s21923_s23 }
 0x1e1   : > { %v1763_v63 = vsel %vm413_vm1, %v20002_v26, %v19997_v36  ;;  %v1764_v61 = vsel %vm413_vm1, %v20003_v29, %v19998_v13  ;;  %18419 = vmatprep.subr.bf16.mxu0 %v18418_v52  ;;  %20225 = vrot.lane.b32.xlu0 %v23527_v30, %s21923_s23 }
 0x1e2   : > { %v18420_v1 = vpack.c.bf16 %v1764_v61, %v1763_v63  ;;  %17993 = vmatmul.mubr.msk.f32.gmra.mrb[6].mxu1 %vm1765_vm8, %v24018_v48 }
 0x1e3   : > { %2109 = vmatprep.mubr.f32.mxu1 %v31563_v37 }
 0x1e4   : > { %18421 = vmatpush1.bf16.msra.mxu0 %v18420_v1  ;;  %20230 = vrot.lane.b32.xlu1 %v23457_v33, %s21923_s23 }
 0x1e5   : > { %20235 = vrot.lane.b32.xlu0 %v23518_v12, %s21923_s23 }
 0x1e7   : > { %17986 = vmatmul.mubr.msk.f32.vlgmr.msra.gmra.mrb[0].mxu0 %vm1765_vm8, %v23966_v18 }
 0x1e8   : > { %1848 = vmatprep.mubr.f32.mxu0 %v31563_v37  ;;  %20240 = vrot.lane.b32.xlu1 %v23817_v35, %s21923_s23 }
 0x1e9   : > { %20245 = vrot.lane.b32.xlu0 %v23797_v15, %s21923_s23 }
 0x1eb   : > { %17987 = vmatmul.mubr.msk.f32.gmra.mrb[2].mxu0 %vm1765_vm8, %v23978_v10 }
 0x1ec   : > { %1854 = vmatprep.mubr.f32.mxu0 %v31563_v37  ;;  %20250 = vrot.lane.b32.xlu1 %v23774_v4, %s21923_s23 }
 0x1ed   : > { %20255 = vrot.lane.b32.xlu0 %v23786_v58, %s21923_s23 }
 0x1ef   : > { %17988 = vmatmul.mubr.msk.f32.gmra.mrb[4].mxu0 %vm1765_vm8, %v23990_v32 }
 0x1f0   : > { %1860 = vmatprep.mubr.f32.mxu0 %v31563_v37  ;;  %20260 = vrot.lane.b32.xlu1 %v23837_v41, %s21923_s23 }
 0x1f1   : > { %20265 = vrot.lane.b32.xlu0 %v23835_v2, %s21923_s23 }
 0x1f3   : > { %17989 = vmatmul.mubr.msk.f32.gmra.mrb[6].mxu0 %vm1765_vm8, %v24018_v48 }
 0x1f4   : > { %2020 = vmatprep.mubr.f32.mxu0 %v31563_v37  ;;  %20270 = vrot.lane.b32.xlu1 %v23827_v24, %s21923_s23 }
 0x1f5   : > { %20275 = vrot.lane.b32.xlu0 %v23635_v0, %s21923_s23 }
 0x1f7   : > { %v20006_v16 = vpop.permute.xlu0 %20005 }
 0x1f8   : > { %20280 = vrot.lane.b32.xlu1 %v23618_v6, %s21924_s13  ;;  %v20008_v49 = vunpack.i.h.bf16 %v20006_v16  ;;  %v20007_v57 = vunpack.i.l.bf16 %v20006_v16 }
 0x1f9   : > { %20285 = vrot.lane.b32.xlu0 %v23527_v30, %s21924_s13 }
 0x1fb   : > { %v20011_v28 = vpop.permute.xlu1 %20010 }
 0x1fc   : > { %v20013_v50 = vunpack.i.h.bf16 %v20011_v28  ;;  %v20012_v60 = vunpack.i.l.bf16 %v20011_v28  ;;  %20290 = vrot.lane.b32.xlu1 %v23457_v33, %s21924_s13  ;;  %v20016_v19 = vpop.permute.xlu0 %20015 }
 0x1fd   : > { %20295 = vrot.lane.b32.xlu0 %v23518_v12, %s21924_s13  ;;  %v20018_v62 = vunpack.i.h.bf16 %v20016_v19  ;;  %v20017_v17 = vunpack.i.l.bf16 %v20016_v19 }
 0x1fe   : > { %v1749_v45 = vsel %vm413_vm1, %v20007_v57, %v20012_v60  ;;  %v1750_v20 = vsel %vm413_vm1, %v20008_v49, %v20013_v50 }
 0x1ff   : > { %v18430_v22 = vpack.c.bf16 %v1750_v20, %v1749_v45  ;;  %v1751_v36 = vsel %vm413_vm1, %v20017_v17, %v20007_v57  ;;  %v1752_v3 = vsel %vm413_vm1, %v20018_v62, %v20008_v49 }
 0x200   : > { %v20021_v53 = vpop.permute.xlu1 %20020  ;;  %20300 = vrot.lane.b32.xlu1 %v23817_v35, %s21924_s13  ;;  %v18432_v63 = vpack.c.bf16 %v1752_v3, %v1751_v36 }
 0x201   : > { %v20023_v9 = vunpack.i.h.bf16 %v20021_v53  ;;  %v20022_v13 = vunpack.i.l.bf16 %v20021_v53  ;;  %18431 = vmatprep.subr.bf16.mxu1 %v18430_v22  ;;  %20305 = vrot.lane.b32.xlu0 %v23797_v15, %s21924_s13  ;;  %v20026_v1 = vpop.permute.xlu0 %20025 }
 0x202   : > { %v20028_v49 = vunpack.i.h.bf16 %v20026_v1  ;;  %v20027_v57 = vunpack.i.l.bf16 %v20026_v1  ;;  %18433 = vmatpush1.bf16.msra.mxu1 %v18432_v63 }
 0x203   : > { %v1755_v47 = vsel %vm413_vm1, %v19987_v23, %v20022_v13  ;;  %v1756_v52 = vsel %vm413_vm1, %v19988_v7, %v20023_v9  ;;  %v1753_v61 = vsel %vm413_vm1, %v20022_v13, %v20017_v17  ;;  %v1754_v16 = vsel %vm413_vm1, %v20023_v9, %v20018_v62 }
 0x204   : > { %v18428_v28 = vpack.c.bf16 %v1756_v52, %v1755_v47  ;;  %v18426_v23 = vpack.c.bf16 %v1754_v16, %v1753_v61  ;;  %20310 = vrot.lane.b32.xlu1 %v23774_v4, %s21924_s13  ;;  %v1741_v51 = vsel %vm413_vm1, %v20027_v57, %v20002_v26  ;;  %v1742_v7 = vsel %vm413_vm1, %v20028_v49, %v20003_v29 }
 0x205   : > { %20315 = vrot.lane.b32.xlu0 %v23786_v58, %s21924_s13  ;;  %v18438_v19 = vpack.c.bf16 %v1742_v7, %v1741_v51  ;;  %17998 = vmatmul.mubr.msk.f32.vlgmr.msra.gmra.mrb[8].mxu1 %vm1765_vm8, %v23966_v18 }
 0x206   : > { %18427 = vmatprep.subr.bf16.mxu0 %v18426_v23  ;;  %v20031_v45 = vpop.permute.xlu1 %20030  ;;  %2115 = vmatprep.mubr.f32.mxu1 %v31563_v37 }
 0x207   : > { %18429 = vmatpush1.bf16.msra.mxu0 %v18428_v28  ;;  %v20033_v20 = vunpack.i.h.bf16 %v20031_v45  ;;  %v20032_v62 = vunpack.i.l.bf16 %v20031_v45  ;;  %v20036_v26 = vpop.permute.xlu0 %20035  ;;  %18439 = vmatprep.subr.bf16.mxu1 %v18438_v19 }
 0x208   : > { %20320 = vrot.lane.b32.xlu1 %v23837_v41, %s21924_s13  ;;  %v20038_v38 = vunpack.i.h.bf16 %v20036_v26  ;;  %v20037_v29 = vunpack.i.l.bf16 %v20036_v26 }
 0x209   : > { %v1744_v17 = vsel %vm413_vm1, %v20033_v20, %v20028_v49  ;;  %v1743_v53 = vsel %vm413_vm1, %v20032_v62, %v20027_v57  ;;  %20325 = vrot.lane.b32.xlu0 %v23835_v2, %s21924_s13  ;;  %17999 = vmatmul.mubr.msk.f32.gmra.mrb[10].mxu1 %vm1765_vm8, %v23978_v10 }
 0x20a   : > { %17994 = vmatmul.mubr.msk.f32.vlgmr.msra.gmra.mrb[8].mxu0 %vm1765_vm8, %v23966_v18  ;;  %v20041_v22 = vpop.permute.xlu1 %20040  ;;  %v1748_v9 = vsel %vm413_vm1, %v20013_v50, %v20038_v38  ;;  %v1747_v13 = vsel %vm413_vm1, %v20012_v60, %v20037_v29  ;;  %v18440_v36 = vpack.c.bf16 %v1744_v17, %v1743_v53  ;;  %2121 = vmatprep.mubr.f32.mxu1 %v31563_v37 }
 0x20b   : > { %2026 = vmatprep.mubr.f32.mxu0 %v31563_v37  ;;  %v20043_v3 = vunpack.i.h.bf16 %v20041_v22  ;;  %v20042_v47 = vunpack.i.l.bf16 %v20041_v22  ;;  %v24124_v52 = vpop.permute.xlu0 %20045  ;;  %v1745_v63 = vsel %vm413_vm1, %v20037_v29, %v20032_v62  ;;  %v1746_v61 = vsel %vm413_vm1, %v20038_v38, %v20033_v20 }
 0x20c   : > { %20330 = vrot.lane.b32.xlu1 %v23827_v24, %s21924_s13  ;;  %18441 = vmatpush1.bf16.msra.mxu1 %v18440_v36  ;;  %v20048_v50 = vunpack.i.h.bf16 %v24124_v52  ;;  %v20047_v60 = vunpack.i.l.bf16 %v24124_v52  ;;  %v18434_v1 = vpack.c.bf16 %v1746_v61, %v1745_v63  ;;  %v18436_v16 = vpack.c.bf16 %v1748_v9, %v1747_v13  ;;  %v24290_v52 = vld [vmem:[%s31474_s1 + $0x8] sm:$0xff] }
 0x20d   : > { %20335 = vrot.lane.b32.xlu0 %v23635_v0, %s21924_s13  ;;  %18000 = vmatmul.mubr.msk.f32.gmra.mrb[12].mxu1 %vm1765_vm8, %v23990_v32 }
 0x20e   : > { %17995 = vmatmul.mubr.msk.f32.gmra.mrb[10].mxu0 %vm1765_vm8, %v23978_v10  ;;  %v20051_v28 = vpop.permute.xlu1 %20050  ;;  %v1681_v49 = vsel %vm291_vm0, %v20042_v47, %v20047_v60  ;;  %v1682_v57 = vsel %vm291_vm0, %v20043_v3, %v20048_v50  ;;  %2127 = vmatprep.mubr.f32.mxu1 %v31563_v37 }
 0x20f   : > { %2032 = vmatprep.mubr.f32.mxu0 %v31563_v37  ;;  %v20053_v23 = vunpack.i.h.bf16 %v20051_v28  ;;  %v20052_v51 = vunpack.i.l.bf16 %v20051_v28  ;;  %18435 = vmatprep.subr.bf16.mxu0 %v18434_v1  ;;  %v20056_v7 = vpop.permute.xlu0 %20055  ;;  %v18446_v19 = vpack.c.bf16 %v1682_v57, %v1681_v49 }
 0x210   : > { %20340 = vrot.lane.b32.xlu1 %v23618_v6, %s21925_s22  ;;  %18437 = vmatpush1.bf16.msra.mxu0 %v18436_v16  ;;  %v20058_v45 = vunpack.i.h.bf16 %v20056_v7  ;;  %v20057_v20 = vunpack.i.l.bf16 %v20056_v7 }
 0x211   : > { %v1683_v62 = vsel %vm291_vm0, %v20052_v51, %v20042_v47  ;;  %v1684_v26 = vsel %vm291_vm0, %v20053_v23, %v20043_v3  ;;  %20345 = vrot.lane.b32.xlu0 %v23527_v30, %s21925_s22  ;;  %18001 = vmatmul.mubr.msk.f32.gmra.mrb[14].mxu1 %vm1765_vm8, %v24018_v48 }
 0x212   : > { %17996 = vmatmul.mubr.msk.f32.gmra.mrb[12].mxu0 %vm1765_vm8, %v23990_v32  ;;  %v24162_v38 = vpop.permute.xlu1 %20060  ;;  %v1685_v29 = vsel %vm291_vm0, %v20057_v20, %v20052_v51  ;;  %v1686_v17 = vsel %vm291_vm0, %v20058_v45, %v20053_v23  ;;  %2287 = vmatprep.mubr.f32.mxu1 %v31563_v37  ;;  %v18448_v9 = vpack.c.bf16 %v1684_v26, %v1683_v62 }
 0x213   : > { %2038 = vmatprep.mubr.f32.mxu0 %v31563_v37  ;;  %v20063_v53 = vunpack.i.h.bf16 %v24162_v38  ;;  %v20062_v22 = vunpack.i.l.bf16 %v24162_v38  ;;  %18447 = vmatprep.subr.bf16.mxu1 %v18446_v19  ;;  %v20066_v13 = vpop.permute.xlu0 %20065  ;;  %v18442_v36 = vpack.c.bf16 %v1686_v17, %v1685_v29 }
 0x214   : > { %20350 = vrot.lane.b32.xlu1 %v23457_v33, %s21925_s22  ;;  %v20068_v63 = vunpack.i.h.bf16 %v20066_v13  ;;  %v20067_v61 = vunpack.i.l.bf16 %v20066_v13 }
 0x215   : > { %v1688_v3 = vsel %vm291_vm0, %v20063_v53, %v20058_v45  ;;  %v1687_v47 = vsel %vm291_vm0, %v20062_v22, %v20057_v20  ;;  %20355 = vrot.lane.b32.xlu0 %v23518_v12, %s21925_s22  ;;  %18006 = vmatmul.mubr.msk.f32.vlgmr.msra.gmra.mrb[16].mxu1 %vm1765_vm8, %v23966_v18 }
 0x216   : > { %17997 = vmatmul.mubr.msk.f32.gmra.mrb[14].mxu0 %vm1765_vm8, %v24018_v48  ;;  %v24184_v1 = vpop.permute.xlu1 %20070  ;;  %v18444_v16 = vpack.c.bf16 %v1688_v3, %v1687_v47  ;;  %18449 = vmatpush1.bf16.msra.mxu1 %v18448_v9 }
 0x217   : > { %2198 = vmatprep.mubr.f32.mxu0 %v31563_v37  ;;  %v20073_v28 = vunpack.i.h.bf16 %v24184_v1  ;;  %v20072_v49 = vunpack.i.l.bf16 %v24184_v1  ;;  %2293 = vmatprep.mubr.f32.mxu1 %v31563_v37  ;;  %v20076_v57 = vpop.permute.xlu0 %20075 }
 0x218   : > { %20360 = vrot.lane.b32.xlu1 %v23817_v35, %s21925_s22  ;;  %18443 = vmatprep.subr.bf16.mxu0 %v18442_v36  ;;  %v20077_v23 = vunpack.i.l.bf16 %v20076_v57 }
 0x219   : > { %20365 = vrot.lane.b32.xlu0 %v23797_v15, %s21925_s22  ;;  %v1673_v51 = vsel %vm291_vm0, %v20067_v61, %v20072_v49  ;;  %v1674_v7 = vsel %vm291_vm0, %v20068_v63, %v20073_v28  ;;  %18007 = vmatmul.mubr.msk.f32.gmra.mrb[18].mxu1 %vm1765_vm8, %v23978_v10 }
 0x21a   : > { %18002 = vmatmul.mubr.msk.f32.vlgmr.msra.gmra.mrb[16].mxu0 %vm1765_vm8, %v23966_v18  ;;  %v20081_v19 = vpop.permute.xlu1 %20080  ;;  %v20078_v18 = vunpack.i.h.bf16 %v20076_v57  ;;  %v18454_v45 = vpack.c.bf16 %v1674_v7, %v1673_v51  ;;  %2299 = vmatprep.mubr.f32.mxu1 %v31563_v37  ;;  %v1675_v51 = vsel %vm291_vm0, %v20077_v23, %v20067_v61 }
 0x21b   : > { %18445 = vmatpush1.bf16.msra.mxu0 %v18444_v16  ;;  %v20083_v20 = vunpack.i.h.bf16 %v20081_v19  ;;  %v20082_v62 = vunpack.i.l.bf16 %v20081_v19  ;;  %2204 = vmatprep.mubr.f32.mxu0 %v31563_v37  ;;  %v24208_v26 = vpop.permute.xlu0 %20085 }
 0x21c   : > { %20370 = vrot.lane.b32.xlu1 %v23774_v4, %s21925_s22  ;;  %18455 = vmatprep.subr.bf16.mxu1 %v18454_v45  ;;  %v20088_v38 = vunpack.i.h.bf16 %v24208_v26  ;;  %v20087_v29 = vunpack.i.l.bf16 %v24208_v26  ;;  %v1676_v7 = vsel %vm291_vm0, %v20078_v18, %v20068_v63 }
 0x21d   : > { %20375 = vrot.lane.b32.xlu0 %v23786_v58, %s21925_s22  ;;  %v1677_v17 = vsel %vm291_vm0, %v20082_v62, %v20077_v23  ;;  %18008 = vmatmul.mubr.msk.f32.gmra.mrb[20].mxu1 %vm1765_vm8, %v23990_v32  ;;  %v1678_v9 = vsel %vm291_vm0, %v20083_v20, %v20078_v18  ;;  %v1679_v23 = vsel %vm291_vm0, %v20047_v60, %v20082_v62 }
 0x21e   : > { %18003 = vmatmul.mubr.msk.f32.gmra.mrb[18].mxu0 %vm1765_vm8, %v23978_v10  ;;  %v24225_v13 = vpop.permute.xlu1 %20090  ;;  %2305 = vmatprep.mubr.f32.mxu1 %v31563_v37  ;;  %v18450_v10 = vpack.c.bf16 %v1678_v9, %v1677_v17  ;;  %v1665_v16 = vsel %vm291_vm0, %v20087_v29, %v20062_v22  ;;  %v1666_v57 = vsel %vm291_vm0, %v20088_v38, %v20063_v53  ;;  %v24259_v53 = vld [vmem:[%s31474_s1] sm:$0xff] }
 0x21f   : > { %2210 = vmatprep.mubr.f32.mxu0 %v31563_v37  ;;  %v24228_v36 = vpop.permute.xlu0 %20095  ;;  %v20093_v19 = vunpack.i.h.bf16 %v24225_v13  ;;  %v18462_v22 = vpack.c.bf16 %v1666_v57, %v1665_v16  ;;  %v1680_v18 = vsel %vm291_vm0, %v20048_v50, %v20083_v20  ;;  %v18456_v45 = vpack.c.bf16 %v1676_v7, %v1675_v51  ;;  %v24306_v20 = vld [vmem:[%s31474_s1 + $0x10] sm:$0xff] }
 0x220   : > { %20380 = vrot.lane.b32.xlu1 %v23837_v41, %s21925_s22  ;;  %v20098_v3 = vunpack.i.h.bf16 %v24228_v36  ;;  %v20097_v47 = vunpack.i.l.bf16 %v24228_v36  ;;  %18451 = vmatprep.subr.bf16.mxu0 %v18450_v10 }
 0x221   : > { %18009 = vmatmul.mubr.msk.f32.gmra.mrb[22].mxu1 %vm1765_vm8, %v24018_v48  ;;  %20385 = vrot.lane.b32.xlu0 %v23835_v2, %s21925_s22  ;;  %v1668_v16 = vsel %vm291_vm0, %v20093_v19, %v20088_v38 }
 0x222   : > { %18004 = vmatmul.mubr.msk.f32.gmra.mrb[20].mxu0 %vm1765_vm8, %v23990_v32  ;;  %v20092_v32 = vunpack.i.l.bf16 %v24225_v13  ;;  %2477 = vmatprep.mubr.f32.mxu1 %v31563_v37  ;;  %v1670_v61 = vsel %vm291_vm0, %v20098_v3, %v20093_v19  ;;  %v24284_v17 = vpop.permute.xlu1 %20100  ;;  %v1672_v19 = vsel %vm291_vm0, %v20073_v28, %v20098_v3 }
 0x223   : > { %2216 = vmatprep.mubr.f32.mxu0 %v31563_v37  ;;  %v24294_v60 = vpop.permute.xlu0 %20105  ;;  %v20102_v10 = vunpack.i.l.bf16 %v24284_v17 }
 0x224   : > { %20390 = vrot.lane.b32.xlu1 %v23827_v24, %s21925_s22  ;;  %v1669_v63 = vsel %vm291_vm0, %v20097_v47, %v20092_v32  ;;  %v20108_v62 = vunpack.i.h.bf16 %v24294_v60  ;;  %v20107_v9 = vunpack.i.l.bf16 %v24294_v60 }
 0x225   : > { %18014 = vmatmul.mubr.msk.f32.vlgmr.msra.gmra.mrb[0].mxu1 %vm1765_vm8, %v24259_v53  ;;  %v18458_v50 = vpack.c.bf16 %v1670_v61, %v1669_v63  ;;  %20395 = vrot.lane.b32.xlu0 %v23635_v0, %s21925_s22 }
 0x226   : > { %18005 = vmatmul.mubr.msk.f32.gmra.mrb[22].mxu0 %vm1765_vm8, %v24018_v48  ;;  %18457 = vmatpush1.bf16.msra.mxu1 %v18456_v45  ;;  %v18452_v48 = vpack.c.bf16 %v1680_v18, %v1679_v23  ;;  %v2926_v26 = vsel %vm559_vm2, %v20102_v10, %v20107_v9 }
 0x227   : > { %2388 = vmatprep.mubr.f32.mxu0 %v31563_v37  ;;  %2483 = vmatprep.mubr.f32.mxu1 %v31563_v37  ;;  %v24322_v13 = vpop.permute.xlu0 %20115 }
 0x228   : > { %18463 = vmatprep.subr.bf16.mxu1 %v18462_v22  ;;  %20400 = vrot.lane.b32.xlu1 %v23618_v6, %s21926_s24  ;;  %v24311_v6 = vpop.permute.xlu1 %20110  ;;  %v20118_v57 = vunpack.i.h.bf16 %v24322_v13  ;;  %v20117_v51 = vunpack.i.l.bf16 %v24322_v13 }
 0x229   : > { %18015 = vmatmul.mubr.msk.f32.gmra.mrb[2].mxu1 %vm1765_vm8, %v24290_v52  ;;  %20405 = vrot.lane.b32.xlu0 %v23527_v30, %s21926_s24  ;;  %v20103_v30 = vunpack.i.h.bf16 %v24284_v17  ;;  %v20112_v7 = vunpack.i.l.bf16 %v24311_v6 }
 0x22a   : > { %18010 = vmatmul.mubr.msk.f32.vlgmr.msra.gmra.mrb[0].mxu0 %vm1765_vm8, %v24259_v53  ;;  %2489 = vmatprep.mubr.f32.mxu1 %v31563_v37 }
 0x22b   : > { %18453 = vmatpush1.bf16.msra.mxu0 %v18452_v48  ;;  %2394 = vmatprep.mubr.f32.mxu0 %v31563_v37  ;;  %v2927_v38 = vsel %vm559_vm2, %v20103_v30, %v20108_v62  ;;  %v2930_v1 = vsel %vm559_vm2, %v20117_v51, %v20112_v7  ;;  %v24398_v36 = vpop.permute.xlu0 %20125 }
 0x22c   : > { %18459 = vmatprep.subr.bf16.mxu0 %v18458_v50  ;;  %20410 = vrot.lane.b32.xlu1 %v23457_v33, %s21926_s24  ;;  %v24328_v33 = vld [vmem:[%s31474_s1 + $0x18] sm:$0xff]  ;;  %v18470_v22 = vpack.c.bf16 %v2927_v38, %v2926_v26  ;;  %v20127_v63 = vunpack.i.l.bf16 %v24398_v36 }
 0x22d   : > { %18016 = vmatmul.mubr.msk.f32.gmra.mrb[4].mxu1 %vm1765_vm8, %v24306_v20  ;;  %20415 = vrot.lane.b32.xlu0 %v23518_v12, %s21926_s24  ;;  %v1667_v12 = vsel %vm291_vm0, %v20092_v32, %v20087_v29  ;;  %v20113_v29 = vunpack.i.h.bf16 %v24311_v6  ;;  %v1671_v32 = vsel %vm291_vm0, %v20072_v49, %v20097_v47  ;;  %v20128_v47 = vunpack.i.h.bf16 %v24398_v36 }
 0x22e   : > { %18011 = vmatmul.mubr.msk.f32.gmra.mrb[2].mxu0 %vm1765_vm8, %v24290_v52  ;;  %2495 = vmatprep.mubr.f32.mxu1 %v31563_v37  ;;  %v18460_v28 = vpack.c.bf16 %v1672_v19, %v1671_v32 }
 0x22f   : > { %2400 = vmatprep.mubr.f32.mxu0 %v31563_v37  ;;  %v20136_v61 = vpop.permute.xlu0 %20135  ;;  %v2929_v23 = vsel %vm559_vm2, %v20113_v29, %v20103_v30 }
 0x230   : > { %20420 = vrot.lane.b32.xlu1 %v23817_v35, %s21926_s24  ;;  %v24351_v35 = vpop.permute.xlu1 %20120  ;;  %v20138_v48 = vunpack.i.h.bf16 %v20136_v61  ;;  %v20137_v6 = vunpack.i.l.bf16 %v20136_v61 }
 0x231   : > { %18017 = vmatmul.mubr.msk.f32.gmra.mrb[6].mxu1 %vm1765_vm8, %v24328_v33  ;;  %20425 = vrot.lane.b32.xlu0 %v23797_v15, %s21926_s24  ;;  %v18464_v15 = vpack.c.bf16 %v1668_v16, %v1667_v12  ;;  %v20123_v18 = vunpack.i.h.bf16 %v24351_v35  ;;  %v20122_v45 = vunpack.i.l.bf16 %v24351_v35 }
 0x232   : > { %18012 = vmatmul.mubr.msk.f32.gmra.mrb[4].mxu0 %vm1765_vm8, %v24306_v20  ;;  %2655 = vmatprep.mubr.f32.mxu1 %v31563_v37  ;;  %v2921_v32 = vsel %vm559_vm2, %v20138_v48, %v20128_v47 }
 0x233   : > { %2406 = vmatprep.mubr.f32.mxu0 %v31563_v37  ;;  %v2932_v16 = vsel %vm559_vm2, %v20122_v45, %v20117_v51  ;;  %v24466_v51 = vpop.permute.xlu0 %20145 }
 0x234   : > { %20430 = vrot.lane.b32.xlu1 %v23774_v4, %s21926_s24  ;;  %v2931_v4 = vsel %vm559_vm2, %v20118_v57, %v20113_v29  ;;  %v24396_v49 = vpop.permute.xlu1 %20130  ;;  %v20147_v29 = vunpack.i.l.bf16 %v24466_v51 }
 0x235   : > { %18022 = vmatmul.mubr.msk.f32.vlgmr.msra.gmra.mrb[8].mxu1 %vm1765_vm8, %v24259_v53  ;;  %20435 = vrot.lane.b32.xlu0 %v23786_v58, %s21926_s24  ;;  %v18466_v3 = vpack.c.bf16 %v2931_v4, %v2930_v1  ;;  %v20133_v58 = vunpack.i.h.bf16 %v24396_v49 }
 0x236   : > { %18013 = vmatmul.mubr.msk.f32.gmra.mrb[6].mxu0 %vm1765_vm8, %v24328_v33  ;;  %18465 = vmatpush1.bf16.msra.mxu1 %v18464_v15  ;;  %v2910_v1 = vsel %vm559_vm2, %v20147_v29, %v20122_v45 }
 0x237   : > { %2566 = vmatprep.mubr.f32.mxu0 %v31563_v37  ;;  %2661 = vmatprep.mubr.f32.mxu1 %v31563_v37  ;;  %v2919_v30 = vsel %vm559_vm2, %v20128_v47, %v20133_v58 }
 0x238   : > { %18471 = vmatprep.subr.bf16.mxu1 %v18470_v22  ;;  %20440 = vrot.lane.b32.xlu1 %v23837_v41, %s21926_s24  ;;  %v20132_v41 = vunpack.i.l.bf16 %v24396_v49 }
 0x239   : > { %18023 = vmatmul.mubr.msk.f32.gmra.mrb[10].mxu1 %vm1765_vm8, %v24290_v52  ;;  %20445 = vrot.lane.b32.xlu0 %v23835_v2, %s21926_s24  ;;  %v24421_v2 = vpop.permute.xlu1 %20140 }
 0x23a   : > { %18018 = vmatmul.mubr.msk.f32.vlgmr.msra.gmra.mrb[8].mxu0 %vm1765_vm8, %v24259_v53  ;;  %2667 = vmatprep.mubr.f32.mxu1 %v31563_v37  ;;  %v20143_v17 = vunpack.i.h.bf16 %v24421_v2  ;;  %v20142_v50 = vunpack.i.l.bf16 %v24421_v2 }
 0x23b   : > { %18461 = vmatpush1.bf16.msra.mxu0 %v18460_v28  ;;  %2572 = vmatprep.mubr.f32.mxu0 %v31563_v37 }
 0x23c   : > { %18467 = vmatprep.subr.bf16.mxu0 %v18466_v3  ;;  %20450 = vrot.lane.b32.xlu1 %v23827_v24, %s21926_s24  ;;  %v2928_v24 = vsel %vm559_vm2, %v20112_v7, %v20102_v10  ;;  %v2933_v10 = vsel %vm559_vm2, %v20123_v18, %v20118_v57  ;;  %v2922_v26 = vsel %vm559_vm2, %v20142_v50, %v20137_v6  ;;  %v24481_v7 = vpop.permute.xlu0 %20155 }
 0x23d   : > { %18024 = vmatmul.mubr.msk.f32.gmra.mrb[12].mxu1 %vm1765_vm8, %v24306_v20  ;;  %20455 = vrot.lane.b32.xlu0 %v23635_v0, %s21926_s24  ;;  %v2918_v0 = vsel %vm559_vm2, %v20127_v63, %v20132_v41  ;;  %v18472_v12 = vpack.c.bf16 %v2929_v23, %v2928_v24  ;;  %v2923_v57 = vsel %vm559_vm2, %v20143_v17, %v20138_v48  ;;  %v20151_v19 = vpop.permute.xlu1 %20150  ;;  %v20158_v15 = vunpack.i.h.bf16 %v24481_v7 }
 0x23e   : > { %18019 = vmatmul.mubr.msk.f32.gmra.mrb[10].mxu0 %vm1765_vm8, %v24290_v52  ;;  %2673 = vmatprep.mubr.f32.mxu1 %v31563_v37  ;;  %v18478_v35 = vpack.c.bf16 %v2919_v30, %v2918_v0  ;;  %v18468_v13 = vpack.c.bf16 %v2933_v10, %v2932_v16  ;;  %v18474_v38 = vpack.c.bf16 %v2923_v57, %v2922_v26  ;;  %v20157_v22 = vunpack.i.l.bf16 %v24481_v7 }
 0x23f   : > { %2578 = vmatprep.mubr.f32.mxu0 %v31563_v37  ;;  %v20153_v28 = vunpack.i.h.bf16 %v20151_v19  ;;  %v20152_v36 = vunpack.i.l.bf16 %v20151_v19  ;;  %v2924_v3 = vsel %vm559_vm2, %v20107_v9, %v20142_v50  ;;  %v2925_v47 = vsel %vm559_vm2, %v20108_v62, %v20143_v17  ;;  %v24528_v62 = vld [vmem:[%s31474_s1 + $0x98] sm:$0xff] }
 0x240   : > { %v24530_v24 = vpop.permute.xlu0 %20165 }
 0x241   : > { %18025 = vmatmul.mubr.msk.f32.gmra.mrb[14].mxu1 %vm1765_vm8, %v24328_v33  ;;  %v2914_v61 = vsel %vm559_vm2, %v20157_v22, %v20152_v36  ;;  %v2915_v9 = vsel %vm559_vm2, %v20158_v15, %v20153_v28  ;;  %v24522_v60 = vpop.permute.xlu1 %20160  ;;  %v20168_v17 = vunpack.i.h.bf16 %v24530_v24  ;;  %v20167_v50 = vunpack.i.l.bf16 %v24530_v24  ;;  %v18063_v24 = vld [vmem:[%s31474_s1 + $0xe0] sm:$0xff] }
 0x242   : > { %18020 = vmatmul.mubr.msk.f32.gmra.mrb[12].mxu0 %vm1765_vm8, %v24306_v20  ;;  %2833 = vmatprep.mubr.f32.mxu1 %v31563_v37  ;;  %v18482_v23 = vpack.c.bf16 %v2915_v9, %v2914_v61  ;;  %v20163_v0 = vunpack.i.h.bf16 %v24522_v60  ;;  %v20162_v30 = vunpack.i.l.bf16 %v24522_v60  ;;  %v2912_v16 = vsel %vm559_vm2, %v20152_v36, %v20147_v29 }
 0x243   : > { %2584 = vmatprep.mubr.f32.mxu0 %v31563_v37  ;;  %v2916_v29 = vsel %vm559_vm2, %v20132_v41, %v20157_v22 }
 0x244   : > { %v24550_v48 = vpop.permute.xlu0 %20175  ;;  %v3596_v57 = vsel %vm705_vm3, %v20162_v30, %v20167_v50 }
 0x245   : > { %18030 = vmatmul.mubr.msk.f32.vlgmr.msra.gmra.mrb[16].mxu1 %vm1765_vm8, %v24259_v53  ;;  %v20171_v45 = vpop.permute.xlu1 %20170 }
 0x246   : > { %18021 = vmatmul.mubr.msk.f32.gmra.mrb[14].mxu0 %vm1765_vm8, %v24328_v33  ;;  %18473 = vmatpush1.bf16.msra.mxu1 %v18472_v12  ;;  %v20178_v12 = vunpack.i.h.bf16 %v24550_v48 }
 0x247   : > { %2744 = vmatprep.mubr.f32.mxu0 %v31563_v37  ;;  %2839 = vmatprep.mubr.f32.mxu1 %v31563_v37 }
 0x248   : > { %18479 = vmatprep.subr.bf16.mxu1 %v18478_v35  ;;  %v20177_v35 = vunpack.i.l.bf16 %v24550_v48 }
 0x249   : > { %18031 = vmatmul.mubr.msk.f32.gmra.mrb[18].mxu1 %vm1765_vm8, %v24290_v52  ;;  %v24571_v26 = vpop.permute.xlu1 %20180 }
 0x24a   : > { %18026 = vmatmul.mubr.msk.f32.vlgmr.msra.gmra.mrb[16].mxu0 %vm1765_vm8, %v24259_v53  ;;  %2845 = vmatprep.mubr.f32.mxu1 %v31563_v37  ;;  %v20148_v53 = vunpack.i.h.bf16 %v24466_v51  ;;  %v20173_v51 = vunpack.i.h.bf16 %v20171_v45  ;;  %v20182_v61 = vunpack.i.l.bf16 %v24571_v26 }
 0x24b   : > { %18469 = vmatpush1.bf16.msra.mxu0 %v18468_v13  ;;  %2750 = vmatprep.mubr.f32.mxu0 %v31563_v37  ;;  %v3597_v13 = vsel %vm705_vm3, %v20163_v0, %v20168_v17 }
 0x24c   : > { %18475 = vmatprep.subr.bf16.mxu0 %v18474_v38  ;;  %v2911_v4 = vsel %vm559_vm2, %v20148_v53, %v20123_v18  ;;  %v24540_v18 = vld [vmem:[%s31474_s1 + $0xa0] sm:$0xff]  ;;  %v2913_v10 = vsel %vm559_vm2, %v20153_v28, %v20148_v53  ;;  %v20172_v38 = vunpack.i.l.bf16 %v20171_v45  ;;  %v2917_v53 = vsel %vm559_vm2, %v20133_v58, %v20158_v15 }
 0x24d   : > { %18032 = vmatmul.mubr.msk.f32.gmra.mrb[20].mxu1 %vm1765_vm8, %v24306_v20  ;;  %v18486_v2 = vpack.c.bf16 %v2911_v4, %v2910_v1  ;;  %v18488_v7 = vpack.c.bf16 %v2913_v10, %v2912_v16  ;;  %v18494_v19 = vpack.c.bf16 %v3597_v13, %v3596_v57  ;;  %v3601_v58 = vsel %vm705_vm3, %v20178_v12, %v20173_v51  ;;  %v24600_v41 = vpop.permute.xlu1 %20190 }
 0x24e   : > { %18027 = vmatmul.mubr.msk.f32.gmra.mrb[18].mxu0 %vm1765_vm8, %v24290_v52  ;;  %2851 = vmatprep.mubr.f32.mxu1 %v31563_v37  ;;  %v2920_v52 = vsel %vm559_vm2, %v20137_v6, %v20127_v63  ;;  %v24556_v6 = vld [vmem:[%s31474_s1 + $0xa8] sm:$0xff]  ;;  %v18484_v49 = vpack.c.bf16 %v2917_v53, %v2916_v29  ;;  %v20193_v22 = vunpack.i.h.bf16 %v24600_v41  ;;  %v20192_v1 = vunpack.i.l.bf16 %v24600_v41 }
 0x24f   : > { %2756 = vmatprep.mubr.f32.mxu0 %v31563_v37  ;;  %v18480_v63 = vpack.c.bf16 %v2921_v32, %v2920_v52  ;;  %v3600_v52 = vsel %vm705_vm3, %v20177_v35, %v20172_v38  ;;  %v24602_v32 = vpop.permute.xlu0 %20185 }
 0x250   : > { %v18490_v15 = vpack.c.bf16 %v3601_v58, %v3600_v52  ;;  %v20188_v4 = vunpack.i.h.bf16 %v24602_v32  ;;  %v20187_v28 = vunpack.i.l.bf16 %v24602_v32  ;;  %v24679_v52 = vld [vmem:[%s31474_s1 + $0xd8] sm:$0xff] }
 0x251   : > { %18033 = vmatmul.mubr.msk.f32.gmra.mrb[22].mxu1 %vm1765_vm8, %v24328_v33  ;;  %v20201_v36 = vpop.permute.xlu1 %20200 }
 0x252   : > { %18028 = vmatmul.mubr.msk.f32.gmra.mrb[20].mxu0 %vm1765_vm8, %v24306_v20  ;;  %3099 = vmatprep.mubr.f32.mxu1 %v31563_v37  ;;  %v24499_v20 = vld [vmem:[%s31474_s1 + $0x90] sm:$0xff]  ;;  %v20203_v9 = vunpack.i.h.bf16 %v20201_v36  ;;  %v20202_v60 = vunpack.i.l.bf16 %v20201_v36  ;;  %v3588_v45 = vsel %vm705_vm3, %v20187_v28, %v20192_v1  ;;  %v3589_v48 = vsel %vm705_vm3, %v20188_v4, %v20193_v22 }
 0x253   : > { %2762 = vmatprep.mubr.f32.mxu0 %v31563_v37  ;;  %v18502_v16 = vpack.c.bf16 %v3589_v48, %v3588_v45  ;;  %v32016_v45 = vmax.f32 %v23472_v39, 0.0 }
 0x255   : > { %18042 = vmatmul.mubr.msk.f32.vlgmr.msra.gmra.mrb[0].mxu1 %vm1765_vm8, %v24499_v20  ;;  %v20211_v53 = vpop.permute.xlu1 %20210 }
 0x256   : > { %18029 = vmatmul.mubr.msk.f32.gmra.mrb[22].mxu0 %vm1765_vm8, %v24328_v33  ;;  %18481 = vmatpush1.bf16.msra.mxu1 %v18480_v63  ;;  %v18476_v33 = vpack.c.bf16 %v2925_v47, %v2924_v3  ;;  %v20196_v3 = vpop.permute.xlu0 %20195  ;;  %v3598_v47 = vsel %vm705_vm3, %v20172_v38, %v20162_v30  ;;  %v3599_v63 = vsel %vm705_vm3, %v20173_v51, %v20163_v0  ;;  %v20212_v32 = vunpack.i.l.bf16 %v20211_v53 }
 0x257   : > { %3010 = vmatprep.mubr.f32.mxu0 %v31563_v37  ;;  %3105 = vmatprep.mubr.f32.mxu1 %v31563_v37  ;;  %v3602_v30 = vsel %vm705_vm3, %v20182_v61, %v20177_v35  ;;  %v18496_v10 = vpack.c.bf16 %v3599_v63, %v3598_v47  ;;  %v18064_v47 = vld [vmem:[%s31474_s1 + $0xe8] sm:$0xff]  ;;  %v18065_v63 = vld [vmem:[%s31474_s1 + $0xf0] sm:$0xff] }
 0x258   : > { %18487 = vmatprep.subr.bf16.mxu1 %v18486_v2  ;;  %v20183_v2 = vunpack.i.h.bf16 %v24571_v26 }
 0x259   : > { %18043 = vmatmul.mubr.msk.f32.gmra.mrb[2].mxu1 %vm1765_vm8, %v24528_v62 }
 0x25a   : > { %18038 = vmatmul.mubr.msk.f32.vlgmr.msra.gmra.mrb[0].mxu0 %vm1765_vm8, %v24499_v20  ;;  %3111 = vmatprep.mubr.f32.mxu1 %v31563_v37  ;;  %v3603_v0 = vsel %vm705_vm3, %v20183_v2, %v20178_v12  ;;  %v20206_v35 = vpop.permute.xlu0 %20205 }
 0x25b   : > { %18477 = vmatpush1.bf16.msra.mxu0 %v18476_v33  ;;  %3016 = vmatprep.mubr.f32.mxu0 %v31563_v37  ;;  %v20198_v33 = vunpack.i.h.bf16 %v20196_v3  ;;  %v18492_v12 = vpack.c.bf16 %v3603_v0, %v3602_v30  ;;  %v20208_v51 = vunpack.i.h.bf16 %v20206_v35  ;;  %v32019_v0 = vld [vmem:[#allocation5_spill] sm:$0xff] }
 0x25c   : > { %18483 = vmatprep.subr.bf16.mxu0 %v18482_v23  ;;  %v20197_v23 = vunpack.i.l.bf16 %v20196_v3  ;;  %v32020_v30 = vmax.f32 %v32019_v0, 0.0 }
 0x25d   : > { %18044 = vmatmul.mubr.msk.f32.gmra.mrb[4].mxu1 %vm1765_vm8, %v24540_v18  ;;  %v3593_v57 = vsel %vm705_vm3, %v20203_v9, %v20198_v33  ;;  %v3581_v58 = vsel %vm705_vm3, %v20208_v51, %v20183_v2 }
 0x25e   : > { %18039 = vmatmul.mubr.msk.f32.gmra.mrb[2].mxu0 %vm1765_vm8, %v24528_v62  ;;  %3117 = vmatprep.mubr.f32.mxu1 %v31563_v37  ;;  %v3592_v26 = vsel %vm705_vm3, %v20202_v60, %v20197_v23  ;;  %v20216_v38 = vpop.permute.xlu0 %20215  ;;  %v3590_v29 = vsel %vm705_vm3, %v20197_v23, %v20187_v28  ;;  %v32015_v23 = vmax.f32 %v23460_v11, 0.0  ;;  %v32021_v11 = vld [vmem:[#allocation16_spill] sm:$0xff] }
 0x25f   : > { %3022 = vmatprep.mubr.f32.mxu0 %v31563_v37  ;;  %v18498_v13 = vpack.c.bf16 %v3593_v57, %v3592_v26  ;;  %v32022_v39 = vmax.f32 %v32021_v11, 0.0 }
 0x260   : > { %v18518_v48 = vpack.c.bf16 %v32016_v45, %v32015_v23 }
 0x261   : > { %18045 = vmatmul.mubr.msk.f32.gmra.mrb[6].mxu1 %vm1765_vm8, %v24556_v6 }
 0x262   : > { %18040 = vmatmul.mubr.msk.f32.gmra.mrb[4].mxu0 %vm1765_vm8, %v24540_v18  ;;  %3277 = vmatprep.mubr.f32.mxu1 %v31563_v37 }
 0x263   : > { %3028 = vmatprep.mubr.f32.mxu0 %v31563_v37 }
 0x265   : > { %18050 = vmatmul.mubr.msk.f32.vlgmr.msra.gmra.mrb[8].mxu1 %vm1765_vm8, %v24499_v20 }
 0x266   : > { %18041 = vmatmul.mubr.msk.f32.gmra.mrb[6].mxu0 %vm1765_vm8, %v24556_v6  ;;  %18489 = vmatpush1.bf16.msra.mxu1 %v18488_v7  ;;  %v20218_v7 = vunpack.i.h.bf16 %v20216_v38 }
 0x267   : > { %3188 = vmatprep.mubr.f32.mxu0 %v31563_v37  ;;  %3283 = vmatprep.mubr.f32.mxu1 %v31563_v37 }
 0x268   : > { %18495 = vmatprep.subr.bf16.mxu1 %v18494_v19  ;;  %v20217_v19 = vunpack.i.l.bf16 %v20216_v38  ;;  %v24837_v38 = vld [vmem:[%s31474_s1 + $0x138] sm:$0xff] }
 0x269   : > { %18051 = vmatmul.mubr.msk.f32.gmra.mrb[10].mxu1 %vm1765_vm8, %v24528_v62 }
 0x26a   : > { %18046 = vmatmul.mubr.msk.f32.vlgmr.msra.gmra.mrb[8].mxu0 %vm1765_vm8, %v24499_v20  ;;  %3289 = vmatprep.mubr.f32.mxu1 %v31563_v37  ;;  %v3584_v3 = vsel %vm705_vm3, %v20217_v19, %v20212_v32 }
 0x26b   : > { %18485 = vmatpush1.bf16.msra.mxu0 %v18484_v49  ;;  %3194 = vmatprep.mubr.f32.mxu0 %v31563_v37  ;;  %v20213_v49 = vunpack.i.h.bf16 %v20211_v53 }
 0x26c   : > { %18491 = vmatprep.subr.bf16.mxu0 %v18490_v15  ;;  %v3594_v15 = vsel %vm705_vm3, %v20167_v50, %v20202_v60  ;;  %v3586_v60 = vsel %vm705_vm3, %v20192_v1, %v20217_v19 }
 0x26d   : > { %18052 = vmatmul.mubr.msk.f32.gmra.mrb[12].mxu1 %vm1765_vm8, %v24540_v18  ;;  %v3585_v50 = vsel %vm705_vm3, %v20218_v7, %v20213_v49  ;;  %v3583_v2 = vsel %vm705_vm3, %v20213_v49, %v20208_v51 }
 0x26e   : > { %18047 = vmatmul.mubr.msk.f32.gmra.mrb[10].mxu0 %vm1765_vm8, %v24528_v62  ;;  %3295 = vmatprep.mubr.f32.mxu1 %v31563_v37 }
 0x26f   : > { %3200 = vmatprep.mubr.f32.mxu0 %v31563_v37 }
 0x271   : > { %18053 = vmatmul.mubr.msk.f32.gmra.mrb[14].mxu1 %vm1765_vm8, %v24556_v6 }
 0x272   : > { %18048 = vmatmul.mubr.msk.f32.gmra.mrb[12].mxu0 %vm1765_vm8, %v24540_v18  ;;  %3455 = vmatprep.mubr.f32.mxu1 %v31563_v37 }
 0x273   : > { %3206 = vmatprep.mubr.f32.mxu0 %v31563_v37 }
 0x275   : > { %18058 = vmatmul.mubr.msk.f32.vlgmr.msra.gmra.mrb[16].mxu1 %vm1765_vm8, %v24499_v20 }
 0x276   : > { %18049 = vmatmul.mubr.msk.f32.gmra.mrb[14].mxu0 %vm1765_vm8, %v24556_v6  ;;  %18497 = vmatpush1.bf16.msra.mxu1 %v18496_v10 }
 0x277   : > { %3366 = vmatprep.mubr.f32.mxu0 %v31563_v37  ;;  %3461 = vmatprep.mubr.f32.mxu1 %v31563_v37 }
 0x278   : > { %18503 = vmatprep.subr.bf16.mxu1 %v18502_v16  ;;  %v32023_v16 = vld [vmem:[#allocation14_spill] sm:$0xff] }
 0x279   : > { %18059 = vmatmul.mubr.msk.f32.gmra.mrb[18].mxu1 %vm1765_vm8, %v24528_v62  ;;  %v32024_v26 = vmax.f32 %v32023_v16, 0.0 }
 0x27a   : > { %18054 = vmatmul.mubr.msk.f32.vlgmr.msra.gmra.mrb[16].mxu0 %vm1765_vm8, %v24499_v20  ;;  %3467 = vmatprep.mubr.f32.mxu1 %v31563_v37  ;;  %v20207_v20 = vunpack.i.l.bf16 %v20206_v35  ;;  %v24808_v35 = vld [vmem:[%s31474_s1 + $0x128] sm:$0xff] }
 0x27b   : > { %18493 = vmatpush1.bf16.msra.mxu0 %v18492_v12  ;;  %3372 = vmatprep.mubr.f32.mxu0 %v31563_v37  ;;  %v18520_v57 = vpack.c.bf16 %v32024_v26, %v32022_v39  ;;  %v24798_v12 = vpop.permute.xlu0 %20225 }
 0x27c   : > { %18499 = vmatprep.subr.bf16.mxu0 %v18498_v13 }
 0x27d   : > { %18060 = vmatmul.mubr.msk.f32.gmra.mrb[20].mxu1 %vm1765_vm8, %v24540_v18 }
 0x27e   : > { %18055 = vmatmul.mubr.msk.f32.gmra.mrb[18].mxu0 %vm1765_vm8, %v24528_v62  ;;  %3473 = vmatprep.mubr.f32.mxu1 %v31563_v37  ;;  %v3591_v62 = vsel %vm705_vm3, %v20198_v33, %v20188_v4  ;;  %v3595_v4 = vsel %vm705_vm3, %v20168_v17, %v20203_v9  ;;  %v3587_v9 = vsel %vm705_vm3, %v20193_v22, %v20218_v7  ;;  %v32017_v22 = vld [vmem:[#allocation13_spill] sm:$0xff]  ;;  %v20227_v7 = vunpack.i.l.bf16 %v24798_v12 }
 0x27f   : > { %3378 = vmatprep.mubr.f32.mxu0 %v31563_v37  ;;  %v18504_v28 = vpack.c.bf16 %v3591_v62, %v3590_v29  ;;  %v18500_v17 = vpack.c.bf16 %v3595_v4, %v3594_v15  ;;  %v18508_v41 = vpack.c.bf16 %v3587_v9, %v3586_v60  ;;  %v32018_v1 = vmax.f32 %v32017_v22, 0.0 }
 0x280   : > { %v20228_v62 = vunpack.i.h.bf16 %v24798_v12 }
 0x281   : > { %18061 = vmatmul.mubr.msk.f32.gmra.mrb[22].mxu1 %vm1765_vm8, %v24556_v6  ;;  %v18514_v10 = vpack.c.bf16 %v32020_v30, %v32018_v1 }
 0x282   : > { %18056 = vmatmul.mubr.msk.f32.gmra.mrb[20].mxu0 %vm1765_vm8, %v24540_v18  ;;  %3769 = vmatprep.mubr.f32.mxu1 %v31563_v37  ;;  %v3580_v18 = vsel %vm705_vm3, %v20207_v20, %v20182_v61  ;;  %v3582_v61 = vsel %vm705_vm3, %v20212_v32, %v20207_v20 }
 0x283   : > { %3384 = vmatprep.mubr.f32.mxu0 %v31563_v37  ;;  %v18510_v36 = vpack.c.bf16 %v3581_v58, %v3580_v18  ;;  %v18512_v33 = vpack.c.bf16 %v3583_v2, %v3582_v61 }
 0x285   : > { %18070 = vmatmul.mubr.msk.f32.vlgmr.msra.gmra.mrb[0].mxu1 %vm1765_vm8, %v24679_v52 }
 0x286   : > { %18057 = vmatmul.mubr.msk.f32.gmra.mrb[22].mxu0 %vm1765_vm8, %v24556_v6  ;;  %18505 = vmatpush1.bf16.msra.mxu1 %v18504_v28  ;;  %v18506_v6 = vpack.c.bf16 %v3585_v50, %v3584_v3 }
 0x287   : > { %3680 = vmatprep.mubr.f32.mxu0 %v31563_v37  ;;  %3775 = vmatprep.mubr.f32.mxu1 %v31563_v37 }
 0x288   : > { %18511 = vmatprep.subr.bf16.mxu1 %v18510_v36 }
 0x289   : > { %18071 = vmatmul.mubr.msk.f32.gmra.mrb[2].mxu1 %vm1765_vm8, %v18063_v24 }
 0x28a   : > { %18066 = vmatmul.mubr.msk.f32.vlgmr.msra.gmra.mrb[0].mxu0 %vm1765_vm8, %v24679_v52  ;;  %3781 = vmatprep.mubr.f32.mxu1 %v31563_v37 }
 0x28b   : > { %18501 = vmatpush1.bf16.msra.mxu0 %v18500_v17  ;;  %3686 = vmatprep.mubr.f32.mxu0 %v31563_v37 }
 0x28c   : > { %18507 = vmatprep.subr.bf16.mxu0 %v18506_v6 }
 0x28d   : > { %18072 = vmatmul.mubr.msk.f32.gmra.mrb[4].mxu1 %vm1765_vm8, %v18064_v47 }
 0x28e   : > { %18067 = vmatmul.mubr.msk.f32.gmra.mrb[2].mxu0 %vm1765_vm8, %v18063_v24  ;;  %3787 = vmatprep.mubr.f32.mxu1 %v31563_v37 }
 0x28f   : > { %3692 = vmatprep.mubr.f32.mxu0 %v31563_v37 }
 0x291   : > { %18073 = vmatmul.mubr.msk.f32.gmra.mrb[6].mxu1 %vm1765_vm8, %v18065_v63 }
 0x292   : > { %18068 = vmatmul.mubr.msk.f32.gmra.mrb[4].mxu0 %vm1765_vm8, %v18064_v47  ;;  %3947 = vmatprep.mubr.f32.mxu1 %v31563_v37 }
 0x293   : > { %3698 = vmatprep.mubr.f32.mxu0 %v31563_v37 }
 0x295   : > { %18078 = vmatmul.mubr.msk.f32.vlgmr.msra.gmra.mrb[8].mxu1 %vm1765_vm8, %v24679_v52 }
 0x296   : > { %18069 = vmatmul.mubr.msk.f32.gmra.mrb[6].mxu0 %vm1765_vm8, %v18065_v63  ;;  %18513 = vmatpush1.bf16.msra.mxu1 %v18512_v33 }
 0x297   : > { %3858 = vmatprep.mubr.f32.mxu0 %v31563_v37  ;;  %3953 = vmatprep.mubr.f32.mxu1 %v31563_v37 }
 0x298   : > { %18519 = vmatprep.subr.bf16.mxu1 %v18518_v48 }
 0x299   : > { %18079 = vmatmul.mubr.msk.f32.gmra.mrb[10].mxu1 %vm1765_vm8, %v18063_v24 }
 0x29a   : > { %18074 = vmatmul.mubr.msk.f32.vlgmr.msra.gmra.mrb[8].mxu0 %vm1765_vm8, %v24679_v52  ;;  %3959 = vmatprep.mubr.f32.mxu1 %v31563_v37 }
 0x29b   : > { %18509 = vmatpush1.bf16.msra.mxu0 %v18508_v41  ;;  %3864 = vmatprep.mubr.f32.mxu0 %v31563_v37 }
 0x29c   : > { %18515 = vmatprep.subr.bf16.mxu0 %v18514_v10 }
 0x29d   : > { %18080 = vmatmul.mubr.msk.f32.gmra.mrb[12].mxu1 %vm1765_vm8, %v18064_v47 }
 0x29e   : > { %18075 = vmatmul.mubr.msk.f32.gmra.mrb[10].mxu0 %vm1765_vm8, %v18063_v24  ;;  %3965 = vmatprep.mubr.f32.mxu1 %v31563_v37 }
 0x29f   : > { %3870 = vmatprep.mubr.f32.mxu0 %v31563_v37 }
 0x2a1   : > { %18081 = vmatmul.mubr.msk.f32.gmra.mrb[14].mxu1 %vm1765_vm8, %v18065_v63 }
 0x2a2   : > { %18076 = vmatmul.mubr.msk.f32.gmra.mrb[12].mxu0 %vm1765_vm8, %v18064_v47  ;;  %4125 = vmatprep.mubr.f32.mxu1 %v31563_v37 }
 0x2a3   : > { %3876 = vmatprep.mubr.f32.mxu0 %v31563_v37 }
 0x2a5   : > { %18086 = vmatmul.mubr.msk.f32.vlgmr.msra.gmra.mrb[16].mxu1 %vm1765_vm8, %v24679_v52 }
 0x2a6   : > { %18077 = vmatmul.mubr.msk.f32.gmra.mrb[14].mxu0 %vm1765_vm8, %v18065_v63  ;;  %18521 = vmatpush1.bf16.msra.mxu1 %v18520_v57 }
 0x2a7   : > { %4036 = vmatprep.mubr.f32.mxu0 %v31563_v37  ;;  %4131 = vmatprep.mubr.f32.mxu1 %v31563_v37 }
 0x2a8   : > { %18527 = vmatprep.subr.bf16.mxu1 %v23861_v14  ;;  %v24784_v14 = vpop.permute.xlu1 %20220 }
 0x2a9   : > { %18087 = vmatmul.mubr.msk.f32.gmra.mrb[18].mxu1 %vm1765_vm8, %v18063_v24  ;;  %v20223_v61 = vunpack.i.h.bf16 %v24784_v14  ;;  %v20222_v9 = vunpack.i.l.bf16 %v24784_v14 }
 0x2aa   : > { %18082 = vmatmul.mubr.msk.f32.vlgmr.msra.gmra.mrb[16].mxu0 %vm1765_vm8, %v24679_v52  ;;  %4137 = vmatprep.mubr.f32.mxu1 %v31563_v37 }
 0x2ab   : > { %18517 = vmatpush1.bf16.msra.mxu0 %v23867_v46  ;;  %4042 = vmatprep.mubr.f32.mxu0 %v31563_v37  ;;  %v24793_v46 = vld [vmem:[%s31474_s1 + $0x120] sm:$0xff]  ;;  %v4869_v23 = vsel %vm912_vm4, %v20223_v61, %v20228_v62  ;;  %v4868_v45 = vsel %vm912_vm4, %v20222_v9, %v20227_v7 }
 0x2ac   : > { %18523 = vmatprep.subr.bf16.mxu0 %v23873_v25  ;;  %v24796_v25 = vpop.permute.xlu1 %20230  ;;  %v18540_v30 = vpack.c.bf16 %v4869_v23, %v4868_v45 }
 0x2ad   : > { %18088 = vmatmul.mubr.msk.f32.gmra.mrb[20].mxu1 %vm1765_vm8, %v18064_v47  ;;  %v20233_v53 = vunpack.i.h.bf16 %v24796_v25  ;;  %v20232_v29 = vunpack.i.l.bf16 %v24796_v25 }
 0x2ae   : > { %18083 = vmatmul.mubr.msk.f32.gmra.mrb[18].mxu0 %vm1765_vm8, %v18063_v24  ;;  %4143 = vmatprep.mubr.f32.mxu1 %v31563_v37 }
 0x2af   : > { %4048 = vmatprep.mubr.f32.mxu0 %v31563_v37  ;;  %v4866_v32 = vsel %vm912_vm4, %v20227_v7, %v20232_v29  ;;  %v4867_v15 = vsel %vm912_vm4, %v20228_v62, %v20233_v53 }
 0x2b0   : > { %v24823_v13 = vpop.permute.xlu1 %20240  ;;  %v18538_v4 = vpack.c.bf16 %v4867_v15, %v4866_v32 }
 0x2b1   : > { %18089 = vmatmul.mubr.msk.f32.gmra.mrb[22].mxu1 %vm1765_vm8, %v18065_v63 }
 0x2b2   : > { %18084 = vmatmul.mubr.msk.f32.gmra.mrb[20].mxu0 %vm1765_vm8, %v18064_v47  ;;  %4367 = vmatprep.mubr.f32.mxu1 %v31563_v37 }
 0x2b3   : > { %4054 = vmatprep.mubr.f32.mxu0 %v31563_v37 }
 0x2b4   : > { %v24859_v18 = vpop.permute.xlu1 %20250 }
 0x2b5   : > { %18098 = vmatmul.mubr.msk.f32.vlgmr.msra.gmra.mrb[0].mxu1 %vm1765_vm8, %v24793_v46  ;;  %v20253_v6 = vunpack.i.h.bf16 %v24859_v18  ;;  %v20252_v47 = vunpack.i.l.bf16 %v24859_v18 }
 0x2b6   : > { %18085 = vmatmul.mubr.msk.f32.gmra.mrb[22].mxu0 %vm1765_vm8, %v18065_v63  ;;  %18529 = vmatpush1.bf16.msra.mxu1 %v23879_v56  ;;  %v24821_v56 = vld [vmem:[%s31474_s1 + $0x130] sm:$0xff] }
 0x2b7   : > { %4278 = vmatprep.mubr.f32.mxu0 %v31563_v37  ;;  %4373 = vmatprep.mubr.f32.mxu1 %v31563_v37 }
 0x2b8   : > { %18535 = vmatprep.subr.bf16.mxu1 %v23885_v8  ;;  %v20236_v8 = vpop.permute.xlu0 %20235  ;;  %v24878_v28 = vpop.permute.xlu1 %20260 }
 0x2b9   : > { %18099 = vmatmul.mubr.msk.f32.gmra.mrb[2].mxu1 %vm1765_vm8, %v24808_v35  ;;  %v20238_v51 = vunpack.i.h.bf16 %v20236_v8  ;;  %v20237_v20 = vunpack.i.l.bf16 %v20236_v8 }
 0x2ba   : > { %18094 = vmatmul.mubr.msk.f32.vlgmr.msra.gmra.mrb[0].mxu0 %vm1765_vm8, %v24793_v46  ;;  %4379 = vmatprep.mubr.f32.mxu1 %v31563_v37 }
 0x2bb   : > { %18525 = vmatpush1.bf16.msra.mxu0 %v23891_v59  ;;  %4284 = vmatprep.mubr.f32.mxu0 %v31563_v37  ;;  %v20243_v59 = vunpack.i.h.bf16 %v24823_v13  ;;  %v4865_v24 = vsel %vm912_vm4, %v20233_v53, %v20238_v51  ;;  %v4864_v17 = vsel %vm912_vm4, %v20232_v29, %v20237_v20 }
 0x2bc   : > { %18531 = vmatprep.subr.bf16.mxu0 %v23893_v34  ;;  %v20242_v34 = vunpack.i.l.bf16 %v24823_v13  ;;  %v24861_v58 = vpop.permute.xlu0 %20245  ;;  %v18544_v48 = vpack.c.bf16 %v4865_v24, %v4864_v17  ;;  %v24931_v11 = vpop.permute.xlu1 %20270 }
 0x2bd   : > { %18100 = vmatmul.mubr.msk.f32.gmra.mrb[4].mxu1 %vm1765_vm8, %v24821_v56  ;;  %v4863_v52 = vsel %vm912_vm4, %v20238_v51, %v20243_v59  ;;  %v20248_v63 = vunpack.i.h.bf16 %v24861_v58  ;;  %v20247_v2 = vunpack.i.l.bf16 %v24861_v58  ;;  %v20273_v25 = vunpack.i.h.bf16 %v24931_v11  ;;  %v24962_v51 = vld [vmem:[%s31474_s1 + $0x168] sm:$0xff]  ;;  %v25003_v58 = vld [vmem:[%s31474_s1 + $0x178] sm:$0xff] }
 0x2be   : > { %18095 = vmatmul.mubr.msk.f32.gmra.mrb[2].mxu0 %vm1765_vm8, %v24808_v35  ;;  %4385 = vmatprep.mubr.f32.mxu1 %v31563_v37  ;;  %v4862_v19 = vsel %vm912_vm4, %v20237_v20, %v20242_v34  ;;  %v20272_v12 = vunpack.i.l.bf16 %v24931_v11 }
 0x2bf   : > { %4290 = vmatprep.mubr.f32.mxu0 %v31563_v37  ;;  %v18542_v49 = vpack.c.bf16 %v4863_v52, %v4862_v19  ;;  %v4858_v1 = vsel %vm912_vm4, %v20247_v2, %v20252_v47  ;;  %v4859_v0 = vsel %vm912_vm4, %v20248_v63, %v20253_v6  ;;  %v4861_v53 = vsel %vm912_vm4, %v20243_v59, %v20248_v63 }
 0x2c0   : > { %v20256_v36 = vpop.permute.xlu0 %20255  ;;  %v18546_v10 = vpack.c.bf16 %v4859_v0, %v4858_v1  ;;  %v24943_v57 = vpop.permute.xlu1 %20280  ;;  %v4860_v29 = vsel %vm912_vm4, %v20242_v34, %v20247_v2  ;;  %v24993_v34 = vld [vmem:[%s31474_s1 + $0x170] sm:$0xff] }
 0x2c1   : > { %18101 = vmatmul.mubr.msk.f32.gmra.mrb[6].mxu1 %vm1765_vm8, %v24837_v38  ;;  %v20258_v3 = vunpack.i.h.bf16 %v20256_v36  ;;  %v20257_v50 = vunpack.i.l.bf16 %v20256_v36 }
 0x2c2   : > { %18096 = vmatmul.mubr.msk.f32.gmra.mrb[4].mxu0 %vm1765_vm8, %v24821_v56  ;;  %4545 = vmatprep.mubr.f32.mxu1 %v31563_v37 }
 0x2c3   : > { %4296 = vmatprep.mubr.f32.mxu0 %v31563_v37  ;;  %v4857_v14 = vsel %vm912_vm4, %v20253_v6, %v20258_v3 }
 0x2c4   : > { %v24919_v41 = vpop.permute.xlu0 %20265  ;;  %v24978_v7 = vpop.permute.xlu1 %20290 }
 0x2c5   : > { %18106 = vmatmul.mubr.msk.f32.vlgmr.msra.gmra.mrb[8].mxu1 %vm1765_vm8, %v24793_v46  ;;  %v20267_v8 = vunpack.i.l.bf16 %v24919_v41  ;;  %v20293_v6 = vunpack.i.h.bf16 %v24978_v7 }
 0x2c6   : > { %18097 = vmatmul.mubr.msk.f32.gmra.mrb[6].mxu0 %vm1765_vm8, %v24837_v38  ;;  %18537 = vmatpush1.bf16.msra.mxu1 %v23895_v40  ;;  %v20263_v40 = vunpack.i.h.bf16 %v24878_v28 }
 0x2c7   : > { %4456 = vmatprep.mubr.f32.mxu0 %v31563_v37  ;;  %4551 = vmatprep.mubr.f32.mxu1 %v31563_v37  ;;  %v4850_v13 = vsel %vm912_vm4, %v20267_v8, %v20272_v12 }
 0x2c8   : > { %18543 = vmatprep.subr.bf16.mxu1 %v18542_v49  ;;  %v4855_v33 = vsel %vm912_vm4, %v20258_v3, %v20263_v40  ;;  %v20276_v39 = vpop.permute.xlu0 %20275  ;;  %v25005_v49 = vpop.permute.xlu1 %20300 }
 0x2c9   : > { %18107 = vmatmul.mubr.msk.f32.gmra.mrb[10].mxu1 %vm1765_vm8, %v24808_v35  ;;  %v20278_v16 = vunpack.i.h.bf16 %v20276_v39  ;;  %v20277_v26 = vunpack.i.l.bf16 %v20276_v39  ;;  %v20303_v15 = vunpack.i.h.bf16 %v25005_v49 }
 0x2ca   : > { %18102 = vmatmul.mubr.msk.f32.vlgmr.msra.gmra.mrb[8].mxu0 %vm1765_vm8, %v24793_v46  ;;  %4557 = vmatprep.mubr.f32.mxu1 %v31563_v37 }
 0x2cb   : > { %18533 = vmatpush1.bf16.msra.mxu0 %v23897_v44  ;;  %4462 = vmatprep.mubr.f32.mxu0 %v31563_v37  ;;  %v20262_v44 = vunpack.i.l.bf16 %v24878_v28  ;;  %v4871_v20 = vsel %vm912_vm4, %v20278_v16, %v20223_v61  ;;  %v4849_v24 = vsel %vm912_vm4, %v20273_v25, %v20278_v16  ;;  %v4848_v17 = vsel %vm912_vm4, %v20272_v12, %v20277_v26 }
 0x2cc   : > { %18539 = vmatprep.subr.bf16.mxu0 %v18538_v4  ;;  %v24980_v19 = vpop.permute.xlu0 %20285  ;;  %v20302_v4 = vunpack.i.l.bf16 %v25005_v49  ;;  %v18560_v23 = vpack.c.bf16 %v4849_v24, %v4848_v17  ;;  %v25053_v45 = vpop.permute.xlu1 %20310 }
 0x2cd   : > { %18108 = vmatmul.mubr.msk.f32.gmra.mrb[12].mxu1 %vm1765_vm8, %v24821_v56  ;;  %v4854_v60 = vsel %vm912_vm4, %v20257_v50, %v20262_v44  ;;  %v20288_v63 = vunpack.i.h.bf16 %v24980_v19  ;;  %v20287_v2 = vunpack.i.l.bf16 %v24980_v19 }
 0x2ce   : > { %18103 = vmatmul.mubr.msk.f32.gmra.mrb[10].mxu0 %vm1765_vm8, %v24808_v35  ;;  %4563 = vmatprep.mubr.f32.mxu1 %v31563_v37  ;;  %v18550_v22 = vpack.c.bf16 %v4855_v33, %v4854_v60  ;;  %v4852_v33 = vsel %vm912_vm4, %v20262_v44, %v20267_v8  ;;  %v20282_v8 = vunpack.i.l.bf16 %v24943_v57 }
 0x2cf   : > { %4468 = vmatprep.mubr.f32.mxu0 %v31563_v37 }
 0x2d0   : > { %v20296_v32 = vpop.permute.xlu0 %20295  ;;  %v25070_v1 = vpop.permute.xlu1 %20320 }
 0x2d1   : > { %18109 = vmatmul.mubr.msk.f32.gmra.mrb[14].mxu1 %vm1765_vm8, %v24837_v38  ;;  %v20298_v36 = vunpack.i.h.bf16 %v20296_v32  ;;  %v20297_v3 = vunpack.i.l.bf16 %v20296_v32 }
 0x2d2   : > { %18104 = vmatmul.mubr.msk.f32.gmra.mrb[12].mxu0 %vm1765_vm8, %v24821_v56  ;;  %4723 = vmatprep.mubr.f32.mxu1 %v31563_v37 }
 0x2d3   : > { %4474 = vmatprep.mubr.f32.mxu0 %v31563_v37  ;;  %v5532_v61 = vsel %vm1058_vm5, %v20297_v3, %v20302_v4  ;;  %v5535_v16 = vsel %vm1058_vm5, %v20293_v6, %v20298_v36 }
 0x2d5   : > { %18114 = vmatmul.mubr.msk.f32.vlgmr.msra.gmra.mrb[16].mxu1 %vm1765_vm8, %v24793_v46 }
 0x2d6   : > { %18105 = vmatmul.mubr.msk.f32.gmra.mrb[14].mxu0 %vm1765_vm8, %v24837_v38  ;;  %18545 = vmatpush1.bf16.msra.mxu1 %v18544_v48  ;;  %v25055_v48 = vpop.permute.xlu0 %20305 }
 0x2d7   : > { %4634 = vmatprep.mubr.f32.mxu0 %v31563_v37  ;;  %4729 = vmatprep.mubr.f32.mxu1 %v31563_v37  ;;  %v20307_v12 = vunpack.i.l.bf16 %v25055_v48 }
 0x2d8   : > { %18551 = vmatprep.subr.bf16.mxu1 %v18550_v22 }
 0x2d9   : > { %18115 = vmatmul.mubr.msk.f32.gmra.mrb[18].mxu1 %vm1765_vm8, %v24808_v35 }
 0x2da   : > { %18110 = vmatmul.mubr.msk.f32.vlgmr.msra.gmra.mrb[16].mxu0 %vm1765_vm8, %v24793_v46  ;;  %4735 = vmatprep.mubr.f32.mxu1 %v31563_v37  ;;  %v4856_v46 = vsel %vm912_vm4, %v20252_v47, %v20257_v50  ;;  %v25019_v50 = vld [vmem:[%s31474_s1 + $0x180] sm:$0xff]  ;;  %v20292_v47 = vunpack.i.l.bf16 %v24978_v7  ;;  %v20316_v0 = vpop.permute.xlu0 %20315 }
 0x2db   : > { %18541 = vmatpush1.bf16.msra.mxu0 %v18540_v30  ;;  %4640 = vmatprep.mubr.f32.mxu0 %v31563_v37  ;;  %v18552_v62 = vpack.c.bf16 %v4857_v14, %v4856_v46  ;;  %v20323_v30 = vunpack.i.h.bf16 %v25070_v1  ;;  %v20318_v11 = vunpack.i.h.bf16 %v20316_v0  ;;  %v20317_v39 = vunpack.i.l.bf16 %v20316_v0 }
 0x2dc   : > { %18547 = vmatprep.subr.bf16.mxu0 %v18546_v10  ;;  %v5536_v28 = vsel %vm1058_vm5, %v20287_v2, %v20292_v47  ;;  %v20322_v10 = vunpack.i.l.bf16 %v25070_v1  ;;  %v20313_v14 = vunpack.i.h.bf16 %v25053_v45  ;;  %v20312_v46 = vunpack.i.l.bf16 %v25053_v45 }
 0x2dd   : > { %18116 = vmatmul.mubr.msk.f32.gmra.mrb[20].mxu1 %vm1765_vm8, %v24821_v56 }
 0x2de   : > { %18111 = vmatmul.mubr.msk.f32.gmra.mrb[18].mxu0 %vm1765_vm8, %v24808_v35  ;;  %4741 = vmatprep.mubr.f32.mxu1 %v31563_v37  ;;  %v20268_v35 = vunpack.i.h.bf16 %v24919_v41  ;;  %v5528_v19 = vsel %vm1058_vm5, %v20307_v12, %v20312_v46  ;;  %v5526_v24 = vsel %vm1058_vm5, %v20312_v46, %v20317_v39 }
 0x2df   : > { %4646 = vmatprep.mubr.f32.mxu0 %v31563_v37 }
 0x2e0   : > { %v4851_v59 = vsel %vm912_vm4, %v20268_v35, %v20273_v25  ;;  %v4853_v60 = vsel %vm912_vm4, %v20263_v40, %v20268_v35  ;;  %v5537_v40 = vsel %vm1058_vm5, %v20288_v63, %v20293_v6  ;;  %v20308_v25 = vunpack.i.h.bf16 %v25055_v48 }
 0x2e1   : > { %18117 = vmatmul.mubr.msk.f32.gmra.mrb[22].mxu1 %vm1765_vm8, %v24837_v38  ;;  %v18554_v18 = vpack.c.bf16 %v4851_v59, %v4850_v13  ;;  %v18556_v44 = vpack.c.bf16 %v4853_v60, %v4852_v33  ;;  %v18562_v22 = vpack.c.bf16 %v5537_v40, %v5536_v28  ;;  %v20283_v35 = vunpack.i.h.bf16 %v24943_v57 }
 0x2e2   : > { %18112 = vmatmul.mubr.msk.f32.gmra.mrb[20].mxu0 %vm1765_vm8, %v24821_v56  ;;  %5037 = vmatprep.mubr.f32.mxu1 %v31563_v37  ;;  %v4870_v56 = vsel %vm912_vm4, %v20277_v26, %v20222_v9  ;;  %v5533_v9 = vsel %vm1058_vm5, %v20298_v36, %v20303_v15  ;;  %v5534_v26 = vsel %vm1058_vm5, %v20292_v47, %v20297_v3 }
 0x2e3   : > { %4652 = vmatprep.mubr.f32.mxu0 %v31563_v37  ;;  %v18558_v52 = vpack.c.bf16 %v4871_v20, %v4870_v56  ;;  %v18566_v41 = vpack.c.bf16 %v5533_v9, %v5532_v61  ;;  %v5524_v56 = vsel %vm1058_vm5, %v20317_v39, %v20322_v10  ;;  %v5525_v20 = vsel %vm1058_vm5, %v20318_v11, %v20323_v30  ;;  %v25215_v39 = vld [vmem:[%s31474_s1 + $0x1c8] sm:$0xff] }
 0x2e4   : > { %v18568_v57 = vpack.c.bf16 %v5535_v16, %v5534_v26  ;;  %v18574_v7 = vpack.c.bf16 %v5525_v20, %v5524_v56  ;;  %v5527_v3 = vsel %vm1058_vm5, %v20313_v14, %v20318_v11  ;;  %v5531_v61 = vsel %vm1058_vm5, %v20303_v15, %v20308_v25 }
 0x2e5   : > { %18126 = vmatmul.mubr.msk.f32.vlgmr.msra.gmra.mrb[0].mxu1 %vm1765_vm8, %v24962_v51  ;;  %v5530_v9 = vsel %vm1058_vm5, %v20302_v4, %v20307_v12  ;;  %v18576_v60 = vpack.c.bf16 %v5527_v3, %v5526_v24  ;;  %v25185_v4 = vld [vmem:[%s31474_s1 + $0x1b8] sm:$0xff] }
 0x2e6   : > { %18113 = vmatmul.mubr.msk.f32.gmra.mrb[22].mxu0 %vm1765_vm8, %v24837_v38  ;;  %18553 = vmatpush1.bf16.msra.mxu1 %v18552_v62  ;;  %v18548_v38 = vpack.c.bf16 %v4861_v53, %v4860_v29  ;;  %v5539_v53 = vsel %vm1058_vm5, %v20283_v35, %v20288_v63  ;;  %v5538_v29 = vsel %vm1058_vm5, %v20282_v8, %v20287_v2  ;;  %v25111_v62 = vpop.permute.xlu0 %20325  ;;  %v25154_v63 = vld [vmem:[%s31474_s1 + $0x1b0] sm:$0xff] }
 0x2e7   : > { %4948 = vmatprep.mubr.f32.mxu0 %v31563_v37  ;;  %5043 = vmatprep.mubr.f32.mxu1 %v31563_v37  ;;  %v18564_v13 = vpack.c.bf16 %v5539_v53, %v5538_v29  ;;  %v20328_v6 = vunpack.i.h.bf16 %v25111_v62  ;;  %v20327_v47 = vunpack.i.l.bf16 %v25111_v62 }
 0x2e8   : > { %18559 = vmatprep.subr.bf16.mxu1 %v18558_v52  ;;  %v5529_v52 = vsel %vm1058_vm5, %v20308_v25, %v20313_v14 }
 0x2e9   : > { %18127 = vmatmul.mubr.msk.f32.gmra.mrb[2].mxu1 %vm1765_vm8, %v24993_v34  ;;  %v18570_v59 = vpack.c.bf16 %v5529_v52, %v5528_v19  ;;  %v5523_v56 = vsel %vm1058_vm5, %v20323_v30, %v20328_v6  ;;  %v5522_v20 = vsel %vm1058_vm5, %v20322_v10, %v20327_v47  ;;  %v21906_v52 = vld [vmem:[%s31475_s2] sm:$0xff] }
 0x2ea   : > { %18122 = vmatmul.mubr.msk.f32.vlgmr.msra.gmra.mrb[0].mxu0 %vm1765_vm8, %v24962_v51  ;;  %5049 = vmatprep.mubr.f32.mxu1 %v31563_v37  ;;  %v18580_v10 = vpack.c.bf16 %v5523_v56, %v5522_v20  ;;  %v25374_v20 = vld [vmem:[%s31474_s1 + $0x1f8] sm:$0xff] }
 0x2eb   : > { %18549 = vmatpush1.bf16.msra.mxu0 %v18548_v38  ;;  %4954 = vmatprep.mubr.f32.mxu0 %v31563_v37  ;;  %v25123_v38 = vpop.permute.xlu1 %20330 }
 0x2ec   : > { %18555 = vmatprep.subr.bf16.mxu0 %v18554_v18  ;;  %v20336_v18 = vpop.permute.xlu0 %20335  ;;  %v20332_v17 = vunpack.i.l.bf16 %v25123_v38 }
 0x2ed   : > { %18128 = vmatmul.mubr.msk.f32.gmra.mrb[4].mxu1 %vm1765_vm8, %v25003_v58  ;;  %v20337_v32 = vunpack.i.l.bf16 %v20336_v18 }
 0x2ee   : > { %18123 = vmatmul.mubr.msk.f32.gmra.mrb[2].mxu0 %vm1765_vm8, %v24993_v34  ;;  %5055 = vmatprep.mubr.f32.mxu1 %v31563_v37  ;;  %v5520_v49 = vsel %vm1058_vm5, %v20327_v47, %v20332_v17 }
 0x2ef   : > { %4960 = vmatprep.mubr.f32.mxu0 %v31563_v37  ;;  %v25135_v36 = vpop.permute.xlu1 %20340  ;;  %v5518_v26 = vsel %vm1058_vm5, %v20332_v17, %v20337_v32 }
 0x2f1   : > { %18129 = vmatmul.mubr.msk.f32.gmra.mrb[6].mxu1 %vm1765_vm8, %v25019_v50 }
 0x2f2   : > { %18124 = vmatmul.mubr.msk.f32.gmra.mrb[4].mxu0 %vm1765_vm8, %v25003_v58  ;;  %5215 = vmatprep.mubr.f32.mxu1 %v31563_v37 }
 0x2f3   : > { %4966 = vmatprep.mubr.f32.mxu0 %v31563_v37  ;;  %v25170_v33 = vpop.permute.xlu1 %20350 }
 0x2f4   : > { %v20353_v14 = vunpack.i.h.bf16 %v25170_v33  ;;  %v20352_v46 = vunpack.i.l.bf16 %v25170_v33 }
 0x2f5   : > { %18134 = vmatmul.mubr.msk.f32.vlgmr.msra.gmra.mrb[8].mxu1 %vm1765_vm8, %v24962_v51 }
 0x2f6   : > { %18125 = vmatmul.mubr.msk.f32.gmra.mrb[6].mxu0 %vm1765_vm8, %v25019_v50  ;;  %18561 = vmatpush1.bf16.msra.mxu1 %v18560_v23  ;;  %v25172_v23 = vpop.permute.xlu0 %20345 }
 0x2f7   : > { %5126 = vmatprep.mubr.f32.mxu0 %v31563_v37  ;;  %5221 = vmatprep.mubr.f32.mxu1 %v31563_v37  ;;  %v25197_v28 = vpop.permute.xlu1 %20360  ;;  %v20348_v25 = vunpack.i.h.bf16 %v25172_v23  ;;  %v20347_v12 = vunpack.i.l.bf16 %v25172_v23 }
 0x2f8   : > { %18567 = vmatprep.subr.bf16.mxu1 %v18566_v41  ;;  %v25195_v41 = vld [vmem:[%s31474_s1 + $0x1c0] sm:$0xff] }
 0x2f9   : > { %18135 = vmatmul.mubr.msk.f32.gmra.mrb[10].mxu1 %vm1765_vm8, %v24993_v34  ;;  %v6206_v1 = vsel %vm1204_vm6, %v20347_v12, %v20352_v46  ;;  %v6207_v30 = vsel %vm1204_vm6, %v20348_v25, %v20353_v14 }
 0x2fa   : > { %18130 = vmatmul.mubr.msk.f32.vlgmr.msra.gmra.mrb[8].mxu0 %vm1765_vm8, %v24962_v51  ;;  %5227 = vmatprep.mubr.f32.mxu1 %v31563_v37  ;;  %v25199_v40 = vpop.permute.xlu0 %20355  ;;  %v18586_v19 = vpack.c.bf16 %v6207_v30, %v6206_v1 }
 0x2fb   : > { %18557 = vmatpush1.bf16.msra.mxu0 %v18556_v44  ;;  %5132 = vmatprep.mubr.f32.mxu0 %v31563_v37  ;;  %v20363_v44 = vunpack.i.h.bf16 %v25197_v28  ;;  %v20358_v0 = vunpack.i.h.bf16 %v25199_v40  ;;  %v20357_v11 = vunpack.i.l.bf16 %v25199_v40  ;;  %v25249_v29 = vpop.permute.xlu1 %20370 }
 0x2fc   : > { %18563 = vmatprep.subr.bf16.mxu0 %v18562_v22  ;;  %v20362_v22 = vunpack.i.l.bf16 %v25197_v28  ;;  %v20373_v47 = vunpack.i.h.bf16 %v25249_v29 }
 0x2fd   : > { %18136 = vmatmul.mubr.msk.f32.gmra.mrb[12].mxu1 %vm1765_vm8, %v25003_v58  ;;  %v6205_v17 = vsel %vm1204_vm6, %v20353_v14, %v20358_v0 }
 0x2fe   : > { %18131 = vmatmul.mubr.msk.f32.gmra.mrb[10].mxu0 %vm1765_vm8, %v24993_v34  ;;  %5233 = vmatprep.mubr.f32.mxu1 %v31563_v37 }
 0x2ff   : > { %5138 = vmatprep.mubr.f32.mxu0 %v31563_v37 }
 0x301   : > { %18137 = vmatmul.mubr.msk.f32.gmra.mrb[14].mxu1 %vm1765_vm8, %v25019_v50 }
 0x302   : > { %18132 = vmatmul.mubr.msk.f32.gmra.mrb[12].mxu0 %vm1765_vm8, %v25003_v58  ;;  %5393 = vmatprep.mubr.f32.mxu1 %v31563_v37 }
 0x303   : > { %5144 = vmatprep.mubr.f32.mxu0 %v31563_v37 }
 0x305   : > { %18142 = vmatmul.mubr.msk.f32.vlgmr.msra.gmra.mrb[16].mxu1 %vm1765_vm8, %v24962_v51 }
 0x306   : > { %18133 = vmatmul.mubr.msk.f32.gmra.mrb[14].mxu0 %vm1765_vm8, %v25019_v50  ;;  %18569 = vmatpush1.bf16.msra.mxu1 %v18568_v57  ;;  %v25251_v57 = vpop.permute.xlu0 %20365 }
 0x307   : > { %5304 = vmatprep.mubr.f32.mxu0 %v31563_v37  ;;  %5399 = vmatprep.mubr.f32.mxu1 %v31563_v37 }
 0x308   : > { %18575 = vmatprep.subr.bf16.mxu1 %v18574_v7  ;;  %v21928_v7 = vmov 1  }
 0x309   : > { %18143 = vmatmul.mubr.msk.f32.gmra.mrb[18].mxu1 %vm1765_vm8, %v24993_v34  ;;  %20459 = vset.pattern.permute.xlu1 %v21928_v7 }
 0x30a   : > { %18138 = vmatmul.mubr.msk.f32.vlgmr.msra.gmra.mrb[16].mxu0 %vm1765_vm8, %v24962_v51  ;;  %5405 = vmatprep.mubr.f32.mxu1 %v31563_v37  ;;  %v20338_v51 = vunpack.i.h.bf16 %v20336_v18  ;;  %v21907_v18 = vld [vmem:[%s31475_s2 + $0x8] sm:$0xff] }
 0x30b   : > { %18565 = vmatpush1.bf16.msra.mxu0 %v18564_v13  ;;  %5310 = vmatprep.mubr.f32.mxu0 %v31563_v37  ;;  %v25273_v13 = vpop.permute.xlu1 %20380 }
 0x30c   : > { %18571 = vmatprep.subr.bf16.mxu0 %v18570_v59  ;;  %v5541_v2 = vsel %vm1058_vm5, %v20338_v51, %v20283_v35  ;;  %v6202_v35 = vsel %vm1204_vm6, %v20357_v11, %v20362_v22  ;;  %7477 = vperm.xlu1 %20459, %v21906_v52   ;;  %v25275_v59 = vpop.permute.xlu0 %20375 }
 0x30d   : > { %18144 = vmatmul.mubr.msk.f32.gmra.mrb[20].mxu1 %vm1765_vm8, %v25003_v58  ;;  %20460 = vset.pattern.permute.xlu0 %v21928_v7  ;;  %v20378_v3 = vunpack.i.h.bf16 %v25275_v59  ;;  %v20377_v24 = vunpack.i.l.bf16 %v25275_v59 }
 0x30e   : > { %18139 = vmatmul.mubr.msk.f32.gmra.mrb[18].mxu0 %vm1765_vm8, %v24993_v34  ;;  %5411 = vmatprep.mubr.f32.mxu1 %v31563_v37  ;;  %v20333_v34 = vunpack.i.h.bf16 %v25123_v38  ;;  %v197_v38 = vld [vmem:[%s31475_s2 + $0x10] sm:$0xff] }
 0x30f   : > { %5316 = vmatprep.mubr.f32.mxu0 %v31563_v37  ;;  %7481 = vperm.xlu0 %20460, %v21907_v18  }
 0x310   : > { %v5521_v15 = vsel %vm1058_vm5, %v20328_v6, %v20333_v34  ;;  %v5519_v16 = vsel %vm1058_vm5, %v20333_v34, %v20338_v51  ;;  %v20383_v51 = vunpack.i.h.bf16 %v25273_v13  ;;  %7486 = vperm.xlu1 %20459, %v197_v38   ;;  %v198_v34 = vld [vmem:[%s31475_s2 + $0x18] sm:$0xff]  ;;  %v6204_v6 = vsel %vm1204_vm6, %v20352_v46, %v20357_v11 }
 0x311   : > { %18145 = vmatmul.mubr.msk.f32.gmra.mrb[22].mxu1 %vm1765_vm8, %v25019_v50  ;;  %v18578_v48 = vpack.c.bf16 %v5521_v15, %v5520_v49  ;;  %v18584_v53 = vpack.c.bf16 %v5519_v16, %v5518_v26  ;;  %v18592_v15 = vpack.c.bf16 %v6205_v17, %v6204_v6  ;;  %v25343_v16 = vpop.permute.xlu1 %20390 }
 0x312   : > { %18140 = vmatmul.mubr.msk.f32.gmra.mrb[20].mxu0 %vm1765_vm8, %v25003_v58  ;;  %5707 = vmatprep.mubr.f32.mxu1 %v31563_v37  ;;  %v5540_v58 = vsel %vm1058_vm5, %v20337_v32, %v20282_v8  ;;  %v6203_v8 = vsel %vm1204_vm6, %v20358_v0, %v20363_v44  ;;  %v20382_v32 = vunpack.i.l.bf16 %v25273_v13 }
 0x313   : > { %5322 = vmatprep.mubr.f32.mxu0 %v31563_v37  ;;  %v18582_v45 = vpack.c.bf16 %v5541_v2, %v5540_v58  ;;  %v18590_v62 = vpack.c.bf16 %v6203_v8, %v6202_v35  ;;  %v20372_v58 = vunpack.i.l.bf16 %v25249_v29  ;;  %v20368_v2 = vunpack.i.h.bf16 %v25251_v57 }
 0x314   : > { %v6194_v33 = vsel %vm1204_vm6, %v20377_v24, %v20382_v32  ;;  %7491 = vperm.xlu1 %20459, %v198_v34   ;;  %v20392_v35 = vunpack.i.l.bf16 %v25343_v16  ;;  %v25431_v34 = vld [vmem:[%s31474_s1 + $0x210] sm:$0xff] }
 0x315   : > { %18154 = vmatmul.mubr.msk.f32.vlgmr.msra.gmra.mrb[0].mxu1 %vm1765_vm8, %v25154_v63  ;;  %v6199_v23 = vsel %vm1204_vm6, %v20368_v2, %v20373_v47  ;;  %v25355_v46 = vpop.permute.xlu1 %20400  ;;  %v6201_v29 = vsel %vm1204_vm6, %v20363_v44, %v20368_v2 }
 0x316   : > { %18141 = vmatmul.mubr.msk.f32.gmra.mrb[22].mxu0 %vm1765_vm8, %v25019_v50  ;;  %18577 = vmatpush1.bf16.msra.mxu1 %v18576_v60  ;;  %v18572_v50 = vpack.c.bf16 %v5531_v61, %v5530_v9  ;;  %v20367_v61 = vunpack.i.l.bf16 %v25251_v57  ;;  %v20343_v9 = vunpack.i.h.bf16 %v25135_v36  ;;  %v20342_v60 = vunpack.i.l.bf16 %v25135_v36 }
 0x317   : > { %5618 = vmatprep.mubr.f32.mxu0 %v31563_v37  ;;  %5713 = vmatprep.mubr.f32.mxu1 %v31563_v37 }
 0x318   : > { %18583 = vmatprep.subr.bf16.mxu1 %v18582_v45  ;;  %v6195_v45 = vsel %vm1204_vm6, %v20378_v3, %v20383_v51  ;;  %v6209_v49 = vsel %vm1204_vm6, %v20343_v9, %v20348_v25  ;;  %v6208_v36 = vsel %vm1204_vm6, %v20342_v60, %v20347_v12  ;;  %v6198_v40 = vsel %vm1204_vm6, %v20367_v61, %v20372_v58 }
 0x319   : > { %18155 = vmatmul.mubr.msk.f32.gmra.mrb[2].mxu1 %vm1765_vm8, %v25185_v4  ;;  %v18588_v0 = vpack.c.bf16 %v6209_v49, %v6208_v36  ;;  %v18594_v11 = vpack.c.bf16 %v6199_v23, %v6198_v40  ;;  %v6197_v25 = vsel %vm1204_vm6, %v20373_v47, %v20378_v3  ;;  %v6196_v12 = vsel %vm1204_vm6, %v20372_v58, %v20377_v24  ;;  %v25390_v1 = vpop.permute.xlu1 %20410 }
 0x31a   : > { %18150 = vmatmul.mubr.msk.f32.vlgmr.msra.gmra.mrb[0].mxu0 %vm1765_vm8, %v25154_v63  ;;  %5719 = vmatprep.mubr.f32.mxu1 %v31563_v37  ;;  %v6200_v57 = vsel %vm1204_vm6, %v20362_v22, %v20367_v61  ;;  %v25405_v22 = vld [vmem:[%s31474_s1 + $0x200] sm:$0xff]  ;;  %v20413_v47 = vunpack.i.h.bf16 %v25390_v1  ;;  %v20412_v58 = vunpack.i.l.bf16 %v25390_v1 }
 0x31b   : > { %18573 = vmatpush1.bf16.msra.mxu0 %v18572_v50  ;;  %5624 = vmatprep.mubr.f32.mxu0 %v31563_v37  ;;  %v25331_v50 = vpop.permute.xlu0 %20385 }
 0x31c   : > { %18579 = vmatprep.subr.bf16.mxu0 %v18578_v48  ;;  %v18598_v48 = vpack.c.bf16 %v6195_v45, %v6194_v33  ;;  %v20388_v8 = vunpack.i.h.bf16 %v25331_v50  ;;  %v20387_v56 = vunpack.i.l.bf16 %v25331_v50 }
 0x31d   : > { %18156 = vmatmul.mubr.msk.f32.gmra.mrb[4].mxu1 %vm1765_vm8, %v25195_v41  ;;  %v25417_v52 = vpop.permute.xlu1 %20420 }
 0x31e   : > { %18151 = vmatmul.mubr.msk.f32.gmra.mrb[2].mxu0 %vm1765_vm8, %v25185_v4  ;;  %5725 = vmatprep.mubr.f32.mxu1 %v31563_v37  ;;  %v6190_v28 = vsel %vm1204_vm6, %v20387_v56, %v20392_v35  ;;  %v20423_v38 = vunpack.i.h.bf16 %v25417_v52  ;;  %v20422_v18 = vunpack.i.l.bf16 %v25417_v52  ;;  %v6193_v33 = vsel %vm1204_vm6, %v20383_v51, %v20388_v8  ;;  %v18203_v52 = vld [vmem:[%s31474_s1 + $0x248] sm:$0xff] }
 0x31f   : > { %5630 = vmatprep.mubr.f32.mxu0 %v31563_v37  ;;  %v20396_v26 = vpop.permute.xlu0 %20395  ;;  %v6192_v45 = vsel %vm1204_vm6, %v20382_v32, %v20387_v56  ;;  %v20402_v56 = vunpack.i.l.bf16 %v25355_v46 }
 0x320   : > { %v20397_v14 = vunpack.i.l.bf16 %v20396_v26  ;;  %v18604_v32 = vpack.c.bf16 %v6193_v33, %v6192_v45 }
 0x321   : > { %18157 = vmatmul.mubr.msk.f32.gmra.mrb[6].mxu1 %vm1765_vm8, %v25215_v39  ;;  %v25465_v36 = vpop.permute.xlu1 %20430 }
 0x322   : > { %18152 = vmatmul.mubr.msk.f32.gmra.mrb[4].mxu0 %vm1765_vm8, %v25195_v41  ;;  %5885 = vmatprep.mubr.f32.mxu1 %v31563_v37  ;;  %v6188_v6 = vsel %vm1204_vm6, %v20392_v35, %v20397_v14 }
 0x323   : > { %5636 = vmatprep.mubr.f32.mxu0 %v31563_v37  ;;  %v25392_v30 = vpop.permute.xlu0 %20405 }
 0x324   : > { %v20408_v2 = vunpack.i.h.bf16 %v25392_v30  ;;  %v20407_v61 = vunpack.i.l.bf16 %v25392_v30 }
 0x325   : > { %18162 = vmatmul.mubr.msk.f32.vlgmr.msra.gmra.mrb[8].mxu1 %vm1765_vm8, %v25154_v63  ;;  %v25482_v40 = vpop.permute.xlu1 %20440 }
 0x326   : > { %18153 = vmatmul.mubr.msk.f32.gmra.mrb[6].mxu0 %vm1765_vm8, %v25215_v39  ;;  %18585 = vmatpush1.bf16.msra.mxu1 %v18584_v53  ;;  %v6876_v13 = vsel %vm1350_vm7, %v20407_v61, %v20412_v58  ;;  %v6877_v51 = vsel %vm1350_vm7, %v20408_v2, %v20413_v47 }
 0x327   : > { %5796 = vmatprep.mubr.f32.mxu0 %v31563_v37  ;;  %5891 = vmatprep.mubr.f32.mxu1 %v31563_v37  ;;  %v20416_v59 = vpop.permute.xlu0 %20415 }
 0x328   : > { %18591 = vmatprep.subr.bf16.mxu1 %v18590_v62  ;;  %v18600_v62 = vpack.c.bf16 %v6197_v25, %v6196_v12  ;;  %v20418_v3 = vunpack.i.h.bf16 %v20416_v59  ;;  %v20417_v24 = vunpack.i.l.bf16 %v20416_v59  ;;  %v20433_v25 = vunpack.i.h.bf16 %v25465_v36 }
 0x329   : > { %18163 = vmatmul.mubr.msk.f32.gmra.mrb[10].mxu1 %vm1765_vm8, %v25185_v4  ;;  %v20432_v12 = vunpack.i.l.bf16 %v25465_v36  ;;  %v18205_v36 = vld [vmem:[%s31474_s1 + $0x258] sm:$0xff] }
 0x32a   : > { %18158 = vmatmul.mubr.msk.f32.vlgmr.msra.gmra.mrb[8].mxu0 %vm1765_vm8, %v25154_v63  ;;  %5897 = vmatprep.mubr.f32.mxu1 %v31563_v37 }
 0x32b   : > { %18581 = vmatpush1.bf16.msra.mxu0 %v18580_v10  ;;  %5802 = vmatprep.mubr.f32.mxu0 %v31563_v37 }
 0x32c   : > { %18587 = vmatprep.subr.bf16.mxu0 %v18586_v19  ;;  %v25415_v19 = vld [vmem:[%s31474_s1 + $0x208] sm:$0xff] }
 0x32d   : > { %18164 = vmatmul.mubr.msk.f32.gmra.mrb[12].mxu1 %vm1765_vm8, %v25195_v41 }
 0x32e   : > { %18159 = vmatmul.mubr.msk.f32.gmra.mrb[10].mxu0 %vm1765_vm8, %v25185_v4  ;;  %5903 = vmatprep.mubr.f32.mxu1 %v31563_v37 }
 0x32f   : > { %5808 = vmatprep.mubr.f32.mxu0 %v31563_v37 }
 0x331   : > { %18165 = vmatmul.mubr.msk.f32.gmra.mrb[14].mxu1 %vm1765_vm8, %v25215_v39 }
 0x332   : > { %18160 = vmatmul.mubr.msk.f32.gmra.mrb[12].mxu0 %vm1765_vm8, %v25195_v41  ;;  %6063 = vmatprep.mubr.f32.mxu1 %v31563_v37 }
 0x333   : > { %5814 = vmatprep.mubr.f32.mxu0 %v31563_v37 }
 0x335   : > { %18170 = vmatmul.mubr.msk.f32.vlgmr.msra.gmra.mrb[16].mxu1 %vm1765_vm8, %v25154_v63 }
 0x336   : > { %18161 = vmatmul.mubr.msk.f32.gmra.mrb[14].mxu0 %vm1765_vm8, %v25215_v39  ;;  %18593 = vmatpush1.bf16.msra.mxu1 %v18592_v15  ;;  %v25467_v15 = vpop.permute.xlu0 %20425 }
 0x337   : > { %5974 = vmatprep.mubr.f32.mxu0 %v31563_v37  ;;  %6069 = vmatprep.mubr.f32.mxu1 %v31563_v37  ;;  %v20427_v35 = vunpack.i.l.bf16 %v25467_v15 }
 0x338   : > { %18599 = vmatprep.subr.bf16.mxu1 %v18598_v48  ;;  %v18610_v48 = vpack.c.bf16 %v6877_v51, %v6876_v13 }
 0x339   : > { %18171 = vmatmul.mubr.msk.f32.gmra.mrb[18].mxu1 %vm1765_vm8, %v25185_v4  ;;  %v6868_v30 = vsel %vm1350_vm7, %v20427_v35, %v20432_v12 }
 0x33a   : > { %18166 = vmatmul.mubr.msk.f32.vlgmr.msra.gmra.mrb[16].mxu0 %vm1765_vm8, %v25154_v63  ;;  %6075 = vmatprep.mubr.f32.mxu1 %v31563_v37  ;;  %v20398_v63 = vunpack.i.h.bf16 %v20396_v26  ;;  %v20436_v23 = vpop.permute.xlu0 %20435 }
 0x33b   : > { %18589 = vmatpush1.bf16.msra.mxu0 %v18588_v0  ;;  %5980 = vmatprep.mubr.f32.mxu0 %v31563_v37  ;;  %v20443_v0 = vunpack.i.h.bf16 %v25482_v40  ;;  %v20437_v26 = vunpack.i.l.bf16 %v20436_v23 }
 0x33c   : > { %18595 = vmatprep.subr.bf16.mxu0 %v18594_v11  ;;  %v6211_v53 = vsel %vm1204_vm6, %v20398_v63, %v20343_v9  ;;  %v6872_v9 = vsel %vm1350_vm7, %v20417_v24, %v20422_v18  ;;  %v20442_v11 = vunpack.i.l.bf16 %v25482_v40 }
 0x33d   : > { %18172 = vmatmul.mubr.msk.f32.gmra.mrb[20].mxu1 %vm1765_vm8, %v25195_v41 }
 0x33e   : > { %18167 = vmatmul.mubr.msk.f32.gmra.mrb[18].mxu0 %vm1765_vm8, %v25185_v4  ;;  %6081 = vmatprep.mubr.f32.mxu1 %v31563_v37  ;;  %v20393_v4 = vunpack.i.h.bf16 %v25343_v16  ;;  %v20438_v16 = vunpack.i.h.bf16 %v20436_v23 }
 0x33f   : > { %5986 = vmatprep.mubr.f32.mxu0 %v31563_v37 }
 0x340   : > { %v6191_v44 = vsel %vm1204_vm6, %v20388_v8, %v20393_v4  ;;  %v6189_v17 = vsel %vm1204_vm6, %v20393_v4, %v20398_v63  ;;  %v6875_v63 = vsel %vm1350_vm7, %v20413_v47, %v20418_v3  ;;  %v20428_v4 = vunpack.i.h.bf16 %v25467_v15 }
 0x341   : > { %18173 = vmatmul.mubr.msk.f32.gmra.mrb[22].mxu1 %vm1765_vm8, %v25215_v39  ;;  %v18602_v7 = vpack.c.bf16 %v6191_v44, %v6190_v28  ;;  %v18608_v49 = vpack.c.bf16 %v6189_v17, %v6188_v6  ;;  %v20403_v8 = vunpack.i.h.bf16 %v25355_v46 }
 0x342   : > { %18168 = vmatmul.mubr.msk.f32.gmra.mrb[20].mxu0 %vm1765_vm8, %v25195_v41  ;;  %6377 = vmatprep.mubr.f32.mxu1 %v31563_v37  ;;  %v6210_v41 = vsel %vm1204_vm6, %v20397_v14, %v20342_v60  ;;  %v6873_v60 = vsel %vm1350_vm7, %v20418_v3, %v20423_v38  ;;  %v6874_v14 = vsel %vm1350_vm7, %v20412_v58, %v20417_v24  ;;  %v18202_v58 = vld [vmem:[%s31474_s1 + $0x240] sm:$0xff] }
 0x343   : > { %5992 = vmatprep.mubr.f32.mxu0 %v31563_v37  ;;  %v18606_v10 = vpack.c.bf16 %v6211_v53, %v6210_v41  ;;  %v18614_v50 = vpack.c.bf16 %v6873_v60, %v6872_v9  ;;  %v6864_v41 = vsel %vm1350_vm7, %v20437_v26, %v20442_v11  ;;  %v6865_v53 = vsel %vm1350_vm7, %v20438_v16, %v20443_v0 }
 0x344   : > { %v18616_v46 = vpack.c.bf16 %v6875_v63, %v6874_v14  ;;  %v18622_v1 = vpack.c.bf16 %v6865_v53, %v6864_v41  ;;  %v6867_v3 = vsel %vm1350_vm7, %v20433_v25, %v20438_v16  ;;  %v6866_v24 = vsel %vm1350_vm7, %v20432_v12, %v20437_v26  ;;  %v32025_v41 = vld [vmem:[#allocation30_spill] sm:$0xff] }
 0x345   : > { %18182 = vmatmul.mubr.msk.f32.vlgmr.msra.gmra.mrb[0].mxu1 %vm1765_vm8, %v25374_v20  ;;  %v6870_v9 = vsel %vm1350_vm7, %v20422_v18, %v20427_v35  ;;  %v18624_v60 = vpack.c.bf16 %v6867_v3, %v6866_v24 }
 0x346   : > { %18169 = vmatmul.mubr.msk.f32.gmra.mrb[22].mxu0 %vm1765_vm8, %v25215_v39  ;;  %18601 = vmatpush1.bf16.msra.mxu1 %v18600_v62  ;;  %v18596_v39 = vpack.c.bf16 %v6201_v29, %v6200_v57  ;;  %v6879_v29 = vsel %vm1350_vm7, %v20403_v8, %v20408_v2  ;;  %v6878_v57 = vsel %vm1350_vm7, %v20402_v56, %v20407_v61  ;;  %v25523_v62 = vpop.permute.xlu0 %20445 }
 0x347   : > { %6288 = vmatprep.mubr.f32.mxu0 %v31563_v37  ;;  %6383 = vmatprep.mubr.f32.mxu1 %v31563_v37  ;;  %v18612_v28 = vpack.c.bf16 %v6879_v29, %v6878_v57  ;;  %v20448_v6 = vunpack.i.h.bf16 %v25523_v62  ;;  %v20447_v47 = vunpack.i.l.bf16 %v25523_v62  ;;  %v6871_v61 = vsel %vm1350_vm7, %v20423_v38, %v20428_v4  ;;  %v32026_v29 = vld [vmem:[#allocation32_spill] sm:$0xff]  ;;  %v32027_v62 = vld [vmem:[#allocation33_spill] sm:$0xff] }
 0x348   : > { %18607 = vmatprep.subr.bf16.mxu1 %v18606_v10  ;;  %v6869_v10 = vsel %vm1350_vm7, %v20428_v4, %v20433_v25  ;;  %v18620_v18 = vpack.c.bf16 %v6871_v61, %v6870_v9 }
 0x349   : > { %18183 = vmatmul.mubr.msk.f32.gmra.mrb[2].mxu1 %vm1765_vm8, %v25405_v22  ;;  %v18618_v44 = vpack.c.bf16 %v6869_v10, %v6868_v30  ;;  %v6863_v13 = vsel %vm1350_vm7, %v20443_v0, %v20448_v6  ;;  %v6862_v51 = vsel %vm1350_vm7, %v20442_v11, %v20447_v47  ;;  %v32029_v10 = vld [vmem:[#allocation31_spill] sm:$0xff] }
 0x34a   : > { %18178 = vmatmul.mubr.msk.f32.vlgmr.msra.gmra.mrb[0].mxu0 %vm1765_vm8, %v25374_v20  ;;  %6389 = vmatprep.mubr.f32.mxu1 %v31563_v37 }
 0x34b   : > { %18597 = vmatpush1.bf16.msra.mxu0 %v18596_v39  ;;  %6294 = vmatprep.mubr.f32.mxu0 %v31563_v37  ;;  %v20456_v39 = vpop.permute.xlu0 %20455 }
 0x34c   : > { %18603 = vmatprep.subr.bf16.mxu0 %v18602_v7  ;;  %v20458_v7 = vunpack.i.h.bf16 %v20456_v39  ;;  %v20457_v59 = vunpack.i.l.bf16 %v20456_v39 }
 0x34d   : > { %18184 = vmatmul.mubr.msk.f32.gmra.mrb[4].mxu1 %vm1765_vm8, %v25415_v19 }
 0x34e   : > { %18179 = vmatmul.mubr.msk.f32.gmra.mrb[2].mxu0 %vm1765_vm8, %v25405_v22  ;;  %6395 = vmatprep.mubr.f32.mxu1 %v31563_v37  ;;  %v6881_v2 = vsel %vm1350_vm7, %v20458_v7, %v20403_v8 }
 0x34f   : > { %6300 = vmatprep.mubr.f32.mxu0 %v31563_v37 }
 0x351   : > { %18185 = vmatmul.mubr.msk.f32.gmra.mrb[6].mxu1 %vm1765_vm8, %v25431_v34 }
 0x352   : > { %18180 = vmatmul.mubr.msk.f32.gmra.mrb[4].mxu0 %vm1765_vm8, %v25415_v19  ;;  %6555 = vmatprep.mubr.f32.mxu1 %v31563_v37 }
 0x353   : > { %6306 = vmatprep.mubr.f32.mxu0 %v31563_v37 }
 0x355   : > { %18190 = vmatmul.mubr.msk.f32.vlgmr.msra.gmra.mrb[8].mxu1 %vm1765_vm8, %v25374_v20 }
 0x356   : > { %18181 = vmatmul.mubr.msk.f32.gmra.mrb[6].mxu0 %vm1765_vm8, %v25431_v34  ;;  %18609 = vmatpush1.bf16.msra.mxu1 %v18608_v49  ;;  %v18204_v49 = vld [vmem:[%s31474_s1 + $0x250] sm:$0xff] }
 0x357   : > { %6466 = vmatprep.mubr.f32.mxu0 %v31563_v37  ;;  %6561 = vmatprep.mubr.f32.mxu1 %v31563_v37 }
 0x358   : > { %18615 = vmatprep.subr.bf16.mxu1 %v18614_v50 }
 0x359   : > { %18191 = vmatmul.mubr.msk.f32.gmra.mrb[10].mxu1 %vm1765_vm8, %v25405_v22 }
 0x35a   : > { %18186 = vmatmul.mubr.msk.f32.vlgmr.msra.gmra.mrb[8].mxu0 %vm1765_vm8, %v25374_v20  ;;  %6567 = vmatprep.mubr.f32.mxu1 %v31563_v37 }
 0x35b   : > { %18605 = vmatpush1.bf16.msra.mxu0 %v18604_v32  ;;  %6472 = vmatprep.mubr.f32.mxu0 %v31563_v37 }
 0x35c   : > { %18611 = vmatprep.subr.bf16.mxu0 %v18610_v48  ;;  %v18628_v48 = vpack.c.bf16 %v6863_v13, %v6862_v51 }
 0x35d   : > { %18192 = vmatmul.mubr.msk.f32.gmra.mrb[12].mxu1 %vm1765_vm8, %v25415_v19 }
 0x35e   : > { %18187 = vmatmul.mubr.msk.f32.gmra.mrb[10].mxu0 %vm1765_vm8, %v25405_v22  ;;  %6573 = vmatprep.mubr.f32.mxu1 %v31563_v37 }
 0x35f   : > { %6478 = vmatprep.mubr.f32.mxu0 %v31563_v37 }
 0x361   : > { %18193 = vmatmul.mubr.msk.f32.gmra.mrb[14].mxu1 %vm1765_vm8, %v25431_v34 }
 0x362   : > { %18188 = vmatmul.mubr.msk.f32.gmra.mrb[12].mxu0 %vm1765_vm8, %v25415_v19  ;;  %6733 = vmatprep.mubr.f32.mxu1 %v31563_v37 }
 0x363   : > { %6484 = vmatprep.mubr.f32.mxu0 %v31563_v37 }
 0x365   : > { %18198 = vmatmul.mubr.msk.f32.vlgmr.msra.gmra.mrb[16].mxu1 %vm1765_vm8, %v25374_v20 }
 0x366   : > { %18189 = vmatmul.mubr.msk.f32.gmra.mrb[14].mxu0 %vm1765_vm8, %v25431_v34  ;;  %18617 = vmatpush1.bf16.msra.mxu1 %v18616_v46 }
 0x367   : > { %6644 = vmatprep.mubr.f32.mxu0 %v31563_v37  ;;  %6739 = vmatprep.mubr.f32.mxu1 %v31563_v37 }
 0x368   : > { %18623 = vmatprep.subr.bf16.mxu1 %v18622_v1 }
 0x369   : > { %18199 = vmatmul.mubr.msk.f32.gmra.mrb[18].mxu1 %vm1765_vm8, %v25405_v22 }
 0x36a   : > { %18194 = vmatmul.mubr.msk.f32.vlgmr.msra.gmra.mrb[16].mxu0 %vm1765_vm8, %v25374_v20  ;;  %6745 = vmatprep.mubr.f32.mxu1 %v31563_v37  ;;  %v20451_v20 = vpop.permute.xlu1 %20450 }
 0x36b   : > { %18613 = vmatpush1.bf16.msra.mxu0 %v18612_v28  ;;  %6650 = vmatprep.mubr.f32.mxu0 %v31563_v37  ;;  %v20452_v17 = vunpack.i.l.bf16 %v20451_v20 }
 0x36c   : > { %18619 = vmatprep.subr.bf16.mxu0 %v18618_v44 }
 0x36d   : > { %18200 = vmatmul.mubr.msk.f32.gmra.mrb[20].mxu1 %vm1765_vm8, %v25415_v19  ;;  %v6860_v45 = vsel %vm1350_vm7, %v20447_v47, %v20452_v17  ;;  %v6858_v50 = vsel %vm1350_vm7, %v20452_v17, %v20457_v59 }
 0x36e   : > { %18195 = vmatmul.mubr.msk.f32.gmra.mrb[18].mxu0 %vm1765_vm8, %v25405_v22  ;;  %6751 = vmatprep.mubr.f32.mxu1 %v31563_v37  ;;  %v20453_v22 = vunpack.i.h.bf16 %v20451_v20 }
 0x36f   : > { %6656 = vmatprep.mubr.f32.mxu0 %v31563_v37 }
 0x370   : > { %v6861_v38 = vsel %vm1350_vm7, %v20448_v6, %v20453_v22  ;;  %v6859_v15 = vsel %vm1350_vm7, %v20453_v22, %v20458_v7 }
 0x371   : > { %18201 = vmatmul.mubr.msk.f32.gmra.mrb[22].mxu1 %vm1765_vm8, %v25431_v34  ;;  %v18632_v32 = vpack.c.bf16 %v6859_v15, %v6858_v50 }
 0x372   : > { %18196 = vmatmul.mubr.msk.f32.gmra.mrb[20].mxu0 %vm1765_vm8, %v25415_v19  ;;  %7047 = vmatprep.mubr.f32.mxu1 %v31563_v37  ;;  %v6880_v19 = vsel %vm1350_vm7, %v20457_v59, %v20402_v56 }
 0x373   : > { %6662 = vmatprep.mubr.f32.mxu0 %v31563_v37  ;;  %v18630_v33 = vpack.c.bf16 %v6881_v2, %v6880_v19 }
 0x375   : > { %18210 = vmatmul.mubr.msk.f32.vlgmr.msra.gmra.mrb[0].mxu1 %vm1765_vm8, %v18202_v58 }
 0x376   : > { %18197 = vmatmul.mubr.msk.f32.gmra.mrb[22].mxu0 %vm1765_vm8, %v25431_v34  ;;  %18625 = vmatpush1.bf16.msra.mxu1 %v18624_v60  ;;  %v18626_v34 = vpack.c.bf16 %v6861_v38, %v6860_v45 }
 0x377   : > { %6958 = vmatprep.mubr.f32.mxu0 %v31563_v37  ;;  %7053 = vmatprep.mubr.f32.mxu1 %v31563_v37 }
 0x378   : > { %18631 = vmatprep.subr.bf16.mxu1 %v18630_v33 }
 0x379   : > { %18211 = vmatmul.mubr.msk.f32.gmra.mrb[2].mxu1 %vm1765_vm8, %v18203_v52 }
 0x37a   : > { %18206 = vmatmul.mubr.msk.f32.vlgmr.msra.gmra.mrb[0].mxu0 %vm1765_vm8, %v18202_v58  ;;  %7059 = vmatprep.mubr.f32.mxu1 %v31563_v37 }
 0x37b   : > { %18621 = vmatpush1.bf16.msra.mxu0 %v18620_v18  ;;  %6964 = vmatprep.mubr.f32.mxu0 %v31563_v37 }
 0x37c   : > { %18627 = vmatprep.subr.bf16.mxu0 %v18626_v34 }
 0x37d   : > { %18212 = vmatmul.mubr.msk.f32.gmra.mrb[4].mxu1 %vm1765_vm8, %v18204_v49 }
 0x37e   : > { %18207 = vmatmul.mubr.msk.f32.gmra.mrb[2].mxu0 %vm1765_vm8, %v18203_v52  ;;  %7065 = vmatprep.mubr.f32.mxu1 %v31563_v37 }
 0x37f   : > { %6970 = vmatprep.mubr.f32.mxu0 %v31563_v37 }
 0x381   : > { %18213 = vmatmul.mubr.msk.f32.gmra.mrb[6].mxu1 %vm1765_vm8, %v18205_v36 }
 0x382   : > { %18208 = vmatmul.mubr.msk.f32.gmra.mrb[4].mxu0 %vm1765_vm8, %v18204_v49  ;;  %7225 = vmatprep.mubr.f32.mxu1 %v31563_v37 }
 0x383   : > { %6976 = vmatprep.mubr.f32.mxu0 %v31563_v37 }
 0x385   : > { %18218 = vmatmul.mubr.msk.f32.vlgmr.msra.gmra.mrb[8].mxu1 %vm1765_vm8, %v18202_v58 }
 0x386   : > { %18209 = vmatmul.mubr.msk.f32.gmra.mrb[6].mxu0 %vm1765_vm8, %v18205_v36  ;;  %18633 = vmatpush1.bf16.msra.mxu1 %v18632_v32 }
 0x387   : > { %7136 = vmatprep.mubr.f32.mxu0 %v31563_v37  ;;  %7231 = vmatprep.mubr.f32.mxu1 %v31563_v37 }
 0x389   : > { %18219 = vmatmul.mubr.msk.f32.gmra.mrb[10].mxu1 %vm1765_vm8, %v18203_v52 }
 0x38a   : > { %18214 = vmatmul.mubr.msk.f32.vlgmr.msra.gmra.mrb[8].mxu0 %vm1765_vm8, %v18202_v58  ;;  %7237 = vmatprep.mubr.f32.mxu1 %v31563_v37 }
 0x38b   : > { %18629 = vmatpush1.bf16.msra.mxu0 %v18628_v48  ;;  %7142 = vmatprep.mubr.f32.mxu0 %v31563_v37  ;;  %v25648_v40 = vpop.permute.xlu1 %7477 }
 0x38d   : > { %18220 = vmatmul.mubr.msk.f32.gmra.mrb[12].mxu1 %vm1765_vm8, %v18204_v49 }
 0x38e   : > { %18215 = vmatmul.mubr.msk.f32.gmra.mrb[10].mxu0 %vm1765_vm8, %v18203_v52  ;;  %7243 = vmatprep.mubr.f32.mxu1 %v31563_v37  ;;  %v25652_v26 = vpop.permute.xlu0 %7481 }
 0x38f   : > { %7148 = vmatprep.mubr.f32.mxu0 %v31563_v37  ;;  %v25657_v56 = vpop.permute.xlu1 %7486 }
 0x391   : > { %18221 = vmatmul.mubr.msk.f32.gmra.mrb[14].mxu1 %vm1765_vm8, %v18205_v36 }
 0x392   : > { %18216 = vmatmul.mubr.msk.f32.gmra.mrb[12].mxu0 %vm1765_vm8, %v18204_v49  ;;  %7403 = vmatprep.mubr.f32.mxu1 %v31563_v37 }
 0x393   : > { %7154 = vmatprep.mubr.f32.mxu0 %v31563_v37  ;;  %v25686_v33 = vpop.permute.xlu1 %7491 }
 0x395   : > { %18226 = vmatmul.mubr.msk.f32.vlgmr.msra.gmra.mrb[16].mxu1 %vm1765_vm8, %v18202_v58 }
 0x396   : > { %18217 = vmatmul.mubr.msk.f32.gmra.mrb[14].mxu0 %vm1765_vm8, %v18205_v36  ;;  %7409 = vmatprep.mubr.f32.mxu1 %v31563_v37 }
 0x397   : > { %7314 = vmatprep.mubr.f32.mxu0 %v31563_v37 }
 0x399   : > { %18227 = vmatmul.mubr.msk.f32.gmra.mrb[18].mxu1 %vm1765_vm8, %v18203_v52 }
 0x39a   : > { %18222 = vmatmul.mubr.msk.f32.vlgmr.msra.gmra.mrb[16].mxu0 %vm1765_vm8, %v18202_v58  ;;  %7415 = vmatprep.mubr.f32.mxu1 %v31563_v37 }
 0x39b   : > { %7320 = vmatprep.mubr.f32.mxu0 %v31563_v37 }
 0x39d   : > { %18228 = vmatmul.mubr.msk.f32.gmra.mrb[20].mxu1 %vm1765_vm8, %v18204_v49 }
 0x39e   : > { %18223 = vmatmul.mubr.msk.f32.gmra.mrb[18].mxu0 %vm1765_vm8, %v18203_v52  ;;  %7421 = vmatprep.mubr.f32.mxu1 %v31563_v37 }
 0x39f   : > { %7326 = vmatprep.mubr.f32.mxu0 %v31563_v37 }
 0x3a1   : > { %18229 = vmatmul.mubr.msk.f32.gmra.mrb[22].mxu1 %vm1765_vm8, %v18205_v36 }
 0x3a2   : > { %18224 = vmatmul.mubr.msk.f32.gmra.mrb[20].mxu0 %vm1765_vm8, %v18204_v49  ;;  %8078 = vmatprep.mubr.f32.mxu1 %v31563_v37 }
 0x3a3   : > { %7332 = vmatprep.mubr.f32.mxu0 %v31563_v37 }
 0x3a6   : > { %18225 = vmatmul.mubr.msk.f32.gmra.mrb[22].mxu0 %vm1765_vm8, %v18205_v36 }
 0x3a7   : > { %8001 = vmatprep.mubr.f32.mxu0 %v31563_v37 }
 0x448   : > { %v7049_v23 = vpop.f32.mrb[0].mxu1 }
 0x449   : > { %v7051_v0 = vpop.f32.mrb[1].mxu1  ;;  %v7496_v11 = vadd.f32 %v25648_v40, %v7049_v23 }
 0x44a   : > { %v7497_v16 = vadd.f32 %v25648_v40, %v7051_v0 }
 0x44b   : > { %v7544_v53 = vmul.f32 %v7496_v11, %v32025_v41 }
 0x44c   : > { %v7055_v25 = vpop.f32.mrb[2].mxu1  ;;  %v7545_v57 = vmul.f32 %v7497_v16, %v32026_v29 }
 0x44d   : > { %v6960_v63 = vpop.f32.mrb[0].mxu0  ;;  %v7508_v4 = vadd.f32 %v25652_v26, %v7055_v25  ;;  %v7057_v8 = vpop.f32.mrb[3].mxu1  ;;  %v25673_v6 = vmax.f32 %v7544_v53, 0.0 }
 0x44e   : > { %v7494_v14 = vadd.f32 %v25648_v40, %v6960_v63  ;;  %v6962_v12 = vpop.f32.mrb[1].mxu0  ;;  %v7509_v46 = vadd.f32 %v25652_v26, %v7057_v8  ;;  %v25675_v47 = vmax.f32 %v7545_v57, 0.0 }
 0x44f   : > { %v7495_v35 = vadd.f32 %v25648_v40, %v6962_v12  ;;  %v7556_v30 = vmul.f32 %v7508_v4, %v32025_v41  ;;  %32031 = vst [vmem:[#allocation3_spill] sm:$0xff] %v25673_v6 }
 0x450   : > { %v25663_v1 = vmul.f32 %v7494_v14, %v32027_v62  ;;  %v7557_v39 = vmul.f32 %v7509_v46, %v32026_v29  ;;  %v7061_v7 = vpop.f32.mrb[4].mxu1  ;;  %32032 = vst [vmem:[#allocation19_spill] sm:$0xff] %v25675_v47 }
 0x451   : > { %v7543_v28 = vmul.f32 %v7495_v35, %v32029_v10  ;;  %v6966_v44 = vpop.f32.mrb[2].mxu0  ;;  %v25669_v3 = vmax.f32 %v7556_v30, 0.0  ;;  %v7520_v24 = vadd.f32 %v25657_v56, %v7061_v7  ;;  %v7063_v17 = vpop.f32.mrb[5].mxu1 }
 0x452   : > { %32028 = vst [vmem:[#allocation25_spill] sm:$0xff] %v25663_v1  ;;  %v7506_v20 = vadd.f32 %v25652_v26, %v6966_v44  ;;  %v6968_v59 = vpop.f32.mrb[3].mxu0  ;;  %v7521_v19 = vadd.f32 %v25657_v56, %v7063_v17  ;;  %v31562_v2 = vmax.f32 %v25663_v1, 0.0  ;;  %v25688_v38 = vmax.f32 %v7557_v39, 0.0 }
 0x453   : > { %32030 = vst [vmem:[#allocation28_spill] sm:$0xff] %v25669_v3  ;;  %v7507_v22 = vadd.f32 %v25652_v26, %v6968_v59  ;;  %v25682_v61 = vmax.f32 %v7543_v28, 0.0  ;;  %v7568_v9 = vmul.f32 %v7520_v24, %v32025_v41  ;;  %v25697_v51 = vpack.i.bf16 %v25669_v3, %v25673_v6 }
 0x454   : > { %v25678_v58 = vmul.f32 %v7506_v20, %v32027_v62  ;;  %32035 = vst [vmem:[#allocation8_spill] sm:$0xff] %v25688_v38  ;;  %v7569_v18 = vmul.f32 %v7521_v19, %v32026_v29  ;;  %v7067_v49 = vpop.f32.mrb[6].mxu1 }
 0x455   : > { %32034 = vst [vmem:[#allocation7_spill] sm:$0xff] %v25682_v61  ;;  %v7555_v60 = vmul.f32 %v7507_v22, %v32029_v10  ;;  %v6972_v45 = vpop.f32.mrb[4].mxu0  ;;  %v7532_v15 = vadd.f32 %v25686_v33, %v7067_v49  ;;  %v7069_v13 = vpop.f32.mrb[7].mxu1  ;;  %32036 = vst [vmem:[#allocation11_spill] sm:$0xff] %v25697_v51  ;;  %v25709_v0 = vmax.f32 %v7568_v9, 0.0 }
 0x456   : > { %32033 = vst [vmem:[#allocation24_spill] sm:$0xff] %v25678_v58  ;;  %v31561_v52 = vmax.f32 %v25678_v58, 0.0  ;;  %v7518_v34 = vadd.f32 %v25657_v56, %v6972_v45  ;;  %v6974_v36 = vpop.f32.mrb[5].mxu0  ;;  %v7533_v48 = vadd.f32 %v25686_v33, %v7069_v13  ;;  %v25717_v25 = vmax.f32 %v7569_v18, 0.0 }
 0x457   : > { %v7519_v50 = vadd.f32 %v25657_v56, %v6974_v36  ;;  %32038 = vst [vmem:[#allocation9_spill] sm:$0xff] %v25709_v0  ;;  %v25711_v11 = vmax.f32 %v7555_v60, 0.0  ;;  %v7580_v16 = vmul.f32 %v7532_v15, %v32025_v41 }
 0x458   : > { %v25700_v32 = vmul.f32 %v7518_v34, %v32027_v62  ;;  %v25707_v23 = vpack.i.bf16 %v31561_v52, %v31562_v2  ;;  %32040 = vst [vmem:[#allocation21_spill] sm:$0xff] %v25717_v25  ;;  %v7581_v12 = vmul.f32 %v7533_v48, %v32026_v29  ;;  %v7227_v35 = vpop.f32.mrb[8].mxu1 }
 0x459   : > { %32039 = vst [vmem:[#allocation12_spill] sm:$0xff] %v25711_v11  ;;  %v25715_v63 = vmul.f32 %v7519_v50, %v32029_v10  ;;  %v6978_v14 = vpop.f32.mrb[6].mxu0  ;;  %v25723_v53 = vmax.f32 %v7580_v16, 0.0  ;;  %v7500_v57 = vadd.f32 %v25648_v40, %v7227_v35  ;;  %v7229_v46 = vpop.f32.mrb[9].mxu1 }
 0x45a   : > { %32037 = vst [vmem:[#allocation10_spill] sm:$0xff] %v25700_v32  ;;  %v7530_v4 = vadd.f32 %v25686_v33, %v6978_v14  ;;  %20462 = vrot.lane.b32.xlu0 %v25707_v23, %s21919_s21  ;;  %v6980_v8 = vpop.f32.mrb[7].mxu0  ;;  %v31560_v28 = vmax.f32 %v25700_v32, 0.0  ;;  %v7501_v39 = vadd.f32 %v25648_v40, %v7229_v46  ;;  %v25733_v7 = vmax.f32 %v7581_v12, 0.0 }
 0x45b   : > { %32041 = vst [vmem:[#allocation20_spill] sm:$0xff] %v25723_v53  ;;  %v7531_v30 = vadd.f32 %v25686_v33, %v6980_v8  ;;  %v31566_v20 = vmax.f32 %v25715_v63, 0.0  ;;  %v25736_v59 = vmul.f32 %v7500_v57, %v31990_v27  ;;  %v25752_v36 = vpack.i.bf16 %v25723_v53, %v25709_v0 }
 0x45c   : > { %v25729_v44 = vmul.f32 %v7530_v4, %v32027_v62  ;;  %32043 = vst [vmem:[#allocation4_spill] sm:$0xff] %v25733_v7  ;;  %v25743_v19 = vmul.f32 %v7501_v39, %v31993_v54  ;;  %v7233_v60 = vpop.f32.mrb[10].mxu1 }
 0x45d   : > { %v25739_v24 = vmul.f32 %v7531_v30, %v32029_v10  ;;  %v7138_v22 = vpop.f32.mrb[8].mxu0  ;;  %v7512_v18 = vadd.f32 %v25652_v26, %v7233_v60  ;;  %v7235_v34 = vpop.f32.mrb[11].mxu1  ;;  %32044 = vst [vmem:[#allocation13_spill] sm:$0xff] %v25752_v36 }
 0x45e   : > { %32042 = vst [vmem:[#allocation18_spill] sm:$0xff] %v25729_v44  ;;  %v31559_v17 = vmax.f32 %v25729_v44, 0.0  ;;  %v7498_v9 = vadd.f32 %v25648_v40, %v7138_v22  ;;  %20467 = vrot.lane.b32.xlu0 %v25697_v51, %s21919_s21  ;;  %v7140_v45 = vpop.f32.mrb[9].mxu0  ;;  %v7513_v50 = vadd.f32 %v25652_v26, %v7235_v34 }
 0x45f   : > { %v7499_v49 = vadd.f32 %v25648_v40, %v7140_v45  ;;  %v31565_v16 = vmax.f32 %v25739_v24, 0.0  ;;  %v25765_v14 = vmul.f32 %v7512_v18, %v31990_v27 }
 0x460   : > { %v7546_v15 = vmul.f32 %v7498_v9, %v31995_v5  ;;  %v25760_v13 = vpack.i.bf16 %v31559_v17, %v31560_v28  ;;  %v25772_v8 = vmul.f32 %v7513_v50, %v31993_v54  ;;  %v7239_v46 = vpop.f32.mrb[12].mxu1 }
 0x461   : > { %v25768_v12 = vmul.f32 %v7499_v49, %v31996_v31  ;;  %v7144_v4 = vpop.f32.mrb[10].mxu0  ;;  %v7524_v22 = vadd.f32 %v25657_v56, %v7239_v46  ;;  %v7241_v9 = vpop.f32.mrb[13].mxu1  ;;  %v25788_v49 = vpack.i.bf16 %v25711_v11, %v25682_v61  ;;  %v32061_v1 = vmax.f32 %v25765_v14, 0.0 }
 0x462   : > { %32045 = vst [vmem:[#allocation5_spill] sm:$0xff] %v25760_v13  ;;  %v7510_v57 = vadd.f32 %v25652_v26, %v7144_v4  ;;  %20472 = vrot.lane.b32.xlu0 %v25707_v23, %s21920_s26  ;;  %20542 = vrot.lane.b32.xlu1 %v25760_v13, %s21919_s21  ;;  %v7146_v30 = vpop.f32.mrb[11].mxu0  ;;  %v25779_v39 = vmax.f32 %v7546_v15, 0.0  ;;  %v7525_v34 = vadd.f32 %v25657_v56, %v7241_v9  ;;  %v32091_v61 = vmax.f32 %v25743_v19, 0.0 }
 0x463   : > { %v7511_v60 = vadd.f32 %v25652_v26, %v7146_v30  ;;  %32047 = vst [vmem:[#allocation14_spill] sm:$0xff] %v25788_v49  ;;  %v25792_v15 = vmul.f32 %v7524_v22, %v31990_v27  ;;  %v25799_v30 = vpack.i.bf16 %v25688_v38, %v25675_v47 }
 0x464   : > { %32046 = vst [vmem:[#allocation16_spill] sm:$0xff] %v25779_v39  ;;  %v7558_v18 = vmul.f32 %v7510_v57, %v31995_v5  ;;  %v25803_v9 = vmul.f32 %v7525_v34, %v31993_v54  ;;  %v7245_v28 = vpop.f32.mrb[14].mxu1 }
 0x465   : > { %v25795_v4 = vmul.f32 %v7511_v60, %v31996_v31  ;;  %v7150_v46 = vpop.f32.mrb[12].mxu0  ;;  %32048 = vst [vmem:[#allocation34_spill] sm:$0xff] %v25799_v30  ;;  %v7536_v52 = vadd.f32 %v25686_v33, %v7245_v28  ;;  %v7247_v2 = vpop.f32.mrb[15].mxu1  ;;  %v25826_v28 = vpack.i.bf16 %v25733_v7, %v25717_v25  ;;  %v32100_v38 = vmax.f32 %v25792_v15, 0.0 }
 0x466   : > { %v7522_v17 = vadd.f32 %v25657_v56, %v7150_v46  ;;  %20477 = vrot.lane.b32.xlu0 %v25697_v51, %s21920_s26  ;;  %20547 = vrot.lane.b32.xlu1 %v25752_v36, %s21919_s21  ;;  %v7152_v22 = vpop.f32.mrb[13].mxu0  ;;  %v25810_v60 = vmax.f32 %v7558_v18, 0.0  ;;  %v7537_v57 = vadd.f32 %v25686_v33, %v7247_v2  ;;  %v25820_v46 = vpack.i.bf16 %v31565_v16, %v31566_v20 }
 0x467   : > { %v7523_v37 = vadd.f32 %v25657_v56, %v7152_v22  ;;  %32051 = vst [vmem:[#allocation37_spill] sm:$0xff] %v25826_v28 }
 0x468   : > { %32049 = vst [vmem:[#allocation35_spill] sm:$0xff] %v25810_v60  ;;  %v7570_v34 = vmul.f32 %v7522_v17, %v31995_v5  ;;  %32050 = vst [vmem:[#allocation36_spill] sm:$0xff] %v25820_v46  ;;  %v25830_v17 = vmul.f32 %v7536_v52, %v31990_v27  ;;  %v7405_v20 = vpop.f32.mrb[16].mxu1  ;;  %v25843_v22 = vmul.f32 %v7537_v57, %v31993_v54  ;;  %v32053_v54 = vld [vmem:[#allocation17_spill] sm:$0xff] }
 0x469   : > { %v7156_v50 = vpop.f32.mrb[14].mxu0  ;;  %v25833_v2 = vmul.f32 %v7523_v37, %v31996_v31  ;;  %v7504_v52 = vadd.f32 %v25648_v40, %v7405_v20  ;;  %v7407_v45 = vpop.f32.mrb[17].mxu1 }
 0x46a   : > { %v7534_v16 = vadd.f32 %v25686_v33, %v7156_v50  ;;  %20482 = vrot.lane.b32.xlu0 %v25707_v23, %s21921_s5  ;;  %20552 = vrot.lane.b32.xlu1 %v25760_v13, %s21920_s26  ;;  %v7158_v18 = vpop.f32.mrb[15].mxu0  ;;  %v25840_v35 = vmax.f32 %v7570_v34, 0.0  ;;  %v7505_v48 = vadd.f32 %v25648_v40, %v7407_v45 }
 0x46b   : > { %v7535_v37 = vadd.f32 %v25686_v33, %v7158_v18  ;;  %v7552_v10 = vmul.f32 %v7504_v52, %v32000_v21 }
 0x46c   : > { %32052 = vst [vmem:[#allocation38_spill] sm:$0xff] %v25840_v35  ;;  %v7582_v50 = vmul.f32 %v7534_v16, %v31995_v5  ;;  %v7553_v29 = vmul.f32 %v7505_v48, %v32053_v54  ;;  %v7411_v41 = vpop.f32.mrb[18].mxu1 }
 0x46d   : > { %v25851_v62 = vmul.f32 %v7535_v37, %v31996_v31  ;;  %v7316_v27 = vpop.f32.mrb[16].mxu0  ;;  %v7516_v52 = vadd.f32 %v25652_v26, %v7411_v41  ;;  %v7413_v37 = vpop.f32.mrb[19].mxu1  ;;  %v25866_v48 = vmax.f32 %v7552_v10, 0.0  ;;  %v25891_v31 = vpack.i.bf16 %v25810_v60, %v25779_v39 }
 0x46e   : > { %v7502_v20 = vadd.f32 %v25648_v40, %v7316_v27  ;;  %20487 = vrot.lane.b32.xlu0 %v25697_v51, %s21921_s5  ;;  %20557 = vrot.lane.b32.xlu1 %v25752_v36, %s21920_s26  ;;  %v7318_v16 = vpop.f32.mrb[17].mxu0  ;;  %v25862_v18 = vmax.f32 %v7582_v50, 0.0  ;;  %v7517_v34 = vadd.f32 %v25652_v26, %v7413_v37  ;;  %v25872_v32 = vmax.f32 %v7553_v29, 0.0 }
 0x46f   : > { %v7503_v57 = vadd.f32 %v25648_v40, %v7318_v16  ;;  %32055 = vst [vmem:[#allocation40_spill] sm:$0xff] %v25866_v48  ;;  %v7564_v5 = vmul.f32 %v7516_v52, %v32000_v21  ;;  %32059 = vst [vmem:[#allocation44_spill] sm:$0xff] %v25891_v31 }
 0x470   : > { %32054 = vst [vmem:[#allocation39_spill] sm:$0xff] %v25862_v18  ;;  %v7550_v27 = vmul.f32 %v7502_v20, %v32005_v42  ;;  %32056 = vst [vmem:[#allocation41_spill] sm:$0xff] %v25872_v32  ;;  %v7417_v45 = vpop.f32.mrb[20].mxu1  ;;  %v7565_v20 = vmul.f32 %v7517_v34, %v32053_v54  ;;  %v25923_v3 = vpack.i.bf16 %v25862_v18, %v25840_v35 }
 0x471   : > { %v7322_v44 = vpop.f32.mrb[18].mxu0  ;;  %v7551_v50 = vmul.f32 %v7503_v57, %v23811_v55  ;;  %v7528_v16 = vadd.f32 %v25657_v56, %v7417_v45  ;;  %v7419_v29 = vpop.f32.mrb[21].mxu1  ;;  %v25885_v57 = vmax.f32 %v7564_v5, 0.0  ;;  %v32060_v45 = vmax.f32 %v25736_v59, 0.0 }
 0x472   : > { %v7514_v41 = vadd.f32 %v25652_v26, %v7322_v44  ;;  %20492 = vrot.lane.b32.xlu0 %v25707_v23, %s21922_s10  ;;  %20562 = vrot.lane.b32.xlu1 %v25760_v13, %s21921_s5  ;;  %v7324_v40 = vpop.f32.mrb[19].mxu0  ;;  %v25880_v10 = vmax.f32 %v7550_v27, 0.0  ;;  %v7529_v37 = vadd.f32 %v25657_v56, %v7419_v29  ;;  %32067 = vst [vmem:[#allocation50_spill] sm:$0xff] %v25923_v3 }
 0x473   : > { %v7515_v52 = vadd.f32 %v25652_v26, %v7324_v40  ;;  %32058 = vst [vmem:[#allocation43_spill] sm:$0xff] %v25885_v57  ;;  %v7576_v27 = vmul.f32 %v7528_v16, %v32000_v21  ;;  %v25899_v26 = vpack.i.bf16 %v32061_v1, %v32060_v45  ;;  %v25901_v5 = vmax.f32 %v7551_v50, 0.0 }
 0x474   : > { %32057 = vst [vmem:[#allocation42_spill] sm:$0xff] %v25880_v10  ;;  %v7562_v44 = vmul.f32 %v7514_v41, %v32005_v42  ;;  %v7577_v41 = vmul.f32 %v7529_v37, %v32053_v54  ;;  %v7423_v29 = vpop.f32.mrb[22].mxu1 }
 0x475   : > { %v7563_v58 = vmul.f32 %v7515_v52, %v23811_v55  ;;  %v7328_v34 = vpop.f32.mrb[20].mxu0  ;;  %32062 = vst [vmem:[#allocation45_spill] sm:$0xff] %v25899_v26  ;;  %32063 = vst [vmem:[#allocation46_spill] sm:$0xff] %v25901_v5  ;;  %v25909_v52 = vmax.f32 %v7565_v20, 0.0  ;;  %v7540_v1 = vadd.f32 %v25686_v33, %v7423_v29  ;;  %v7425_v50 = vpop.f32.mrb[23].mxu1  ;;  %v25915_v37 = vmax.f32 %v7576_v27, 0.0 }
 0x476   : > { %v7526_v40 = vadd.f32 %v25657_v56, %v7328_v34  ;;  %20497 = vrot.lane.b32.xlu0 %v25697_v51, %s21922_s10  ;;  %20567 = vrot.lane.b32.xlu1 %v25752_v36, %s21921_s5  ;;  %v7330_v16 = vpop.f32.mrb[21].mxu0  ;;  %v25911_v0 = vmax.f32 %v7562_v44, 0.0  ;;  %v7541_v51 = vadd.f32 %v25686_v33, %v7425_v50  ;;  %v32069_v29 = vmax.f32 %v25792_v15, 0.0 }
 0x477   : > { %32064 = vst [vmem:[#allocation47_spill] sm:$0xff] %v25909_v52  ;;  %v7527_v45 = vadd.f32 %v25657_v56, %v7330_v16  ;;  %32066 = vst [vmem:[#allocation49_spill] sm:$0xff] %v25915_v37  ;;  %v25925_v20 = vmax.f32 %v7563_v58, 0.0  ;;  %v7588_v44 = vmul.f32 %v7540_v1, %v32000_v21  ;;  %v32070_v56 = vmax.f32 %v25830_v17, 0.0 }
 0x478   : > { %32065 = vst [vmem:[#allocation48_spill] sm:$0xff] %v25911_v0  ;;  %v25918_v34 = vmul.f32 %v7526_v40, %v32005_v42  ;;  %v25934_v16 = vmax.f32 %v7577_v41, 0.0  ;;  %v7589_v40 = vmul.f32 %v7541_v51, %v32053_v54  ;;  %v32075_v1 = vmax.f32 %v25768_v12, 0.0 }
 0x479   : > { %32068 = vst [vmem:[#allocation51_spill] sm:$0xff] %v25925_v20  ;;  %v7334_v11 = vpop.f32.mrb[22].mxu0  ;;  %v25932_v27 = vpack.i.bf16 %v32070_v56, %v32069_v29  ;;  %v7575_v21 = vmul.f32 %v7527_v45, %v23811_v55  ;;  %v25945_v56 = vmax.f32 %v7588_v44, 0.0  ;;  %v32076_v45 = vmax.f32 %v25795_v4, 0.0 }
 0x47a   : > { %32072 = vst [vmem:[#allocation53_spill] sm:$0xff] %v25934_v16  ;;  %v7538_v50 = vadd.f32 %v25686_v33, %v7334_v11  ;;  %20502 = vrot.lane.b32.xlu0 %v25788_v49, %s21919_s21  ;;  %20572 = vrot.lane.b32.xlu1 %v25760_v13, %s21922_s10  ;;  %v7336_v58 = vpop.f32.mrb[23].mxu0  ;;  %v25951_v11 = vmax.f32 %v7589_v40, 0.0  ;;  %v32082_v54 = vmax.f32 %v25803_v9, 0.0  ;;  %v32097_v13 = vmax.f32 %v25803_v9, 0.0 }
 0x47b   : > { %32071 = vst [vmem:[#allocation52_spill] sm:$0xff] %v25932_v27  ;;  %v7539_v29 = vadd.f32 %v25686_v33, %v7336_v58  ;;  %32073 = vst [vmem:[#allocation54_spill] sm:$0xff] %v25945_v56  ;;  %v25961_v33 = vpack.i.bf16 %v32076_v45, %v32075_v1  ;;  %v32078_v58 = vmax.f32 %v25772_v8, 0.0  ;;  %v26012_v53 = vmax.f32 %v7575_v21, 0.0 }
 0x47c   : > { %v25948_v41 = vmul.f32 %v7538_v50, %v32005_v42  ;;  %32074 = vst [vmem:[#allocation55_spill] sm:$0xff] %v25951_v11  ;;  %v32077_v50 = vmax.f32 %v25743_v19, 0.0  ;;  %v26032_v21 = vpack.i.bf16 %v25951_v11, %v25934_v16  ;;  %v32101_v19 = vmax.f32 %v25830_v17, 0.0 }
 0x47d   : > { %v7587_v51 = vmul.f32 %v7539_v29, %v23811_v55  ;;  %v32080_v29 = vmax.f32 %v25833_v2, 0.0  ;;  %v32081_v55 = vmax.f32 %v25851_v62, 0.0  ;;  %32088 = vst [vmem:[#allocation60_spill] sm:$0xff] %v26012_v53  ;;  %v32107_v15 = vmax.f32 %v25795_v4, 0.0 }
 0x47e   : > { %20507 = vrot.lane.b32.xlu0 %v25799_v30, %s21919_s21  ;;  %20577 = vrot.lane.b32.xlu1 %v25752_v36, %s21922_s10  ;;  %v31596_v44 = vmax.f32 %v25948_v41, 0.0  ;;  %v25968_v40 = vpack.i.bf16 %v32078_v58, %v32077_v50  ;;  %v32083_v36 = vmax.f32 %v25843_v22, 0.0  ;;  %v26010_v50 = vpack.i.bf16 %v25945_v56, %v25915_v37 }
 0x47f   : > { %v25974_v42 = vpack.i.bf16 %v32081_v55, %v32080_v29  ;;  %v25982_v45 = vmax.f32 %v7587_v51, 0.0  ;;  %v25992_v55 = vpack.i.bf16 %v25911_v0, %v25880_v10  ;;  %v32087_v51 = vmax.f32 %v25918_v34, 0.0 }
 0x480   : > { %32079 = vst [vmem:[#allocation56_spill] sm:$0xff] %v25968_v40  ;;  %v25980_v1 = vpack.i.bf16 %v32083_v36, %v32082_v54  ;;  %v25998_v54 = vpack.i.bf16 %v25885_v57, %v25866_v48  ;;  %v26020_v36 = vpack.i.bf16 %v25925_v20, %v25901_v5  ;;  %v26104_v7 = vpack.c.bf16 %v32101_v19, %v32100_v38 }
 0x481   : > { %32085 = vst [vmem:[#allocation58_spill] sm:$0xff] %v25982_v45  ;;  %v26006_v29 = vpack.i.bf16 %v31596_v44, %v32087_v51  ;;  %v26024_v51 = vpack.i.bf16 %v25909_v52, %v25872_v32  ;;  %v26028_v58 = vpack.i.bf16 %v25982_v45, %v26012_v53  ;;  %v32092_v44 = vmax.f32 %v25772_v8, 0.0 }
 0x482   : > { %32084 = vst [vmem:[#allocation57_spill] sm:$0xff] %v25980_v1  ;;  %20512 = vrot.lane.b32.xlu0 %v25788_v49, %s21920_s26  ;;  %20582 = vrot.lane.b32.xlu1 %v25820_v46, %s21919_s21  ;;  %32086 = vst [vmem:[#allocation59_spill] sm:$0xff] %v25998_v54  ;;  %v32110_v4 = vmax.f32 %v25851_v62, 0.0  ;;  %v32112_v19 = vmax.f32 %v25918_v34, 0.0  ;;  %v32119_v17 = vpack.i.bf16 %v25901_v5, %v25885_v57 }
 0x483   : > { %32089 = vst [vmem:[#allocation61_spill] sm:$0xff] %v26020_v36  ;;  %32090 = vst [vmem:[#allocation62_spill] sm:$0xff] %v26024_v51 }
 0x484   : > { %32102 = vst [vmem:[#allocation66_spill] sm:$0xff] %v26104_v7 }
 0x486   : > { %20517 = vrot.lane.b32.xlu0 %v25799_v30, %s21920_s26  ;;  %20587 = vrot.lane.b32.xlu1 %v25826_v28, %s21919_s21 }
 0x48a   : > { %20522 = vrot.lane.b32.xlu0 %v25788_v49, %s21921_s5  ;;  %20592 = vrot.lane.b32.xlu1 %v25820_v46, %s21920_s26 }
 0x48e   : > { %20527 = vrot.lane.b32.xlu0 %v25799_v30, %s21921_s5  ;;  %20597 = vrot.lane.b32.xlu1 %v25826_v28, %s21920_s26 }
 0x492   : > { %20532 = vrot.lane.b32.xlu0 %v25788_v49, %s21922_s10  ;;  %20602 = vrot.lane.b32.xlu1 %v25820_v46, %s21921_s5  ;;  %v32095_v49 = vmax.f32 %v25765_v14, 0.0 }
 0x496   : > { %20537 = vrot.lane.b32.xlu0 %v25799_v30, %s21922_s10  ;;  %20607 = vrot.lane.b32.xlu1 %v25826_v28, %s21921_s5  ;;  %v32094_v30 = vmax.f32 %v25736_v59, 0.0  ;;  %v32104_v59 = vmax.f32 %v25739_v24, 0.0 }
 0x498   : > { %v26092_v6 = vpack.c.bf16 %v32095_v49, %v32094_v30 }
 0x49a   : > { %20612 = vrot.lane.b32.xlu1 %v25820_v46, %s21922_s10  ;;  %20622 = vrot.lane.b32.xlu0 %v25891_v31, %s21919_s21  ;;  %32096 = vst [vmem:[#allocation64_spill] sm:$0xff] %v26092_v6  ;;  %v32098_v46 = vmax.f32 %v25843_v22, 0.0 }
 0x49c   : > { %v26098_v25 = vpack.c.bf16 %v32098_v46, %v32097_v13  ;;  %v32106_v13 = vmax.f32 %v25768_v12, 0.0  ;;  %v32109_v12 = vmax.f32 %v25833_v2, 0.0  ;;  %v32113_v2 = vmax.f32 %v25948_v41, 0.0 }
 0x49d   : > { %v32122_v46 = vpack.i.bf16 %v25934_v16, %v25909_v52 }
 0x49e   : > { %20617 = vrot.lane.b32.xlu1 %v25826_v28, %s21922_s10  ;;  %20627 = vrot.lane.b32.xlu0 %v25899_v26, %s21919_s21  ;;  %v26086_v28 = vpack.c.bf16 %v32092_v44, %v32091_v61  ;;  %32099 = vst [vmem:[#allocation65_spill] sm:$0xff] %v26098_v25  ;;  %v32103_v61 = vmax.f32 %v25715_v63, 0.0  ;;  %v26120_v30 = vpack.c.bf16 %v32107_v15, %v32106_v13 }
 0x49f   : > { %v26136_v9 = vpack.c.bf16 %v32110_v4, %v32109_v12  ;;  %v32116_v12 = vpack.i.bf16 %v25872_v32, %v25880_v10 }
 0x4a0   : > { %32093 = vst [vmem:[#allocation63_spill] sm:$0xff] %v26086_v28  ;;  %v26110_v8 = vpack.c.bf16 %v32104_v59, %v32103_v61  ;;  %32108 = vst [vmem:[#allocation68_spill] sm:$0xff] %v26120_v30  ;;  %v26150_v61 = vpack.c.bf16 %v32113_v2, %v32112_v19 }
 0x4a1   : > { %32111 = vst [vmem:[#allocation69_spill] sm:$0xff] %v26136_v9 }
 0x4a2   : > { %20632 = vrot.lane.b32.xlu0 %v25891_v31, %s21920_s26  ;;  %20702 = vrot.lane.b32.xlu1 %v25923_v3, %s21919_s21  ;;  %32105 = vst [vmem:[#allocation67_spill] sm:$0xff] %v26110_v8  ;;  %32114 = vst [vmem:[#allocation70_spill] sm:$0xff] %v26150_v61 }
 0x4a6   : > { %20637 = vrot.lane.b32.xlu0 %v25899_v26, %s21920_s26  ;;  %20707 = vrot.lane.b32.xlu1 %v25932_v27, %s21919_s21 }
 0x4aa   : > { %20642 = vrot.lane.b32.xlu0 %v25891_v31, %s21921_s5  ;;  %20712 = vrot.lane.b32.xlu1 %v25923_v3, %s21920_s26 }
 0x4ae   : > { %20647 = vrot.lane.b32.xlu0 %v25899_v26, %s21921_s5  ;;  %20717 = vrot.lane.b32.xlu1 %v25932_v27, %s21920_s26 }
 0x4b2   : > { %20652 = vrot.lane.b32.xlu0 %v25891_v31, %s21922_s10  ;;  %20722 = vrot.lane.b32.xlu1 %v25923_v3, %s21921_s5 }
 0x4b6   : > { %20657 = vrot.lane.b32.xlu0 %v25899_v26, %s21922_s10  ;;  %20727 = vrot.lane.b32.xlu1 %v25932_v27, %s21921_s5 }
 0x4ba   : > { %20662 = vrot.lane.b32.xlu0 %v25961_v33, %s21919_s21  ;;  %20732 = vrot.lane.b32.xlu1 %v25923_v3, %s21922_s10 }
 0x4be   : > { %20667 = vrot.lane.b32.xlu0 %v25968_v40, %s21919_s21  ;;  %20737 = vrot.lane.b32.xlu1 %v25932_v27, %s21922_s10 }
 0x4c2   : > { %20672 = vrot.lane.b32.xlu0 %v25961_v33, %s21920_s26  ;;  %20742 = vrot.lane.b32.xlu1 %v25974_v42, %s21919_s21 }
 0x4c6   : > { %20677 = vrot.lane.b32.xlu0 %v25968_v40, %s21920_s26  ;;  %20747 = vrot.lane.b32.xlu1 %v25980_v1, %s21919_s21 }
 0x4ca   : > { %20682 = vrot.lane.b32.xlu0 %v25961_v33, %s21921_s5  ;;  %20752 = vrot.lane.b32.xlu1 %v25974_v42, %s21920_s26 }
 0x4cc   : > { %v26184_v62 = vpop.permute.xlu0 %20462 }
 0x4ce   : > { %20687 = vrot.lane.b32.xlu0 %v25968_v40, %s21921_s5  ;;  %20757 = vrot.lane.b32.xlu1 %v25980_v1, %s21920_s26 }
 0x4d0   : > { %v26190_v34 = vpop.permute.xlu0 %20467 }
 0x4d2   : > { %20692 = vrot.lane.b32.xlu0 %v25961_v33, %s21922_s10  ;;  %20762 = vrot.lane.b32.xlu1 %v25974_v42, %s21921_s5 }
 0x4d4   : > { %v26196_v41 = vpop.permute.xlu0 %20472  ;;  %v26198_v59 = vpop.permute.xlu1 %20542 }
 0x4d5   : > { %32115 = vst [vmem:[#allocation71_spill] sm:$0xff] %v26198_v59  ;;  %v31624_v9 = vunpack.i.h.bf16 %v26196_v41  ;;  %v31623_v16 = vunpack.i.l.bf16 %v26196_v41 }
 0x4d6   : > { %20697 = vrot.lane.b32.xlu0 %v25968_v40, %s21922_s10  ;;  %20767 = vrot.lane.b32.xlu1 %v25980_v1, %s21921_s5 }
 0x4d8   : > { %v20478_v13 = vpop.permute.xlu0 %20477  ;;  %v26204_v15 = vpop.permute.xlu1 %20547 }
 0x4d9   : > { %v20480_v52 = vunpack.i.h.bf16 %v20478_v13  ;;  %v20479_v8 = vunpack.i.l.bf16 %v20478_v13 }
 0x4da   : > { %20772 = vrot.lane.b32.xlu1 %v25974_v42, %s21922_s10  ;;  %20782 = vrot.lane.b32.xlu0 %v32116_v12, %s21922_s10 }
 0x4dc   : > { %v26212_v4 = vpop.permute.xlu0 %20482  ;;  %v26214_v19 = vpop.permute.xlu1 %20552 }
 0x4dd   : > { %32117 = vst [vmem:[#allocation72_spill] sm:$0xff] %v26212_v4 }
 0x4de   : > { %20777 = vrot.lane.b32.xlu1 %v25980_v1, %s21922_s10  ;;  %20787 = vrot.lane.b32.xlu0 %v25992_v55, %s21919_s21 }
 0x4e0   : > { %v26220_v2 = vpop.permute.xlu0 %20487  ;;  %v26222_v44 = vpop.permute.xlu1 %20557 }
 0x4e1   : > { %32118 = vst [vmem:[#allocation73_spill] sm:$0xff] %v26220_v2 }
 0x4e2   : > { %20817 = vrot.lane.b32.xlu1 %v32119_v17, %s21922_s10  ;;  %20792 = vrot.lane.b32.xlu0 %v25998_v54, %s21919_s21 }
 0x4e4   : > { %v26230_v12 = vpop.permute.xlu0 %20492  ;;  %v26232_v22 = vpop.permute.xlu1 %20562 }
 0x4e5   : > { %32120 = vst [vmem:[#allocation74_spill] sm:$0xff] %v26230_v12  ;;  %32121 = vst [vmem:[#allocation75_spill] sm:$0xff] %v26232_v22 }
 0x4e6   : > { %20857 = vrot.lane.b32.xlu1 %v32122_v46, %s21922_s10  ;;  %20797 = vrot.lane.b32.xlu0 %v25992_v55, %s21920_s26 }
 0x4e8   : > { %v26240_v24 = vpop.permute.xlu0 %20497  ;;  %v26242_v63 = vpop.permute.xlu1 %20567 }
 0x4e9   : > { %32123 = vst [vmem:[#allocation76_spill] sm:$0xff] %v26240_v24  ;;  %32124 = vst [vmem:[#allocation77_spill] sm:$0xff] %v26242_v63  ;;  %v32140_v24 = vld [vmem:[#allocation7_spill] sm:$0xff] }
 0x4ea   : > { %20802 = vrot.lane.b32.xlu0 %v25998_v54, %s21920_s26  ;;  %20862 = vrot.lane.b32.xlu1 %v26006_v29, %s21919_s21 }
 0x4ec   : > { %v26248_v17 = vpop.permute.xlu0 %20502  ;;  %v26250_v38 = vpop.permute.xlu1 %20572 }
 0x4ed   : > { %32125 = vst [vmem:[#allocation78_spill] sm:$0xff] %v26250_v38 }
 0x4ee   : > { %20807 = vrot.lane.b32.xlu0 %v25992_v55, %s21921_s5  ;;  %20867 = vrot.lane.b32.xlu1 %v26010_v50, %s21919_s21 }
 0x4f0   : > { %v26256_v46 = vpop.permute.xlu0 %20507  ;;  %v26258_v49 = vpop.permute.xlu1 %20577 }
 0x4f1   : > { %32126 = vst [vmem:[#allocation79_spill] sm:$0xff] %v26258_v49  ;;  %v31629_v49 = vunpack.i.h.bf16 %v26214_v19 }
 0x4f2   : > { %20812 = vrot.lane.b32.xlu0 %v25998_v54, %s21921_s5  ;;  %20872 = vrot.lane.b32.xlu1 %v26006_v29, %s21920_s26 }
 0x4f4   : > { %v20513_v14 = vpop.permute.xlu0 %20512  ;;  %v26264_v61 = vpop.permute.xlu1 %20582 }
 0x4f5   : > { %v20515_v10 = vunpack.i.h.bf16 %v20513_v14  ;;  %v20514_v5 = vunpack.i.l.bf16 %v20513_v14 }
 0x4f6   : > { %20822 = vrot.lane.b32.xlu0 %v26020_v36, %s21919_s21  ;;  %20877 = vrot.lane.b32.xlu1 %v26010_v50, %s21920_s26 }
 0x4f7   : > { %v7922_v32 = vsel %vm413_vm1, %v31623_v16, %v20514_v5  ;;  %v7923_v14 = vsel %vm413_vm1, %v31624_v9, %v20515_v10  ;;  %v7919_v16 = vsel %vm413_vm1, %v20515_v10, %v20480_v52  ;;  %v7918_v28 = vsel %vm413_vm1, %v20514_v5, %v20479_v8 }
 0x4f8   : > { %v26272_v30 = vpop.permute.xlu0 %20517  ;;  %v26274_v57 = vpop.permute.xlu1 %20587  ;;  %v18634_v6 = vpack.c.bf16 %v7923_v14, %v7922_v32  ;;  %v31628_v5 = vunpack.i.l.bf16 %v26214_v19 }
 0x4f9   : > { %v31631_v7 = vunpack.i.h.bf16 %v26272_v30  ;;  %v31630_v25 = vunpack.i.l.bf16 %v26272_v30  ;;  %v32141_v22 = vunpack.i.h.bf16 %v26272_v30  ;;  %v32142_v4 = vunpack.i.l.bf16 %v26272_v30  ;;  %v32144_v30 = vld [vmem:[#allocation5_spill] sm:$0xff] }
 0x4fa   : > { %20827 = vrot.lane.b32.xlu0 %v26024_v51, %s21919_s21  ;;  %20882 = vrot.lane.b32.xlu1 %v26006_v29, %s21921_s5 }
 0x4fb   : > { %v7914_v13 = vsel %vm413_vm1, %v20479_v8, %v31630_v25  ;;  %v7915_v32 = vsel %vm413_vm1, %v20480_v52, %v31631_v7  ;;  %18635 = vmatprep.subr.bf16.mxu0 %v18634_v6  ;;  %v18644_v8 = vpack.c.bf16 %v7919_v16, %v7918_v28  ;;  %v20560_v28 = vunpack.i.h.bf16 %v26222_v44 }
 0x4fc   : > { %v26302_v14 = vpop.permute.xlu0 %20522  ;;  %v20593_v9 = vpop.permute.xlu1 %20592  ;;  %v18642_v38 = vpack.c.bf16 %v7915_v32, %v7914_v13  ;;  %v20559_v16 = vunpack.i.l.bf16 %v26222_v44 }
 0x4fd   : > { %32127 = vst [vmem:[#allocation80_spill] sm:$0xff] %v26302_v14  ;;  %v20595_v12 = vunpack.i.h.bf16 %v20593_v9  ;;  %v20594_v10 = vunpack.i.l.bf16 %v20593_v9 }
 0x4fe   : > { %18643 = vmatprep.subr.bf16.mxu1 %v18642_v38  ;;  %20832 = vrot.lane.b32.xlu0 %v26020_v36, %s21920_s26 }
 0x4ff   : > { %20887 = vrot.lane.b32.xlu1 %v26010_v50, %s21921_s5  ;;  %18645 = vmatpush1.bf16.msra.mxu1 %v18644_v8  ;;  %v26318_v9 = vsel %vm413_vm1, %v31628_v5, %v20594_v10  ;;  %v26324_v38 = vsel %vm413_vm1, %v31629_v49, %v20595_v12  ;;  %v7921_v5 = vsel %vm413_vm1, %v20595_v12, %v20560_v28 }
 0x500   : > { %v26310_v6 = vpop.permute.xlu0 %20527  ;;  %v26312_v52 = vpop.permute.xlu1 %20597  ;;  %v7920_v49 = vsel %vm413_vm1, %v20594_v10, %v20559_v16 }
 0x501   : > { %32128 = vst [vmem:[#allocation81_spill] sm:$0xff] %v26310_v6  ;;  %v20600_v13 = vunpack.i.h.bf16 %v26312_v52  ;;  %v20599_v32 = vunpack.i.l.bf16 %v26312_v52  ;;  %v18648_v12 = vpack.c.bf16 %v7921_v5, %v7920_v49 }
 0x502   : > { %20837 = vrot.lane.b32.xlu0 %v26024_v51, %s21920_s26 }
 0x503   : > { %20892 = vrot.lane.b32.xlu1 %v26028_v58, %s21919_s21  ;;  %v7916_v44 = vsel %vm413_vm1, %v20559_v16, %v20599_v32  ;;  %v7917_v52 = vsel %vm413_vm1, %v20560_v28, %v20600_v13  ;;  %v26359_v28 = vld [vmem:[%s31474_s1 + $0x68] sm:$0xff] }
 0x504   : > { %v26344_v25 = vpop.permute.xlu0 %20532  ;;  %v26346_v7 = vpop.permute.xlu1 %20602  ;;  %v18646_v8 = vpack.c.bf16 %v7917_v52, %v7916_v44  ;;  %v26375_v44 = vld [vmem:[%s31474_s1 + $0x70] sm:$0xff]  ;;  %v32136_v52 = vpack.i.bf16 %v25915_v37, %v25925_v20  ;;  %v32138_v20 = vpack.i.bf16 %v26012_v53, %v25945_v56 }
 0x505   : > { %32129 = vst [vmem:[#allocation82_spill] sm:$0xff] %v26344_v25  ;;  %32130 = vst [vmem:[#allocation83_spill] sm:$0xff] %v26346_v7 }
 0x506   : > { %18647 = vmatprep.subr.bf16.mxu1 %v18646_v8  ;;  %20842 = vrot.lane.b32.xlu0 %v26020_v36, %s21921_s5  ;;  %v32135_v8 = vmov 0.0  }
 0x507   : > { %20897 = vrot.lane.b32.xlu1 %v26032_v21, %s21919_s21  ;;  %18649 = vmatpush1.bf16.msra.mxu1 %v18648_v12 }
 0x508   : > { %v26352_v10 = vpop.permute.xlu0 %20537  ;;  %v26354_v16 = vpop.permute.xlu1 %20607 }
 0x509   : > { %32131 = vst [vmem:[#allocation84_spill] sm:$0xff] %v26352_v10  ;;  %32132 = vst [vmem:[#allocation85_spill] sm:$0xff] %v26354_v16 }
 0x50a   : > { %20847 = vrot.lane.b32.xlu0 %v26024_v51, %s21921_s5  ;;  %18234 = vmatmul.mubr.msk.f32.vlgmr.msra.gmra.mrb[24].mxu1 %vm7930_vm9, %v26359_v28 }
 0x50b   : > { %20902 = vrot.lane.b32.xlu1 %v26028_v58, %s21920_s26  ;;  %8084 = vmatprep.mubr.f32.mxu1 %v32135_v8 }
 0x50c   : > { %v26367_v49 = vpop.permute.xlu1 %20612  ;;  %v26369_v5 = vpop.permute.xlu0 %20622 }
 0x50d   : > { %32133 = vst [vmem:[#allocation86_spill] sm:$0xff] %v26367_v49  ;;  %32134 = vst [vmem:[#allocation87_spill] sm:$0xff] %v26369_v5  ;;  %v32156_v5 = vld [vmem:[#allocation21_spill] sm:$0xff] }
 0x50e   : > { %20852 = vrot.lane.b32.xlu0 %v32136_v52, %s21922_s10  ;;  %18235 = vmatmul.mubr.msk.f32.gmra.mrb[26].mxu1 %vm7930_vm9, %v26375_v44 }
 0x50f   : > { %20907 = vrot.lane.b32.xlu1 %v26032_v21, %s21920_s26  ;;  %8232 = vmatprep.mubr.f32.mxu1 %v32135_v8 }
 0x510   : > { %v26383_v12 = vpop.permute.xlu1 %20617  ;;  %v26385_v49 = vpop.permute.xlu0 %20627 }
 0x511   : > { %32137 = vst [vmem:[#allocation88_spill] sm:$0xff] %v26383_v12  ;;  %v20931_v12 = vpack.i.bf16 %v25675_v47, %v32140_v24 }
 0x512   : > { %20922 = vrot.lane.b32.xlu0 %v25707_v23, %s21923_s23 }
 0x513   : > { %20912 = vrot.lane.b32.xlu1 %v32138_v20, %s21922_s10 }
 0x514   : > { %v20633_v52 = vpop.permute.xlu0 %20632  ;;  %v26396_v37 = vpop.permute.xlu1 %20702 }
 0x515   : > { %32139 = vst [vmem:[#allocation89_spill] sm:$0xff] %v26396_v37  ;;  %v20635_v10 = vunpack.i.h.bf16 %v20633_v52  ;;  %v20634_v25 = vunpack.i.l.bf16 %v20633_v52  ;;  %v32146_v37 = vld [vmem:[#allocation4_spill] sm:$0xff] }
 0x516   : > { %20932 = vrot.lane.b32.xlu0 %v20931_v12, %s21923_s23  ;;  %v32143_v12 = vld [vmem:[#allocation3_spill] sm:$0xff] }
 0x517   : > { %v26405_v7 = vsel %vm413_vm1, %v32141_v22, %v20635_v10  ;;  %v26411_v20 = vsel %vm413_vm1, %v32142_v4, %v20634_v25  ;;  %20917 = vrot.lane.b32.xlu1 %v26006_v29, %s21922_s10  ;;  %v20941_v52 = vpack.i.bf16 %v32143_v12, %v25810_v60  ;;  %v32147_v60 = vpack.i.bf16 %v25840_v35, %v32146_v37  ;;  %v32150_v12 = vld [vmem:[#allocation8_spill] sm:$0xff] }
 0x518   : > { %v20638_v53 = vpop.permute.xlu0 %20637  ;;  %v26415_v56 = vpop.permute.xlu1 %20707  ;;  %v32153_v35 = vld [vmem:[#allocation20_spill] sm:$0xff] }
 0x519   : > { %v32154_v37 = vld [vmem:[#allocation12_spill] sm:$0xff] }
 0x51a   : > { %20942 = vrot.lane.b32.xlu0 %v20941_v52, %s21923_s23  ;;  %v20961_v14 = vpack.i.bf16 %v32154_v37, %v32153_v35 }
 0x51b   : > { %20927 = vrot.lane.b32.xlu1 %v32144_v30, %s21923_s23 }
 0x51c   : > { %v26424_v22 = vpop.permute.xlu0 %20642  ;;  %v26426_v4 = vpop.permute.xlu1 %20712 }
 0x51d   : > { %32145 = vst [vmem:[#allocation90_spill] sm:$0xff] %v26424_v22  ;;  %v31652_v24 = vunpack.i.h.bf16 %v26426_v4  ;;  %v31655_v63 = vunpack.i.l.bf16 %v26426_v4  ;;  %v32151_v22 = vpack.i.bf16 %v25779_v39, %v32150_v12 }
 0x51e   : > { %20952 = vrot.lane.b32.xlu0 %v32147_v60, %s21923_s23 }
 0x51f   : > { %v26438_v52 = vsel %vm413_vm1, %v20600_v13, %v31652_v24  ;;  %v26444_v47 = vsel %vm413_vm1, %v20599_v32, %v31655_v63  ;;  %20937 = vrot.lane.b32.xlu1 %v32151_v22, %s21923_s23  ;;  %v32155_v24 = vld [vmem:[#allocation28_spill] sm:$0xff]  ;;  %v32159_v63 = vld [vmem:[#allocation9_spill] sm:$0xff] }
 0x520   : > { %32148 = vst [vmem:[#allocation91_spill] sm:$0xff] %v26438_v52  ;;  %32149 = vst [vmem:[#allocation92_spill] sm:$0xff] %v26444_v47  ;;  %v26450_v16 = vpop.permute.xlu0 %20647  ;;  %v26452_v60 = vpop.permute.xlu1 %20717  ;;  %v20946_v6 = vpack.i.bf16 %v32156_v5, %v32155_v24  ;;  %v20956_v39 = vpack.i.bf16 %v32159_v63, %v25862_v18 }
 0x521   : > { %32152 = vst [vmem:[#allocation93_spill] sm:$0xff] %v26450_v16 }
 0x522   : > { %20962 = vrot.lane.b32.xlu0 %v20961_v14, %s21923_s23  ;;  %v32162_v14 = vld [vmem:[#allocation36_spill] sm:$0xff] }
 0x523   : > { %20947 = vrot.lane.b32.xlu1 %v20946_v6, %s21923_s23 }
 0x524   : > { %v26462_v32 = vpop.permute.xlu0 %20652  ;;  %v26464_v22 = vpop.permute.xlu1 %20722 }
 0x525   : > { %32157 = vst [vmem:[#allocation94_spill] sm:$0xff] %v26462_v32  ;;  %32158 = vst [vmem:[#allocation95_spill] sm:$0xff] %v26464_v22  ;;  %v20640_v22 = vunpack.i.h.bf16 %v20638_v53 }
 0x526   : > { %20972 = vrot.lane.b32.xlu0 %v25992_v55, %s21923_s23 }
 0x527   : > { %20957 = vrot.lane.b32.xlu1 %v20956_v39, %s21923_s23 }
 0x528   : > { %v26471_v13 = vpop.permute.xlu0 %20657  ;;  %v26473_v12 = vpop.permute.xlu1 %20727 }
 0x529   : > { %32160 = vst [vmem:[#allocation96_spill] sm:$0xff] %v26471_v13  ;;  %32161 = vst [vmem:[#allocation97_spill] sm:$0xff] %v26473_v12 }
 0x52a   : > { %20982 = vrot.lane.b32.xlu0 %v32162_v14, %s21923_s23 }
 0x52b   : > { %20967 = vrot.lane.b32.xlu1 %v25968_v40, %s21923_s23 }
 0x52c   : > { %v26479_v6 = vpop.permute.xlu0 %20662  ;;  %v26481_v5 = vpop.permute.xlu1 %20732 }
 0x52d   : > { %32163 = vst [vmem:[#allocation98_spill] sm:$0xff] %v26481_v5 }
 0x52e   : > { %20992 = vrot.lane.b32.xlu0 %v26006_v29, %s21923_s23 }
 0x52f   : > { %20977 = vrot.lane.b32.xlu1 %v25899_v26, %s21923_s23 }
 0x530   : > { %v26487_v39 = vpop.permute.xlu0 %20667  ;;  %v26489_v18 = vpop.permute.xlu1 %20737 }
 0x531   : > { %32164 = vst [vmem:[#allocation99_spill] sm:$0xff] %v26489_v18 }
 0x532   : > { %21002 = vrot.lane.b32.xlu0 %v25961_v33, %s21923_s23 }
 0x533   : > { %20987 = vrot.lane.b32.xlu1 %v25980_v1, %s21923_s23 }
 0x534   : > { %v20673_v37 = vpop.permute.xlu0 %20672  ;;  %v26495_v35 = vpop.permute.xlu1 %20742 }
 0x535   : > { %32165 = vst [vmem:[#allocation100_spill] sm:$0xff] %v26495_v35  ;;  %v20675_v63 = vunpack.i.h.bf16 %v20673_v37  ;;  %v20674_v24 = vunpack.i.l.bf16 %v20673_v37  ;;  %v20639_v37 = vunpack.i.l.bf16 %v20638_v53 }
 0x536   : > { %21022 = vrot.lane.b32.xlu0 %v25998_v54, %s21923_s23 }
 0x537   : > { %20997 = vrot.lane.b32.xlu1 %v25932_v27, %s21923_s23  ;;  %v26507_v18 = vsel %vm413_vm1, %v20634_v25, %v20674_v24  ;;  %v26511_v13 = vsel %vm413_vm1, %v20635_v10, %v20675_v63  ;;  %v7903_v25 = vsel %vm413_vm1, %v20675_v63, %v20640_v22  ;;  %v7902_v59 = vsel %vm413_vm1, %v20674_v24, %v20639_v37 }
 0x538   : > { %v26501_v5 = vpop.permute.xlu0 %20677  ;;  %v26503_v32 = vpop.permute.xlu1 %20747  ;;  %v18660_v24 = vpack.c.bf16 %v7903_v25, %v7902_v59  ;;  %v20720_v59 = vunpack.i.h.bf16 %v26452_v60  ;;  %v20719_v25 = vunpack.i.l.bf16 %v26452_v60 }
 0x539   : > { %v31671_v12 = vunpack.i.h.bf16 %v26501_v5  ;;  %v31670_v16 = vunpack.i.l.bf16 %v26501_v5 }
 0x53a   : > { %21037 = vrot.lane.b32.xlu0 %v26020_v36, %s21923_s23 }
 0x53b   : > { %21007 = vrot.lane.b32.xlu1 %v26028_v58, %s21921_s5  ;;  %v7898_v53 = vsel %vm413_vm1, %v20639_v37, %v31670_v16  ;;  %v7899_v10 = vsel %vm413_vm1, %v20640_v22, %v31671_v12  ;;  %v32168_v22 = vunpack.i.l.bf16 %v26426_v4 }
 0x53c   : > { %v26533_v2 = vpop.permute.xlu0 %20682  ;;  %v20753_v35 = vpop.permute.xlu1 %20752  ;;  %v18658_v63 = vpack.c.bf16 %v7899_v10, %v7898_v53 }
 0x53d   : > { %32166 = vst [vmem:[#allocation101_spill] sm:$0xff] %v26533_v2  ;;  %v20755_v47 = vunpack.i.h.bf16 %v20753_v35  ;;  %v20754_v52 = vunpack.i.l.bf16 %v20753_v35  ;;  %v32169_v35 = vunpack.i.h.bf16 %v26426_v4 }
 0x53e   : > { %18659 = vmatprep.subr.bf16.mxu1 %v18658_v63  ;;  %21047 = vrot.lane.b32.xlu0 %v25891_v31, %s21924_s13 }
 0x53f   : > { %21012 = vrot.lane.b32.xlu1 %v26032_v21, %s21921_s5  ;;  %18661 = vmatpush1.bf16.msra.mxu1 %v18660_v24  ;;  %v26547_v53 = vsel %vm413_vm1, %v32168_v22, %v20754_v52  ;;  %v26553_v10 = vsel %vm413_vm1, %v32169_v35, %v20755_v47  ;;  %v7905_v4 = vsel %vm413_vm1, %v20755_v47, %v20720_v59  ;;  %v32172_v47 = vld [vmem:[#allocation14_spill] sm:$0xff] }
 0x540   : > { %v26539_v37 = vpop.permute.xlu0 %20687  ;;  %v26541_v16 = vpop.permute.xlu1 %20757  ;;  %v7904_v35 = vsel %vm413_vm1, %v20754_v52, %v20719_v25 }
 0x541   : > { %32167 = vst [vmem:[#allocation102_spill] sm:$0xff] %v26539_v37  ;;  %v20760_v63 = vunpack.i.h.bf16 %v26541_v16  ;;  %v20759_v24 = vunpack.i.l.bf16 %v26541_v16  ;;  %v18664_v37 = vpack.c.bf16 %v7905_v4, %v7904_v35 }
 0x542   : > { %21062 = vrot.lane.b32.xlu0 %v25923_v3, %s21924_s13 }
 0x543   : > { %21017 = vrot.lane.b32.xlu1 %v26024_v51, %s21923_s23  ;;  %v7900_v60 = vsel %vm413_vm1, %v20719_v25, %v20759_v24  ;;  %v7901_v16 = vsel %vm413_vm1, %v20720_v59, %v20760_v63 }
 0x544   : > { %v26573_v12 = vpop.permute.xlu0 %20692  ;;  %v26575_v2 = vpop.permute.xlu1 %20762  ;;  %v18662_v22 = vpack.c.bf16 %v7901_v16, %v7900_v60  ;;  %v32180_v60 = vpack.i.bf16 %v25866_v48, %v25951_v11  ;;  %v32181_v16 = vld [vmem:[#allocation11_spill] sm:$0xff]  ;;  %v32186_v48 = vpack.i.bf16 %v25911_v0, %v25982_v45 }
 0x545   : > { %32170 = vst [vmem:[#allocation103_spill] sm:$0xff] %v26573_v12  ;;  %32171 = vst [vmem:[#allocation104_spill] sm:$0xff] %v26575_v2 }
 0x546   : > { %18663 = vmatprep.subr.bf16.mxu1 %v18662_v22  ;;  %21072 = vrot.lane.b32.xlu0 %v32172_v47, %s21924_s13 }
 0x547   : > { %21027 = vrot.lane.b32.xlu1 %v25974_v42, %s21923_s23  ;;  %18665 = vmatpush1.bf16.msra.mxu1 %v18664_v37  ;;  %v32177_v37 = vld [vmem:[#allocation34_spill] sm:$0xff] }
 0x548   : > { %v26581_v52 = vpop.permute.xlu0 %20697  ;;  %v26583_v25 = vpop.permute.xlu1 %20767 }
 0x549   : > { %32173 = vst [vmem:[#allocation105_spill] sm:$0xff] %v26581_v52  ;;  %32174 = vst [vmem:[#allocation106_spill] sm:$0xff] %v26583_v25 }
 0x54a   : > { %21082 = vrot.lane.b32.xlu0 %v25968_v40, %s21924_s13  ;;  %18238 = vmatmul.mubr.msk.f32.vlgmr.msra.gmra.mrb[28].mxu1 %vm7930_vm9, %v26359_v28 }
 0x54b   : > { %21032 = vrot.lane.b32.xlu1 %v26010_v50, %s21923_s23  ;;  %8238 = vmatprep.mubr.f32.mxu1 %v32135_v8 }
 0x54c   : > { %v26591_v59 = vpop.permute.xlu1 %20772  ;;  %v26593_v22 = vpop.permute.xlu0 %20782 }
 0x54d   : > { %32175 = vst [vmem:[#allocation107_spill] sm:$0xff] %v26591_v59  ;;  %32176 = vst [vmem:[#allocation108_spill] sm:$0xff] %v26593_v22 }
 0x54e   : > { %21092 = vrot.lane.b32.xlu0 %v25899_v26, %s21924_s13  ;;  %18239 = vmatmul.mubr.msk.f32.gmra.mrb[30].mxu1 %vm7930_vm9, %v26375_v44 }
 0x54f   : > { %21042 = vrot.lane.b32.xlu1 %v32177_v37, %s21924_s13  ;;  %8386 = vmatprep.mubr.f32.mxu1 %v32135_v8 }
 0x550   : > { %v26600_v4 = vpop.permute.xlu1 %20777  ;;  %v26602_v35 = vpop.permute.xlu0 %20787 }
 0x551   : > { %32178 = vst [vmem:[#allocation34_spill] sm:$0xff] %v26600_v4  ;;  %32179 = vst [vmem:[#allocation109_spill] sm:$0xff] %v26602_v35  ;;  %v32184_v4 = vld [vmem:[#allocation37_spill] sm:$0xff] }
 0x552   : > { %21102 = vrot.lane.b32.xlu0 %v32180_v60, %s21922_s10  ;;  %v32189_v35 = vld [vmem:[#allocation13_spill] sm:$0xff] }
 0x553   : > { %21052 = vrot.lane.b32.xlu1 %v32181_v16, %s21924_s13 }
 0x554   : > { %v26613_v22 = vpop.permute.xlu1 %20817  ;;  %v26615_v59 = vpop.permute.xlu0 %20792 }
 0x555   : > { %32182 = vst [vmem:[#allocation110_spill] sm:$0xff] %v26613_v22  ;;  %32183 = vst [vmem:[#allocation111_spill] sm:$0xff] %v26615_v59  ;;  %v32187_v22 = vunpack.i.h.bf16 %v26501_v5 }
 0x556   : > { %21107 = vrot.lane.b32.xlu0 %v32144_v30, %s21924_s13 }
 0x557   : > { %21057 = vrot.lane.b32.xlu1 %v32184_v4, %s21924_s13 }
 0x558   : > { %v26621_v12 = vpop.permute.xlu1 %20857  ;;  %v26623_v52 = vpop.permute.xlu0 %20797 }
 0x559   : > { %32185 = vst [vmem:[#allocation37_spill] sm:$0xff] %v26621_v12  ;;  %v31688_v11 = vunpack.i.h.bf16 %v26623_v52  ;;  %v31689_v60 = vunpack.i.l.bf16 %v26623_v52  ;;  %v32188_v12 = vunpack.i.l.bf16 %v26501_v5 }
 0x55a   : > { %21117 = vrot.lane.b32.xlu0 %v32186_v48, %s21922_s10 }
 0x55b   : > { %v26637_v2 = vsel %vm413_vm1, %v32187_v22, %v31688_v11  ;;  %v26645_v25 = vsel %vm413_vm1, %v32188_v12, %v31689_v60  ;;  %21067 = vrot.lane.b32.xlu1 %v32189_v35, %s21924_s13 }
 0x55c   : > { %v20803_v48 = vpop.permute.xlu0 %20802  ;;  %v26649_v45 = vpop.permute.xlu1 %20862 }
 0x55d   : > { %32190 = vst [vmem:[#allocation13_spill] sm:$0xff] %v26649_v45 }
 0x55e   : > { %21122 = vrot.lane.b32.xlu0 %v26006_v29, %s21924_s13 }
 0x55f   : > { %21077 = vrot.lane.b32.xlu1 %v25707_v23, %s21924_s13 }
 0x560   : > { %v26657_v5 = vpop.permute.xlu0 %20807  ;;  %v26659_v22 = vpop.permute.xlu1 %20867 }
 0x561   : > { %32191 = vst [vmem:[#allocation112_spill] sm:$0xff] %v26657_v5  ;;  %32192 = vst [vmem:[#allocation113_spill] sm:$0xff] %v26659_v22 }
 0x562   : > { %21132 = vrot.lane.b32.xlu0 %v25961_v33, %s21924_s13 }
 0x563   : > { %21087 = vrot.lane.b32.xlu1 %v25992_v55, %s21924_s13 }
 0x564   : > { %v26665_v12 = vpop.permute.xlu0 %20812  ;;  %v26667_v11 = vpop.permute.xlu1 %20872 }
 0x565   : > { %32193 = vst [vmem:[#allocation114_spill] sm:$0xff] %v26665_v12  ;;  %v31696_v0 = vunpack.i.h.bf16 %v26667_v11  ;;  %v31697_v60 = vunpack.i.l.bf16 %v26667_v11 }
 0x566   : > { %21142 = vrot.lane.b32.xlu0 %v25998_v54, %s21924_s13 }
 0x567   : > { %v26677_v5 = vsel %vm413_vm1, %v20760_v63, %v31696_v0  ;;  %v26683_v12 = vsel %vm413_vm1, %v20759_v24, %v31697_v60  ;;  %21097 = vrot.lane.b32.xlu1 %v32162_v14, %s21924_s13 }
 0x568   : > { %32194 = vst [vmem:[#allocation115_spill] sm:$0xff] %v26677_v5  ;;  %32195 = vst [vmem:[#allocation116_spill] sm:$0xff] %v26683_v12  ;;  %v26687_v45 = vpop.permute.xlu0 %20822  ;;  %v26689_v22 = vpop.permute.xlu1 %20877 }
 0x569   : > { %32196 = vst [vmem:[#allocation117_spill] sm:$0xff] %v26687_v45 }
 0x56a   : > { %21157 = vrot.lane.b32.xlu0 %v26020_v36, %s21924_s13 }
 0x56b   : > { %21112 = vrot.lane.b32.xlu1 %v25980_v1, %s21924_s13  ;;  %v20804_v1 = vunpack.i.l.bf16 %v20803_v48 }
 0x56c   : > { %v26697_v63 = vpop.permute.xlu0 %20827  ;;  %v26699_v24 = vpop.permute.xlu1 %20882 }
 0x56d   : > { %32197 = vst [vmem:[#allocation118_spill] sm:$0xff] %v26699_v24  ;;  %v20805_v24 = vunpack.i.h.bf16 %v20803_v48  ;;  %v32200_v48 = vunpack.i.h.bf16 %v26196_v41 }
 0x56e   : > { %21167 = vrot.lane.b32.xlu0 %v25891_v31, %s21925_s22 }
 0x56f   : > { %21127 = vrot.lane.b32.xlu1 %v25932_v27, %s21924_s13 }
 0x570   : > { %v26705_v0 = vpop.permute.xlu0 %20832 }
 0x571   : > { %v26707_v60 = vpop.permute.xlu1 %20887  ;;  %v31713_v54 = vunpack.i.h.bf16 %v26705_v0  ;;  %v31714_v36 = vunpack.i.l.bf16 %v26705_v0 }
 0x572   : > { %32198 = vst [vmem:[#allocation119_spill] sm:$0xff] %v26707_v60  ;;  %21182 = vrot.lane.b32.xlu0 %v25923_v3, %s21925_s22 }
 0x573   : > { %21137 = vrot.lane.b32.xlu1 %v26024_v51, %s21924_s13  ;;  %v7887_v60 = vsel %vm413_vm1, %v31713_v54, %v20805_v24  ;;  %v7886_v3 = vsel %vm413_vm1, %v31714_v36, %v20804_v1  ;;  %v32201_v51 = vunpack.i.l.bf16 %v26196_v41 }
 0x574   : > { %v20838_v31 = vpop.permute.xlu0 %20837  ;;  %v18676_v41 = vpack.c.bf16 %v7887_v60, %v7886_v3  ;;  %v20880_v60 = vunpack.i.h.bf16 %v26689_v22 }
 0x575   : > { %v20840_v12 = vunpack.i.h.bf16 %v20838_v31  ;;  %v20839_v5 = vunpack.i.l.bf16 %v20838_v31  ;;  %v26715_v27 = vpop.permute.xlu1 %20892 }
 0x576   : > { %32199 = vst [vmem:[#allocation120_spill] sm:$0xff] %v26715_v27  ;;  %21192 = vrot.lane.b32.xlu0 %v32172_v47, %s21925_s22 }
 0x577   : > { %v7927_v31 = vsel %vm413_vm1, %v20840_v12, %v32200_v48  ;;  %v7926_v27 = vsel %vm413_vm1, %v20839_v5, %v32201_v51  ;;  %21147 = vrot.lane.b32.xlu1 %v25974_v42, %s21924_s13  ;;  %v7882_v54 = vsel %vm413_vm1, %v20804_v1, %v20839_v5  ;;  %v7883_v36 = vsel %vm413_vm1, %v20805_v24, %v20840_v12 }
 0x578   : > { %v26741_v47 = vpop.permute.xlu0 %20842  ;;  %v18636_v14 = vpack.c.bf16 %v7927_v31, %v7926_v27  ;;  %v18674_v45 = vpack.c.bf16 %v7883_v36, %v7882_v54  ;;  %v32202_v1 = vpack.c.bf16 %v26324_v38, %v26318_v9  ;;  %v31719_v54 = vunpack.i.l.bf16 %v26256_v46 }
 0x579   : > { %v26743_v59 = vpop.permute.xlu1 %20897  ;;  %v20469_v9 = vunpack.i.l.bf16 %v26190_v34  ;;  %v20879_v5 = vunpack.i.l.bf16 %v26689_v22 }
 0x57a   : > { %18637 = vmatpush1.bf16.msra.mxu0 %v18636_v14  ;;  %18675 = vmatprep.subr.bf16.mxu1 %v18674_v45  ;;  %v31724_v45 = vunpack.i.h.bf16 %v26256_v46  ;;  %v20470_v14 = vunpack.i.h.bf16 %v26190_v34 }
 0x57b   : > { %21202 = vrot.lane.b32.xlu0 %v25968_v40, %s21925_s22  ;;  %21152 = vrot.lane.b32.xlu1 %v26010_v50, %s21924_s13 }
 0x57c   : > { %18639 = vmatprep.subr.bf16.mxu0 %v32202_v1  ;;  %18677 = vmatpush1.bf16.msra.mxu1 %v18676_v41  ;;  %v26752_v51 = vpop.permute.xlu0 %20847  ;;  %v7768_v41 = vsel %vm291_vm0, %v20469_v9, %v31719_v54  ;;  %v32204_v54 = vunpack.i.h.bf16 %v26214_v19  ;;  %v32205_v1 = vunpack.i.l.bf16 %v26214_v19  ;;  %v20550_v19 = vunpack.i.h.bf16 %v26204_v15 }
 0x57d   : > { %v26754_v27 = vpop.permute.xlu1 %20902 }
 0x57e   : > { %v31720_v3 = vunpack.i.h.bf16 %v26754_v27  ;;  %v31721_v36 = vunpack.i.l.bf16 %v26754_v27 }
 0x57f   : > { %21212 = vrot.lane.b32.xlu0 %v25899_v26, %s21925_s22  ;;  %21162 = vrot.lane.b32.xlu1 %v32177_v37, %s21925_s22  ;;  %v31730_v26 = vunpack.i.l.bf16 %v26274_v57 }
 0x580   : > { %v26765_v38 = vpop.permute.xlu0 %20852  ;;  %v7889_v34 = vsel %vm413_vm1, %v31720_v3, %v20880_v60  ;;  %v7888_v22 = vsel %vm413_vm1, %v31721_v36, %v20879_v5 }
 0x581   : > { %32203 = vst [vmem:[#allocation121_spill] sm:$0xff] %v26765_v38  ;;  %v20908_v12 = vpop.permute.xlu1 %20907 }
 0x582   : > { %v20910_v48 = vunpack.i.h.bf16 %v20908_v12  ;;  %v20909_v31 = vunpack.i.l.bf16 %v20908_v12  ;;  %v7769_v12 = vsel %vm291_vm0, %v20470_v14, %v31724_v45  ;;  %v31732_v45 = vunpack.i.h.bf16 %v26274_v57 }
 0x583   : > { %21222 = vrot.lane.b32.xlu0 %v32144_v30, %s21925_s22  ;;  %21172 = vrot.lane.b32.xlu1 %v32181_v16, %s21925_s22 }
 0x584   : > { %v7929_v3 = vsel %vm413_vm1, %v20910_v48, %v32204_v54  ;;  %v7928_v36 = vsel %vm413_vm1, %v20909_v31, %v32205_v1  ;;  %v26800_v24 = vpop.permute.xlu0 %20922  ;;  %v7884_v38 = vsel %vm413_vm1, %v20879_v5, %v20909_v31  ;;  %v7885_v30 = vsel %vm413_vm1, %v20880_v60, %v20910_v48 }
 0x585   : > { %v26808_v16 = vpop.permute.xlu1 %20912  ;;  %v18640_v54 = vpack.c.bf16 %v7929_v3, %v7928_v36  ;;  %v18678_v40 = vpack.c.bf16 %v7885_v30, %v7884_v38  ;;  %v20549_v1 = vunpack.i.l.bf16 %v26204_v15  ;;  %v18680_v5 = vpack.c.bf16 %v7889_v34, %v7888_v22 }
 0x586   : > { %v32206_v60 = vunpack.i.h.bf16 %v26248_v17  ;;  %v18690_v30 = vpack.c.bf16 %v7769_v12, %v7768_v41  ;;  %v32207_v36 = vunpack.i.l.bf16 %v26248_v17  ;;  %v32208_v38 = vpack.c.bf16 %v26511_v13, %v26507_v18 }
 0x587   : > { %21232 = vrot.lane.b32.xlu0 %v26006_v29, %s21925_s22  ;;  %21177 = vrot.lane.b32.xlu1 %v32184_v4, %s21925_s22  ;;  %v31736_v41 = vunpack.i.h.bf16 %v26264_v61  ;;  %v31729_v18 = vunpack.i.h.bf16 %v26487_v39  ;;  %v31728_v13 = vunpack.i.l.bf16 %v26487_v39  ;;  %v32209_v34 = vpack.c.bf16 %v26405_v7, %v26411_v20 }
 0x588   : > { %v7773_v48 = vsel %vm291_vm0, %v32206_v60, %v20470_v14  ;;  %18641 = vmatpush1.bf16.msra.mxu0 %v18640_v54  ;;  %18679 = vmatprep.subr.bf16.mxu1 %v18678_v40  ;;  %v26820_v3 = vpop.permute.xlu0 %20932  ;;  %v7772_v15 = vsel %vm291_vm0, %v32207_v36, %v20469_v9  ;;  %v7770_v40 = vsel %vm291_vm0, %v20549_v1, %v31730_v26  ;;  %v31739_v9 = vunpack.i.l.bf16 %v26264_v61 }
 0x589   : > { %18651 = vmatprep.subr.bf16.mxu0 %v32208_v38  ;;  %18681 = vmatpush1.bf16.msra.mxu1 %v18680_v5  ;;  %v26829_v31 = vpop.permute.xlu1 %20917  ;;  %v7771_v14 = vsel %vm291_vm0, %v20550_v19, %v31732_v45  ;;  %v18692_v22 = vpack.c.bf16 %v7773_v48, %v7772_v15  ;;  %v20630_v5 = vunpack.i.h.bf16 %v26385_v49  ;;  %v20629_v60 = vunpack.i.l.bf16 %v26385_v49  ;;  %v32228_v45 = vld [vmem:[#allocation71_spill] sm:$0xff] }
 0x58a   : > { %18691 = vmatprep.subr.bf16.mxu1 %v18690_v30  ;;  %v18694_v54 = vpack.c.bf16 %v7771_v14, %v7770_v40  ;;  %v32210_v30 = vpack.c.bf16 %v26553_v10, %v26547_v53  ;;  %v32211_v7 = vunpack.i.l.bf16 %v26705_v0  ;;  %v32212_v20 = vunpack.i.l.bf16 %v26623_v52 }
 0x58b   : > { %18232 = vmatmul.mubr.msk.f32.vlgmr.msra.gmra.mrb[24].mxu0 %vm7930_vm9, %v26359_v28  ;;  %21242 = vrot.lane.b32.xlu0 %v26032_v21, %s21923_s23  ;;  %v32213_v15 = vunpack.i.h.bf16 %v26705_v0  ;;  %v32214_v49 = vunpack.i.h.bf16 %v26623_v52  ;;  %v7775_v10 = vsel %vm291_vm0, %v31736_v41, %v20550_v19  ;;  %v7774_v38 = vsel %vm291_vm0, %v31739_v9, %v20549_v1  ;;  %v32230_v41 = vld [vmem:[#allocation111_spill] sm:$0xff] }
 0x58c   : > { %21187 = vrot.lane.b32.xlu1 %v32189_v35, %s21925_s22  ;;  %18653 = vmatpush1.bf16.msra.mxu0 %v32209_v34  ;;  %v26852_v12 = vpop.permute.xlu0 %20942  ;;  %v7890_v48 = vsel %vm413_vm1, %v32212_v20, %v32211_v7  ;;  %v31734_v0 = vunpack.i.h.bf16 %v26479_v6  ;;  %v31735_v52 = vunpack.i.l.bf16 %v26479_v6  ;;  %v7752_v19 = vsel %vm291_vm0, %v20629_v60, %v31728_v13  ;;  %v32216_v7 = vld [vmem:[#allocation91_spill] sm:$0xff]  ;;  %v32217_v20 = vld [vmem:[#allocation92_spill] sm:$0xff] }
 0x58d   : > { %18655 = vmatprep.subr.bf16.mxu0 %v32210_v30  ;;  %18242 = vmatmul.mubr.msk.f32.vlgmr.msra.gmra.mrb[32].mxu1 %vm7930_vm9, %v26359_v28  ;;  %v26861_v36 = vpop.permute.xlu1 %20927  ;;  %v7891_v53 = vsel %vm413_vm1, %v32214_v49, %v32213_v15  ;;  %v7753_v1 = vsel %vm291_vm0, %v20630_v5, %v31729_v18  ;;  %v31733_v40 = vunpack.i.h.bf16 %v26503_v32  ;;  %v31731_v14 = vunpack.i.l.bf16 %v26503_v32  ;;  %v32238_v9 = vld [vmem:[#allocation115_spill] sm:$0xff] }
 0x58e   : > { %18693 = vmatpush1.bf16.msra.mxu1 %v18692_v22  ;;  %8007 = vmatprep.mubr.f32.mxu0 %v32135_v8  ;;  %v18666_v34 = vpack.c.bf16 %v7891_v53, %v7890_v48  ;;  %v20710_v30 = vunpack.i.h.bf16 %v26415_v56  ;;  %v32218_v15 = vpack.c.bf16 %v32216_v7, %v32217_v20  ;;  %v18696_v49 = vpack.c.bf16 %v7775_v10, %v7774_v38 }
 0x58f   : > { %18695 = vmatprep.subr.bf16.mxu1 %v18694_v54  ;;  %18233 = vmatmul.mubr.msk.f32.gmra.mrb[26].mxu0 %vm7930_vm9, %v26375_v44  ;;  %v20464_v54 = vunpack.i.l.bf16 %v26184_v62  ;;  %v20709_v18 = vunpack.i.l.bf16 %v26415_v56  ;;  %v18706_v48 = vpack.c.bf16 %v7753_v1, %v7752_v19  ;;  %v32219_v53 = vunpack.i.l.bf16 %v26754_v27 }
 0x590   : > { %21247 = vrot.lane.b32.xlu0 %v25961_v33, %s21925_s22  ;;  %21197 = vrot.lane.b32.xlu1 %v25707_v23, %s21925_s22  ;;  %v26902_v22 = vpop.permute.xlu0 %20952  ;;  %v32220_v26 = vunpack.i.l.bf16 %v26667_v11  ;;  %v32221_v20 = vunpack.i.h.bf16 %v26754_v27  ;;  %v32222_v10 = vunpack.i.h.bf16 %v26667_v11  ;;  %v20465_v56 = vunpack.i.h.bf16 %v26184_v62  ;;  %v32224_v27 = vld [vmem:[#allocation100_spill] sm:$0xff] }
 0x591   : > { %32215 = vst [vmem:[#allocation122_spill] sm:$0xff] %v26902_v22  ;;  %18657 = vmatpush1.bf16.msra.mxu0 %v32218_v15  ;;  %8392 = vmatprep.mubr.f32.mxu1 %v32135_v8  ;;  %v26910_v13 = vpop.permute.xlu1 %20937  ;;  %v7757_v19 = vsel %vm291_vm0, %v31734_v0, %v20630_v5  ;;  %v7756_v1 = vsel %vm291_vm0, %v31735_v52, %v20629_v60  ;;  %v31737_v62 = vunpack.i.h.bf16 %v32224_v27  ;;  %v26948_v5 = vld [vmem:[%s31474_s1 + $0x20] sm:$0xff]  ;;  %v20544_v52 = vunpack.i.l.bf16 %v32228_v45 }
 0x592   : > { %18667 = vmatprep.subr.bf16.mxu0 %v18666_v34  ;;  %18243 = vmatmul.mubr.msk.f32.gmra.mrb[34].mxu1 %vm7930_vm9, %v26375_v44  ;;  %v7892_v7 = vsel %vm413_vm1, %v32220_v26, %v32219_v53  ;;  %v7893_v38 = vsel %vm413_vm1, %v32222_v10, %v32221_v20  ;;  %v32223_v26 = vunpack.i.l.bf16 %v26248_v17  ;;  %v31738_v34 = vunpack.i.l.bf16 %v32224_v27 }
 0x593   : > { %18697 = vmatpush1.bf16.msra.mxu1 %v18696_v49  ;;  %8155 = vmatprep.mubr.f32.mxu0 %v32135_v8  ;;  %v7754_v15 = vsel %vm291_vm0, %v20709_v18, %v31731_v14  ;;  %v7755_v49 = vsel %vm291_vm0, %v20710_v30, %v31733_v40  ;;  %v20829_v53 = vunpack.i.l.bf16 %v26697_v63  ;;  %v18670_v20 = vpack.c.bf16 %v7893_v38, %v7892_v7 }
 0x594   : > { %v7776_v11 = vsel %vm291_vm0, %v20464_v54, %v32223_v26  ;;  %18707 = vmatprep.subr.bf16.mxu1 %v18706_v48  ;;  %18236 = vmatmul.mubr.msk.f32.vlgmr.msra.gmra.mrb[28].mxu0 %vm7930_vm9, %v26359_v28  ;;  %v26950_v60 = vpop.permute.xlu0 %20962  ;;  %v20830_v48 = vunpack.i.h.bf16 %v26697_v63  ;;  %v32227_v26 = vunpack.i.h.bf16 %v26248_v17  ;;  %v32229_v0 = vpack.c.bf16 %v26637_v2, %v26645_v25 }
 0x595   : > { %32225 = vst [vmem:[#allocation91_spill] sm:$0xff] %v26950_v60  ;;  %21257 = vrot.lane.b32.xlu0 %v26028_v58, %s21923_s23  ;;  %21207 = vrot.lane.b32.xlu1 %v25992_v55, %s21925_s22  ;;  %v26966_v10 = vpop.permute.xlu1 %20947  ;;  %v18708_v63 = vpack.c.bf16 %v7757_v19, %v7756_v1  ;;  %v20795_v7 = vunpack.i.h.bf16 %v32230_v41  ;;  %v20794_v38 = vunpack.i.l.bf16 %v32230_v41  ;;  %v18710_v17 = vpack.c.bf16 %v7755_v49, %v7754_v15  ;;  %v32233_v19 = vld [vmem:[#allocation117_spill] sm:$0xff] }
 0x596   : > { %32226 = vst [vmem:[#allocation92_spill] sm:$0xff] %v26966_v10  ;;  %v7777_v14 = vsel %vm291_vm0, %v20465_v56, %v32227_v26  ;;  %18669 = vmatpush1.bf16.msra.mxu0 %v32229_v0  ;;  %8546 = vmatprep.mubr.f32.mxu1 %v32135_v8  ;;  %v32231_v26 = vld [vmem:[#allocation73_spill] sm:$0xff]  ;;  %v7759_v2 = vsel %vm291_vm0, %v31737_v62, %v20710_v30  ;;  %v27001_v30 = vld [vmem:[%s31474_s1 + $0x28] sm:$0xff] }
 0x597   : > { %18671 = vmatprep.subr.bf16.mxu0 %v18670_v20  ;;  %18246 = vmatmul.mubr.msk.f32.vlgmr.msra.gmra.mrb[24].mxu1 %vm7930_vm9, %v26948_v5  ;;  %v7758_v25 = vsel %vm291_vm0, %v31738_v34, %v20709_v18  ;;  %v18682_v41 = vpack.c.bf16 %v7777_v14, %v7776_v11  ;;  %v7736_v14 = vsel %vm291_vm0, %v20794_v38, %v20829_v53  ;;  %v32235_v62 = vld [vmem:[#allocation59_spill] sm:$0xff]  ;;  %v32236_v34 = vld [vmem:[#allocation36_spill] sm:$0xff]  ;;  %v32237_v15 = vld [vmem:[#allocation81_spill] sm:$0xff] }
 0x598   : > { %18709 = vmatpush1.bf16.msra.mxu1 %v18708_v63  ;;  %8161 = vmatprep.mubr.f32.mxu0 %v32135_v8  ;;  %v26992_v0 = vpop.permute.xlu0 %20972  ;;  %v7737_v11 = vsel %vm291_vm0, %v20795_v7, %v20830_v48  ;;  %v7781_v49 = vsel %vm291_vm0, %v20830_v48, %v20465_v56  ;;  %v7780_v20 = vsel %vm291_vm0, %v20829_v53, %v20464_v54  ;;  %v20900_v63 = vunpack.i.h.bf16 %v26743_v59  ;;  %v32242_v53 = vld [vmem:[#allocation113_spill] sm:$0xff] }
 0x599   : > { %32232 = vst [vmem:[#allocation100_spill] sm:$0xff] %v26992_v0  ;;  %18711 = vmatprep.subr.bf16.mxu1 %v18710_v17  ;;  %18237 = vmatmul.mubr.msk.f32.gmra.mrb[30].mxu0 %vm7930_vm9, %v26375_v44  ;;  %v27003_v18 = vpop.permute.xlu1 %20957  ;;  %v20899_v17 = vunpack.i.l.bf16 %v26743_v59  ;;  %v31746_v1 = vunpack.i.l.bf16 %v32237_v15  ;;  %v32239_v0 = vld [vmem:[#allocation116_spill] sm:$0xff]  ;;  %v18712_v54 = vpack.c.bf16 %v7759_v2, %v7758_v25  ;;  %v32241_v48 = vunpack.i.l.bf16 %v26264_v61 }
 0x59a   : > { %32234 = vst [vmem:[#allocation71_spill] sm:$0xff] %v27003_v18  ;;  %21262 = vrot.lane.b32.xlu0 %v32235_v62, %s21925_s22  ;;  %21217 = vrot.lane.b32.xlu1 %v32236_v34, %s21925_s22  ;;  %v32240_v56 = vpack.c.bf16 %v32238_v9, %v32239_v0  ;;  %v20870_v18 = vunpack.i.h.bf16 %v32242_v53  ;;  %v20869_v22 = vunpack.i.l.bf16 %v32242_v53  ;;  %v18722_v40 = vpack.c.bf16 %v7737_v11, %v7736_v14 }
 0x59b   : > { %8552 = vmatprep.mubr.f32.mxu1 %v32135_v8  ;;  %v7778_v59 = vsel %vm291_vm0, %v20544_v52, %v32241_v48  ;;  %v32243_v9 = vunpack.i.h.bf16 %v26264_v61  ;;  %v32244_v0 = vunpack.i.h.bf16 %v32228_v45  ;;  %v32246_v48 = vunpack.i.h.bf16 %v32233_v19  ;;  %8309 = vmatprep.mubr.f32.mxu0 %v32135_v8 }
 0x59c   : > { %18673 = vmatpush1.bf16.msra.mxu0 %v32240_v56  ;;  %18247 = vmatmul.mubr.msk.f32.gmra.mrb[26].mxu1 %vm7930_vm9, %v27001_v30  ;;  %v27039_v25 = vpop.permute.xlu0 %20982  ;;  %v32247_v53 = vunpack.i.l.bf16 %v32233_v19  ;;  %v18684_v61 = vpack.c.bf16 %v7781_v49, %v7780_v20  ;;  %v32251_v20 = vld [vmem:[#allocation61_spill] sm:$0xff] }
 0x59d   : > { %18683 = vmatprep.subr.bf16.mxu0 %v18682_v41  ;;  %v7779_v2 = vsel %vm291_vm0, %v32244_v0, %v32243_v9  ;;  %32245 = vst [vmem:[#allocation111_spill] sm:$0xff] %v27039_v25  ;;  %v7741_v41 = vsel %vm291_vm0, %v32246_v48, %v20795_v7  ;;  %18713 = vmatpush1.bf16.msra.mxu1 %v18712_v54  ;;  %v27051_v11 = vpop.permute.xlu1 %20967  ;;  %v32249_v9 = vld [vmem:[#allocation120_spill] sm:$0xff]  ;;  %v32250_v54 = vld [vmem:[#allocation87_spill] sm:$0xff]  ;;  %v32255_v25 = vunpack.i.h.bf16 %v32228_v45  ;;  %v32257_v45 = vunpack.i.l.bf16 %v26479_v6 }
 0x59e   : > { %v7740_v14 = vsel %vm291_vm0, %v32247_v53, %v20794_v38  ;;  %32248 = vst [vmem:[#allocation73_spill] sm:$0xff] %v27051_v11  ;;  %18723 = vmatprep.subr.bf16.mxu1 %v18722_v40  ;;  %v7738_v7 = vsel %vm291_vm0, %v20869_v22, %v20899_v17  ;;  %v7739_v38 = vsel %vm291_vm0, %v20870_v18, %v20900_v63  ;;  %v20625_v48 = vunpack.i.h.bf16 %v32250_v54  ;;  %v32252_v53 = vld [vmem:[#allocation57_spill] sm:$0xff]  ;;  %v32254_v0 = vld [vmem:[#allocation80_spill] sm:$0xff] }
 0x59f   : > { %18240 = vmatmul.mubr.msk.f32.vlgmr.msra.gmra.mrb[32].mxu0 %vm7930_vm9, %v26359_v28  ;;  %v20624_v49 = vunpack.i.l.bf16 %v32250_v54  ;;  %21277 = vrot.lane.b32.xlu0 %v32251_v20, %s21925_s22  ;;  %v18686_v40 = vpack.c.bf16 %v7779_v2, %v7778_v59  ;;  %v32253_v28 = vunpack.i.l.bf16 %v32231_v26  ;;  %v7783_v54 = vsel %vm291_vm0, %v20900_v63, %v32255_v25 }
 0x5a0   : > { %21227 = vrot.lane.b32.xlu1 %v32252_v53, %s21925_s22  ;;  %v7782_v20 = vsel %vm291_vm0, %v20899_v17, %v20544_v52  ;;  %18685 = vmatpush1.bf16.msra.mxu0 %v18684_v61  ;;  %v18724_v59 = vpack.c.bf16 %v7741_v41, %v7740_v14  ;;  %v27081_v2 = vpop.permute.xlu0 %20992  ;;  %v32258_v52 = vunpack.i.h.bf16 %v26479_v6  ;;  %v32260_v41 = vld [vmem:[#allocation85_spill] sm:$0xff]  ;;  %v32261_v61 = vunpack.i.h.bf16 %v32249_v9 }
 0x5a1   : > { %v8997_v56 = vsel %vm559_vm2, %v32253_v28, %v31746_v1  ;;  %8700 = vmatprep.mubr.f32.mxu1 %v32135_v8  ;;  %32256 = vst [vmem:[#allocation117_spill] sm:$0xff] %v27081_v2  ;;  %18687 = vmatprep.subr.bf16.mxu0 %v18686_v40  ;;  %v18726_v28 = vpack.c.bf16 %v7739_v38, %v7738_v7  ;;  %v27094_v25 = vpop.permute.xlu1 %20977  ;;  %v32262_v7 = vunpack.i.l.bf16 %v32249_v9  ;;  %v32263_v6 = vunpack.i.h.bf16 %v32237_v15  ;;  %v32265_v14 = vld [vmem:[#allocation89_spill] sm:$0xff]  ;;  %v32269_v1 = vld [vmem:[#allocation44_spill] sm:$0xff] }
 0x5a2   : > { %18250 = vmatmul.mubr.msk.f32.vlgmr.msra.gmra.mrb[28].mxu1 %vm7930_vm9, %v26948_v5  ;;  %v7760_v63 = vsel %vm291_vm0, %v20624_v49, %v32257_v45  ;;  %v7761_v17 = vsel %vm291_vm0, %v20625_v48, %v32258_v52  ;;  %32259 = vst [vmem:[#allocation59_spill] sm:$0xff] %v27094_v25  ;;  %v7743_v40 = vsel %vm291_vm0, %v32261_v61, %v20870_v18  ;;  %v32264_v45 = vunpack.i.h.bf16 %v32231_v26 }
 0x5a3   : > { %v7742_v38 = vsel %vm291_vm0, %v32262_v7, %v20869_v22  ;;  %18725 = vmatpush1.bf16.msra.mxu1 %v18724_v59  ;;  %8315 = vmatprep.mubr.f32.mxu0 %v32135_v8  ;;  %v20705_v10 = vunpack.i.h.bf16 %v32265_v14  ;;  %v20704_v18 = vunpack.i.l.bf16 %v32265_v14  ;;  %v18688_v22 = vpack.c.bf16 %v7783_v54, %v7782_v20  ;;  %v32266_v59 = vld [vmem:[#allocation77_spill] sm:$0xff] }
 0x5a4   : > { %v8998_v52 = vsel %vm559_vm2, %v32264_v45, %v32263_v6  ;;  %18727 = vmatprep.subr.bf16.mxu1 %v18726_v28  ;;  %18241 = vmatmul.mubr.msk.f32.gmra.mrb[34].mxu0 %vm7930_vm9, %v26375_v44  ;;  %v20570_v61 = vunpack.i.h.bf16 %v32266_v59  ;;  %v32267_v7 = vunpack.i.h.bf16 %v26256_v46  ;;  %v32268_v6 = vunpack.i.l.bf16 %v26256_v46  ;;  %v32270_v28 = vld [vmem:[#allocation52_spill] sm:$0xff]  ;;  %v27130_v20 = vpop.permute.xlu0 %21002 }
 0x5a5   : > { %21287 = vrot.lane.b32.xlu0 %v32269_v1, %s21926_s24  ;;  %21237 = vrot.lane.b32.xlu1 %v32270_v28, %s21925_s22  ;;  %v18698_v44 = vpack.c.bf16 %v7761_v17, %v7760_v63  ;;  %32271 = vst [vmem:[#allocation36_spill] sm:$0xff] %v27130_v20  ;;  %v20569_v54 = vunpack.i.l.bf16 %v32266_v59  ;;  %v32272_v46 = vunpack.i.l.bf16 %v32224_v27  ;;  %v32273_v14 = vunpack.i.h.bf16 %v32224_v27  ;;  %v32275_v63 = vld [vmem:[#allocation72_spill] sm:$0xff]  ;;  %v32287_v17 = vld [vmem:[#allocation109_spill] sm:$0xff] }
 0x5a6   : > { %v7765_v11 = vsel %vm291_vm0, %v32267_v7, %v20625_v48  ;;  %v7764_v45 = vsel %vm291_vm0, %v32268_v6, %v20624_v49  ;;  %18689 = vmatpush1.bf16.msra.mxu0 %v18688_v22  ;;  %8706 = vmatprep.mubr.f32.mxu1 %v32135_v8  ;;  %v18728_v48 = vpack.c.bf16 %v7743_v40, %v7742_v38  ;;  %v27142_v7 = vpop.permute.xlu1 %20987  ;;  %v32276_v59 = vunpack.i.h.bf16 %v32231_v26 }
 0x5a7   : > { %v7762_v49 = vsel %vm291_vm0, %v20704_v18, %v32272_v46  ;;  %v7763_v1 = vsel %vm291_vm0, %v20705_v10, %v32273_v14  ;;  %32274 = vst [vmem:[#allocation81_spill] sm:$0xff] %v27142_v7  ;;  %v32277_v22 = vunpack.i.h.bf16 %v32254_v0  ;;  %v32278_v38 = vunpack.i.l.bf16 %v32231_v26  ;;  %18699 = vmatprep.subr.bf16.mxu0 %v18698_v44  ;;  %18251 = vmatmul.mubr.msk.f32.gmra.mrb[30].mxu1 %vm7930_vm9, %v27001_v30  ;;  %v32280_v14 = vld [vmem:[#allocation83_spill] sm:$0xff] }
 0x5a8   : > { %v32279_v6 = vunpack.i.l.bf16 %v32254_v0  ;;  %v18738_v46 = vpack.c.bf16 %v8998_v52, %v8997_v56  ;;  %18729 = vmatpush1.bf16.msra.mxu1 %v18728_v48  ;;  %8469 = vmatprep.mubr.f32.mxu0 %v32135_v8  ;;  %v18700_v7 = vpack.c.bf16 %v7765_v11, %v7764_v45  ;;  %v32283_v56 = vunpack.i.h.bf16 %v26274_v57 }
 0x5a9   : > { %v9002_v40 = vsel %vm559_vm2, %v32277_v22, %v32276_v59  ;;  %v32281_v59 = vunpack.i.l.bf16 %v32260_v41  ;;  %v32282_v22 = vunpack.i.h.bf16 %v32260_v41  ;;  %v32284_v48 = vunpack.i.l.bf16 %v26274_v57  ;;  %18244 = vmatmul.mubr.msk.f32.vlgmr.msra.gmra.mrb[24].mxu0 %vm7930_vm9, %v26948_v5  ;;  %21302 = vrot.lane.b32.xlu0 %v26032_v21, %s21924_s13  ;;  %v32288_v57 = vld [vmem:[#allocation62_spill] sm:$0xff] }
 0x5aa   : > { %v9001_v27 = vsel %vm559_vm2, %v32279_v6, %v32278_v38  ;;  %v7767_v52 = vsel %vm291_vm0, %v32283_v56, %v20705_v10  ;;  %18739 = vmatprep.subr.bf16.mxu1 %v18738_v46  ;;  %v18702_v45 = vpack.c.bf16 %v7763_v1, %v7762_v49  ;;  %v27180_v6 = vpop.permute.xlu0 %21022  ;;  %v20790_v20 = vunpack.i.h.bf16 %v32287_v17  ;;  %21252 = vrot.lane.b32.xlu1 %v32288_v57, %s21925_s22  ;;  %v32290_v1 = vld [vmem:[#allocation75_spill] sm:$0xff] }
 0x5ab   : > { %v8999_v26 = vsel %vm559_vm2, %v20569_v54, %v32281_v59  ;;  %v9000_v44 = vsel %vm559_vm2, %v20570_v61, %v32282_v22  ;;  %v7766_v11 = vsel %vm291_vm0, %v32284_v48, %v20704_v18  ;;  %32285 = vst [vmem:[#allocation115_spill] sm:$0xff] %v27180_v6  ;;  %v32286_v59 = vld [vmem:[#allocation102_spill] sm:$0xff]  ;;  %v20789_v10 = vunpack.i.l.bf16 %v32287_v17  ;;  %v27190_v18 = vpop.permute.xlu1 %20997  ;;  %18701 = vmatpush1.bf16.msra.mxu0 %v18700_v7  ;;  %v32291_v22 = vld [vmem:[#allocation93_spill] sm:$0xff] }
 0x5ac   : > { %32289 = vst [vmem:[#allocation116_spill] sm:$0xff] %v27190_v18  ;;  %8854 = vmatprep.mubr.f32.mxu1 %v32135_v8  ;;  %v18740_v56 = vpack.c.bf16 %v9002_v40, %v9001_v27  ;;  %v18742_v48 = vpack.c.bf16 %v9000_v44, %v8999_v26  ;;  %v20650_v38 = vunpack.i.h.bf16 %v32291_v22  ;;  %v20649_v17 = vunpack.i.l.bf16 %v32291_v22  ;;  %18703 = vmatprep.subr.bf16.mxu0 %v18702_v45  ;;  %v32296_v45 = vld [vmem:[#allocation101_spill] sm:$0xff]  ;;  %v32298_v18 = vld [vmem:[#allocation106_spill] sm:$0xff] }
 0x5ad   : > { %18254 = vmatmul.mubr.msk.f32.vlgmr.msra.gmra.mrb[32].mxu1 %vm7930_vm9, %v26948_v5  ;;  %v32292_v6 = vunpack.i.l.bf16 %v32233_v19  ;;  %v32293_v46 = vunpack.i.h.bf16 %v32233_v19  ;;  %v32294_v40 = vunpack.i.h.bf16 %v32280_v14  ;;  %v32295_v26 = vunpack.i.l.bf16 %v32280_v14  ;;  %8475 = vmatprep.mubr.f32.mxu0 %v32135_v8  ;;  %v32303_v22 = vld [vmem:[#allocation97_spill] sm:$0xff] }
 0x5ae   : > { %18741 = vmatpush1.bf16.msra.mxu1 %v18740_v56  ;;  %v27217_v19 = vpop.permute.xlu0 %21037  ;;  %18245 = vmatmul.mubr.msk.f32.gmra.mrb[26].mxu0 %vm7930_vm9, %v27001_v30  ;;  %v32300_v56 = vunpack.i.h.bf16 %v32286_v59  ;;  %v32304_v25 = vunpack.i.h.bf16 %v26487_v39 }
 0x5af   : > { %v7744_v49 = vsel %vm291_vm0, %v20789_v10, %v32292_v6  ;;  %v7745_v7 = vsel %vm291_vm0, %v20790_v20, %v32293_v46  ;;  %v9004_v27 = vsel %vm559_vm2, %v32294_v40, %v20570_v61  ;;  %v9003_v44 = vsel %vm559_vm2, %v32295_v26, %v20569_v54  ;;  %32297 = vst [vmem:[#allocation113_spill] sm:$0xff] %v27217_v19  ;;  %v32301_v26 = vld [vmem:[#allocation13_spill] sm:$0xff]  ;;  %v32302_v46 = vld [vmem:[#allocation50_spill] sm:$0xff] }
 0x5b0   : > { %v18704_v6 = vpack.c.bf16 %v7767_v52, %v7766_v11  ;;  %18743 = vmatprep.subr.bf16.mxu1 %v18742_v48  ;;  %v32299_v61 = vunpack.i.l.bf16 %v32286_v59  ;;  %v8982_v52 = vsel %vm559_vm2, %v20650_v38, %v32300_v56  ;;  %v27231_v11 = vpop.permute.xlu1 %21007  ;;  %v20865_v2 = vunpack.i.h.bf16 %v32301_v26  ;;  %21307 = vrot.lane.b32.xlu0 %v32302_v46, %s21926_s24 }
 0x5b1   : > { %v20864_v48 = vunpack.i.l.bf16 %v32301_v26  ;;  %21267 = vrot.lane.b32.xlu1 %v25974_v42, %s21925_s22  ;;  %v20729_v19 = vunpack.i.l.bf16 %v32303_v22  ;;  %v7749_v56 = vsel %vm291_vm0, %v32304_v25, %v20790_v20  ;;  %v32305_v40 = vunpack.i.l.bf16 %v26487_v39  ;;  %8860 = vmatprep.mubr.f32.mxu1 %v32135_v8 }
 0x5b2   : > { %v8981_v54 = vsel %vm559_vm2, %v20649_v17, %v32299_v61  ;;  %v18714_v61 = vpack.c.bf16 %v7745_v7, %v7744_v49  ;;  %18705 = vmatpush1.bf16.msra.mxu0 %v18704_v6  ;;  %v18744_v46 = vpack.c.bf16 %v9004_v27, %v9003_v44  ;;  %v20730_v26 = vunpack.i.h.bf16 %v32303_v22  ;;  %18255 = vmatmul.mubr.msk.f32.gmra.mrb[34].mxu1 %vm7930_vm9, %v27001_v30 }
 0x5b3   : > { %v7748_v60 = vsel %vm291_vm0, %v32305_v40, %v20789_v10  ;;  %v18754_v49 = vpack.c.bf16 %v8982_v52, %v8981_v54  ;;  %v32306_v7 = vunpack.i.l.bf16 %v32249_v9  ;;  %v32307_v39 = vunpack.i.h.bf16 %v32249_v9  ;;  %v27261_v10 = vpop.permute.xlu0 %21047  ;;  %v32311_v54 = vld [vmem:[#allocation104_spill] sm:$0xff]  ;;  %8623 = vmatprep.mubr.f32.mxu0 %v32135_v8  ;;  %9160 = vmatprep.mubr.f32.mxu1 %v32135_v8 }
 0x5b4   : > { %18715 = vmatprep.subr.bf16.mxu0 %v18714_v61  ;;  %32308 = vst [vmem:[#allocation120_spill] sm:$0xff] %v27261_v10  ;;  %v32309_v27 = vunpack.i.h.bf16 %v32296_v45  ;;  %v32310_v22 = vunpack.i.l.bf16 %v32296_v45  ;;  %v31756_v52 = vunpack.i.h.bf16 %v32311_v54  ;;  %18745 = vmatpush1.bf16.msra.mxu1 %v18744_v46  ;;  %v32312_v9 = vunpack.i.l.bf16 %v32298_v18  ;;  %v27277_v61 = vpop.permute.xlu1 %21012  ;;  %v27289_v46 = vld [vmem:[%s31474_s1 + $0xb0] sm:$0xff] }
 0x5b5   : > { %v7746_v25 = vsel %vm291_vm0, %v20864_v48, %v32306_v7  ;;  %v7747_v20 = vsel %vm291_vm0, %v20865_v2, %v32307_v39  ;;  %18755 = vmatprep.subr.bf16.mxu1 %v18754_v49  ;;  %18248 = vmatmul.mubr.msk.f32.vlgmr.msra.gmra.mrb[28].mxu0 %vm7930_vm9, %v26948_v5  ;;  %v20850_v49 = vunpack.i.h.bf16 %v26752_v51  ;;  %v32319_v7 = vunpack.i.h.bf16 %v32275_v63 }
 0x5b6   : > { %v8986_v44 = vsel %vm559_vm2, %v32309_v27, %v20650_v38  ;;  %v8985_v6 = vsel %vm559_vm2, %v32310_v22, %v20649_v17  ;;  %v8983_v40 = vsel %vm559_vm2, %v20729_v19, %v32312_v9  ;;  %v32313_v38 = vunpack.i.h.bf16 %v26503_v32  ;;  %21317 = vrot.lane.b32.xlu0 %v26028_v58, %s21924_s13  ;;  %21272 = vrot.lane.b32.xlu1 %v26010_v50, %s21925_s22 }
 0x5b7   : > { %v18716_v17 = vpack.c.bf16 %v7749_v56, %v7748_v60  ;;  %v32314_v27 = vunpack.i.h.bf16 %v32298_v18  ;;  %v32315_v9 = vunpack.i.l.bf16 %v26503_v32  ;;  %v18718_v60 = vpack.c.bf16 %v7747_v20, %v7746_v25  ;;  %v27319_v20 = vpop.permute.xlu0 %21062  ;;  %18260 = vmatmul.mubr.msk.f32.vlgmr.msra.gmra.mrb[24].mxu1 %vm7930_vm9, %v27289_v46  ;;  %8629 = vmatprep.mubr.f32.mxu0 %v32135_v8 }
 0x5b8   : > { %v7751_v39 = vsel %vm291_vm0, %v32313_v38, %v20865_v2  ;;  %v20849_v38 = vunpack.i.l.bf16 %v26752_v51  ;;  %v20564_v56 = vunpack.i.l.bf16 %v32290_v1  ;;  %v18756_v32 = vpack.c.bf16 %v8986_v44, %v8985_v6  ;;  %32320 = vst [vmem:[#allocation87_spill] sm:$0xff] %v27319_v20  ;;  %v32321_v6 = vld [vmem:[#allocation114_spill] sm:$0xff]  ;;  %9166 = vmatprep.mubr.f32.mxu1 %v32135_v8 }
 0x5b9   : > { %v8984_v22 = vsel %vm559_vm2, %v20730_v26, %v32314_v27  ;;  %v7750_v2 = vsel %vm291_vm0, %v32315_v9, %v20864_v48  ;;  %18717 = vmatpush1.bf16.msra.mxu0 %v18716_v17  ;;  %v32316_v27 = vunpack.i.l.bf16 %v32254_v0  ;;  %v32317_v48 = vunpack.i.l.bf16 %v32275_v63 }
 0x5ba   : > { %v32318_v9 = vunpack.i.h.bf16 %v32254_v0  ;;  %v8988_v44 = vsel %vm559_vm2, %v31756_v52, %v20730_v26  ;;  %v20815_v17 = vunpack.i.h.bf16 %v32321_v6  ;;  %v20814_v10 = vunpack.i.l.bf16 %v32321_v6  ;;  %18719 = vmatprep.subr.bf16.mxu0 %v18718_v60  ;;  %18757 = vmatpush1.bf16.msra.mxu1 %v18756_v32 }
 0x5bb   : > { %v9005_v51 = vsel %vm559_vm2, %v32317_v48, %v32316_v27  ;;  %v18758_v0 = vpack.c.bf16 %v8984_v22, %v8983_v40  ;;  %v27329_v27 = vpop.permute.xlu1 %21017  ;;  %v18720_v6 = vpack.c.bf16 %v7751_v39, %v7750_v2  ;;  %18249 = vmatmul.mubr.msk.f32.gmra.mrb[30].mxu0 %vm7930_vm9, %v27001_v30  ;;  %v27343_v40 = vld [vmem:[%s31474_s1 + $0xb8] sm:$0xff]  ;;  %v21015_v22 = vunpack.i.h.bf16 %v27277_v61  ;;  %v32324_v39 = vld [vmem:[#allocation82_spill] sm:$0xff]  ;;  %21282 = vrot.lane.b32.xlu1 %v32177_v37, %s21926_s24  ;;  %v27364_v20 = vpop.permute.xlu0 %21072  ;;  %v32328_v2 = vld [vmem:[#allocation119_spill] sm:$0xff] }
 0x5bc   : > { %v9006_v25 = vsel %vm559_vm2, %v32319_v7, %v32318_v9  ;;  %32322 = vst [vmem:[#allocation57_spill] sm:$0xff] %v27329_v27  ;;  %v32323_v7 = vunpack.i.l.bf16 %v32311_v54  ;;  %v8965_v60 = vsel %vm559_vm2, %v20814_v10, %v20849_v38  ;;  %v8966_v32 = vsel %vm559_vm2, %v20815_v17, %v20850_v49  ;;  %18261 = vmatmul.mubr.msk.f32.gmra.mrb[26].mxu1 %vm7930_vm9, %v27343_v40 }
 0x5bd   : > { %18759 = vmatprep.subr.bf16.mxu1 %v18758_v0  ;;  %v32325_v0 = vunpack.i.h.bf16 %v32275_v63  ;;  %v32326_v52 = vunpack.i.l.bf16 %v32275_v63  ;;  %v18730_v9 = vpack.c.bf16 %v9006_v25, %v9005_v51  ;;  %v20890_v27 = vunpack.i.h.bf16 %v32328_v2  ;;  %18721 = vmatpush1.bf16.msra.mxu0 %v18720_v6 }
 0x5be   : > { %v8987_v48 = vsel %vm559_vm2, %v32323_v7, %v20729_v19  ;;  %v21014_v19 = vunpack.i.l.bf16 %v27277_v61  ;;  %v32327_v61 = vld [vmem:[#allocation14_spill] sm:$0xff]  ;;  %v32329_v63 = vunpack.i.l.bf16 %v32280_v14  ;;  %v20889_v25 = vunpack.i.l.bf16 %v32328_v2  ;;  %8777 = vmatprep.mubr.f32.mxu0 %v32135_v8  ;;  %9314 = vmatprep.mubr.f32.mxu1 %v32135_v8 }
 0x5bf   : > { %v9010_v7 = vsel %vm559_vm2, %v20850_v49, %v32325_v0  ;;  %v9009_v26 = vsel %vm559_vm2, %v20849_v38, %v32326_v52  ;;  %21322 = vrot.lane.b32.xlu0 %v32327_v61, %s21926_s24  ;;  %v18760_v49 = vpack.c.bf16 %v8988_v44, %v8987_v48  ;;  %v32330_v38 = vunpack.i.h.bf16 %v32280_v14  ;;  %v27378_v51 = vpop.permute.xlu1 %21027  ;;  %18731 = vmatprep.subr.bf16.mxu0 %v18730_v9 }
 0x5c0   : > { %v9007_v52 = vsel %vm559_vm2, %v20564_v56, %v32329_v63  ;;  %v32331_v0 = vunpack.i.h.bf16 %v32290_v1  ;;  %v32332_v6 = vunpack.i.h.bf16 %v26741_v47  ;;  %v32333_v48 = vunpack.i.l.bf16 %v26741_v47  ;;  %v32334_v63 = vld [vmem:[#allocation84_spill] sm:$0xff]  ;;  %18252 = vmatmul.mubr.msk.f32.vlgmr.msra.gmra.mrb[32].mxu0 %vm7930_vm9, %v26948_v5 }
 0x5c1   : > { %v18770_v14 = vpack.c.bf16 %v8966_v32, %v8965_v60  ;;  %18761 = vmatpush1.bf16.msra.mxu1 %v18760_v49  ;;  %v8967_v1 = vsel %vm559_vm2, %v20889_v25, %v21014_v19  ;;  %v8968_v60 = vsel %vm559_vm2, %v20890_v27, %v21015_v22  ;;  %v27407_v32 = vpop.permute.xlu0 %21082  ;;  %v32336_v49 = vld [vmem:[#allocation90_spill] sm:$0xff]  ;;  %8783 = vmatprep.mubr.f32.mxu0 %v32135_v8 }
 0x5c2   : > { %v9008_v37 = vsel %vm559_vm2, %v32331_v0, %v32330_v38  ;;  %v8970_v44 = vsel %vm559_vm2, %v32332_v6, %v20815_v17  ;;  %v8969_v61 = vsel %vm559_vm2, %v32333_v48, %v20814_v10  ;;  %v32335_v2 = vmov %v32331_v0  ;;  %v32337_v48 = vld [vmem:[#allocation56_spill] sm:$0xff] }
 0x5c3   : > { %v9012_v0 = vsel %vm559_vm2, %v21015_v22, %v32335_v2  ;;  %v9011_v17 = vsel %vm559_vm2, %v21014_v19, %v20564_v56  ;;  %v18732_v6 = vpack.c.bf16 %v9010_v7, %v9009_v26  ;;  %v31759_v10 = vunpack.i.h.bf16 %v27231_v11  ;;  %18771 = vmatprep.subr.bf16.mxu1 %v18770_v14  ;;  %21332 = vrot.lane.b32.xlu0 %v32337_v48, %s21926_s24  ;;  %v32338_v14 = vld [vmem:[#allocation11_spill] sm:$0xff]  ;;  %v27416_v2 = vpop.permute.xlu1 %21032  ;;  %v32340_v19 = vld [vmem:[#allocation76_spill] sm:$0xff] }
 0x5c4   : > { %v20645_v26 = vunpack.i.h.bf16 %v32336_v49  ;;  %v20644_v7 = vunpack.i.l.bf16 %v32336_v49  ;;  %21292 = vrot.lane.b32.xlu1 %v32338_v14, %s21926_s24  ;;  %v18734_v5 = vpack.c.bf16 %v9008_v37, %v9007_v52  ;;  %32339 = vst [vmem:[#allocation80_spill] sm:$0xff] %v27416_v2  ;;  %v20500_v38 = vunpack.i.h.bf16 %v32340_v19  ;;  %18264 = vmatmul.mubr.msk.f32.vlgmr.msra.gmra.mrb[28].mxu1 %vm7930_vm9, %v27289_v46  ;;  %v32343_v22 = vld [vmem:[#allocation79_spill] sm:$0xff] }
 0x5c5   : > { %18733 = vmatpush1.bf16.msra.mxu0 %v18732_v6  ;;  %v18772_v56 = vpack.c.bf16 %v8970_v44, %v8969_v61  ;;  %v18736_v9 = vpack.c.bf16 %v9012_v0, %v9011_v17  ;;  %v20499_v49 = vunpack.i.l.bf16 %v32340_v19  ;;  %v18774_v48 = vpack.c.bf16 %v8968_v60, %v8967_v1  ;;  %v27448_v60 = vpop.permute.xlu0 %21092  ;;  %v32352_v44 = vld [vmem:[#allocation95_spill] sm:$0xff]  ;;  %9320 = vmatprep.mubr.f32.mxu1 %v32135_v8 }
 0x5c6   : > { %18735 = vmatprep.subr.bf16.mxu0 %v18734_v5  ;;  %v32341_v52 = vunpack.i.l.bf16 %v32296_v45  ;;  %v32342_v14 = vunpack.i.h.bf16 %v32296_v45  ;;  %v32344_v61 = vunpack.i.h.bf16 %v32324_v39  ;;  %v8972_v17 = vsel %vm559_vm2, %v31759_v10, %v20890_v27  ;;  %v32346_v5 = vld [vmem:[#allocation88_spill] sm:$0xff]  ;;  %18253 = vmatmul.mubr.msk.f32.gmra.mrb[34].mxu0 %vm7930_vm9, %v27001_v30 }
 0x5c7   : > { %v32345_v1 = vunpack.i.l.bf16 %v27231_v11  ;;  %18773 = vmatpush1.bf16.msra.mxu1 %v18772_v56  ;;  %v32348_v27 = vunpack.i.l.bf16 %v32334_v63  ;;  %v32349_v56 = vunpack.i.h.bf16 %v32334_v63  ;;  %v32351_v10 = vunpack.i.l.bf16 %v32324_v39  ;;  %9083 = vmatprep.mubr.f32.mxu0 %v32135_v8 }
 0x5c8   : > { %v8989_v37 = vsel %vm559_vm2, %v20644_v7, %v32341_v52  ;;  %v8990_v6 = vsel %vm559_vm2, %v20645_v26, %v32342_v14  ;;  %v27437_v0 = vsel %vm705_vm3, %v32344_v61, %v20500_v38  ;;  %v32347_v14 = vld [vmem:[#allocation45_spill] sm:$0xff]  ;;  %v20725_v19 = vunpack.i.h.bf16 %v32352_v44  ;;  %21297 = vrot.lane.b32.xlu1 %v32184_v4, %s21926_s24  ;;  %18775 = vmatprep.subr.bf16.mxu1 %v18774_v48 }
 0x5c9   : > { %v8971_v45 = vsel %vm559_vm2, %v32345_v1, %v20889_v25  ;;  %21342 = vrot.lane.b32.xlu0 %v32347_v14, %s21926_s24  ;;  %v9635_v25 = vsel %vm705_vm3, %v20499_v49, %v32348_v27  ;;  %v9636_v61 = vsel %vm705_vm3, %v20500_v38, %v32349_v56  ;;  %v27464_v1 = vpop.permute.xlu1 %21042  ;;  %v9639_v30 = vsel %vm705_vm3, %v32351_v10, %v20499_v49 }
 0x5ca   : > { %32350 = vst [vmem:[#allocation85_spill] sm:$0xff] %v27464_v1  ;;  %v20724_v14 = vunpack.i.l.bf16 %v32352_v44  ;;  %18737 = vmatpush1.bf16.msra.mxu0 %v18736_v9  ;;  %v18746_v27 = vpack.c.bf16 %v8990_v6, %v8989_v37  ;;  %v20579_v52 = vunpack.i.l.bf16 %v32343_v22  ;;  %v32353_v38 = vunpack.i.h.bf16 %v32237_v15  ;;  %18265 = vmatmul.mubr.msk.f32.gmra.mrb[30].mxu1 %vm7930_vm9, %v27343_v40 }
 0x5cb   : > { %v32354_v2 = vunpack.i.l.bf16 %v32237_v15  ;;  %v18776_v49 = vpack.c.bf16 %v8972_v17, %v8971_v45  ;;  %v18786_v4 = vpack.c.bf16 %v9636_v61, %v9635_v25  ;;  %v32355_v9 = vunpack.i.l.bf16 %v32311_v54  ;;  %9468 = vmatprep.mubr.f32.mxu1 %v32135_v8 }
 0x5cc   : > { %v8994_v56 = vsel %vm559_vm2, %v32353_v38, %v20645_v26  ;;  %18747 = vmatprep.subr.bf16.mxu0 %v18746_v27  ;;  %v32356_v26 = vunpack.i.h.bf16 %v32311_v54  ;;  %v32358_v44 = vunpack.i.l.bf16 %v32346_v5  ;;  %v32359_v45 = vunpack.i.h.bf16 %v32346_v5  ;;  %21312 = vrot.lane.b32.xlu1 %v32189_v35, %s21926_s24 }
 0x5cd   : > { %v8993_v10 = vsel %vm559_vm2, %v32354_v2, %v20644_v7  ;;  %v8991_v37 = vsel %vm559_vm2, %v20724_v14, %v32355_v9  ;;  %v27494_v7 = vpop.permute.xlu0 %21102  ;;  %v32357_v2 = vld [vmem:[#allocation86_spill] sm:$0xff]  ;;  %18777 = vmatpush1.bf16.msra.mxu1 %v18776_v49  ;;  %v32360_v54 = vunpack.i.h.bf16 %v32343_v22  ;;  %v27509_v61 = vpop.permute.xlu1 %21052  ;;  %v32362_v27 = vunpack.i.h.bf16 %v32260_v41  ;;  %18258 = vmatmul.mubr.msk.f32.vlgmr.msra.gmra.mrb[24].mxu0 %vm7930_vm9, %v27289_v46 }
 0x5ce   : > { %v8992_v15 = vsel %vm559_vm2, %v20725_v19, %v32356_v26  ;;  %v9637_v17 = vsel %vm705_vm3, %v20579_v52, %v32358_v44  ;;  %32361 = vst [vmem:[#allocation89_spill] sm:$0xff] %v27509_v61  ;;  %v32363_v49 = vunpack.i.l.bf16 %v32260_v41  ;;  %v32364_v26 = vld [vmem:[#allocation105_spill] sm:$0xff]  ;;  %18787 = vmatprep.subr.bf16.mxu1 %v18786_v4  ;;  %v18748_v6 = vpack.c.bf16 %v8994_v56, %v8993_v10  ;;  %v32376_v44 = vld [vmem:[#allocation34_spill] sm:$0xff] }
 0x5cf   : > { %v9638_v25 = vsel %vm705_vm3, %v32360_v54, %v32359_v45  ;;  %v8996_v38 = vsel %vm559_vm2, %v32362_v27, %v20725_v19  ;;  %v31762_v45 = vunpack.i.l.bf16 %v32364_v26  ;;  %v32365_v54 = vld [vmem:[#allocation112_spill] sm:$0xff]  ;;  %21352 = vrot.lane.b32.xlu0 %v26032_v21, %s21925_s22  ;;  %v18750_v41 = vpack.c.bf16 %v8992_v15, %v8991_v37  ;;  %v32366_v19 = vld [vmem:[#allocation74_spill] sm:$0xff]  ;;  %9089 = vmatprep.mubr.f32.mxu0 %v32135_v8 }
 0x5d0   : > { %v8995_v9 = vsel %vm559_vm2, %v32363_v49, %v20724_v14  ;;  %v20810_v48 = vunpack.i.h.bf16 %v32365_v54  ;;  %v20809_v61 = vunpack.i.l.bf16 %v32365_v54  ;;  %18749 = vmatpush1.bf16.msra.mxu0 %v18748_v6  ;;  %v18788_v56 = vpack.c.bf16 %v27437_v0, %v9639_v30  ;;  %v32368_v27 = vld [vmem:[#allocation96_spill] sm:$0xff]  ;;  %18268 = vmatmul.mubr.msk.f32.vlgmr.msra.gmra.mrb[32].mxu1 %vm7930_vm9, %v27289_v46 }
 0x5d1   : > { %v18790_v10 = vpack.c.bf16 %v9638_v25, %v9637_v17  ;;  %v27532_v4 = vpop.permute.xlu0 %21107  ;;  %v20660_v49 = vunpack.i.h.bf16 %v32368_v27  ;;  %v20659_v54 = vunpack.i.l.bf16 %v32368_v27  ;;  %18751 = vmatprep.subr.bf16.mxu0 %v18750_v41  ;;  %v32369_v35 = vunpack.i.l.bf16 %v26741_v47  ;;  %v27546_v30 = vpop.permute.xlu1 %21057  ;;  %18259 = vmatmul.mubr.msk.f32.gmra.mrb[26].mxu0 %vm7930_vm9, %v27343_v40 }
 0x5d2   : > { %32367 = vst [vmem:[#allocation77_spill] sm:$0xff] %v27532_v4  ;;  %v32370_v15 = vunpack.i.h.bf16 %v26741_v47  ;;  %32371 = vst [vmem:[#allocation44_spill] sm:$0xff] %v27546_v30  ;;  %v32372_v6 = vunpack.i.h.bf16 %v32343_v22  ;;  %v32373_v17 = vunpack.i.h.bf16 %v32357_v2  ;;  %v32374_v41 = vunpack.i.l.bf16 %v32357_v2  ;;  %18789 = vmatpush1.bf16.msra.mxu1 %v18788_v56  ;;  %21327 = vrot.lane.b32.xlu1 %v25707_v23, %s21926_s24  ;;  %v32399_v30 = vld [vmem:[#allocation78_spill] sm:$0xff] }
 0x5d3   : > { %v8973_v37 = vsel %vm559_vm2, %v20809_v61, %v32369_v35  ;;  %v32375_v35 = vld [vmem:[#allocation103_spill] sm:$0xff]  ;;  %v18752_v47 = vpack.c.bf16 %v8996_v38, %v8995_v9  ;;  %18791 = vmatprep.subr.bf16.mxu1 %v18790_v10  ;;  %v32378_v9 = vld [vmem:[#allocation118_spill] sm:$0xff]  ;;  %v32379_v10 = vld [vmem:[#allocation5_spill] sm:$0xff]  ;;  %v32381_v4 = vunpack.i.h.bf16 %v32286_v59  ;;  %v32382_v38 = vunpack.i.l.bf16 %v32286_v59  ;;  %9474 = vmatprep.mubr.f32.mxu1 %v32135_v8 }
 0x5d4   : > { %v8974_v0 = vsel %vm559_vm2, %v20810_v48, %v32370_v15  ;;  %v9642_v25 = vsel %vm705_vm3, %v32373_v17, %v32372_v6  ;;  %v9641_v27 = vsel %vm705_vm3, %v32374_v41, %v20579_v52  ;;  %v9619_v6 = vsel %vm705_vm3, %v20659_v54, %v31762_v45  ;;  %21357 = vrot.lane.b32.xlu0 %v32379_v10, %s21926_s24  ;;  %v32380_v45 = vld [vmem:[#allocation99_spill] sm:$0xff] }
 0x5d5   : > { %v32377_v52 = vunpack.i.h.bf16 %v32364_v26  ;;  %v20885_v17 = vunpack.i.h.bf16 %v32378_v9  ;;  %v20884_v41 = vunpack.i.l.bf16 %v32378_v9  ;;  %v18762_v22 = vpack.c.bf16 %v8974_v0, %v8973_v37  ;;  %v27579_v15 = vpop.permute.xlu0 %21117  ;;  %18753 = vmatpush1.bf16.msra.mxu0 %v18752_v47  ;;  %v27591_v23 = vpop.permute.xlu1 %21067  ;;  %18269 = vmatmul.mubr.msk.f32.gmra.mrb[34].mxu1 %vm7930_vm9, %v27343_v40 }
 0x5d6   : > { %v20740_v14 = vunpack.i.h.bf16 %v32380_v45  ;;  %v8977_v9 = vsel %vm559_vm2, %v32382_v38, %v20809_v61  ;;  %v18792_v10 = vpack.c.bf16 %v9642_v25, %v9641_v27  ;;  %32383 = vst [vmem:[#allocation52_spill] sm:$0xff] %v27591_v23  ;;  %v20739_v37 = vunpack.i.l.bf16 %v32380_v45  ;;  %9237 = vmatprep.mubr.f32.mxu0 %v32135_v8  ;;  %21337 = vrot.lane.b32.xlu1 %v25992_v55, %s21926_s24 }
 0x5d7   : > { %v9620_v56 = vsel %vm705_vm3, %v20660_v49, %v32377_v52  ;;  %v8978_v52 = vsel %vm559_vm2, %v32381_v4, %v20810_v48  ;;  %18763 = vmatprep.subr.bf16.mxu0 %v18762_v22  ;;  %v32384_v48 = vunpack.i.l.bf16 %v27231_v11  ;;  %v32385_v61 = vunpack.i.h.bf16 %v27231_v11  ;;  %9798 = vmatprep.mubr.f32.mxu1 %v32135_v8 }
 0x5d8   : > { %v18802_v0 = vpack.c.bf16 %v9620_v56, %v9619_v6  ;;  %v20494_v25 = vunpack.i.l.bf16 %v32366_v19  ;;  %v32386_v27 = vunpack.i.h.bf16 %v32375_v35  ;;  %v32387_v47 = vunpack.i.l.bf16 %v32375_v35  ;;  %v32388_v6 = vld [vmem:[#allocation107_spill] sm:$0xff]  ;;  %18793 = vmatpush1.bf16.msra.mxu1 %v18792_v10  ;;  %18262 = vmatmul.mubr.msk.f32.vlgmr.msra.gmra.mrb[28].mxu0 %vm7930_vm9, %v27289_v46 }
 0x5d9   : > { %v8975_v59 = vsel %vm559_vm2, %v20884_v41, %v32384_v48  ;;  %v8976_v4 = vsel %vm559_vm2, %v20885_v17, %v32385_v61  ;;  %v18764_v38 = vpack.c.bf16 %v8978_v52, %v8977_v9  ;;  %v32389_v48 = vunpack.i.l.bf16 %v32376_v44  ;;  %21367 = vrot.lane.b32.xlu0 %v26028_v58, %s21925_s22  ;;  %v27648_v56 = vpop.permute.xlu1 %21077  ;;  %9243 = vmatprep.mubr.f32.mxu0 %v32135_v8 }
 0x5da   : > { %v9624_v45 = vsel %vm705_vm3, %v32386_v27, %v20660_v49  ;;  %v9623_v22 = vsel %vm705_vm3, %v32387_v47, %v20659_v54  ;;  %18803 = vmatprep.subr.bf16.mxu1 %v18802_v0  ;;  %v27621_v49 = vld [vmem:[%s31474_s1 + $0xf8] sm:$0xff]  ;;  %v32390_v10 = vunpack.i.h.bf16 %v32376_v44  ;;  %v27631_v0 = vpop.permute.xlu0 %21122  ;;  %v18766_v52 = vpack.c.bf16 %v8976_v4, %v8975_v59  ;;  %32395 = vst [vmem:[#allocation83_spill] sm:$0xff] %v27648_v56  ;;  %v32400_v56 = vld [vmem:[#allocation108_spill] sm:$0xff] }
 0x5db   : > { %v9621_v54 = vsel %vm705_vm3, %v20739_v37, %v32389_v48  ;;  %32391 = vst [vmem:[#allocation72_spill] sm:$0xff] %v27631_v0  ;;  %v21105_v9 = vunpack.i.h.bf16 %v27494_v7  ;;  %v32392_v27 = vunpack.i.l.bf16 %v32324_v39  ;;  %v32393_v48 = vunpack.i.h.bf16 %v32324_v39  ;;  %v32396_v0 = vld [vmem:[#allocation37_spill] sm:$0xff]  ;;  %18765 = vmatpush1.bf16.msra.mxu0 %v18764_v38  ;;  %18274 = vmatmul.mubr.msk.f32.vlgmr.msra.gmra.mrb[24].mxu1 %vm7930_vm9, %v27621_v49 }
 0x5dc   : > { %v9622_v61 = vsel %vm705_vm3, %v20740_v14, %v32390_v10  ;;  %v32394_v10 = vunpack.i.h.bf16 %v32366_v19  ;;  %v20859_v23 = vunpack.i.l.bf16 %v32396_v0  ;;  %v32397_v55 = vunpack.i.h.bf16 %v32298_v18  ;;  %18767 = vmatprep.subr.bf16.mxu0 %v18766_v52  ;;  %18263 = vmatmul.mubr.msk.f32.gmra.mrb[30].mxu0 %vm7930_vm9, %v27343_v40 }
 0x5dd   : > { %v9643_v47 = vsel %vm705_vm3, %v20494_v25, %v32392_v27  ;;  %v32398_v4 = vunpack.i.l.bf16 %v32298_v18  ;;  %v18804_v39 = vpack.c.bf16 %v9624_v45, %v9623_v22  ;;  %v20785_v1 = vunpack.i.h.bf16 %v32400_v56  ;;  %v32403_v22 = vld [vmem:[#allocation110_spill] sm:$0xff]  ;;  %21372 = vrot.lane.b32.xlu0 %v26006_v29, %s21926_s24  ;;  %21347 = vrot.lane.b32.xlu1 %v32236_v34, %s21926_s24 }
 0x5de   : > { %v9644_v11 = vsel %vm705_vm3, %v32394_v10, %v32393_v48  ;;  %v8980_v59 = vsel %vm559_vm2, %v32397_v55, %v20885_v17  ;;  %v20575_v48 = vunpack.i.h.bf16 %v32399_v30  ;;  %v18806_v17 = vpack.c.bf16 %v9622_v61, %v9621_v54  ;;  %v32404_v61 = vld [vmem:[#allocation121_spill] sm:$0xff]  ;;  %9804 = vmatprep.mubr.f32.mxu1 %v32135_v8  ;;  %9391 = vmatprep.mubr.f32.mxu0 %v32135_v8 }
 0x5df   : > { %v8979_v27 = vsel %vm559_vm2, %v32398_v4, %v20884_v41  ;;  %v32401_v18 = vunpack.i.h.bf16 %v32388_v6  ;;  %v32402_v38 = vunpack.i.l.bf16 %v32388_v6  ;;  %v31769_v55 = vunpack.i.h.bf16 %v32403_v22  ;;  %18805 = vmatpush1.bf16.msra.mxu1 %v18804_v39  ;;  %v27675_v4 = vpop.permute.xlu0 %21132 }
 0x5e0   : > { %v18778_v52 = vpack.c.bf16 %v9644_v11, %v9643_v47  ;;  %v20819_v54 = vunpack.i.l.bf16 %v32403_v22  ;;  %v20854_v10 = vunpack.i.l.bf16 %v32404_v61  ;;  %18807 = vmatprep.subr.bf16.mxu1 %v18806_v17  ;;  %v9603_v39 = vsel %vm705_vm3, %v21105_v9, %v20785_v1  ;;  %v27688_v11 = vpop.permute.xlu1 %21087 }
 0x5e1   : > { %v9626_v41 = vsel %vm705_vm3, %v32401_v18, %v20740_v14  ;;  %v9625_v45 = vsel %vm705_vm3, %v32402_v38, %v20739_v37  ;;  %v18768_v14 = vpack.c.bf16 %v8980_v59, %v8979_v27  ;;  %v27684_v37 = vld [vmem:[%s31474_s1 + $0x100] sm:$0xff]  ;;  %v32405_v47 = vunpack.i.h.bf16 %v32366_v19  ;;  %21382 = vrot.lane.b32.xlu0 %v25961_v33, %s21926_s24  ;;  %21362 = vrot.lane.b32.xlu1 %v32252_v53, %s21926_s24 }
 0x5e2   : > { %v21104_v17 = vunpack.i.l.bf16 %v27494_v7  ;;  %v32406_v59 = vunpack.i.l.bf16 %v32357_v2  ;;  %v32407_v27 = vunpack.i.l.bf16 %v32399_v30  ;;  %v32408_v19 = vunpack.i.h.bf16 %v32357_v2  ;;  %18275 = vmatmul.mubr.msk.f32.gmra.mrb[26].mxu1 %vm7930_vm9, %v27684_v37 }
 0x5e3   : > { %v9648_v18 = vsel %vm705_vm3, %v20859_v23, %v32405_v47  ;;  %v9607_v29 = vsel %vm705_vm3, %v31769_v55, %v21105_v9  ;;  %18769 = vmatpush1.bf16.msra.mxu0 %v18768_v14  ;;  %v18808_v34 = vpack.c.bf16 %v9626_v41, %v9625_v45  ;;  %v9604_v7 = vsel %vm705_vm3, %v20819_v54, %v20859_v23  ;;  %v27722_v9 = vpop.permute.xlu0 %21142  ;;  %v32409_v14 = vld [vmem:[#allocation94_spill] sm:$0xff] }
 0x5e4   : > { %v9645_v38 = vsel %vm705_vm3, %v32407_v27, %v32406_v59  ;;  %v9646_v47 = vsel %vm705_vm3, %v20575_v48, %v32408_v19  ;;  %v9647_v59 = vsel %vm705_vm3, %v20785_v1, %v20494_v25  ;;  %v20855_v2 = vunpack.i.h.bf16 %v32404_v61  ;;  %18779 = vmatprep.subr.bf16.mxu0 %v18778_v52  ;;  %v27730_v25 = vpop.permute.xlu1 %21097  ;;  %9952 = vmatprep.mubr.f32.mxu1 %v32135_v8 }
 0x5e5   : > { %v20914_v27 = vunpack.i.l.bf16 %v26808_v16  ;;  %v18818_v19 = vpack.c.bf16 %v9604_v7, %v9603_v39  ;;  %v20655_v55 = vunpack.i.h.bf16 %v32409_v14  ;;  %v9608_v23 = vsel %vm705_vm3, %v20854_v10, %v20819_v54  ;;  %18809 = vmatpush1.bf16.msra.mxu1 %v18808_v34  ;;  %v32410_v39 = vld [vmem:[#allocation98_spill] sm:$0xff]  ;;  %21392 = vrot.lane.b32.xlu0 %v32235_v62, %s21926_s24 }
 0x5e6   : > { %v18780_v1 = vpack.c.bf16 %v9648_v18, %v9647_v59  ;;  %v20654_v41 = vunpack.i.l.bf16 %v32409_v14  ;;  %v20860_v45 = vunpack.i.h.bf16 %v32396_v0  ;;  %18266 = vmatmul.mubr.msk.f32.vlgmr.msra.gmra.mrb[32].mxu0 %vm7930_vm9, %v27289_v46  ;;  %v18820_v52 = vpack.c.bf16 %v9608_v23, %v9607_v29  ;;  %v32411_v29 = vld [vmem:[#allocation3_spill] sm:$0xff]  ;;  %v32412_v59 = vld [vmem:[#allocation28_spill] sm:$0xff]  ;;  %21377 = vrot.lane.b32.xlu1 %v32270_v28, %s21926_s24 }
 0x5e7   : > { %v9606_v54 = vsel %vm705_vm3, %v20914_v27, %v21104_v17  ;;  %v20735_v34 = vunpack.i.h.bf16 %v32410_v39  ;;  %v18782_v18 = vpack.c.bf16 %v9646_v47, %v9645_v38  ;;  %v31770_v7 = vunpack.i.l.bf16 %v27579_v15  ;;  %18819 = vmatprep.subr.bf16.mxu1 %v18818_v19  ;;  %v27752_v23 = vpop.permute.xlu0 %21157  ;;  %9397 = vmatprep.mubr.f32.mxu0 %v32135_v8 }
 0x5e8   : > { %18781 = vmatpush1.bf16.msra.mxu0 %v18780_v1  ;;  %v20734_v0 = vunpack.i.l.bf16 %v32410_v39  ;;  %v9650_v46 = vsel %vm705_vm3, %v21104_v17, %v20575_v48  ;;  %v9605_v33 = vsel %vm705_vm3, %v20855_v2, %v20860_v45  ;;  %v31771_v53 = vunpack.i.h.bf16 %v26808_v16  ;;  %18278 = vmatmul.mubr.msk.f32.vlgmr.msra.gmra.mrb[28].mxu1 %vm7930_vm9, %v27621_v49  ;;  %v27765_v1 = vpop.permute.xlu1 %21112 }
 0x5e9   : > { %18783 = vmatprep.subr.bf16.mxu0 %v18782_v18  ;;  %v18822_v38 = vpack.c.bf16 %v9606_v54, %v9605_v33  ;;  %v32413_v48 = vunpack.i.l.bf16 %v32375_v35  ;;  %v32414_v47 = vunpack.i.h.bf16 %v32375_v35  ;;  %32415 = vst [vmem:[#allocation102_spill] sm:$0xff] %v27765_v1  ;;  %v32416_v39 = vunpack.i.h.bf16 %v32334_v63  ;;  %18821 = vmatpush1.bf16.msra.mxu1 %v18820_v52  ;;  %v32511_v1 = vld [vmem:[#allocation68_spill] sm:$0xff] }
 0x5ea   : > { %v32417_v14 = vunpack.i.l.bf16 %v32334_v63  ;;  %v32418_v33 = vunpack.i.l.bf16 %v32399_v30  ;;  %v9610_v63 = vsel %vm705_vm3, %v31770_v7, %v20914_v27  ;;  %18267 = vmatmul.mubr.msk.f32.gmra.mrb[34].mxu0 %vm7930_vm9, %v27343_v40  ;;  %v32421_v52 = vunpack.i.l.bf16 %v32388_v6  ;;  %9958 = vmatprep.mubr.f32.mxu1 %v32135_v8 }
 0x5eb   : > { %v9627_v17 = vsel %vm705_vm3, %v20654_v41, %v32413_v48  ;;  %v9628_v19 = vsel %vm705_vm3, %v20655_v55, %v32414_v47  ;;  %v9632_v18 = vsel %vm705_vm3, %v32416_v39, %v20655_v55  ;;  %v32419_v48 = vunpack.i.h.bf16 %v32346_v5  ;;  %18823 = vmatprep.subr.bf16.mxu1 %v18822_v38  ;;  %9721 = vmatprep.mubr.f32.mxu0 %v32135_v8 }
 0x5ec   : > { %v9631_v54 = vsel %vm705_vm3, %v32417_v14, %v20654_v41  ;;  %v9649_v35 = vsel %vm705_vm3, %v20860_v45, %v32418_v33  ;;  %v32420_v55 = vunpack.i.l.bf16 %v32346_v5  ;;  %v20784_v45 = vunpack.i.l.bf16 %v32400_v56  ;;  %18279 = vmatmul.mubr.msk.f32.gmra.mrb[30].mxu1 %vm7930_vm9, %v27684_v37  ;;  %21407 = vrot.lane.b32.xlu0 %v26032_v21, %s21926_s24 }
 0x5ed   : > { %v27784_v47 = vsel %vm705_vm3, %v32419_v48, %v20735_v34  ;;  %v18784_v30 = vpack.c.bf16 %v9650_v46, %v9649_v35  ;;  %v18794_v27 = vpack.c.bf16 %v9628_v19, %v9627_v17  ;;  %v9629_v40 = vsel %vm705_vm3, %v20734_v0, %v32421_v52  ;;  %v27807_v46 = vpop.permute.xlu0 %21167  ;;  %v32425_v19 = vld [vmem:[#allocation9_spill] sm:$0xff]  ;;  %v32428_v35 = vld [vmem:[#allocation12_spill] sm:$0xff]  ;;  %21387 = vrot.lane.b32.xlu1 %v32288_v57, %s21926_s24 }
 0x5ee   : > { %v27796_v41 = vsel %vm705_vm3, %v32420_v55, %v20734_v0  ;;  %32422 = vst [vmem:[#allocation109_spill] sm:$0xff] %v27807_v46  ;;  %v9609_v5 = vsel %vm705_vm3, %v31771_v53, %v20855_v2  ;;  %v20920_v56 = vunpack.i.h.bf16 %v26829_v31  ;;  %v20919_v62 = vunpack.i.l.bf16 %v26829_v31  ;;  %v27820_v0 = vpop.permute.xlu1 %21127  ;;  %v32426_v31 = vld [vmem:[#allocation20_spill] sm:$0xff]  ;;  %v32429_v48 = vld [vmem:[#allocation25_spill] sm:$0xff]  ;;  %v32435_v53 = vld [vmem:[#allocation18_spill] sm:$0xff]  ;;  %10106 = vmatprep.mubr.f32.mxu1 %v32135_v8 }
 0x5ef   : > { %18785 = vmatpush1.bf16.msra.mxu0 %v18784_v30  ;;  %v32423_v28 = vunpack.i.h.bf16 %v32388_v6  ;;  %32424 = vst [vmem:[#allocation62_spill] sm:$0xff] %v27820_v0  ;;  %v20934_v38 = vunpack.i.l.bf16 %v26820_v3  ;;  %v21120_v17 = vunpack.i.h.bf16 %v27579_v15  ;;  %v18824_v2 = vpack.c.bf16 %v9610_v63, %v9609_v5  ;;  %v32427_v6 = vld [vmem:[#allocation7_spill] sm:$0xff]  ;;  %v32431_v55 = vld [vmem:[#allocation24_spill] sm:$0xff] }
 0x5f0   : > { %18795 = vmatprep.subr.bf16.mxu0 %v18794_v27  ;;  %v18796_v33 = vpack.c.bf16 %v9632_v18, %v9631_v54  ;;  %v32430_v30 = vmax.f32 %v32429_v48, 0.0  ;;  %v32432_v52 = vmax.f32 %v32431_v55, 0.0  ;;  %v32433_v27 = vld [vmem:[#allocation10_spill] sm:$0xff]  ;;  %v32436_v63 = vmax.f32 %v32435_v53, 0.0 }
 0x5f1   : > { %v9630_v14 = vsel %vm705_vm3, %v20735_v34, %v32423_v28  ;;  %v32434_v7 = vmax.f32 %v32433_v27, 0.0  ;;  %v32437_v18 = vunpack.i.l.bf16 %v32364_v26  ;;  %v31772_v34 = vunpack.i.l.bf16 %v26800_v24  ;;  %18825 = vmatpush1.bf16.msra.mxu1 %v18824_v2  ;;  %21397 = vrot.lane.b32.xlu1 %v25974_v42, %s21926_s24 }
 0x5f2   : > { %v27835_v28 = vpack.c.bf16 %v32432_v52, %v32430_v30  ;;  %18272 = vmatmul.mubr.msk.f32.vlgmr.msra.gmra.mrb[24].mxu0 %vm7930_vm9, %v27621_v49  ;;  %v18798_v48 = vpack.c.bf16 %v9630_v14, %v9629_v40  ;;  %v18800_v53 = vpack.c.bf16 %v27784_v47, %v27796_v41  ;;  %v32439_v30 = vunpack.i.h.bf16 %v32376_v44  ;;  %v27877_v40 = vpop.permute.xlu1 %21137  ;;  %v32453_v14 = vld [vmem:[#allocation122_spill] sm:$0xff] }
 0x5f3   : > { %v27841_v5 = vpack.c.bf16 %v32436_v63, %v32434_v7  ;;  %v27847_v54 = vsel %vm705_vm3, %v32437_v18, %v20784_v45  ;;  %v27856_v7 = vpop.permute.xlu0 %21182  ;;  %v32440_v52 = vunpack.i.l.bf16 %v32376_v44  ;;  %v20945_v21 = vunpack.i.h.bf16 %v26852_v12  ;;  %18797 = vmatpush1.bf16.msra.mxu0 %v18796_v33  ;;  %32442 = vst [vmem:[#allocation93_spill] sm:$0xff] %v27877_v40  ;;  %v32444_v18 = vld [vmem:[#allocation19_spill] sm:$0xff]  ;;  %9727 = vmatprep.mubr.f32.mxu0 %v32135_v8  ;;  %v32493_v40 = vld [vmem:[#allocation41_spill] sm:$0xff] }
 0x5f4   : > { %32438 = vst [vmem:[#allocation75_spill] sm:$0xff] %v27856_v7  ;;  %v27862_v55 = vsel %vm705_vm3, %v32439_v30, %v20920_v56  ;;  %v32441_v47 = vunpack.i.h.bf16 %v32403_v22  ;;  %v20935_v44 = vunpack.i.h.bf16 %v26820_v3  ;;  %v27885_v63 = vsel %vm912_vm4, %v31772_v34, %v20934_v38  ;;  %18799 = vmatprep.subr.bf16.mxu0 %v18798_v48  ;;  %v32443_v3 = vld [vmem:[#allocation8_spill] sm:$0xff]  ;;  %v32451_v48 = vld [vmem:[#allocation61_spill] sm:$0xff]  ;;  %18282 = vmatmul.mubr.msk.f32.vlgmr.msra.gmra.mrb[32].mxu1 %vm7930_vm9, %v27621_v49 }
 0x5f5   : > { %v27868_v27 = vsel %vm705_vm3, %v32440_v52, %v20919_v62  ;;  %v9612_v57 = vsel %vm705_vm3, %v21120_v17, %v20854_v10  ;;  %v20939_v33 = vunpack.i.l.bf16 %v26910_v13  ;;  %v32445_v30 = vpack.c.bf16 %v32443_v3, %v32444_v18  ;;  %v32447_v10 = vld [vmem:[#allocation91_spill] sm:$0xff]  ;;  %21412 = vrot.lane.b32.xlu0 %v32451_v48, %s21926_s24  ;;  %10112 = vmatprep.mubr.f32.mxu1 %v32135_v8 }
 0x5f6   : > { %v9611_v41 = vsel %vm705_vm3, %v20784_v45, %v32441_v47  ;;  %v32446_v2 = vunpack.i.h.bf16 %v26808_v16  ;;  %v20965_v52 = vunpack.i.h.bf16 %v32447_v10  ;;  %v32448_v47 = vld [vmem:[#allocation92_spill] sm:$0xff]  ;;  %18273 = vmatmul.mubr.msk.f32.gmra.mrb[26].mxu0 %vm7930_vm9, %v27684_v37  ;;  %v27914_v16 = vsel %vm912_vm4, %v20945_v21, %v20935_v44  ;;  %v27925_v39 = vpop.permute.xlu1 %21147  ;;  %v32454_v45 = vld [vmem:[#allocation71_spill] sm:$0xff]  ;;  %21402 = vrot.lane.b32.xlu1 %v26010_v50, %s21926_s24 }
 0x5f7   : > { %18835 = vmatprep.subr.bf16.mxu1 %v32445_v30  ;;  %v20949_v34 = vunpack.i.l.bf16 %v32448_v47  ;;  %v27910_v18 = vpop.permute.xlu0 %21192  ;;  %v32450_v30 = vunpack.i.h.bf16 %v32364_v26  ;;  %v18810_v3 = vpack.c.bf16 %v9612_v57, %v9611_v41  ;;  %32452 = vst [vmem:[#allocation106_spill] sm:$0xff] %v27925_v39  ;;  %v31775_v22 = vunpack.i.h.bf16 %v32453_v14  ;;  %18801 = vmatpush1.bf16.msra.mxu0 %v18800_v53  ;;  %v32479_v39 = vld [vmem:[#allocation64_spill] sm:$0xff] }
 0x5f8   : > { %v9613_v61 = vsel %vm705_vm3, %v20919_v62, %v32446_v2  ;;  %32449 = vst [vmem:[#allocation101_spill] sm:$0xff] %v27910_v18  ;;  %v31776_v62 = vunpack.i.l.bf16 %v26861_v36  ;;  %v31774_v18 = vunpack.i.l.bf16 %v32454_v45  ;;  %v32455_v26 = vunpack.i.l.bf16 %v27579_v15  ;;  %9875 = vmatprep.mubr.f32.mxu0 %v32135_v8  ;;  %18283 = vmatmul.mubr.msk.f32.gmra.mrb[34].mxu1 %vm7930_vm9, %v27684_v37 }
 0x5f9   : > { %v9616_v2 = vsel %vm705_vm3, %v32450_v30, %v21120_v17  ;;  %v27937_v48 = vsel %vm912_vm4, %v20934_v38, %v20945_v21  ;;  %v20964_v42 = vunpack.i.l.bf16 %v32447_v10  ;;  %v20950_v41 = vunpack.i.h.bf16 %v32448_v47  ;;  %18811 = vmatprep.subr.bf16.mxu0 %v18810_v3  ;;  %v32461_v47 = vld [vmem:[#allocation21_spill] sm:$0xff]  ;;  %10292 = vmatprep.mubr.f32.mxu1 %v32135_v8 }
 0x5fa   : > { %v9614_v17 = vsel %vm705_vm3, %v20920_v56, %v32455_v26  ;;  %v32456_v57 = vpack.c.bf16 %v32412_v59, %v32411_v29  ;;  %v32457_v53 = vunpack.i.h.bf16 %v26910_v13  ;;  %v32458_v56 = vunpack.i.l.bf16 %v26852_v12  ;;  %18276 = vmatmul.mubr.msk.f32.vlgmr.msra.gmra.mrb[28].mxu0 %vm7930_vm9, %v27621_v49  ;;  %21417 = vrot.lane.b32.xlu1 %v26028_v58, %s21926_s24 }
 0x5fb   : > { %v20954_v21 = vunpack.i.l.bf16 %v32453_v14  ;;  %v32459_v10 = vunpack.i.h.bf16 %v26800_v24  ;;  %v27965_v59 = vsel %vm912_vm4, %v20949_v34, %v20939_v33  ;;  %v18812_v30 = vpack.c.bf16 %v9616_v2, %v27847_v54  ;;  %v32466_v2 = vld [vmem:[#allocation73_spill] sm:$0xff]  ;;  %9881 = vmatprep.mubr.f32.mxu0 %v32135_v8 }
 0x5fc   : > { %18837 = vmatpush1.bf16.msra.mxu1 %v32456_v57  ;;  %v27948_v15 = vsel %vm912_vm4, %v20935_v44, %v32457_v53  ;;  %v27954_v38 = vsel %vm912_vm4, %v20939_v33, %v32458_v56  ;;  %v32460_v44 = vld [vmem:[#allocation4_spill] sm:$0xff]  ;;  %v20960_v26 = vunpack.i.h.bf16 %v32454_v45  ;;  %v32463_v57 = vld [vmem:[#allocation111_spill] sm:$0xff]  ;;  %v18814_v56 = vpack.c.bf16 %v9614_v17, %v9613_v61  ;;  %v27977_v33 = vpop.permute.xlu0 %21202 }
 0x5fd   : > { %v27961_v29 = vsel %vm912_vm4, %v32459_v10, %v20965_v52  ;;  %v32462_v3 = vpack.c.bf16 %v32460_v44, %v32461_v47  ;;  %v20984_v53 = vunpack.i.l.bf16 %v32463_v57  ;;  %32464 = vst [vmem:[#allocation13_spill] sm:$0xff] %v27977_v33  ;;  %v27979_v10 = vpop.permute.xlu1 %21152  ;;  %v27983_v44 = vsel %vm912_vm4, %v20965_v52, %v20949_v34  ;;  %18813 = vmatpush1.bf16.msra.mxu0 %v18812_v30  ;;  %v32467_v52 = vld [vmem:[#allocation100_spill] sm:$0xff] }
 0x5fe   : > { %32465 = vst [vmem:[#allocation50_spill] sm:$0xff] %v27979_v10  ;;  %v20985_v54 = vunpack.i.h.bf16 %v32463_v57  ;;  %v20970_v47 = vunpack.i.h.bf16 %v32466_v2  ;;  %v27994_v61 = vsel %vm912_vm4, %v20954_v21, %v31774_v18  ;;  %v27998_v34 = vsel %vm912_vm4, %v20964_v42, %v20954_v21  ;;  %18815 = vmatprep.subr.bf16.mxu0 %v18814_v56  ;;  %v28019_v56 = vld [vmem:[%s31474_s1 + $0x140] sm:$0xff]  ;;  %18277 = vmatmul.mubr.msk.f32.gmra.mrb[30].mxu0 %vm7930_vm9, %v27684_v37  ;;  %v32475_v18 = vld [vmem:[#allocation59_spill] sm:$0xff] }
 0x5ff   : > { %18839 = vmatprep.subr.bf16.mxu1 %v32462_v3  ;;  %v20969_v3 = vunpack.i.l.bf16 %v32466_v2  ;;  %v31780_v17 = vunpack.i.h.bf16 %v32467_v52  ;;  %v28009_v30 = vsel %vm912_vm4, %v20950_v41, %v31775_v22  ;;  %v31779_v57 = vunpack.i.l.bf16 %v32467_v52  ;;  %10029 = vmatprep.mubr.f32.mxu0 %v32135_v8 }
 0x600   : > { %v32468_v21 = vpack.c.bf16 %v32426_v31, %v32425_v19  ;;  %v28029_v19 = vsel %vm912_vm4, %v20960_v26, %v20950_v41  ;;  %v28035_v31 = vsel %vm912_vm4, %v31776_v62, %v20984_v53  ;;  %v28042_v2 = vpop.permute.xlu0 %21212  ;;  %v32473_v41 = vunpack.i.h.bf16 %v26861_v36 }
 0x601   : > { %32469 = vst [vmem:[#allocation97_spill] sm:$0xff] %v28035_v31  ;;  %32471 = vst [vmem:[#allocation104_spill] sm:$0xff] %v28042_v2  ;;  %v28044_v50 = vpop.permute.xlu1 %21162  ;;  %v28065_v62 = vsel %vm912_vm4, %v20970_v47, %v31780_v17  ;;  %v20979_v10 = vunpack.i.l.bf16 %v32475_v18  ;;  %v28076_v58 = vsel %vm912_vm4, %v20984_v53, %v20960_v26  ;;  %v32477_v17 = vld [vmem:[#allocation117_spill] sm:$0xff]  ;;  %v32478_v2 = vld [vmem:[#allocation36_spill] sm:$0xff] }
 0x602   : > { %18841 = vmatpush1.bf16.msra.mxu1 %v32468_v21  ;;  %v32470_v21 = vld [vmem:[#allocation63_spill] sm:$0xff]  ;;  %32472 = vst [vmem:[#allocation114_spill] sm:$0xff] %v28044_v50  ;;  %v28050_v22 = vsel %vm912_vm4, %v32473_v41, %v20985_v54  ;;  %v20980_v41 = vunpack.i.h.bf16 %v32475_v18  ;;  %v32476_v50 = vpack.c.bf16 %v27862_v55, %v27868_v27  ;;  %v21005_v7 = vunpack.i.h.bf16 %v32478_v2  ;;  %v32481_v53 = vld [vmem:[#allocation81_spill] sm:$0xff] }
 0x603   : > { %18851 = vmatprep.subr.bf16.mxu1 %v32470_v21  ;;  %32474 = vst [vmem:[#allocation82_spill] sm:$0xff] %v28050_v22  ;;  %v28059_v21 = vsel %vm912_vm4, %v20969_v3, %v31779_v57  ;;  %v28080_v57 = vsel %vm912_vm4, %v20985_v54, %v20964_v42  ;;  %v21004_v18 = vunpack.i.l.bf16 %v32478_v2  ;;  %v32480_v55 = vpack.c.bf16 %v32428_v35, %v32427_v6  ;;  %v28092_v27 = vld [vmem:[%s31474_s1 + $0x148] sm:$0xff]  ;;  %v32482_v2 = vld [vmem:[#allocation65_spill] sm:$0xff] }
 0x604   : > { %18817 = vmatpush1.bf16.msra.mxu0 %v32476_v50  ;;  %v20990_v54 = vunpack.i.h.bf16 %v32481_v53  ;;  %v20989_v50 = vunpack.i.l.bf16 %v32481_v53  ;;  %v28103_v6 = vpop.permute.xlu0 %21222  ;;  %v28122_v33 = vsel %vm912_vm4, %v20980_v41, %v20970_v47  ;;  %v32486_v42 = vld [vmem:[#allocation113_spill] sm:$0xff]  ;;  %v32487_v53 = vunpack.i.l.bf16 %v26852_v12 }
 0x605   : > { %18288 = vmatmul.mubr.msk.f32.vlgmr.msra.gmra.mrb[24].mxu1 %vm7930_vm9, %v28019_v56  ;;  %18827 = vmatprep.subr.bf16.mxu0 %v32480_v55  ;;  %32483 = vst [vmem:[#allocation14_spill] sm:$0xff] %v28103_v6  ;;  %v28105_v35 = vpop.permute.xlu1 %21172  ;;  %v32485_v55 = vld [vmem:[#allocation116_spill] sm:$0xff]  ;;  %v21040_v26 = vunpack.i.h.bf16 %v32486_v42  ;;  %v32489_v6 = vld [vmem:[#allocation66_spill] sm:$0xff]  ;;  %v32513_v22 = vld [vmem:[#allocation53_spill] sm:$0xff] }
 0x606   : > { %18853 = vmatpush1.bf16.msra.mxu1 %v32479_v39  ;;  %32484 = vst [vmem:[#allocation119_spill] sm:$0xff] %v28105_v35  ;;  %10298 = vmatprep.mubr.f32.mxu1 %v32135_v8  ;;  %v28118_v39 = vsel %vm912_vm4, %v20979_v10, %v20969_v3  ;;  %v32488_v3 = vunpack.i.h.bf16 %v26910_v13  ;;  %v32491_v35 = vld [vmem:[#allocation115_spill] sm:$0xff]  ;;  %v32495_v13 = vunpack.i.l.bf16 %v32477_v17 }
 0x607   : > { %18855 = vmatprep.subr.bf16.mxu1 %v32482_v2  ;;  %18280 = vmatmul.mubr.msk.f32.vlgmr.msra.gmra.mrb[32].mxu0 %vm7930_vm9, %v27621_v49  ;;  %v21039_v49 = vunpack.i.l.bf16 %v32486_v42  ;;  %v28133_v2 = vsel %vm912_vm4, %v32487_v53, %v21005_v7  ;;  %v32490_v42 = vld [vmem:[#allocation67_spill] sm:$0xff]  ;;  %v21025_v12 = vunpack.i.h.bf16 %v32491_v35  ;;  %v21024_v46 = vunpack.i.l.bf16 %v32491_v35 }
 0x608   : > { %18829 = vmatpush1.bf16.msra.mxu0 %v27835_v28  ;;  %v28139_v47 = vsel %vm912_vm4, %v32488_v3, %v21004_v18  ;;  %v28145_v28 = vsel %vm912_vm4, %v21004_v18, %v20979_v10  ;;  %v32492_v53 = vld [vmem:[#allocation47_spill] sm:$0xff]  ;;  %10035 = vmatprep.mubr.f32.mxu0 %v32135_v8  ;;  %v32496_v3 = vunpack.i.h.bf16 %v32477_v17  ;;  %v28165_v18 = vpop.permute.xlu0 %21232 }
 0x609   : > { %18289 = vmatmul.mubr.msk.f32.gmra.mrb[26].mxu1 %vm7930_vm9, %v28092_v27  ;;  %18831 = vmatprep.subr.bf16.mxu0 %v32490_v42  ;;  %v32494_v0 = vpack.c.bf16 %v32492_v53, %v32493_v40  ;;  %32497 = vst [vmem:[#allocation84_spill] sm:$0xff] %v28165_v18  ;;  %v28167_v35 = vpop.permute.xlu1 %21177  ;;  %v32500_v42 = vunpack.i.h.bf16 %v32485_v55 }
 0x60a   : > { %18857 = vmatpush1.bf16.msra.mxu1 %v32489_v6  ;;  %v28157_v6 = vsel %vm912_vm4, %v20989_v50, %v32495_v13  ;;  %v28163_v10 = vsel %vm912_vm4, %v20990_v54, %v32496_v3  ;;  %32498 = vst [vmem:[#allocation90_spill] sm:$0xff] %v28167_v35  ;;  %10446 = vmatprep.mubr.f32.mxu1 %v32135_v8  ;;  %v32501_v3 = vld [vmem:[#allocation57_spill] sm:$0xff]  ;;  %v32509_v35 = vld [vmem:[#allocation40_spill] sm:$0xff] }
 0x60b   : > { %18867 = vmatprep.subr.bf16.mxu1 %v32494_v0  ;;  %v32499_v0 = vunpack.i.l.bf16 %v32485_v55  ;;  %v28179_v53 = vsel %vm912_vm4, %v32500_v42, %v20990_v54  ;;  %18281 = vmatmul.mubr.msk.f32.gmra.mrb[34].mxu0 %vm7930_vm9, %v27684_v37  ;;  %v28186_v13 = vsel %vm912_vm4, %v21005_v7, %v20980_v41  ;;  %v21020_v18 = vunpack.i.h.bf16 %v32501_v3  ;;  %v32508_v54 = vld [vmem:[#allocation43_spill] sm:$0xff] }
 0x60c   : > { %18833 = vmatpush1.bf16.msra.mxu0 %v27841_v5  ;;  %v28200_v37 = vsel %vm912_vm4, %v21040_v26, %v21025_v12  ;;  %v32504_v7 = vunpack.i.h.bf16 %v32467_v52  ;;  %v32506_v5 = vunpack.i.l.bf16 %v32467_v52  ;;  %v21019_v42 = vunpack.i.l.bf16 %v32501_v3  ;;  %10215 = vmatprep.mubr.f32.mxu0 %v32135_v8  ;;  %v28228_v3 = vpop.permute.xlu0 %21242 }
 0x60d   : > { %v28173_v40 = vsel %vm912_vm4, %v32499_v0, %v20989_v50  ;;  %18292 = vmatmul.mubr.msk.f32.vlgmr.msra.gmra.mrb[28].mxu1 %vm7930_vm9, %v28019_v56  ;;  %v28196_v50 = vsel %vm912_vm4, %v21039_v49, %v21024_v46  ;;  %32503 = vst [vmem:[#allocation11_spill] sm:$0xff] %v28200_v37  ;;  %v32510_v17 = vpack.c.bf16 %v32508_v54, %v32509_v35  ;;  %v32515_v35 = vld [vmem:[#allocation120_spill] sm:$0xff]  ;;  %v32518_v54 = vld [vmem:[#allocation35_spill] sm:$0xff] }
 0x60e   : > { %32502 = vst [vmem:[#allocation56_spill] sm:$0xff] %v28196_v50  ;;  %v28206_v41 = vsel %vm912_vm4, %v32504_v7, %v21040_v26  ;;  %v28212_v0 = vsel %vm912_vm4, %v32506_v5, %v21039_v49  ;;  %18843 = vmatprep.subr.bf16.mxu0 %v32511_v1  ;;  %v21029_v26 = vunpack.i.l.bf16 %v27378_v51  ;;  %v32512_v7 = vld [vmem:[#allocation55_spill] sm:$0xff]  ;;  %10452 = vmatprep.mubr.f32.mxu1 %v32135_v8  ;;  %v32522_v50 = vld [vmem:[#allocation49_spill] sm:$0xff]  ;;  %v32526_v49 = vunpack.i.h.bf16 %v32453_v14 }
 0x60f   : > { %32505 = vst [vmem:[#allocation76_spill] sm:$0xff] %v28206_v41  ;;  %32507 = vst [vmem:[#allocation79_spill] sm:$0xff] %v28212_v0  ;;  %18869 = vmatpush1.bf16.msra.mxu1 %v32510_v17  ;;  %v32514_v52 = vpack.c.bf16 %v32512_v7, %v32513_v22  ;;  %v21030_v22 = vunpack.i.h.bf16 %v27378_v51  ;;  %18286 = vmatmul.mubr.msk.f32.vlgmr.msra.gmra.mrb[24].mxu0 %vm7930_vm9, %v28019_v56  ;;  %v28240_v7 = vpop.permute.xlu1 %21187  ;;  %v32517_v17 = vld [vmem:[#allocation87_spill] sm:$0xff]  ;;  %v28248_v31 = vsel %vm912_vm4, %v21025_v12, %v21020_v18  ;;  %v32519_v51 = vld [vmem:[#allocation16_spill] sm:$0xff] }
 0x610   : > { %32516 = vst [vmem:[#allocation88_spill] sm:$0xff] %v28240_v7  ;;  %v32520_v5 = vpack.c.bf16 %v32518_v54, %v32519_v51  ;;  %v32521_v12 = vld [vmem:[#allocation54_spill] sm:$0xff]  ;;  %v32524_v54 = vld [vmem:[#allocation69_spill] sm:$0xff]  ;;  %v28279_v1 = vsel %vm912_vm4, %v32526_v49, %v21029_v26  ;;  %10221 = vmatprep.mubr.f32.mxu0 %v32135_v8  ;;  %v32538_v7 = vunpack.i.l.bf16 %v32485_v55  ;;  %v32539_v49 = vunpack.i.h.bf16 %v32485_v55 }
 0x611   : > { %18871 = vmatprep.subr.bf16.mxu1 %v32514_v52  ;;  %18293 = vmatmul.mubr.msk.f32.gmra.mrb[30].mxu1 %vm7930_vm9, %v28092_v27  ;;  %v28259_v52 = vsel %vm912_vm4, %v21024_v46, %v21019_v42  ;;  %v32523_v37 = vpack.c.bf16 %v32521_v12, %v32522_v50  ;;  %32527 = vst [vmem:[#allocation45_spill] sm:$0xff] %v28279_v1  ;;  %v32530_v12 = vunpack.i.l.bf16 %v32454_v45  ;;  %v32544_v55 = vld [vmem:[#allocation89_spill] sm:$0xff] }
 0x612   : > { %18845 = vmatpush1.bf16.msra.mxu0 %v32520_v5  ;;  %v32525_v5 = vunpack.i.l.bf16 %v26800_v24  ;;  %v32528_v50 = vpack.c.bf16 %v27954_v38, %v27948_v15  ;;  %v32532_v15 = vld [vmem:[#allocation85_spill] sm:$0xff]  ;;  %10600 = vmatprep.mubr.f32.mxu1 %v32135_v8  ;;  %v28319_v46 = vsel %vm912_vm4, %v21029_v26, %v32538_v7  ;;  %v21055_v7 = vunpack.i.h.bf16 %v32544_v55 }
 0x613   : > { %18873 = vmatpush1.bf16.msra.mxu1 %v32523_v37  ;;  %18847 = vmatprep.subr.bf16.mxu0 %v32524_v54  ;;  %v32529_v37 = vunpack.i.h.bf16 %v26800_v24  ;;  %v28295_v14 = vsel %vm912_vm4, %v32530_v12, %v21030_v22  ;;  %v31801_v54 = vunpack.i.l.bf16 %v27407_v32  ;;  %v21044_v38 = vunpack.i.l.bf16 %v32532_v15  ;;  %v28303_v24 = vpop.permute.xlu0 %21247 }
 0x614   : > { %v28271_v51 = vsel %vm912_vm4, %v21019_v42, %v32525_v5  ;;  %18883 = vmatprep.subr.bf16.mxu1 %v32528_v50  ;;  %32531 = vst [vmem:[#allocation95_spill] sm:$0xff] %v28295_v14  ;;  %18287 = vmatmul.mubr.msk.f32.gmra.mrb[26].mxu0 %vm7930_vm9, %v28092_v27  ;;  %32533 = vst [vmem:[#allocation86_spill] sm:$0xff] %v28303_v24  ;;  %v21045_v45 = vunpack.i.h.bf16 %v32532_v15  ;;  %v32535_v5 = vld [vmem:[#allocation39_spill] sm:$0xff]  ;;  %v32536_v50 = vld [vmem:[#allocation38_spill] sm:$0xff]  ;;  %v28325_v15 = vsel %vm912_vm4, %v21030_v22, %v32539_v49 }
 0x615   : > { %v28289_v42 = vsel %vm912_vm4, %v21020_v18, %v32529_v37  ;;  %v28305_v18 = vpop.permute.xlu1 %21197  ;;  %v32537_v37 = vpack.c.bf16 %v32535_v5, %v32536_v50  ;;  %v32540_v5 = vunpack.i.l.bf16 %v27448_v60  ;;  %v32543_v12 = vunpack.i.h.bf16 %v27448_v60  ;;  %v32547_v24 = vld [vmem:[#allocation46_spill] sm:$0xff]  ;;  %10369 = vmatprep.mubr.f32.mxu0 %v32135_v8 }
 0x616   : > { %32534 = vst [vmem:[#allocation105_spill] sm:$0xff] %v28305_v18  ;;  %18296 = vmatmul.mubr.msk.f32.vlgmr.msra.gmra.mrb[32].mxu1 %vm7930_vm9, %v28019_v56  ;;  %v21054_v22 = vunpack.i.l.bf16 %v32544_v55  ;;  %v32545_v49 = vpack.c.bf16 %v27965_v59, %v27914_v16  ;;  %v32546_v18 = vld [vmem:[#allocation51_spill] sm:$0xff]  ;;  %v32551_v59 = vld [vmem:[#allocation52_spill] sm:$0xff]  ;;  %v32555_v16 = vld [vmem:[#allocation42_spill] sm:$0xff] }
 0x617   : > { %18849 = vmatpush1.bf16.msra.mxu0 %v32537_v37  ;;  %v28333_v50 = vsel %vm1058_vm5, %v32540_v5, %v31801_v54  ;;  %v32542_v37 = vunpack.i.h.bf16 %v27407_v32  ;;  %v32548_v5 = vpack.c.bf16 %v32546_v18, %v32547_v24  ;;  %v32549_v54 = vld [vmem:[#allocation44_spill] sm:$0xff]  ;;  %10606 = vmatprep.mubr.f32.mxu1 %v32135_v8  ;;  %v32553_v18 = vld [vmem:[#allocation83_spill] sm:$0xff]  ;;  %v28381_v55 = vpop.permute.xlu0 %21257  ;;  %v32558_v24 = vunpack.i.h.bf16 %v32515_v35 }
 0x618   : > { %32541 = vst [vmem:[#allocation112_spill] sm:$0xff] %v28333_v50  ;;  %18885 = vmatpush1.bf16.msra.mxu1 %v32545_v49  ;;  %v21060_v0 = vunpack.i.h.bf16 %v32549_v54  ;;  %v21059_v41 = vunpack.i.l.bf16 %v32549_v54  ;;  %v32559_v49 = vld [vmem:[#allocation80_spill] sm:$0xff] }
 0x619   : > { %v28341_v26 = vsel %vm1058_vm5, %v32543_v12, %v32542_v37  ;;  %18859 = vmatprep.subr.bf16.mxu0 %v32548_v5  ;;  %v32550_v12 = vpack.c.bf16 %v27994_v61, %v28009_v30  ;;  %v32552_v30 = vunpack.i.l.bf16 %v32515_v35  ;;  %v28383_v61 = vpop.permute.xlu1 %21207  ;;  %v28411_v5 = vld [vmem:[%s31474_s1 + $0x188] sm:$0xff] }
 0x61a   : > { %18290 = vmatmul.mubr.msk.f32.vlgmr.msra.gmra.mrb[28].mxu0 %vm7930_vm9, %v28019_v56  ;;  %18297 = vmatmul.mubr.msk.f32.gmra.mrb[34].mxu1 %vm7930_vm9, %v28092_v27  ;;  %32557 = vst [vmem:[#allocation74_spill] sm:$0xff] %v28383_v61  ;;  %v32561_v61 = vld [vmem:[#allocation58_spill] sm:$0xff] }
 0x61b   : > { %18887 = vmatprep.subr.bf16.mxu1 %v32550_v12  ;;  %v28372_v54 = vsel %vm1058_vm5, %v21044_v38, %v32552_v30  ;;  %v32554_v12 = vld [vmem:[#allocation48_spill] sm:$0xff]  ;;  %v28389_v30 = vsel %vm1058_vm5, %v21045_v45, %v32558_v24  ;;  %10375 = vmatprep.mubr.f32.mxu0 %v32135_v8 }
 0x61c   : > { %v32556_v37 = vpack.c.bf16 %v32554_v12, %v32555_v16  ;;  %v28400_v16 = vsel %vm1058_vm5, %v21055_v7, %v21045_v45  ;;  %v32560_v12 = vpack.c.bf16 %v27998_v34, %v28029_v19  ;;  %v32562_v24 = vld [vmem:[#allocation60_spill] sm:$0xff]  ;;  %v32565_v34 = vpack.c.bf16 %v28065_v62, %v28059_v21  ;;  %10930 = vmatprep.mubr.f32.mxu1 %v32135_v8  ;;  %v32575_v45 = vld [vmem:[#allocation70_spill] sm:$0xff] }
 0x61d   : > { %v32563_v14 = vpack.c.bf16 %v32561_v61, %v32562_v24  ;;  %v32566_v19 = vunpack.i.l.bf16 %v32517_v17  ;;  %v32567_v61 = vunpack.i.h.bf16 %v32517_v17  ;;  %v32569_v21 = vunpack.i.l.bf16 %v32551_v59  ;;  %v28499_v50 = vpop.permute.xlu1 %21217 }
 0x61e   : > { %18861 = vmatpush1.bf16.msra.mxu0 %v32556_v37  ;;  %v28396_v37 = vsel %vm1058_vm5, %v21054_v22, %v21044_v38  ;;  %18889 = vmatpush1.bf16.msra.mxu1 %v32560_v12  ;;  %v32564_v38 = vunpack.i.l.bf16 %v27364_v20  ;;  %v32568_v12 = vunpack.i.h.bf16 %v27364_v20 }
 0x61f   : > { %18863 = vmatprep.subr.bf16.mxu0 %v32563_v14  ;;  %18899 = vmatprep.subr.bf16.mxu1 %v32565_v34  ;;  %v28428_v14 = vsel %vm1058_vm5, %v21059_v41, %v32566_v19  ;;  %v28446_v24 = vsel %vm1058_vm5, %v32569_v21, %v21059_v41  ;;  %v32572_v41 = vunpack.i.h.bf16 %v32553_v18  ;;  %v32574_v21 = vunpack.i.l.bf16 %v32553_v18 }
 0x620   : > { %v28417_v1 = vsel %vm1058_vm5, %v32564_v38, %v21054_v22  ;;  %v28434_v22 = vsel %vm1058_vm5, %v21060_v0, %v32567_v61  ;;  %v28440_v62 = vsel %vm1058_vm5, %v32568_v12, %v21055_v7  ;;  %v32570_v38 = vunpack.i.h.bf16 %v32551_v59  ;;  %18291 = vmatmul.mubr.msk.f32.gmra.mrb[30].mxu0 %vm7930_vm9, %v28092_v27 }
 0x621   : > { %v32571_v7 = vmov %v32568_v12  ;;  %18302 = vmatmul.mubr.msk.f32.vlgmr.msra.gmra.mrb[24].mxu1 %vm7930_vm9, %v28411_v5  ;;  %v21245_v19 = vunpack.i.h.bf16 %v28228_v3  ;;  %v21244_v61 = vunpack.i.l.bf16 %v28228_v3  ;;  %10523 = vmatprep.mubr.f32.mxu0 %v32135_v8  ;;  %v21100_v3 = vunpack.i.h.bf16 %v27730_v25 }
 0x622   : > { %v28452_v34 = vsel %vm1058_vm5, %v32570_v38, %v21060_v0  ;;  %v28465_v12 = vsel %vm1058_vm5, %v32572_v41, %v32571_v7  ;;  %v32573_v0 = vunpack.i.l.bf16 %v27364_v20  ;;  %18865 = vmatpush1.bf16.msra.mxu0 %v32575_v45  ;;  %v21135_v7 = vunpack.i.h.bf16 %v27675_v4  ;;  %v28491_v45 = vld [vmem:[%s31474_s1 + $0x190] sm:$0xff]  ;;  %10936 = vmatprep.mubr.f32.mxu1 %v32135_v8 }
 0x623   : > { %v21134_v41 = vunpack.i.l.bf16 %v27675_v4  ;;  %v32576_v20 = vpack.c.bf16 %v28122_v33, %v28118_v39  ;;  %v28497_v4 = vpop.permute.xlu0 %21262  ;;  %v32578_v33 = vld [vmem:[#allocation77_spill] sm:$0xff]  ;;  %v32584_v39 = vpack.c.bf16 %v27961_v29, %v27885_v63  ;;  %v32589_v29 = vunpack.i.l.bf16 %v32515_v35 }
 0x624   : > { %v28473_v38 = vsel %vm1058_vm5, %v32574_v21, %v32573_v0  ;;  %v32577_v0 = vpack.c.bf16 %v27983_v44, %v27937_v48  ;;  %v32579_v48 = vpack.c.bf16 %v28163_v10, %v28157_v6  ;;  %v32580_v6 = vunpack.i.l.bf16 %v27688_v11 }
 0x625   : > { %18901 = vmatpush1.bf16.msra.mxu1 %v32576_v20  ;;  %18294 = vmatmul.mubr.msk.f32.vlgmr.msra.gmra.mrb[32].mxu0 %vm7930_vm9, %v28019_v56  ;;  %v32581_v10 = vunpack.i.l.bf16 %v27407_v32  ;;  %v32582_v20 = vunpack.i.h.bf16 %v27688_v11  ;;  %v32583_v44 = vunpack.i.h.bf16 %v27407_v32  ;;  %v21099_v21 = vunpack.i.l.bf16 %v27730_v25 }
 0x626   : > { %18875 = vmatprep.subr.bf16.mxu0 %v32577_v0  ;;  %18903 = vmatprep.subr.bf16.mxu1 %v32579_v48  ;;  %v32585_v32 = vunpack.i.l.bf16 %v26861_v36  ;;  %v32588_v25 = vunpack.i.h.bf16 %v32515_v35  ;;  %v32594_v56 = vunpack.i.l.bf16 %v32559_v49 }
 0x627   : > { %v28522_v48 = vsel %vm1058_vm5, %v32581_v10, %v32580_v6  ;;  %v28530_v0 = vsel %vm1058_vm5, %v32583_v44, %v32582_v20  ;;  %18877 = vmatpush1.bf16.msra.mxu0 %v32584_v39  ;;  %18303 = vmatmul.mubr.msk.f32.gmra.mrb[26].mxu1 %vm7930_vm9, %v28491_v45  ;;  %v32586_v20 = vunpack.i.h.bf16 %v26861_v36  ;;  %v32587_v10 = vld [vmem:[#allocation72_spill] sm:$0xff]  ;;  %v28560_v39 = vsel %vm1058_vm5, %v32589_v29, %v21134_v41 }
 0x628   : > { %v10781_v44 = vsel %vm912_vm4, %v21244_v61, %v32585_v32  ;;  %v28554_v63 = vsel %vm1058_vm5, %v32588_v25, %v21135_v7  ;;  %v32590_v36 = vpack.c.bf16 %v28179_v53, %v28173_v40  ;;  %v32591_v32 = vpack.c.bf16 %v28080_v57, %v28076_v58  ;;  %10529 = vmatprep.mubr.f32.mxu0 %v32135_v8  ;;  %v28587_v53 = vpop.permute.xlu0 %21277 }
 0x629   : > { %v10782_v6 = vsel %vm912_vm4, %v21245_v19, %v32586_v20  ;;  %v32592_v20 = vunpack.i.l.bf16 %v27448_v60  ;;  %v31808_v35 = vunpack.i.l.bf16 %v32587_v10  ;;  %v32593_v29 = vpack.c.bf16 %v28289_v42, %v28271_v51  ;;  %18295 = vmatmul.mubr.msk.f32.gmra.mrb[34].mxu0 %vm7930_vm9, %v28092_v27  ;;  %11084 = vmatprep.mubr.f32.mxu1 %v32135_v8 }
 0x62a   : > { %18905 = vmatpush1.bf16.msra.mxu1 %v32590_v36  ;;  %18879 = vmatprep.subr.bf16.mxu0 %v32591_v32  ;;  %v10737_v40 = vsel %vm912_vm4, %v32594_v56, %v21244_v61  ;;  %v32595_v57 = vunpack.i.h.bf16 %v32559_v49  ;;  %v32596_v36 = vunpack.i.h.bf16 %v27448_v60  ;;  %v31811_v61 = vunpack.i.l.bf16 %v27722_v9 }
 0x62b   : > { %v28572_v25 = vsel %vm1058_vm5, %v21134_v41, %v32592_v20  ;;  %18915 = vmatprep.subr.bf16.mxu1 %v32593_v29  ;;  %v28589_v41 = vpop.permute.xlu1 %21227  ;;  %v32597_v32 = vunpack.i.h.bf16 %v32578_v33  ;;  %v21160_v27 = vunpack.i.h.bf16 %v27752_v23  ;;  %v21159_v29 = vunpack.i.l.bf16 %v27752_v23  ;;  %10853 = vmatprep.mubr.f32.mxu0 %v32135_v8 }
 0x62c   : > { %v10738_v58 = vsel %vm912_vm4, %v32595_v57, %v21245_v19  ;;  %v28595_v51 = vsel %vm1058_vm5, %v21135_v7, %v32596_v36  ;;  %v18918_v19 = vpack.c.bf16 %v10782_v6, %v10781_v44  ;;  %v32598_v7 = vunpack.i.l.bf16 %v32578_v33  ;;  %v32599_v44 = vld [vmem:[#allocation82_spill] sm:$0xff]  ;;  %v32600_v6 = vld [vmem:[#allocation97_spill] sm:$0xff] }
 0x62d   : > { %v28608_v60 = vsel %vm1058_vm5, %v32597_v32, %v21100_v3  ;;  %v32601_v57 = vpack.c.bf16 %v32599_v44, %v32600_v6  ;;  %18306 = vmatmul.mubr.msk.f32.vlgmr.msra.gmra.mrb[28].mxu1 %vm7930_vm9, %v28411_v5  ;;  %v32602_v36 = vld [vmem:[#allocation102_spill] sm:$0xff]  ;;  %v32603_v42 = vpack.c.bf16 %v28248_v31, %v28259_v52  ;;  %v18920_v23 = vpack.c.bf16 %v10738_v58, %v10737_v40  ;;  %v28649_v58 = vpop.permute.xlu0 %21287 }
 0x62e   : > { %v28614_v20 = vsel %vm1058_vm5, %v32598_v7, %v21099_v21  ;;  %v21115_v32 = vunpack.i.h.bf16 %v32602_v36  ;;  %v21114_v56 = vunpack.i.l.bf16 %v32602_v36  ;;  %v32604_v7 = vpack.c.bf16 %v28186_v13, %v28145_v28  ;;  %11090 = vmatprep.mubr.f32.mxu1 %v32135_v8  ;;  %v32606_v13 = vld [vmem:[#allocation62_spill] sm:$0xff]  ;;  %32607 = vst [vmem:[#allocation96_spill] sm:$0xff] %v28649_v58  ;;  %v32629_v58 = vld [vmem:[#allocation75_spill] sm:$0xff] }
 0x62f   : > { %18881 = vmatpush1.bf16.msra.mxu0 %v32601_v57  ;;  %18917 = vmatpush1.bf16.msra.mxu1 %v32603_v42  ;;  %v21260_v6 = vunpack.i.h.bf16 %v28381_v55  ;;  %v21259_v57 = vunpack.i.l.bf16 %v28381_v55  ;;  %v32605_v36 = vunpack.i.l.bf16 %v32551_v59  ;;  %v31809_v52 = vunpack.i.h.bf16 %v32606_v13  ;;  %v28651_v55 = vpop.permute.xlu1 %21237 }
 0x630   : > { %18891 = vmatprep.subr.bf16.mxu0 %v32604_v7  ;;  %v31810_v40 = vunpack.i.l.bf16 %v32606_v13  ;;  %18919 = vmatprep.subr.bf16.mxu1 %v18918_v19  ;;  %v32608_v42 = vunpack.i.h.bf16 %v32551_v59  ;;  %v32610_v19 = vunpack.i.h.bf16 %v27688_v11  ;;  %v32611_v59 = vpack.c.bf16 %v28133_v2, %v28139_v47 }
 0x631   : > { %v28641_v31 = vsel %vm1058_vm5, %v21099_v21, %v32605_v36  ;;  %v32609_v36 = vunpack.i.l.bf16 %v27688_v11  ;;  %18307 = vmatmul.mubr.msk.f32.gmra.mrb[30].mxu1 %vm7930_vm9, %v28491_v45  ;;  %v32612_v11 = vpack.c.bf16 %v28325_v15, %v28319_v46  ;;  %v28691_v2 = vsel %vm1058_vm5, %v21114_v56, %v31808_v35  ;;  %v32615_v46 = vld [vmem:[#allocation93_spill] sm:$0xff]  ;;  %v28745_v35 = vpop.permute.xlu0 %21302 }
 0x632   : > { %18300 = vmatmul.mubr.msk.f32.vlgmr.msra.gmra.mrb[24].mxu0 %vm7930_vm9, %v28411_v5  ;;  %v28657_v21 = vsel %vm1058_vm5, %v21100_v3, %v32608_v42  ;;  %v28671_v44 = vsel %vm1058_vm5, %v32610_v19, %v21160_v27  ;;  %v28682_v3 = vsel %vm1058_vm5, %v21159_v29, %v31811_v61  ;;  %v32613_v47 = vunpack.i.h.bf16 %v32587_v10  ;;  %11238 = vmatprep.mubr.f32.mxu1 %v32135_v8  ;;  %v32640_v61 = vld [vmem:[#allocation79_spill] sm:$0xff] }
 0x633   : > { %v28665_v28 = vsel %vm1058_vm5, %v32609_v36, %v21159_v29  ;;  %18893 = vmatpush1.bf16.msra.mxu0 %v32611_v59  ;;  %18921 = vmatpush1.bf16.msra.mxu1 %v18920_v23  ;;  %v32614_v29 = vunpack.i.h.bf16 %v27722_v9  ;;  %v21140_v15 = vunpack.i.h.bf16 %v32615_v46  ;;  %v21139_v23 = vunpack.i.l.bf16 %v32615_v46  ;;  %v28747_v7 = vpop.permute.xlu1 %21252  ;;  %v32624_v46 = vld [vmem:[#allocation106_spill] sm:$0xff] }
 0x634   : > { %18895 = vmatprep.subr.bf16.mxu0 %v32612_v11  ;;  %v28697_v42 = vsel %vm1058_vm5, %v21115_v32, %v32613_v47  ;;  %10859 = vmatprep.mubr.f32.mxu0 %v32135_v8  ;;  %v32616_v19 = vpack.c.bf16 %v28389_v30, %v28372_v54  ;;  %v32617_v59 = vunpack.i.l.bf16 %v32559_v49  ;;  %v32618_v47 = vunpack.i.h.bf16 %v32559_v49  ;;  %v32619_v30 = vld [vmem:[#allocation109_spill] sm:$0xff]  ;;  %32623 = vst [vmem:[#allocation103_spill] sm:$0xff] %v28747_v7 }
 0x635   : > { %v28703_v36 = vsel %vm1058_vm5, %v21160_v27, %v32614_v29  ;;  %v28723_v29 = vsel %vm1058_vm5, %v31810_v40, %v21114_v56  ;;  %v28729_v54 = vsel %vm1058_vm5, %v31809_v52, %v21115_v32  ;;  %v32620_v56 = vld [vmem:[#allocation95_spill] sm:$0xff]  ;;  %v21150_v52 = vunpack.i.h.bf16 %v32624_v46 }
 0x636   : > { %18931 = vmatprep.subr.bf16.mxu1 %v32616_v19  ;;  %v10741_v11 = vsel %vm912_vm4, %v21259_v57, %v32617_v59  ;;  %v10742_v27 = vsel %vm912_vm4, %v21260_v6, %v32618_v47  ;;  %18301 = vmatmul.mubr.msk.f32.gmra.mrb[26].mxu0 %vm7930_vm9, %v28491_v45  ;;  %v32621_v59 = vld [vmem:[#allocation45_spill] sm:$0xff]  ;;  %v21149_v19 = vunpack.i.l.bf16 %v32624_v46  ;;  %v32625_v40 = vld [vmem:[#allocation11_spill] sm:$0xff]  ;;  %v32630_v49 = vunpack.i.h.bf16 %v27722_v9 }
 0x637   : > { %v32622_v47 = vpack.c.bf16 %v32620_v56, %v32621_v59  ;;  %18310 = vmatmul.mubr.msk.f32.vlgmr.msra.gmra.mrb[32].mxu1 %vm7930_vm9, %v28411_v5  ;;  %v32626_v56 = vld [vmem:[#allocation56_spill] sm:$0xff]  ;;  %v18910_v32 = vpack.c.bf16 %v10742_v27, %v10741_v11  ;;  %v32631_v46 = vunpack.i.l.bf16 %v27722_v9  ;;  %11007 = vmatprep.mubr.f32.mxu0 %v32135_v8  ;;  %v32633_v27 = vld [vmem:[#allocation117_spill] sm:$0xff]  ;;  %v32648_v11 = vld [vmem:[#allocation114_spill] sm:$0xff] }
 0x638   : > { %v32627_v59 = vpack.c.bf16 %v32625_v40, %v32626_v56  ;;  %v28766_v10 = vsel %vm1058_vm5, %v32630_v49, %v21140_v15  ;;  %v32634_v49 = vunpack.i.h.bf16 %v32633_v27  ;;  %v32635_v56 = vunpack.i.l.bf16 %v32633_v27  ;;  %11244 = vmatprep.mubr.f32.mxu1 %v32135_v8 }
 0x639   : > { %18897 = vmatpush1.bf16.msra.mxu0 %v32622_v47  ;;  %v32628_v47 = vpack.c.bf16 %v28400_v16, %v28396_v37  ;;  %v28772_v40 = vsel %vm1058_vm5, %v32631_v46, %v21139_v23  ;;  %v32632_v37 = vpack.c.bf16 %v28434_v22, %v28428_v14  ;;  %v32636_v14 = vunpack.i.l.bf16 %v32553_v18 }
 0x63a   : > { %18907 = vmatprep.subr.bf16.mxu0 %v32627_v59  ;;  %v10746_v9 = vsel %vm912_vm4, %v32634_v49, %v21260_v6  ;;  %v10745_v59 = vsel %vm912_vm4, %v32635_v56, %v21259_v57  ;;  %v32639_v49 = vld [vmem:[#allocation76_spill] sm:$0xff]  ;;  %v32642_v56 = vunpack.i.h.bf16 %v32553_v18  ;;  %v32644_v46 = vunpack.i.l.bf16 %v32517_v17 }
 0x63b   : > { %18933 = vmatpush1.bf16.msra.mxu1 %v32628_v47  ;;  %v28796_v22 = vsel %vm1058_vm5, %v21139_v23, %v32636_v14  ;;  %v32637_v47 = vld [vmem:[#allocation101_spill] sm:$0xff]  ;;  %v32641_v57 = vpack.c.bf16 %v32639_v49, %v32640_v61  ;;  %v32643_v23 = vunpack.i.h.bf16 %v32517_v17  ;;  %v32646_v18 = vpack.c.bf16 %v28452_v34, %v28446_v24  ;;  %v28835_v17 = vpop.permute.xlu0 %21307 }
 0x63c   : > { %18935 = vmatprep.subr.bf16.mxu1 %v32632_v37  ;;  %18304 = vmatmul.mubr.msk.f32.vlgmr.msra.gmra.mrb[28].mxu0 %vm7930_vm9, %v28411_v5  ;;  %v32638_v37 = vld [vmem:[#allocation104_spill] sm:$0xff]  ;;  %v28810_v7 = vsel %vm1058_vm5, %v21140_v15, %v32642_v56  ;;  %v28822_v61 = vsel %vm1058_vm5, %v32644_v46, %v21149_v19  ;;  %v32645_v49 = vld [vmem:[#allocation13_spill] sm:$0xff]  ;;  %32647 = vst [vmem:[#allocation34_spill] sm:$0xff] %v28835_v17  ;;  %v21164_v16 = vunpack.i.l.bf16 %v32648_v11  ;;  %v32652_v27 = vunpack.i.h.bf16 %v32606_v13 }
 0x63d   : > { %18909 = vmatpush1.bf16.msra.mxu0 %v32641_v57  ;;  %18311 = vmatmul.mubr.msk.f32.gmra.mrb[34].mxu1 %vm7930_vm9, %v28491_v45  ;;  %v28816_v14 = vsel %vm1058_vm5, %v32643_v23, %v21150_v52  ;;  %v28831_v15 = vld [vmem:[%s31474_s1 + $0x1d0] sm:$0xff]  ;;  %v28837_v23 = vpop.permute.xlu1 %21267  ;;  %v31815_v46 = vunpack.i.l.bf16 %v32645_v49  ;;  %v32649_v24 = vpack.c.bf16 %v28530_v0, %v28522_v48  ;;  %v18912_v34 = vpack.c.bf16 %v10746_v9, %v10745_v59 }
 0x63e   : > { %18911 = vmatprep.subr.bf16.mxu0 %v18910_v32  ;;  %v21165_v32 = vunpack.i.h.bf16 %v32648_v11  ;;  %11013 = vmatprep.mubr.f32.mxu0 %v32135_v8  ;;  %v32651_v57 = vunpack.i.l.bf16 %v32606_v13  ;;  %v28861_v0 = vsel %vm1058_vm5, %v21150_v52, %v32652_v27  ;;  %v32653_v48 = vunpack.i.l.bf16 %v32638_v37  ;;  %v32656_v27 = vld [vmem:[#allocation90_spill] sm:$0xff] }
 0x63f   : > { %18937 = vmatpush1.bf16.msra.mxu1 %v32646_v18  ;;  %v32650_v18 = vld [vmem:[#allocation119_spill] sm:$0xff]  ;;  %11568 = vmatprep.mubr.f32.mxu1 %v32135_v8  ;;  %v32654_v59 = vunpack.i.h.bf16 %v32645_v49  ;;  %v21305_v13 = vunpack.i.h.bf16 %v28745_v35  ;;  %v21304_v52 = vunpack.i.l.bf16 %v28745_v35  ;;  %v18962_v35 = vpack.c.bf16 %v28810_v7, %v28796_v22 }
 0x640   : > { %18947 = vmatprep.subr.bf16.mxu1 %v32649_v24  ;;  %v21175_v6 = vunpack.i.h.bf16 %v32650_v18  ;;  %v21174_v56 = vunpack.i.l.bf16 %v32650_v18  ;;  %18305 = vmatmul.mubr.msk.f32.gmra.mrb[30].mxu0 %vm7930_vm9, %v28491_v45  ;;  %v28855_v11 = vsel %vm1058_vm5, %v21149_v19, %v32651_v57  ;;  %v28869_v9 = vsel %vm1204_vm6, %v32653_v48, %v31815_v46  ;;  %v32658_v46 = vld [vmem:[#allocation112_spill] sm:$0xff] }
 0x641   : > { %v32655_v24 = vunpack.i.h.bf16 %v32638_v37  ;;  %18913 = vmatpush1.bf16.msra.mxu0 %v18912_v34  ;;  %v21180_v57 = vunpack.i.h.bf16 %v32656_v27  ;;  %v21179_v18 = vunpack.i.l.bf16 %v32656_v27  ;;  %v32657_v48 = vpack.c.bf16 %v28440_v62, %v28417_v1  ;;  %v28894_v34 = vld [vmem:[%s31474_s1 + $0x1d8] sm:$0xff]  ;;  %11161 = vmatprep.mubr.f32.mxu0 %v32135_v8  ;;  %v28907_v62 = vpop.permute.xlu0 %21317 }
 0x642   : > { %18316 = vmatmul.mubr.msk.f32.vlgmr.msra.gmra.mrb[24].mxu1 %vm7930_vm9, %v28831_v15  ;;  %v31816_v27 = vunpack.i.l.bf16 %v32637_v47  ;;  %v32660_v1 = vpack.c.bf16 %v28697_v42, %v28691_v2  ;;  %v32661_v7 = vunpack.i.l.bf16 %v32619_v30  ;;  %v32663_v2 = vld [vmem:[#allocation50_spill] sm:$0xff] }
 0x643   : > { %v28877_v19 = vsel %vm1204_vm6, %v32655_v24, %v32654_v59  ;;  %18923 = vmatprep.subr.bf16.mxu0 %v32657_v48  ;;  %v32659_v59 = vpack.c.bf16 %v28341_v26, %v32658_v46  ;;  %v28909_v46 = vpop.permute.xlu1 %21272  ;;  %v32662_v48 = vunpack.i.h.bf16 %v32619_v30  ;;  %v28930_v24 = vsel %vm1204_vm6, %v21175_v6, %v21165_v32  ;;  %11574 = vmatprep.mubr.f32.mxu1 %v32135_v8 }
 0x644   : > { %v28915_v22 = vsel %vm1204_vm6, %v21164_v16, %v32661_v7  ;;  %18308 = vmatmul.mubr.msk.f32.vlgmr.msra.gmra.mrb[32].mxu0 %vm7930_vm9, %v28411_v5  ;;  %v32664_v26 = vpack.c.bf16 %v28465_v12, %v28473_v38  ;;  %v32666_v5 = vunpack.i.h.bf16 %v32578_v33  ;;  %v28955_v7 = vsel %vm1204_vm6, %v31816_v27, %v21174_v56  ;;  %v32667_v12 = vld [vmem:[#allocation14_spill] sm:$0xff] }
 0x645   : > { %18949 = vmatpush1.bf16.msra.mxu1 %v32659_v59  ;;  %v28921_v59 = vsel %vm1204_vm6, %v21165_v32, %v32662_v48  ;;  %v32671_v48 = vunpack.i.h.bf16 %v32629_v58  ;;  %v32672_v38 = vunpack.i.h.bf16 %v32637_v47  ;;  %11167 = vmatprep.mubr.f32.mxu0 %v32135_v8  ;;  %v32676_v27 = vld [vmem:[#allocation86_spill] sm:$0xff] }
 0x646   : > { %18951 = vmatprep.subr.bf16.mxu1 %v32660_v1  ;;  %v28926_v1 = vsel %vm1204_vm6, %v21174_v56, %v21164_v16  ;;  %18925 = vmatpush1.bf16.msra.mxu0 %v32664_v26  ;;  %v32665_v16 = vunpack.i.l.bf16 %v32578_v33  ;;  %v11420_v42 = vsel %vm1058_vm5, %v21305_v13, %v32666_v5  ;;  %v32668_v26 = vpack.c.bf16 %v28657_v21, %v28641_v31  ;;  %v32673_v21 = vld [vmem:[#allocation88_spill] sm:$0xff] }
 0x647   : > { %18317 = vmatmul.mubr.msk.f32.gmra.mrb[26].mxu1 %vm7930_vm9, %v28894_v34  ;;  %v32670_v33 = vunpack.i.l.bf16 %v32629_v58  ;;  %v28974_v56 = vsel %vm1204_vm6, %v21180_v57, %v32671_v48  ;;  %v28980_v31 = vsel %vm1204_vm6, %v32672_v38, %v21175_v6  ;;  %v21250_v6 = vunpack.i.h.bf16 %v32676_v27 }
 0x648   : > { %v11419_v32 = vsel %vm1058_vm5, %v21304_v52, %v32665_v16  ;;  %18927 = vmatprep.subr.bf16.mxu0 %v32668_v26  ;;  %v32669_v16 = vpack.c.bf16 %v28729_v54, %v28723_v29  ;;  %v32674_v26 = vunpack.i.l.bf16 %v32663_v2  ;;  %v21249_v38 = vunpack.i.l.bf16 %v32676_v27  ;;  %v32677_v29 = vld [vmem:[#allocation105_spill] sm:$0xff]  ;;  %18309 = vmatmul.mubr.msk.f32.gmra.mrb[34].mxu0 %vm7930_vm9, %v28491_v45  ;;  %v29001_v54 = vpop.permute.xlu1 %21282 }
 0x649   : > { %v28968_v5 = vsel %vm1204_vm6, %v21179_v18, %v32670_v33  ;;  %v32675_v33 = vunpack.i.h.bf16 %v32663_v2  ;;  %v21200_v17 = vunpack.i.h.bf16 %v32677_v29  ;;  %11722 = vmatprep.mubr.f32.mxu1 %v32135_v8  ;;  %v18978_v27 = vpack.c.bf16 %v28921_v59, %v28915_v22  ;;  %11491 = vmatprep.mubr.f32.mxu0 %v32135_v8 }
 0x64a   : > { %18953 = vmatpush1.bf16.msra.mxu1 %v32669_v16  ;;  %v11375_v16 = vsel %vm1058_vm5, %v32674_v26, %v21304_v52  ;;  %v18966_v52 = vpack.c.bf16 %v11420_v42, %v11419_v32  ;;  %v28999_v26 = vpop.permute.xlu0 %21322  ;;  %v18980_v45 = vpack.c.bf16 %v28930_v24, %v28926_v1  ;;  %v18970_v42 = vpack.c.bf16 %v28980_v31, %v28955_v7  ;;  %v32679_v32 = vld [vmem:[#allocation74_spill] sm:$0xff] }
 0x64b   : > { %v11376_v48 = vsel %vm1058_vm5, %v32675_v33, %v21305_v13  ;;  %18963 = vmatprep.subr.bf16.mxu1 %v18962_v35  ;;  %v32678_v35 = vpack.c.bf16 %v28608_v60, %v28614_v20  ;;  %v21210_v33 = vunpack.i.h.bf16 %v32679_v32  ;;  %v21209_v13 = vunpack.i.l.bf16 %v32679_v32 }
 0x64c   : > { %v32680_v60 = vpack.c.bf16 %v28595_v51, %v28572_v25  ;;  %v32681_v20 = vpack.c.bf16 %v28766_v10, %v28772_v40  ;;  %v18982_v22 = vpack.c.bf16 %v28974_v56, %v28968_v5  ;;  %v32682_v24 = vunpack.i.l.bf16 %v32673_v21 }
 0x64d   : > { %18929 = vmatpush1.bf16.msra.mxu0 %v32678_v35  ;;  %18320 = vmatmul.mubr.msk.f32.vlgmr.msra.gmra.mrb[28].mxu1 %vm7930_vm9, %v28831_v15  ;;  %v18968_v35 = vpack.c.bf16 %v11376_v48, %v11375_v16  ;;  %v32683_v1 = vunpack.i.h.bf16 %v32673_v21  ;;  %v21320_v10 = vunpack.i.h.bf16 %v28907_v62  ;;  %v21319_v51 = vunpack.i.l.bf16 %v28907_v62  ;;  %v32687_v48 = vld [vmem:[#allocation84_spill] sm:$0xff] }
 0x64e   : > { %18939 = vmatprep.subr.bf16.mxu0 %v32680_v60  ;;  %18965 = vmatpush1.bf16.msra.mxu1 %v32681_v20  ;;  %v29029_v59 = vsel %vm1204_vm6, %v32682_v24, %v21179_v18  ;;  %v31818_v40 = vunpack.i.l.bf16 %v32667_v12  ;;  %v32684_v5 = vunpack.i.l.bf16 %v32619_v30  ;;  %v32685_v56 = vunpack.i.h.bf16 %v32619_v30 }
 0x64f   : > { %v29035_v25 = vsel %vm1204_vm6, %v32683_v1, %v21180_v57  ;;  %11728 = vmatprep.mubr.f32.mxu1 %v32135_v8  ;;  %v32686_v16 = vunpack.i.h.bf16 %v32637_v47  ;;  %18967 = vmatprep.subr.bf16.mxu1 %v18966_v52  ;;  %v21235_v60 = vunpack.i.h.bf16 %v32687_v48  ;;  %v32688_v30 = vunpack.i.l.bf16 %v32637_v47  ;;  %v29080_v52 = vpop.permute.xlu1 %21292 }
 0x650   : > { %v29046_v18 = vsel %vm1204_vm6, %v32684_v5, %v21249_v38  ;;  %v29052_v57 = vsel %vm1204_vm6, %v32685_v56, %v21250_v6  ;;  %18314 = vmatmul.mubr.msk.f32.vlgmr.msra.gmra.mrb[24].mxu0 %vm7930_vm9, %v28831_v15  ;;  %v32689_v20 = vunpack.i.l.bf16 %v32677_v29  ;;  %v32690_v1 = vpack.c.bf16 %v28554_v63, %v28560_v39  ;;  %v29078_v5 = vpop.permute.xlu0 %21332 }
 0x651   : > { %v29060_v62 = vsel %vm1204_vm6, %v21200_v17, %v32686_v16  ;;  %18321 = vmatmul.mubr.msk.f32.gmra.mrb[30].mxu1 %vm7930_vm9, %v28894_v34  ;;  %v32691_v56 = vunpack.i.l.bf16 %v32638_v37  ;;  %v32692_v16 = vunpack.i.h.bf16 %v32638_v37  ;;  %v21220_v63 = vunpack.i.h.bf16 %v28499_v50  ;;  %11497 = vmatprep.mubr.f32.mxu0 %v32135_v8 }
 0x652   : > { %v29071_v24 = vsel %vm1204_vm6, %v32689_v20, %v32688_v30  ;;  %18941 = vmatpush1.bf16.msra.mxu0 %v32690_v1  ;;  %v21219_v39 = vunpack.i.l.bf16 %v28499_v50  ;;  %v32693_v20 = vpack.c.bf16 %v28861_v0, %v28855_v11  ;;  %18969 = vmatpush1.bf16.msra.mxu1 %v18968_v35  ;;  %v21234_v50 = vunpack.i.l.bf16 %v32687_v48 }
 0x653   : > { %v29086_v47 = vsel %vm1204_vm6, %v21249_v38, %v32691_v56  ;;  %v29092_v30 = vsel %vm1204_vm6, %v21250_v6, %v32692_v16  ;;  %v32694_v38 = vunpack.i.l.bf16 %v32645_v49  ;;  %v32695_v6 = vunpack.i.h.bf16 %v32645_v49  ;;  %18979 = vmatprep.subr.bf16.mxu1 %v18978_v27  ;;  %11876 = vmatprep.mubr.f32.mxu1 %v32135_v8 }
 0x654   : > { %18943 = vmatprep.subr.bf16.mxu0 %v32693_v20  ;;  %v32696_v11 = vunpack.i.l.bf16 %v32663_v2  ;;  %v32697_v35 = vunpack.i.h.bf16 %v32663_v2  ;;  %v18984_v49 = vpack.c.bf16 %v29035_v25, %v29029_v59  ;;  %v21279_v16 = vunpack.i.l.bf16 %v28587_v53  ;;  %18315 = vmatmul.mubr.msk.f32.gmra.mrb[26].mxu0 %vm7930_vm9, %v28894_v34 }
 0x655   : > { %v12023_v37 = vsel %vm1204_vm6, %v32694_v38, %v21209_v13  ;;  %v12024_v1 = vsel %vm1204_vm6, %v32695_v6, %v21210_v33  ;;  %v18972_v27 = vpack.c.bf16 %v29060_v62, %v29071_v24  ;;  %v21265_v38 = vunpack.i.h.bf16 %v28497_v4  ;;  %18324 = vmatmul.mubr.msk.f32.vlgmr.msra.gmra.mrb[32].mxu1 %vm7930_vm9, %v28831_v15  ;;  %11645 = vmatprep.mubr.f32.mxu0 %v32135_v8 }
 0x656   : > { %v11379_v0 = vsel %vm1058_vm5, %v21319_v51, %v32696_v11  ;;  %v11380_v56 = vsel %vm1058_vm5, %v21320_v10, %v32697_v35  ;;  %v21230_v59 = vunpack.i.h.bf16 %v28589_v41  ;;  %v21229_v25 = vunpack.i.l.bf16 %v28589_v41  ;;  %v29141_v35 = vpop.permute.xlu0 %21342  ;;  %18981 = vmatpush1.bf16.msra.mxu1 %v18980_v45  ;;  %11882 = vmatprep.mubr.f32.mxu1 %v32135_v8 }
 0x657   : > { %v32698_v6 = vpack.c.bf16 %v28816_v14, %v28822_v61  ;;  %v18994_v11 = vpack.c.bf16 %v12024_v1, %v12023_v37  ;;  %v32699_v20 = vunpack.i.h.bf16 %v32667_v12  ;;  %v29153_v41 = vsel %vm1204_vm6, %v31818_v40, %v21219_v39  ;;  %v29159_v1 = vpop.permute.xlu1 %21297  ;;  %18983 = vmatprep.subr.bf16.mxu1 %v18982_v22  ;;  %v32703_v22 = vld [vmem:[#allocation72_spill] sm:$0xff] }
 0x658   : > { %v21280_v14 = vunpack.i.h.bf16 %v28587_v53  ;;  %v32700_v61 = vpack.c.bf16 %v28703_v36, %v28682_v3  ;;  %v18958_v37 = vpack.c.bf16 %v11380_v56, %v11379_v0  ;;  %v32701_v40 = vunpack.i.l.bf16 %v32673_v21 }
 0x659   : > { %18945 = vmatpush1.bf16.msra.mxu0 %v32698_v6  ;;  %v29147_v2 = vsel %vm1204_vm6, %v32699_v20, %v21220_v63  ;;  %v21240_v6 = vunpack.i.h.bf16 %v28651_v55  ;;  %v21239_v20 = vunpack.i.l.bf16 %v28651_v55  ;;  %v32702_v3 = vunpack.i.h.bf16 %v32673_v21  ;;  %18325 = vmatmul.mubr.msk.f32.gmra.mrb[34].mxu1 %vm7930_vm9, %v28894_v34 }
 0x65a   : > { %18955 = vmatprep.subr.bf16.mxu0 %v32700_v61  ;;  %v29168_v53 = vsel %vm1204_vm6, %v21219_v39, %v32701_v40  ;;  %v21264_v45 = vunpack.i.l.bf16 %v28497_v4  ;;  %v29181_v0 = vsel %vm1204_vm6, %v21209_v13, %v21279_v16  ;;  %v32704_v56 = vunpack.i.l.bf16 %v32703_v22  ;;  %18985 = vmatpush1.bf16.msra.mxu1 %v18984_v49 }
 0x65b   : > { %v29174_v36 = vsel %vm1204_vm6, %v21220_v63, %v32702_v3  ;;  %v32705_v39 = vunpack.i.h.bf16 %v32703_v22  ;;  %v32706_v63 = vld [vmem:[#allocation103_spill] sm:$0xff]  ;;  %v32707_v3 = vpack.c.bf16 %v28671_v44, %v28665_v28  ;;  %v29213_v22 = vsel %vm1204_vm6, %v21210_v33, %v21280_v14  ;;  %v29218_v44 = vld [vmem:[%s31474_s1 + $0x218] sm:$0xff]  ;;  %18995 = vmatprep.subr.bf16.mxu1 %v18994_v11  ;;  %12206 = vmatprep.mubr.f32.mxu1 %v32135_v8 }
 0x65c   : > { %v11383_v40 = vsel %vm1058_vm5, %v32704_v56, %v21319_v51  ;;  %18318 = vmatmul.mubr.msk.f32.vlgmr.msra.gmra.mrb[28].mxu0 %vm7930_vm9, %v28831_v15  ;;  %v21255_v61 = vunpack.i.h.bf16 %v32706_v63  ;;  %v21254_v13 = vunpack.i.l.bf16 %v32706_v63  ;;  %v12026_v51 = vsel %vm1204_vm6, %v21230_v59, %v21235_v60  ;;  %v21353_v56 = vpop.permute.xlu0 %21352 }
 0x65d   : > { %v11384_v21 = vsel %vm1058_vm5, %v32705_v39, %v21320_v10  ;;  %18957 = vmatpush1.bf16.msra.mxu0 %v32707_v3  ;;  %v12025_v10 = vsel %vm1204_vm6, %v21229_v25, %v21234_v50  ;;  %v29222_v28 = vsel %vm1204_vm6, %v21279_v16, %v21264_v45  ;;  %v29228_v32 = vsel %vm1204_vm6, %v21280_v14, %v21265_v38  ;;  %v29240_v39 = vpop.permute.xlu1 %21312 }
 0x65e   : > { %18959 = vmatprep.subr.bf16.mxu0 %v18958_v37  ;;  %v12029_v33 = vsel %vm1204_vm6, %v21239_v20, %v21229_v25  ;;  %v12030_v49 = vsel %vm1204_vm6, %v21240_v6, %v21230_v59  ;;  %v21270_v37 = vunpack.i.h.bf16 %v28837_v23  ;;  %11651 = vmatprep.mubr.f32.mxu0 %v32135_v8  ;;  %v18960_v16 = vpack.c.bf16 %v11384_v21, %v11383_v40 }
 0x65f   : > { %v21269_v14 = vunpack.i.l.bf16 %v28837_v23  ;;  %v18998_v25 = vpack.c.bf16 %v12026_v51, %v12025_v10  ;;  %v18974_v59 = vpack.c.bf16 %v29174_v36, %v29168_v53  ;;  %v18976_v63 = vpack.c.bf16 %v29147_v2, %v29153_v41  ;;  %18330 = vmatmul.mubr.msk.f32.vlgmr.msra.gmra.mrb[24].mxu1 %vm7930_vm9, %v29218_v44  ;;  %v29269_v41 = vld [vmem:[%s31474_s1 + $0x220] sm:$0xff]  ;;  %v32710_v36 = vld [vmem:[#allocation96_spill] sm:$0xff] }
 0x660   : > { %18319 = vmatmul.mubr.msk.f32.gmra.mrb[30].mxu0 %vm7930_vm9, %v28894_v34  ;;  %v21355_v11 = vunpack.i.h.bf16 %v21353_v56  ;;  %v21354_v40 = vunpack.i.l.bf16 %v21353_v56  ;;  %v32708_v23 = vunpack.i.l.bf16 %v32677_v29  ;;  %v12056_v3 = vsel %vm1204_vm6, %v21255_v61, %v21200_v17  ;;  %12212 = vmatprep.mubr.f32.mxu1 %v32135_v8 }
 0x661   : > { %18961 = vmatpush1.bf16.msra.mxu0 %v18960_v16  ;;  %v32709_v2 = vpack.c.bf16 %v28877_v19, %v28869_v9  ;;  %v19000_v53 = vpack.c.bf16 %v12030_v49, %v12029_v33  ;;  %v19002_v29 = vpack.c.bf16 %v29228_v32, %v29222_v28  ;;  %v19004_v17 = vpack.c.bf16 %v29213_v22, %v29181_v0  ;;  %v29302_v51 = vpop.permute.xlu1 %21327  ;;  %v29488_v0 = vld [vmem:[%s31474_s1 + $0x260] sm:$0xff] }
 0x662   : > { %v12055_v21 = vsel %vm1204_vm6, %v21254_v13, %v32708_v23  ;;  %18971 = vmatprep.subr.bf16.mxu0 %v18970_v42  ;;  %v21290_v10 = vunpack.i.h.bf16 %v32710_v36  ;;  %v12012_v9 = vsel %vm1204_vm6, %v21265_v38, %v21255_v61  ;;  %v12011_v19 = vsel %vm1204_vm6, %v21264_v45, %v21254_v13  ;;  %11799 = vmatprep.mubr.f32.mxu0 %v32135_v8  ;;  %v29300_v13 = vpop.permute.xlu0 %21357 }
 0x663   : > { %18997 = vmatpush1.bf16.msra.mxu1 %v32709_v2  ;;  %v32711_v7 = vunpack.i.h.bf16 %v32629_v58  ;;  %v32712_v42 = vunpack.i.l.bf16 %v32629_v58  ;;  %v21275_v38 = vunpack.i.h.bf16 %v28909_v46  ;;  %v21284_v61 = vunpack.i.l.bf16 %v29001_v54 }
 0x664   : > { %18999 = vmatprep.subr.bf16.mxu1 %v18998_v25  ;;  %18322 = vmatmul.mubr.msk.f32.vlgmr.msra.gmra.mrb[32].mxu0 %vm7930_vm9, %v28831_v15  ;;  %v19010_v45 = vpack.c.bf16 %v12056_v3, %v12055_v21  ;;  %v21274_v58 = vunpack.i.l.bf16 %v28909_v46  ;;  %v21285_v33 = vunpack.i.h.bf16 %v29001_v54  ;;  %v32713_v15 = vunpack.i.l.bf16 %v32667_v12  ;;  %v32715_v54 = vld [vmem:[#allocation34_spill] sm:$0xff] }
 0x665   : > { %v29286_v31 = vsel %vm1204_vm6, %v32711_v7, %v21270_v37  ;;  %v29293_v4 = vsel %vm1204_vm6, %v32712_v42, %v21269_v14  ;;  %18973 = vmatpush1.bf16.msra.mxu0 %v18972_v27  ;;  %18331 = vmatmul.mubr.msk.f32.gmra.mrb[26].mxu1 %vm7930_vm9, %v29269_v41  ;;  %v32714_v16 = vunpack.i.h.bf16 %v32667_v12  ;;  %v21289_v25 = vunpack.i.l.bf16 %v32710_v36  ;;  %v29354_v3 = vpop.permute.xlu1 %21337 }
 0x666   : > { %v12057_v49 = vsel %vm1204_vm6, %v21354_v40, %v32713_v15  ;;  %v21310_v23 = vunpack.i.h.bf16 %v32715_v54  ;;  %18975 = vmatprep.subr.bf16.mxu0 %v18974_v59  ;;  %v19012_v62 = vpack.c.bf16 %v12012_v9, %v12011_v19  ;;  %v12033_v24 = vsel %vm1204_vm6, %v21269_v14, %v21239_v20  ;;  %11805 = vmatprep.mubr.f32.mxu0 %v32135_v8 }
 0x667   : > { %v12058_v56 = vsel %vm1204_vm6, %v21355_v11, %v32714_v16  ;;  %19001 = vmatpush1.bf16.msra.mxu1 %v19000_v53  ;;  %v21309_v27 = vunpack.i.l.bf16 %v32715_v54  ;;  %v12013_v12 = vsel %vm1204_vm6, %v21274_v58, %v21354_v40  ;;  %v12014_v21 = vsel %vm1204_vm6, %v21275_v38, %v21355_v11  ;;  %12360 = vmatprep.mubr.f32.mxu1 %v32135_v8 }
 0x668   : > { %19011 = vmatprep.subr.bf16.mxu1 %v19010_v45  ;;  %v12034_v20 = vsel %vm1204_vm6, %v21270_v37, %v21240_v6  ;;  %v21294_v14 = vunpack.i.l.bf16 %v29080_v52  ;;  %18323 = vmatmul.mubr.msk.f32.gmra.mrb[34].mxu0 %vm7930_vm9, %v28894_v34  ;;  %v19014_v59 = vpack.c.bf16 %v12058_v56, %v12057_v49  ;;  %v12677_v11 = vsel %vm1350_vm7, %v21284_v61, %v21289_v25  ;;  %v21368_v34 = vpop.permute.xlu0 %21367 }
 0x669   : > { %v18992_v40 = vpack.c.bf16 %v29286_v31, %v29293_v4  ;;  %v21295_v55 = vunpack.i.h.bf16 %v29080_v52  ;;  %v21300_v6 = vunpack.i.h.bf16 %v29159_v1  ;;  %v21299_v37 = vunpack.i.l.bf16 %v29159_v1  ;;  %18977 = vmatpush1.bf16.msra.mxu0 %v18976_v63  ;;  %12129 = vmatprep.mubr.f32.mxu0 %v32135_v8 }
 0x66a   : > { %18334 = vmatmul.mubr.msk.f32.vlgmr.msra.gmra.mrb[28].mxu1 %vm7930_vm9, %v29218_v44  ;;  %v12678_v2 = vsel %vm1350_vm7, %v21285_v33, %v21290_v10  ;;  %v21315_v53 = vunpack.i.h.bf16 %v29240_v39  ;;  %v21314_v52 = vunpack.i.l.bf16 %v29240_v39  ;;  %v32716_v9 = vpack.c.bf16 %v29092_v30, %v29086_v47 }
 0x66b   : > { %19013 = vmatpush1.bf16.msra.mxu1 %v19012_v62  ;;  %v18990_v1 = vpack.c.bf16 %v12034_v20, %v12033_v24  ;;  %v19016_v63 = vpack.c.bf16 %v12014_v21, %v12013_v12  ;;  %v21325_v19 = vunpack.i.h.bf16 %v28999_v26  ;;  %v21324_v7 = vunpack.i.l.bf16 %v28999_v26  ;;  %12366 = vmatprep.mubr.f32.mxu1 %v32135_v8  ;;  %v29403_v12 = vpop.permute.xlu1 %21347 }
 0x66c   : > { %18987 = vmatprep.subr.bf16.mxu0 %v32716_v9  ;;  %v21370_v31 = vunpack.i.h.bf16 %v21368_v34  ;;  %v21369_v42 = vunpack.i.l.bf16 %v21368_v34  ;;  %v21334_v4 = vunpack.i.l.bf16 %v29078_v5  ;;  %v12681_v45 = vsel %vm1350_vm7, %v21294_v14, %v21284_v61  ;;  %18328 = vmatmul.mubr.msk.f32.vlgmr.msra.gmra.mrb[24].mxu0 %vm7930_vm9, %v29218_v44  ;;  %v29401_v24 = vpop.permute.xlu0 %21372 }
 0x66d   : > { %v21344_v47 = vunpack.i.l.bf16 %v29141_v35  ;;  %19015 = vmatprep.subr.bf16.mxu1 %v19014_v59  ;;  %v19026_v30 = vpack.c.bf16 %v12678_v2, %v12677_v11  ;;  %v12682_v15 = vsel %vm1350_vm7, %v21295_v55, %v21285_v33  ;;  %v21345_v49 = vunpack.i.h.bf16 %v29141_v35  ;;  %12135 = vmatprep.mubr.f32.mxu0 %v32135_v8 }
 0x66e   : > { %v32717_v16 = vpack.c.bf16 %v29052_v57, %v29046_v18  ;;  %18335 = vmatmul.mubr.msk.f32.gmra.mrb[30].mxu1 %vm7930_vm9, %v29269_v41  ;;  %v12679_v61 = vsel %vm1350_vm7, %v21299_v37, %v21309_v27  ;;  %v12680_v56 = vsel %vm1350_vm7, %v21300_v6, %v21310_v23  ;;  %v12683_v33 = vsel %vm1350_vm7, %v21314_v52, %v21299_v37 }
 0x66f   : > { %v12684_v18 = vsel %vm1350_vm7, %v21315_v53, %v21300_v6  ;;  %19017 = vmatpush1.bf16.msra.mxu1 %v19016_v63  ;;  %v21340_v57 = vunpack.i.h.bf16 %v29354_v3  ;;  %v21339_v62 = vunpack.i.l.bf16 %v29354_v3  ;;  %v21335_v21 = vunpack.i.h.bf16 %v29078_v5  ;;  %12514 = vmatprep.mubr.f32.mxu1 %v32135_v8  ;;  %v21363_v63 = vpop.permute.xlu1 %21362 }
 0x670   : > { %18989 = vmatpush1.bf16.msra.mxu0 %v32717_v16  ;;  %19027 = vmatprep.subr.bf16.mxu1 %v19026_v30  ;;  %v12017_v20 = vsel %vm1204_vm6, %v21369_v42, %v21274_v58  ;;  %v12018_v59 = vsel %vm1204_vm6, %v21370_v31, %v21275_v38  ;;  %v29419_v11 = vsel %vm1350_vm7, %v21324_v7, %v21294_v14  ;;  %v21330_v14 = vunpack.i.h.bf16 %v29302_v51  ;;  %v29445_v2 = vpop.permute.xlu0 %21382 }
 0x671   : > { %18991 = vmatprep.subr.bf16.mxu0 %v18990_v1  ;;  %v29425_v5 = vsel %vm1350_vm7, %v21344_v47, %v21334_v4  ;;  %18329 = vmatmul.mubr.msk.f32.gmra.mrb[26].mxu0 %vm7930_vm9, %v29269_v41  ;;  %v19028_v46 = vpack.c.bf16 %v12682_v15, %v12681_v45  ;;  %v12686_v38 = vsel %vm1350_vm7, %v21325_v19, %v21295_v55  ;;  %v21329_v34 = vunpack.i.l.bf16 %v29302_v51 }
 0x672   : > { %v12666_v58 = vsel %vm1350_vm7, %v21345_v49, %v21335_v21  ;;  %18338 = vmatmul.mubr.msk.f32.vlgmr.msra.gmra.mrb[32].mxu1 %vm7930_vm9, %v29218_v44  ;;  %v19030_v6 = vpack.c.bf16 %v12680_v56, %v12679_v61  ;;  %v19032_v37 = vpack.c.bf16 %v12684_v18, %v12683_v33  ;;  %v19006_v55 = vpack.c.bf16 %v12018_v59, %v12017_v20 }
 0x673   : > { %19029 = vmatpush1.bf16.msra.mxu1 %v19028_v46  ;;  %v12662_v9 = vsel %vm1350_vm7, %v21335_v21, %v21340_v57  ;;  %v12021_v28 = vsel %vm1204_vm6, %v21234_v50, %v21369_v42  ;;  %v12022_v32 = vsel %vm1204_vm6, %v21235_v60, %v21370_v31  ;;  %v21349_v1 = vunpack.i.l.bf16 %v29403_v12  ;;  %12283 = vmatprep.mubr.f32.mxu0 %v32135_v8 }
 0x674   : > { %18993 = vmatpush1.bf16.msra.mxu0 %v18992_v40  ;;  %v12661_v40 = vsel %vm1350_vm7, %v21334_v4, %v21339_v62  ;;  %19031 = vmatprep.subr.bf16.mxu1 %v19030_v6  ;;  %v21374_v4 = vunpack.i.l.bf16 %v29401_v24  ;;  %v21350_v45 = vunpack.i.h.bf16 %v29403_v12  ;;  %v21365_v48 = vunpack.i.h.bf16 %v21363_v63  ;;  %v29515_v26 = vpop.permute.xlu0 %21392 }
 0x675   : > { %19003 = vmatprep.subr.bf16.mxu0 %v19002_v29  ;;  %v21375_v29 = vunpack.i.h.bf16 %v29401_v24  ;;  %12520 = vmatprep.mubr.f32.mxu1 %v32135_v8  ;;  %v21364_v50 = vunpack.i.l.bf16 %v21363_v63  ;;  %v19042_v60 = vpack.c.bf16 %v12662_v9, %v12661_v40  ;;  %v19018_v31 = vpack.c.bf16 %v12686_v38, %v29419_v11 }
 0x676   : > { %18339 = vmatmul.mubr.msk.f32.gmra.mrb[34].mxu1 %vm7930_vm9, %v29269_v41  ;;  %v19044_v42 = vpack.c.bf16 %v12666_v58, %v29425_v5  ;;  %v21360_v30 = vunpack.i.h.bf16 %v29300_v13  ;;  %v12690_v15 = vsel %vm1350_vm7, %v21330_v14, %v21325_v19  ;;  %v21359_v16 = vunpack.i.l.bf16 %v29300_v13 }
 0x677   : > { %18332 = vmatmul.mubr.msk.f32.vlgmr.msra.gmra.mrb[28].mxu0 %vm7930_vm9, %v29218_v44  ;;  %19033 = vmatpush1.bf16.msra.mxu1 %v19032_v37  ;;  %v12663_v22 = vsel %vm1350_vm7, %v21364_v50, %v21374_v4  ;;  %v12689_v19 = vsel %vm1350_vm7, %v21329_v34, %v21324_v7  ;;  %v19008_v61 = vpack.c.bf16 %v12022_v32, %v12021_v28  ;;  %v21385_v33 = vunpack.i.h.bf16 %v29445_v2  ;;  %v29517_v7 = vpop.permute.xlu1 %21377 }
 0x678   : > { %19005 = vmatpush1.bf16.msra.mxu0 %v19004_v17  ;;  %v12664_v17 = vsel %vm1350_vm7, %v21365_v48, %v21375_v29  ;;  %12289 = vmatprep.mubr.f32.mxu0 %v32135_v8  ;;  %v12687_v56 = vsel %vm1350_vm7, %v21349_v1, %v21314_v52  ;;  %v21384_v18 = vunpack.i.l.bf16 %v29445_v2  ;;  %v12688_v21 = vsel %vm1350_vm7, %v21350_v45, %v21315_v53  ;;  %v29536_v53 = vld [vmem:[%s31474_s1 + $0x268] sm:$0xff]  ;;  %v29550_v58 = vpop.permute.xlu0 %21407 }
 0x679   : > { %19007 = vmatprep.subr.bf16.mxu0 %v19006_v55  ;;  %19043 = vmatprep.subr.bf16.mxu1 %v19042_v60  ;;  %v19046_v12 = vpack.c.bf16 %v12664_v17, %v12663_v22  ;;  %v21380_v52 = vunpack.i.h.bf16 %v29517_v7  ;;  %v21379_v20 = vunpack.i.l.bf16 %v29517_v7  ;;  %v12692_v59 = vsel %vm1350_vm7, %v21360_v30, %v21350_v45 }
 0x67a   : > { %12844 = vmatprep.mubr.f32.mxu1 %v32135_v8  ;;  %v12691_v11 = vsel %vm1350_vm7, %v21359_v16, %v21349_v1  ;;  %v19020_v39 = vpack.c.bf16 %v12690_v15, %v12689_v19  ;;  %v19022_v38 = vpack.c.bf16 %v12688_v21, %v12687_v56  ;;  %v12669_v37 = vsel %vm1350_vm7, %v21384_v18, %v21344_v47 }
 0x67b   : > { %18333 = vmatmul.mubr.msk.f32.gmra.mrb[30].mxu0 %vm7930_vm9, %v29269_v41  ;;  %18344 = vmatmul.mubr.msk.f32.vlgmr.msra.gmra.mrb[24].mxu1 %vm7930_vm9, %v29488_v0  ;;  %v12667_v5 = vsel %vm1350_vm7, %v21379_v20, %v21364_v50  ;;  %v12668_v46 = vsel %vm1350_vm7, %v21380_v52, %v21365_v48  ;;  %v12670_v55 = vsel %vm1350_vm7, %v21385_v33, %v21345_v49  ;;  %v21409_v40 = vunpack.i.l.bf16 %v29550_v58  ;;  %v21388_v9 = vpop.permute.xlu1 %21387 }
 0x67c   : > { %19009 = vmatpush1.bf16.msra.mxu0 %v19008_v61  ;;  %19045 = vmatpush1.bf16.msra.mxu1 %v19044_v42  ;;  %v19048_v6 = vpack.c.bf16 %v12668_v46, %v12667_v5  ;;  %v12673_v2 = vsel %vm1350_vm7, %v21289_v25, %v21384_v18  ;;  %v19024_v47 = vpack.c.bf16 %v12692_v59, %v12691_v11  ;;  %v21395_v35 = vunpack.i.h.bf16 %v29515_v26  ;;  %v21413_v50 = vpop.permute.xlu0 %21412 }
 0x67d   : > { %19019 = vmatprep.subr.bf16.mxu0 %v19018_v31  ;;  %12437 = vmatprep.mubr.f32.mxu0 %v32135_v8  ;;  %v21394_v28 = vunpack.i.l.bf16 %v29515_v26  ;;  %v21390_v49 = vunpack.i.h.bf16 %v21388_v9  ;;  %v21389_v32 = vunpack.i.l.bf16 %v21388_v9  ;;  %v12674_v25 = vsel %vm1350_vm7, %v21290_v10, %v21385_v33 }
 0x67e   : > { %12850 = vmatprep.mubr.f32.mxu1 %v32135_v8  ;;  %19047 = vmatprep.subr.bf16.mxu1 %v19046_v12  ;;  %v19034_v1 = vpack.c.bf16 %v12670_v55, %v12669_v37  ;;  %v12695_v63 = vsel %vm1350_vm7, %v21409_v40, %v21359_v16  ;;  %v21415_v15 = vunpack.i.h.bf16 %v21413_v50  ;;  %v21929_v26 = vmov 2   ;;  %v21909_v37 = vld [vmem:[%s31475_s2 + $0x8] sm:$0xff] }
 0x67f   : > { %18336 = vmatmul.mubr.msk.f32.vlgmr.msra.gmra.mrb[32].mxu0 %vm7930_vm9, %v29218_v44  ;;  %18345 = vmatmul.mubr.msk.f32.gmra.mrb[26].mxu1 %vm7930_vm9, %v29536_v53  ;;  %v21410_v44 = vunpack.i.h.bf16 %v29550_v58  ;;  %v12650_v45 = vsel %vm1350_vm7, %v21395_v35, %v21390_v49  ;;  %v12649_v48 = vsel %vm1350_vm7, %v21394_v28, %v21389_v32  ;;  %v12693_v36 = vsel %vm1350_vm7, %v21389_v32, %v21329_v34  ;;  %v21398_v60 = vpop.permute.xlu1 %21397 }
 0x680   : > { %19021 = vmatpush1.bf16.msra.mxu0 %v19020_v39  ;;  %12443 = vmatprep.mubr.f32.mxu0 %v32135_v8  ;;  %v12694_v10 = vsel %vm1350_vm7, %v21390_v49, %v21330_v14  ;;  %v19060_v42 = vpack.c.bf16 %v12650_v45, %v12649_v48  ;;  %v21414_v34 = vunpack.i.l.bf16 %v21413_v50  ;;  %v21400_v22 = vunpack.i.h.bf16 %v21398_v60  ;;  %v29644_v39 = vld [vmem:[%s31475_s2] sm:$0xff] }
 0x681   : > { %19023 = vmatprep.subr.bf16.mxu0 %v19022_v38  ;;  %19049 = vmatpush1.bf16.msra.mxu1 %v19048_v6  ;;  %v19058_v31 = vpack.c.bf16 %v12694_v10, %v12693_v36  ;;  %v21399_v51 = vunpack.i.l.bf16 %v21398_v60  ;;  %v19036_v14 = vpack.c.bf16 %v12674_v25, %v12673_v2  ;;  %v12654_v56 = vsel %vm1350_vm7, %v21415_v15, %v21395_v35 }
 0x682   : > { %12998 = vmatprep.mubr.f32.mxu1 %v32135_v8  ;;  %v12676_v13 = vsel %vm1350_vm7, %v21310_v23, %v21400_v22  ;;  %v12672_v23 = vsel %vm1350_vm7, %v21400_v22, %v21380_v52  ;;  %v12653_v61 = vsel %vm1350_vm7, %v21414_v34, %v21394_v28  ;;  %21421 = vset.pattern.permute.xlu0 %v21929_v26 }
 0x683   : > { %18337 = vmatmul.mubr.msk.f32.gmra.mrb[34].mxu0 %vm7930_vm9, %v29269_v41  ;;  %v12696_v41 = vsel %vm1350_vm7, %v21410_v44, %v21360_v30  ;;  %19059 = vmatprep.subr.bf16.mxu1 %v19058_v31  ;;  %v12675_v30 = vsel %vm1350_vm7, %v21309_v27, %v21399_v51  ;;  %v12671_v16 = vsel %vm1350_vm7, %v21399_v51, %v21379_v20  ;;  %v21403_v19 = vpop.permute.xlu1 %21402 }
 0x684   : > { %19025 = vmatpush1.bf16.msra.mxu0 %v19024_v47  ;;  %12767 = vmatprep.mubr.f32.mxu0 %v32135_v8  ;;  %v19062_v17 = vpack.c.bf16 %v12696_v41, %v12695_v63  ;;  %v19040_v54 = vpack.c.bf16 %v12676_v13, %v12675_v30  ;;  %v19038_v27 = vpack.c.bf16 %v12672_v23, %v12671_v16  ;;  %v21405_v33 = vunpack.i.h.bf16 %v21403_v19  ;;  %v32718_v47 = vld [vmem:[#allocation30_spill] sm:$0xff]  ;;  %v32721_v30 = vld [vmem:[#allocation23_spill] sm:$0xff]  ;;  %v32722_v16 = vld [vmem:[#allocation33_spill] sm:$0xff] }
 0x685   : > { %19035 = vmatprep.subr.bf16.mxu0 %v19034_v1  ;;  %18348 = vmatmul.mubr.msk.f32.vlgmr.msra.gmra.mrb[28].mxu1 %vm7930_vm9, %v29488_v0  ;;  %v21404_v18 = vunpack.i.l.bf16 %v21403_v19  ;;  %v12657_v7 = vsel %vm1350_vm7, %v21339_v62, %v21414_v34  ;;  %v12658_v12 = vsel %vm1350_vm7, %v21340_v57, %v21415_v15  ;;  %v19050_v21 = vpack.c.bf16 %v12654_v56, %v12653_v61  ;;  %v32720_v34 = vld [vmem:[#allocation29_spill] sm:$0xff] }
 0x686   : > { %13004 = vmatprep.mubr.f32.mxu1 %v32135_v8  ;;  %19061 = vmatpush1.bf16.msra.mxu1 %v19060_v42  ;;  %v12652_v52 = vsel %vm1350_vm7, %v21405_v33, %v21410_v44  ;;  %v19052_v11 = vpack.c.bf16 %v12658_v12, %v12657_v7 }
 0x687   : > { %18342 = vmatmul.mubr.msk.f32.vlgmr.msra.gmra.mrb[24].mxu0 %vm7930_vm9, %v29488_v0  ;;  %19063 = vmatprep.subr.bf16.mxu1 %v19062_v17  ;;  %v12651_v20 = vsel %vm1350_vm7, %v21404_v18, %v21409_v40  ;;  %v21418_v62 = vpop.permute.xlu1 %21417 }
 0x688   : > { %19037 = vmatpush1.bf16.msra.mxu0 %v19036_v14  ;;  %12773 = vmatprep.mubr.f32.mxu0 %v32135_v8  ;;  %v19064_v3 = vpack.c.bf16 %v12652_v52, %v12651_v20  ;;  %v21420_v57 = vunpack.i.h.bf16 %v21418_v62  ;;  %v21419_v59 = vunpack.i.l.bf16 %v21418_v62 }
 0x689   : > { %18349 = vmatmul.mubr.msk.f32.gmra.mrb[30].mxu1 %vm7930_vm9, %v29536_v53  ;;  %19039 = vmatprep.subr.bf16.mxu0 %v19038_v27  ;;  %v32723_v27 = vld [vmem:[#allocation31_spill] sm:$0xff] }
 0x68a   : > { %13152 = vmatprep.mubr.f32.mxu1 %v32135_v8  ;;  %13190 = vperm.xlu0 %21421, %v29644_v39   ;;  %v12660_v5 = vsel %vm1350_vm7, %v21375_v29, %v21420_v57  ;;  %v12659_v46 = vsel %vm1350_vm7, %v21374_v4, %v21419_v59  ;;  %v12655_v38 = vsel %vm1350_vm7, %v21419_v59, %v21404_v18 }
 0x68b   : > { %18343 = vmatmul.mubr.msk.f32.gmra.mrb[26].mxu0 %vm7930_vm9, %v29536_v53  ;;  %21422 = vset.pattern.permute.xlu1 %v21929_v26  ;;  %v12656_v58 = vsel %vm1350_vm7, %v21420_v57, %v21405_v33  ;;  %v19056_v6 = vpack.c.bf16 %v12660_v5, %v12659_v46 }
 0x68c   : > { %19041 = vmatpush1.bf16.msra.mxu0 %v19040_v54  ;;  %12921 = vmatprep.mubr.f32.mxu0 %v32135_v8  ;;  %v19054_v24 = vpack.c.bf16 %v12656_v58, %v12655_v38 }
 0x68d   : > { %19051 = vmatprep.subr.bf16.mxu0 %v19050_v21  ;;  %19065 = vmatpush1.bf16.msra.mxu1 %v19064_v3 }
 0x68e   : > { %13194 = vperm.xlu1 %21422, %v21909_v37  }
 0x68f   : > { %18346 = vmatmul.mubr.msk.f32.vlgmr.msra.gmra.mrb[28].mxu0 %vm7930_vm9, %v29488_v0 }
 0x690   : > { %19053 = vmatpush1.bf16.msra.mxu0 %v19052_v11  ;;  %12927 = vmatprep.mubr.f32.mxu0 %v32135_v8 }
 0x691   : > { %18352 = vmatmul.mubr.msk.f32.vlgmr.msra.gmra.mrb[32].mxu1 %vm7930_vm9, %v29488_v0  ;;  %19055 = vmatprep.subr.bf16.mxu0 %v19054_v24 }
 0x692   : > { %13158 = vmatprep.mubr.f32.mxu1 %v32135_v8 }
 0x693   : > { %18347 = vmatmul.mubr.msk.f32.gmra.mrb[30].mxu0 %vm7930_vm9, %v29536_v53 }
 0x694   : > { %13075 = vmatprep.mubr.f32.mxu0 %v32135_v8  ;;  %19057 = vmatpush1.bf16.msra.mxu0 %v19056_v6 }
 0x695   : > { %18353 = vmatmul.mubr.msk.f32.gmra.mrb[34].mxu1 %vm7930_vm9, %v29536_v53 }
 0x696   : > { %13553 = vmatprep.mubr.f32.mxu1 %v32135_v8 }
 0x697   : > { %18350 = vmatmul.mubr.msk.f32.vlgmr.msra.gmra.mrb[32].mxu0 %vm7930_vm9, %v29488_v0 }
 0x698   : > { %13081 = vmatprep.mubr.f32.mxu0 %v32135_v8 }
 0x69b   : > { %18351 = vmatmul.mubr.msk.f32.gmra.mrb[34].mxu0 %vm7930_vm9, %v29536_v53  ;;  %v32719_v53 = vld [vmem:[#allocation32_spill] sm:$0xff] }
 0x69c   : > { %13482 = vmatprep.mubr.f32.mxu0 %v32135_v8 }
 0x709   : > { %v29680_v29 = vpop.permute.xlu0 %13190 }
 0x70d   : > { %v29684_v40 = vpop.permute.xlu1 %13194 }
 0x74e   : > { %v12846_v4 = vpop.f32.mrb[24].mxu1 }
 0x74f   : > { %v13199_v55 = vadd.f32 %v29680_v29, %v12846_v4  ;;  %v12848_v2 = vpop.f32.mrb[25].mxu1 }
 0x750   : > { %v13200_v44 = vadd.f32 %v29680_v29, %v12848_v2  ;;  %v32724_v2 = vld [vmem:[#allocation26_spill] sm:$0xff] }
 0x751   : > { %v29687_v0 = vmul.f32 %v13199_v55, %v32718_v47 }
 0x752   : > { %v12852_v9 = vpop.f32.mrb[26].mxu1  ;;  %v29691_v49 = vmul.f32 %v13200_v44, %v32719_v53 }
 0x753   : > { %v13211_v35 = vadd.f32 %v29684_v40, %v12852_v9  ;;  %v12854_v28 = vpop.f32.mrb[27].mxu1  ;;  %v13247_v63 = vmax.f32 %v29687_v0, 0.0 }
 0x754   : > { %v13212_v32 = vadd.f32 %v29684_v40, %v12854_v28  ;;  %v13248_v36 = vmax.f32 %v29691_v49, 0.0 }
 0x755   : > { %v29695_v25 = vmul.f32 %v13211_v35, %v32718_v47  ;;  %v32725_v35 = vld [vmem:[#allocation27_spill] sm:$0xff] }
 0x756   : > { %v29698_v1 = vmul.f32 %v13212_v32, %v32719_v53 }
 0x757   : > { %v13259_v45 = vmax.f32 %v29695_v25, 0.0 }
 0x758   : > { %v13000_v48 = vpop.f32.mrb[28].mxu1  ;;  %v13260_v10 = vmax.f32 %v29698_v1, 0.0 }
 0x759   : > { %v13203_v50 = vadd.f32 %v29680_v29, %v13000_v48  ;;  %v13002_v60 = vpop.f32.mrb[29].mxu1  ;;  %v29710_v41 = vpack.i.bf16 %v13259_v45, %v13247_v63 }
 0x75a   : > { %v12769_v31 = vpop.f32.mrb[24].mxu0  ;;  %v13204_v42 = vadd.f32 %v29680_v29, %v13002_v60  ;;  %v29720_v14 = vpack.i.bf16 %v13260_v10, %v13248_v36 }
 0x75b   : > { %v13197_v15 = vadd.f32 %v29680_v29, %v12769_v31  ;;  %v29714_v22 = vmul.f32 %v13203_v50, %v32720_v34  ;;  %v12771_v51 = vpop.f32.mrb[25].mxu0  ;;  %21444 = vrot.lane.b32.xlu0 %v29710_v41, %s21923_s23  ;;  %21424 = vrot.lane.b32.xlu1 %v29710_v41, %s21920_s26 }
 0x75c   : > { %v13198_v13 = vadd.f32 %v29680_v29, %v12771_v51  ;;  %v29724_v17 = vmul.f32 %v13204_v42, %v32721_v30  ;;  %v13006_v19 = vpop.f32.mrb[30].mxu1 }
 0x75d   : > { %v29731_v23 = vmul.f32 %v13197_v15, %v32722_v16  ;;  %v13251_v54 = vmax.f32 %v29714_v22, 0.0  ;;  %v13215_v18 = vadd.f32 %v29684_v40, %v13006_v19  ;;  %v13008_v26 = vpop.f32.mrb[31].mxu1  ;;  %v32727_v19 = vld [vmem:[#allocation17_spill] sm:$0xff] }
 0x75e   : > { %v29735_v61 = vmul.f32 %v13198_v13, %v32723_v27  ;;  %v13252_v56 = vmax.f32 %v29724_v17, 0.0  ;;  %v12775_v33 = vpop.f32.mrb[26].mxu0  ;;  %v13216_v52 = vadd.f32 %v29684_v40, %v13008_v26 }
 0x75f   : > { %v13245_v7 = vmax.f32 %v29731_v23, 0.0  ;;  %v13209_v12 = vadd.f32 %v29684_v40, %v12775_v33  ;;  %v12777_v21 = vpop.f32.mrb[27].mxu0  ;;  %v29744_v62 = vmul.f32 %v13215_v18, %v32720_v34  ;;  %21429 = vrot.lane.b32.xlu1 %v29710_v41, %s21919_s21  ;;  %21449 = vrot.lane.b32.xlu0 %v29720_v14, %s21920_s26  ;;  %v32726_v34 = vld [vmem:[#allocation6_spill] sm:$0xff] }
 0x760   : > { %v13246_v20 = vmax.f32 %v29735_v61, 0.0  ;;  %v13210_v3 = vadd.f32 %v29684_v40, %v12777_v21  ;;  %v29755_v59 = vmul.f32 %v13216_v52, %v32721_v30 }
 0x761   : > { %v29752_v57 = vmul.f32 %v13209_v12, %v32722_v16  ;;  %v13263_v11 = vmax.f32 %v29744_v62, 0.0 }
 0x762   : > { %v29759_v5 = vmul.f32 %v13210_v3, %v32723_v27  ;;  %v12923_v46 = vpop.f32.mrb[28].mxu0  ;;  %v13264_v58 = vmax.f32 %v29755_v59, 0.0 }
 0x763   : > { %v13257_v38 = vmax.f32 %v29752_v57, 0.0  ;;  %v13201_v6 = vadd.f32 %v29680_v29, %v12923_v46  ;;  %v12925_v37 = vpop.f32.mrb[29].mxu0  ;;  %21434 = vrot.lane.b32.xlu1 %v29710_v41, %s21921_s5  ;;  %21454 = vrot.lane.b32.xlu0 %v29720_v14, %s21919_s21  ;;  %v29774_v55 = vpack.i.bf16 %v13263_v11, %v13251_v54  ;;  %v29903_v0 = vpack.c.bf16 %v13263_v11, %v13251_v54 }
 0x764   : > { %v13258_v24 = vmax.f32 %v29759_v5, 0.0  ;;  %v13202_v4 = vadd.f32 %v29680_v29, %v12925_v37  ;;  %v13154_v9 = vpop.f32.mrb[32].mxu1  ;;  %v29783_v47 = vpack.i.bf16 %v13264_v58, %v13252_v56  ;;  %v29895_v1 = vpack.c.bf16 %v13264_v58, %v13252_v56 }
 0x765   : > { %v29777_v44 = vmul.f32 %v13201_v6, %v32724_v2  ;;  %v13207_v53 = vadd.f32 %v29680_v29, %v13154_v9  ;;  %v13156_v48 = vpop.f32.mrb[33].mxu1  ;;  %v29805_v30 = vpack.i.bf16 %v13257_v38, %v13245_v7  ;;  %v29889_v49 = vpack.c.bf16 %v13257_v38, %v13245_v7  ;;  %32736 = vst [vmem:[#allocation108_spill] sm:$0xff] %v29903_v0 }
 0x766   : > { %v29786_v28 = vmul.f32 %v13202_v4, %v32725_v35  ;;  %v12929_v32 = vpop.f32.mrb[30].mxu0  ;;  %v13208_v31 = vadd.f32 %v29680_v29, %v13156_v48  ;;  %v29813_v18 = vpack.i.bf16 %v13258_v24, %v13246_v20  ;;  %v32728_v48 = vld [vmem:[#allocation15_spill] sm:$0xff]  ;;  %32734 = vst [vmem:[#allocation37_spill] sm:$0xff] %v29895_v1 }
 0x767   : > { %v13249_v50 = vmax.f32 %v29777_v44, 0.0  ;;  %v13213_v60 = vadd.f32 %v29684_v40, %v12929_v32  ;;  %v12931_v42 = vpop.f32.mrb[31].mxu0  ;;  %v29794_v51 = vmul.f32 %v13207_v53, %v32726_v34  ;;  %21439 = vrot.lane.b32.xlu1 %v29710_v41, %s21922_s10  ;;  %21459 = vrot.lane.b32.xlu0 %v29720_v14, %s21921_s5  ;;  %32733 = vst [vmem:[#allocation107_spill] sm:$0xff] %v29889_v49 }
 0x768   : > { %v13250_v15 = vmax.f32 %v29786_v28, 0.0  ;;  %v13214_v13 = vadd.f32 %v29684_v40, %v12931_v42  ;;  %v13232_v27 = vmul.f32 %v13208_v31, %v32727_v19  ;;  %v13160_v33 = vpop.f32.mrb[34].mxu1  ;;  %v32729_v42 = vld [vmem:[#allocation22_spill] sm:$0xff] }
 0x769   : > { %v13237_v16 = vmul.f32 %v13213_v60, %v32724_v2  ;;  %v13255_v26 = vmax.f32 %v29794_v51, 0.0  ;;  %v13219_v21 = vadd.f32 %v29684_v40, %v13160_v33  ;;  %v13162_v52 = vpop.f32.mrb[35].mxu1 }
 0x76a   : > { %v13238_v12 = vmul.f32 %v13214_v13, %v32725_v35  ;;  %v13256_v46 = vmax.f32 %v13232_v27, 0.0  ;;  %v13077_v6 = vpop.f32.mrb[32].mxu0  ;;  %v13220_v37 = vadd.f32 %v29684_v40, %v13162_v52 }
 0x76b   : > { %v13261_v3 = vmax.f32 %v13237_v16, 0.0  ;;  %v13243_v2 = vmul.f32 %v13219_v21, %v32726_v34  ;;  %v13205_v9 = vadd.f32 %v29680_v29, %v13077_v6  ;;  %21469 = vrot.lane.b32.xlu1 %v29720_v14, %s21923_s23  ;;  %21464 = vrot.lane.b32.xlu0 %v29720_v14, %s21922_s10  ;;  %v13079_v35 = vpop.f32.mrb[33].mxu0 }
 0x76c   : > { %v13262_v4 = vmax.f32 %v13238_v12, 0.0  ;;  %v13244_v28 = vmul.f32 %v13220_v37, %v32727_v19  ;;  %v13206_v53 = vadd.f32 %v29680_v29, %v13079_v35 }
 0x76d   : > { %v13267_v32 = vmax.f32 %v13243_v2, 0.0  ;;  %v13229_v60 = vmul.f32 %v13205_v9, %v32728_v48  ;;  %v29831_v13 = vpack.i.bf16 %v13261_v3, %v13249_v50  ;;  %v29907_v25 = vpack.c.bf16 %v13261_v3, %v13249_v50 }
 0x76e   : > { %v13268_v31 = vmax.f32 %v13244_v28, 0.0  ;;  %v13230_v51 = vmul.f32 %v13206_v53, %v32729_v42  ;;  %v13083_v34 = vpop.f32.mrb[34].mxu0  ;;  %v29845_v37 = vpack.i.bf16 %v13262_v4, %v13250_v15  ;;  %v29877_v53 = vpack.c.bf16 %v13258_v24, %v13246_v20 }
 0x76f   : > { %v13253_v16 = vmax.f32 %v13229_v60, 0.0  ;;  %v13217_v27 = vadd.f32 %v29684_v40, %v13083_v34  ;;  %21474 = vrot.lane.b32.xlu0 %v29774_v55, %s21920_s26  ;;  %21494 = vrot.lane.b32.xlu1 %v29783_v47, %s21920_s26  ;;  %v13085_v29 = vpop.f32.mrb[35].mxu0  ;;  %v29838_v19 = vpack.i.bf16 %v13267_v32, %v13255_v26  ;;  %32737 = vst [vmem:[#allocation110_spill] sm:$0xff] %v29907_v25 }
 0x770   : > { %v13254_v33 = vmax.f32 %v13230_v51, 0.0  ;;  %v13218_v12 = vadd.f32 %v29684_v40, %v13085_v29  ;;  %v29841_v21 = vpack.i.bf16 %v13268_v31, %v13256_v46  ;;  %v29871_v40 = vpack.c.bf16 %v13260_v10, %v13248_v36  ;;  %32731 = vst [vmem:[#allocation5_spill] sm:$0xff] %v29877_v53 }
 0x771   : > { %v13241_v52 = vmul.f32 %v13217_v27, %v32728_v48  ;;  %v29883_v48 = vpack.c.bf16 %v13259_v45, %v13247_v63  ;;  %v29897_v36 = vpack.c.bf16 %v13262_v4, %v13250_v15  ;;  %v29909_v63 = vpack.c.bf16 %v13268_v31, %v13256_v46 }
 0x772   : > { %v13242_v6 = vmul.f32 %v13218_v12, %v32729_v42  ;;  %32730 = vst [vmem:[#allocation118_spill] sm:$0xff] %v29871_v40  ;;  %v29917_v10 = vpack.c.bf16 %v13267_v32, %v13255_v26 }
 0x773   : > { %v13265_v2 = vmax.f32 %v13241_v52, 0.0  ;;  %21479 = vrot.lane.b32.xlu0 %v29774_v55, %s21919_s21  ;;  %21499 = vrot.lane.b32.xlu1 %v29783_v47, %s21919_s21  ;;  %32732 = vst [vmem:[#allocation99_spill] sm:$0xff] %v29883_v48  ;;  %32735 = vst [vmem:[#allocation78_spill] sm:$0xff] %v29897_v36 }
 0x774   : > { %v13266_v9 = vmax.f32 %v13242_v6, 0.0  ;;  %32738 = vst [vmem:[#allocation121_spill] sm:$0xff] %v29909_v63  ;;  %32740 = vst [vmem:[#allocation98_spill] sm:$0xff] %v29917_v10 }
 0x775   : > { %v29851_v35 = vpack.i.bf16 %v13265_v2, %v13253_v16  ;;  %v29919_v22 = vpack.c.bf16 %v13265_v2, %v13253_v16 }
 0x776   : > { %v29853_v28 = vpack.i.bf16 %v13266_v9, %v13254_v33  ;;  %v29915_v45 = vpack.c.bf16 %v13266_v9, %v13254_v33 }
 0x777   : > { %21484 = vrot.lane.b32.xlu0 %v29774_v55, %s21921_s5  ;;  %21504 = vrot.lane.b32.xlu1 %v29783_v47, %s21921_s5  ;;  %32741 = vst [vmem:[#allocation3_spill] sm:$0xff] %v29919_v22 }
 0x778   : > { %32739 = vst [vmem:[#allocation94_spill] sm:$0xff] %v29915_v45 }
 0x77b   : > { %21489 = vrot.lane.b32.xlu0 %v29774_v55, %s21922_s10  ;;  %21509 = vrot.lane.b32.xlu1 %v29783_v47, %s21922_s10 }
 0x77f   : > { %21514 = vrot.lane.b32.xlu1 %v29805_v30, %s21920_s26  ;;  %21539 = vrot.lane.b32.xlu0 %v29813_v18, %s21920_s26 }
 0x783   : > { %21519 = vrot.lane.b32.xlu1 %v29805_v30, %s21919_s21  ;;  %21544 = vrot.lane.b32.xlu0 %v29838_v19, %s21920_s26 }
 0x787   : > { %21524 = vrot.lane.b32.xlu1 %v29805_v30, %s21921_s5  ;;  %21549 = vrot.lane.b32.xlu0 %v29813_v18, %s21919_s21 }
 0x78b   : > { %21529 = vrot.lane.b32.xlu1 %v29805_v30, %s21922_s10  ;;  %21554 = vrot.lane.b32.xlu0 %v29838_v19, %s21919_s21 }
 0x78f   : > { %21534 = vrot.lane.b32.xlu1 %v29805_v30, %s21923_s23  ;;  %21559 = vrot.lane.b32.xlu0 %v29813_v18, %s21921_s5 }
 0x793   : > { %21579 = vrot.lane.b32.xlu1 %v29813_v18, %s21923_s23  ;;  %21564 = vrot.lane.b32.xlu0 %v29838_v19, %s21921_s5 }
 0x797   : > { %21584 = vrot.lane.b32.xlu1 %v29841_v21, %s21920_s26  ;;  %21569 = vrot.lane.b32.xlu0 %v29813_v18, %s21922_s10 }
 0x79b   : > { %21589 = vrot.lane.b32.xlu1 %v29841_v21, %s21919_s21  ;;  %21574 = vrot.lane.b32.xlu0 %v29838_v19, %s21922_s10 }
 0x79f   : > { %21594 = vrot.lane.b32.xlu1 %v29841_v21, %s21921_s5  ;;  %21604 = vrot.lane.b32.xlu0 %v29831_v13, %s21920_s26 }
 0x7a3   : > { %21599 = vrot.lane.b32.xlu1 %v29841_v21, %s21922_s10  ;;  %21609 = vrot.lane.b32.xlu0 %v29831_v13, %s21919_s21 }
 0x7a7   : > { %21614 = vrot.lane.b32.xlu0 %v29831_v13, %s21921_s5  ;;  %21629 = vrot.lane.b32.xlu1 %v29845_v37, %s21920_s26 }
 0x7ab   : > { %21619 = vrot.lane.b32.xlu0 %v29831_v13, %s21922_s10  ;;  %21634 = vrot.lane.b32.xlu1 %v29845_v37, %s21919_s21 }
 0x7af   : > { %21624 = vrot.lane.b32.xlu0 %v29831_v13, %s21923_s23  ;;  %21639 = vrot.lane.b32.xlu1 %v29845_v37, %s21921_s5 }
 0x7b3   : > { %21649 = vrot.lane.b32.xlu0 %v29845_v37, %s21923_s23  ;;  %21644 = vrot.lane.b32.xlu1 %v29845_v37, %s21922_s10 }
 0x7b7   : > { %21654 = vrot.lane.b32.xlu0 %v29851_v35, %s21920_s26  ;;  %21674 = vrot.lane.b32.xlu1 %v29853_v28, %s21920_s26 }
 0x7bb   : > { %21659 = vrot.lane.b32.xlu0 %v29851_v35, %s21919_s21  ;;  %21679 = vrot.lane.b32.xlu1 %v29774_v55, %s21923_s23 }
 0x7bf   : > { %21664 = vrot.lane.b32.xlu0 %v29851_v35, %s21921_s5  ;;  %21689 = vrot.lane.b32.xlu1 %v29851_v35, %s21923_s23 }
 0x7c3   : > { %21669 = vrot.lane.b32.xlu0 %v29851_v35, %s21922_s10  ;;  %21694 = vrot.lane.b32.xlu1 %v29853_v28, %s21919_s21 }
 0x7c7   : > { %21684 = vrot.lane.b32.xlu0 %v29783_v47, %s21923_s23  ;;  %21699 = vrot.lane.b32.xlu1 %v29838_v19, %s21923_s23 }
 0x7cb   : > { %21704 = vrot.lane.b32.xlu0 %v29841_v21, %s21923_s23  ;;  %21709 = vrot.lane.b32.xlu1 %v29813_v18, %s21924_s13 }
 0x7cd   : > { %v29993_v17 = vpop.permute.xlu0 %21444  ;;  %v29995_v23 = vpop.permute.xlu1 %21424 }
 0x7ce   : > { %v31844_v56 = vunpack.i.h.bf16 %v29995_v23  ;;  %v31841_v7 = vunpack.i.l.bf16 %v29995_v23  ;;  %v31839_v51 = vunpack.i.h.bf16 %v29993_v17  ;;  %v31840_v27 = vunpack.i.l.bf16 %v29993_v17 }
 0x7cf   : > { %21714 = vrot.lane.b32.xlu0 %v29710_v41, %s21924_s13  ;;  %21719 = vrot.lane.b32.xlu1 %v29853_v28, %s21921_s5  ;;  %v32754_v0 = vunpack.i.l.bf16 %v29995_v23 }
 0x7d1   : > { %v30001_v54 = vpop.permute.xlu1 %21429  ;;  %v30003_v61 = vpop.permute.xlu0 %21449 }
 0x7d2   : > { %v31836_v20 = vunpack.i.h.bf16 %v30003_v61  ;;  %v31833_v62 = vunpack.i.l.bf16 %v30003_v61  ;;  %v31832_v58 = vunpack.i.h.bf16 %v30001_v54  ;;  %v31831_v24 = vunpack.i.l.bf16 %v30001_v54 }
 0x7d3   : > { %21729 = vrot.lane.b32.xlu0 %v29831_v13, %s21924_s13  ;;  %21724 = vrot.lane.b32.xlu1 %v29720_v14, %s21924_s13 }
 0x7d4   : > { %v13407_v57 = vsel %vm413_vm1, %v31841_v7, %v31833_v62  ;;  %v13408_v59 = vsel %vm413_vm1, %v31844_v56, %v31836_v20 }
 0x7d5   : > { %v30025_v11 = vpop.permute.xlu1 %21434  ;;  %v30027_v5 = vpop.permute.xlu0 %21454  ;;  %v19070_v38 = vpack.c.bf16 %v13408_v59, %v13407_v57 }
 0x7d6   : > { %v31829_v44 = vunpack.i.h.bf16 %v30027_v5  ;;  %v31824_v50 = vunpack.i.l.bf16 %v30027_v5  ;;  %v31830_v32 = vunpack.i.h.bf16 %v30025_v11  ;;  %v31823_v60 = vunpack.i.l.bf16 %v30025_v11 }
 0x7d7   : > { %19071 = vmatprep.subr.bf16.mxu1 %v19070_v38  ;;  %21739 = vrot.lane.b32.xlu0 %v29845_v37, %s21924_s13 }
 0x7d8   : > { %21734 = vrot.lane.b32.xlu1 %v29805_v30, %s21924_s13  ;;  %v30043_v15 = vsel %vm291_vm0, %v31831_v24, %v31824_v50  ;;  %v30051_v26 = vsel %vm291_vm0, %v31832_v58, %v31829_v44 }
 0x7d9   : > { %v30053_v3 = vpop.permute.xlu1 %21439  ;;  %v30055_v46 = vpop.permute.xlu0 %21459 }
 0x7da   : > { %v31820_v31 = vunpack.i.h.bf16 %v30055_v46  ;;  %v31819_v42 = vunpack.i.l.bf16 %v30055_v46  ;;  %v31828_v29 = vunpack.i.h.bf16 %v30053_v3  ;;  %v31827_v33 = vunpack.i.l.bf16 %v30053_v3 }
 0x7db   : > { %21754 = vrot.lane.b32.xlu0 %v29783_v47, %s21924_s13 }
 0x7dc   : > { %21744 = vrot.lane.b32.xlu1 %v29853_v28, %s21922_s10  ;;  %v30074_v34 = vsel %vm559_vm2, %v31823_v60, %v31819_v42  ;;  %v30082_v16 = vsel %vm559_vm2, %v31830_v32, %v31820_v31 }
 0x7dd   : > { %v30087_v12 = vpop.permute.xlu1 %21469  ;;  %v30089_v52 = vpop.permute.xlu0 %21464 }
 0x7de   : > { %32742 = vst [vmem:[#allocation28_spill] sm:$0xff] %v30087_v12  ;;  %v31821_v2 = vunpack.i.h.bf16 %v30087_v12  ;;  %v31822_v9 = vunpack.i.l.bf16 %v30087_v12  ;;  %v31826_v57 = vunpack.i.h.bf16 %v30089_v52  ;;  %v31825_v59 = vunpack.i.l.bf16 %v30089_v52 }
 0x7df   : > { %21769 = vrot.lane.b32.xlu0 %v29841_v21, %s21924_s13 }
 0x7e0   : > { %v30105_v38 = vsel %vm912_vm4, %v31839_v51, %v31821_v2  ;;  %v30113_v42 = vsel %vm912_vm4, %v31840_v27, %v31822_v9  ;;  %21749 = vrot.lane.b32.xlu1 %v29774_v55, %s21924_s13  ;;  %v30123_v31 = vsel %vm705_vm3, %v31827_v33, %v31825_v59  ;;  %v30131_v2 = vsel %vm705_vm3, %v31828_v29, %v31826_v57 }
 0x7e1   : > { %32743 = vst [vmem:[#allocation9_spill] sm:$0xff] %v30105_v38  ;;  %32744 = vst [vmem:[#allocation20_spill] sm:$0xff] %v30113_v42  ;;  %v30135_v6 = vpop.permute.xlu0 %21474  ;;  %v30137_v60 = vpop.permute.xlu1 %21494 }
 0x7e2   : > { %v32752_v25 = vunpack.i.h.bf16 %v30135_v6 }
 0x7e3   : > { %21779 = vrot.lane.b32.xlu0 %v29710_v41, %s21925_s22 }
 0x7e4   : > { %21759 = vrot.lane.b32.xlu1 %v29851_v35, %s21924_s13 }
 0x7e5   : > { %v30145_v59 = vpop.permute.xlu0 %21479  ;;  %v30147_v57 = vpop.permute.xlu1 %21499 }
 0x7e6   : > { %v31838_v33 = vunpack.i.h.bf16 %v30145_v59  ;;  %v31835_v9 = vunpack.i.l.bf16 %v30145_v59  ;;  %v31837_v29 = vunpack.i.h.bf16 %v30147_v57  ;;  %v31834_v44 = vunpack.i.l.bf16 %v30147_v57 }
 0x7e7   : > { %21789 = vrot.lane.b32.xlu0 %v29831_v13, %s21925_s22 }
 0x7e8   : > { %21764 = vrot.lane.b32.xlu1 %v29838_v19, %s21924_s13  ;;  %v30163_v50 = vsel %vm291_vm0, %v31835_v9, %v31834_v44  ;;  %v30171_v32 = vsel %vm291_vm0, %v31838_v33, %v31837_v29 }
 0x7e9   : > { %v30173_v4 = vpop.permute.xlu0 %21484  ;;  %v30175_v24 = vpop.permute.xlu1 %21504 }
 0x7ea   : > { %v31847_v62 = vunpack.i.h.bf16 %v30173_v4  ;;  %v31843_v44 = vunpack.i.l.bf16 %v30173_v4  ;;  %v31846_v9 = vunpack.i.h.bf16 %v30175_v24  ;;  %v31842_v20 = vunpack.i.l.bf16 %v30175_v24 }
 0x7eb   : > { %21799 = vrot.lane.b32.xlu0 %v29845_v37, %s21925_s22 }
 0x7ec   : > { %21774 = vrot.lane.b32.xlu1 %v29813_v18, %s21925_s22  ;;  %v30193_v29 = vsel %vm559_vm2, %v31843_v44, %v31842_v20  ;;  %v30201_v58 = vsel %vm559_vm2, %v31847_v62, %v31846_v9 }
 0x7ed   : > { %v30203_v33 = vpop.permute.xlu0 %21489  ;;  %v30205_v51 = vpop.permute.xlu1 %21509 }
 0x7ee   : > { %32745 = vst [vmem:[#allocation7_spill] sm:$0xff] %v30203_v33  ;;  %32746 = vst [vmem:[#allocation12_spill] sm:$0xff] %v30205_v51  ;;  %v31852_v7 = vunpack.i.h.bf16 %v30203_v33  ;;  %v31850_v20 = vunpack.i.l.bf16 %v30203_v33  ;;  %v31851_v44 = vunpack.i.h.bf16 %v30205_v51  ;;  %v31849_v56 = vunpack.i.l.bf16 %v30205_v51 }
 0x7ef   : > { %21809 = vrot.lane.b32.xlu0 %v29783_v47, %s21925_s22 }
 0x7f0   : > { %21784 = vrot.lane.b32.xlu1 %v29720_v14, %s21925_s22  ;;  %v30227_v27 = vsel %vm705_vm3, %v31850_v20, %v31849_v56  ;;  %v30235_v42 = vsel %vm705_vm3, %v31852_v7, %v31851_v44  ;;  %v32749_v56 = vunpack.i.l.bf16 %v30137_v60  ;;  %v32750_v20 = vunpack.i.l.bf16 %v30135_v6 }
 0x7f1   : > { %32747 = vst [vmem:[#allocation25_spill] sm:$0xff] %v30227_v27  ;;  %32748 = vst [vmem:[#allocation24_spill] sm:$0xff] %v30235_v42  ;;  %v21515_v62 = vpop.permute.xlu1 %21514  ;;  %v21540_v9 = vpop.permute.xlu0 %21539  ;;  %v32751_v7 = vunpack.i.h.bf16 %v30137_v60 }
 0x7f2   : > { %v21517_v22 = vunpack.i.h.bf16 %v21515_v62  ;;  %v21516_v10 = vunpack.i.l.bf16 %v21515_v62  ;;  %v21542_v45 = vunpack.i.h.bf16 %v21540_v9  ;;  %v21541_v63 = vunpack.i.l.bf16 %v21540_v9 }
 0x7f3   : > { %21824 = vrot.lane.b32.xlu0 %v29853_v28, %s21923_s23  ;;  %v13399_v44 = vsel %vm413_vm1, %v32750_v20, %v32749_v56  ;;  %v13400_v38 = vsel %vm413_vm1, %v32752_v25, %v32751_v7  ;;  %v32753_v62 = vunpack.i.h.bf16 %v29995_v23 }
 0x7f4   : > { %v13409_v36 = vsel %vm413_vm1, %v21541_v63, %v32754_v0  ;;  %21794 = vrot.lane.b32.xlu1 %v29805_v30, %s21925_s22  ;;  %v13411_v56 = vsel %vm413_vm1, %v21516_v10, %v21541_v63  ;;  %v13412_v20 = vsel %vm413_vm1, %v21517_v22, %v21542_v45  ;;  %v19078_v23 = vpack.c.bf16 %v13400_v38, %v13399_v44  ;;  %v30274_v0 = vld [vmem:[%s31474_s1 + $0x78] sm:$0xff] }
 0x7f5   : > { %v13410_v9 = vsel %vm413_vm1, %v21542_v45, %v32753_v62  ;;  %v30267_v7 = vpop.permute.xlu1 %21519  ;;  %v30269_v1 = vpop.permute.xlu0 %21544  ;;  %v19066_v62 = vpack.c.bf16 %v13412_v20, %v13411_v56 }
 0x7f6   : > { %v19072_v25 = vpack.c.bf16 %v13410_v9, %v13409_v36 }
 0x7f7   : > { %19067 = vmatprep.subr.bf16.mxu0 %v19066_v62  ;;  %21829 = vrot.lane.b32.xlu0 %v29841_v21, %s21925_s22 }
 0x7f8   : > { %19073 = vmatpush1.bf16.msra.mxu1 %v19072_v25  ;;  %21804 = vrot.lane.b32.xlu1 %v29774_v55, %s21925_s22 }
 0x7f9   : > { %19079 = vmatprep.subr.bf16.mxu1 %v19078_v23  ;;  %v30280_v36 = vpop.permute.xlu1 %21524  ;;  %v30282_v63 = vpop.permute.xlu0 %21549 }
 0x7fb   : > { %18356 = vmatmul.mubr.msk.f32.vlgmr.msra.gmra.mrb[36].mxu1 %vm1765_vm8, %v30274_v0  ;;  %21839 = vrot.lane.b32.xlu0 %v29710_v41, %s21926_s24 }
 0x7fc   : > { %13695 = vmatprep.mubr.f32.mxu1 %v32135_v8  ;;  %21814 = vrot.lane.b32.xlu1 %v29851_v35, %s21925_s22 }
 0x7fd   : > { %v30291_v45 = vpop.permute.xlu1 %21529  ;;  %v30293_v44 = vpop.permute.xlu0 %21554 }
 0x7fe   : > { %v21557_v33 = vunpack.i.h.bf16 %v30293_v44 }
 0x7ff   : > { %21849 = vrot.lane.b32.xlu0 %v29853_v28, %s21924_s13 }
 0x800   : > { %21819 = vrot.lane.b32.xlu1 %v29838_v19, %s21925_s22 }
 0x801   : > { %v30299_v38 = vpop.permute.xlu1 %21534  ;;  %v30301_v9 = vpop.permute.xlu0 %21559 }
 0x802   : > { %32755 = vst [vmem:[#allocation10_spill] sm:$0xff] %v30299_v38  ;;  %v31853_v20 = vunpack.i.h.bf16 %v30299_v38  ;;  %v31856_v25 = vunpack.i.l.bf16 %v30299_v38 }
 0x803   : > { %21854 = vrot.lane.b32.xlu0 %v29831_v13, %s21926_s24  ;;  %v32758_v13 = vunpack.i.l.bf16 %v29993_v17 }
 0x804   : > { %21834 = vrot.lane.b32.xlu1 %v29813_v18, %s21926_s24 }
 0x805   : > { %v21580_v41 = vpop.permute.xlu1 %21579  ;;  %v30307_v56 = vpop.permute.xlu0 %21564 }
 0x806   : > { %v21582_v62 = vunpack.i.h.bf16 %v21580_v41  ;;  %v21581_v23 = vunpack.i.l.bf16 %v21580_v41 }
 0x807   : > { %21864 = vrot.lane.b32.xlu0 %v29845_v37, %s21926_s24 }
 0x808   : > { %v30315_v49 = vsel %vm912_vm4, %v31853_v20, %v21582_v62  ;;  %v30321_v18 = vsel %vm912_vm4, %v31856_v25, %v21581_v23  ;;  %21844 = vrot.lane.b32.xlu1 %v29720_v14, %s21926_s24  ;;  %v30331_v41 = vsel %vm912_vm4, %v21581_v23, %v32758_v13  ;;  %v32760_v25 = vunpack.i.h.bf16 %v29993_v17 }
 0x809   : > { %32756 = vst [vmem:[#allocation18_spill] sm:$0xff] %v30315_v49  ;;  %32757 = vst [vmem:[#allocation8_spill] sm:$0xff] %v30321_v18  ;;  %v21585_v38 = vpop.permute.xlu1 %21584  ;;  %v30335_v48 = vpop.permute.xlu0 %21569  ;;  %v21930_v49 = vmov 3  }
 0x80a   : > { %32759 = vst [vmem:[#allocation19_spill] sm:$0xff] %v30331_v41  ;;  %v30341_v37 = vsel %vm912_vm4, %v21582_v62, %v32760_v25  ;;  %v21587_v53 = vunpack.i.h.bf16 %v21585_v38  ;;  %v21586_v14 = vunpack.i.l.bf16 %v21585_v38  ;;  %21903 = vset.pattern.permute.xlu1 %v21930_v49  ;;  %21904 = vset.pattern.permute.xlu0 %v21930_v49  ;;  %v21522_v49 = vunpack.i.h.bf16 %v30267_v7 }
 0x80b   : > { %32761 = vst [vmem:[#allocation91_spill] sm:$0xff] %v30341_v37  ;;  %21874 = vrot.lane.b32.xlu0 %v29853_v28, %s21925_s22 }
 0x80c   : > { %v13414_v23 = vsel %vm413_vm1, %v21587_v53, %v21517_v22  ;;  %v13413_v13 = vsel %vm413_vm1, %v21586_v14, %v21516_v10  ;;  %21859 = vrot.lane.b32.xlu1 %v29805_v30, %s21926_s24  ;;  %v32762_v30 = vunpack.i.h.bf16 %v30003_v61 }
 0x80d   : > { %v19068_v20 = vpack.c.bf16 %v13414_v23, %v13413_v13  ;;  %v30353_v17 = vpop.permute.xlu1 %21589  ;;  %v30355_v25 = vpop.permute.xlu0 %21574 }
 0x80e   : > { %v21592_v12 = vunpack.i.h.bf16 %v30353_v17 }
 0x80f   : > { %19069 = vmatpush1.bf16.msra.mxu0 %v19068_v20  ;;  %21879 = vrot.lane.b32.xlu0 %v29783_v47, %s21926_s24  ;;  %v32763_v47 = vunpack.i.l.bf16 %v30003_v61  ;;  %v21546_v61 = vunpack.i.l.bf16 %v30269_v1 }
 0x810   : > { %21869 = vrot.lane.b32.xlu1 %v29774_v55, %s21926_s24 }
 0x811   : > { %v30361_v22 = vpop.permute.xlu1 %21594  ;;  %v21605_v10 = vpop.permute.xlu0 %21604 }
 0x812   : > { %v21607_v38 = vunpack.i.h.bf16 %v21605_v10  ;;  %v21606_v62 = vunpack.i.l.bf16 %v21605_v10  ;;  %18355 = vmatmul.mubr.msk.f32.vlgmr.msra.gmra.mrb[36].mxu0 %vm1765_vm8, %v30274_v0 }
 0x813   : > { %13624 = vmatprep.mubr.f32.mxu0 %v32135_v8  ;;  %21894 = vrot.lane.b32.xlu0 %v29853_v28, %s21926_s24 }
 0x814   : > { %v13406_v20 = vsel %vm413_vm1, %v32762_v30, %v21607_v38  ;;  %v13405_v55 = vsel %vm413_vm1, %v32763_v47, %v21606_v62  ;;  %21884 = vrot.lane.b32.xlu1 %v29851_v35, %s21926_s24  ;;  %v21547_v30 = vunpack.i.h.bf16 %v30269_v1  ;;  %v13391_v35 = vsel %vm413_vm1, %v21546_v61, %v21586_v14 }
 0x815   : > { %v19076_v23 = vpack.c.bf16 %v13406_v20, %v13405_v55  ;;  %v30378_v13 = vpop.permute.xlu1 %21599  ;;  %v30380_v10 = vpop.permute.xlu0 %21609  ;;  %v32765_v1 = vunpack.i.l.bf16 %v30135_v6 }
 0x816   : > { %v13392_v40 = vsel %vm413_vm1, %v21547_v30, %v21587_v53 }
 0x817   : > { %21899 = vrot.lane.b32.xlu0 %v29841_v21, %s21926_s24  ;;  %v32764_v21 = vunpack.i.h.bf16 %v30135_v6 }
 0x818   : > { %21889 = vrot.lane.b32.xlu1 %v29838_v19, %s21926_s24 }
 0x819   : > { %v30388_v47 = vpop.permute.xlu0 %21614  ;;  %v21630_v28 = vpop.permute.xlu1 %21629 }
 0x81a   : > { %v21632_v20 = vunpack.i.h.bf16 %v21630_v28  ;;  %v21631_v55 = vunpack.i.l.bf16 %v21630_v28 }
 0x81c   : > { %v13402_v18 = vsel %vm413_vm1, %v21632_v20, %v32764_v21  ;;  %v13401_v19 = vsel %vm413_vm1, %v21631_v55, %v32765_v1  ;;  %v13403_v53 = vsel %vm413_vm1, %v21606_v62, %v21631_v55  ;;  %v13404_v14 = vsel %vm413_vm1, %v21607_v38, %v21632_v20  ;;  %17800 = vperm.xlu1 %21903, %v29644_v39  }
 0x81d   : > { %v19080_v41 = vpack.c.bf16 %v13402_v18, %v13401_v19  ;;  %v30402_v28 = vpop.permute.xlu0 %21619  ;;  %v30404_v37 = vpop.permute.xlu1 %21634  ;;  %v19086_v21 = vpack.c.bf16 %v13392_v40, %v13391_v35  ;;  %v19074_v6 = vpack.c.bf16 %v13404_v14, %v13403_v53  ;;  %v21552_v39 = vunpack.i.h.bf16 %v30282_v63 }
 0x81e   : > { %v21551_v40 = vunpack.i.l.bf16 %v30282_v63  ;;  %v32768_v14 = vunpack.i.h.bf16 %v30001_v54 }
 0x81f   : > { %19081 = vmatpush1.bf16.msra.mxu1 %v19080_v41  ;;  %19075 = vmatprep.subr.bf16.mxu0 %v19074_v6  ;;  %v21521_v41 = vunpack.i.l.bf16 %v30267_v7  ;;  %v32769_v6 = vunpack.i.l.bf16 %v30001_v54  ;;  %v21591_v7 = vunpack.i.l.bf16 %v30353_v17 }
 0x820   : > { %19087 = vmatprep.subr.bf16.mxu1 %v19086_v21  ;;  %19077 = vmatpush1.bf16.msra.mxu0 %v19076_v23  ;;  %v13337_v21 = vsel %vm291_vm0, %v21552_v39, %v32768_v14 }
 0x821   : > { %v30411_v1 = vpop.permute.xlu0 %21624  ;;  %v30413_v18 = vpop.permute.xlu1 %21639  ;;  %v13336_v63 = vsel %vm291_vm0, %v21551_v40, %v32769_v6  ;;  %v21637_v6 = vunpack.i.h.bf16 %v30404_v37 }
 0x822   : > { %32766 = vst [vmem:[#allocation92_spill] sm:$0xff] %v30411_v1  ;;  %18358 = vmatmul.mubr.msk.f32.vlgmr.msra.gmra.mrb[38].mxu1 %vm1765_vm8, %v30274_v0 }
 0x823   : > { %13837 = vmatprep.mubr.f32.mxu1 %v32135_v8  ;;  %18357 = vmatmul.mubr.msk.f32.vlgmr.msra.gmra.mrb[38].mxu0 %vm1765_vm8, %v30274_v0 }
 0x824   : > { %13766 = vmatprep.mubr.f32.mxu0 %v32135_v8 }
 0x825   : > { %v30418_v62 = vpop.permute.xlu0 %21649  ;;  %v30420_v38 = vpop.permute.xlu1 %21644 }
 0x826   : > { %32767 = vst [vmem:[#allocation61_spill] sm:$0xff] %v30418_v62  ;;  %v32770_v62 = vunpack.i.h.bf16 %v30137_v60 }
 0x829   : > { %v21655_v23 = vpop.permute.xlu0 %21654  ;;  %v21675_v20 = vpop.permute.xlu1 %21674 }
 0x82a   : > { %v21657_v55 = vunpack.i.h.bf16 %v21655_v23  ;;  %v21656_v35 = vunpack.i.l.bf16 %v21655_v23  ;;  %v21677_v19 = vunpack.i.h.bf16 %v21675_v20  ;;  %v21676_v53 = vunpack.i.l.bf16 %v21675_v20 }
 0x82b   : > { %v32771_v20 = vunpack.i.l.bf16 %v30137_v60 }
 0x82c   : > { %v13398_v23 = vsel %vm413_vm1, %v32770_v62, %v21657_v55  ;;  %v13394_v54 = vsel %vm413_vm1, %v21677_v19, %v21547_v30  ;;  %v13393_v14 = vsel %vm413_vm1, %v21676_v53, %v21546_v61  ;;  %v13395_v62 = vsel %vm413_vm1, %v21656_v35, %v21676_v53 }
 0x82d   : > { %v13397_v51 = vsel %vm413_vm1, %v32771_v20, %v21656_v35  ;;  %v19088_v1 = vpack.c.bf16 %v13394_v54, %v13393_v14  ;;  %v30452_v17 = vpop.permute.xlu0 %21659  ;;  %v30454_v27 = vpop.permute.xlu1 %21679  ;;  %v13396_v60 = vsel %vm413_vm1, %v21657_v55, %v21677_v19  ;;  %v21636_v20 = vunpack.i.l.bf16 %v30404_v37 }
 0x82e   : > { %32772 = vst [vmem:[#allocation122_spill] sm:$0xff] %v30454_v27  ;;  %v19084_v42 = vpack.c.bf16 %v13398_v23, %v13397_v51  ;;  %v13338_v30 = vsel %vm291_vm0, %v21521_v41, %v21551_v40  ;;  %v13339_v61 = vsel %vm291_vm0, %v21522_v49, %v21552_v39  ;;  %v21562_v54 = vunpack.i.h.bf16 %v30301_v9 }
 0x82f   : > { %v19082_v14 = vpack.c.bf16 %v13396_v60, %v13395_v62  ;;  %19089 = vmatpush1.bf16.msra.mxu1 %v19088_v1  ;;  %v19096_v27 = vpack.c.bf16 %v13337_v21, %v13336_v63  ;;  %v21612_v35 = vunpack.i.h.bf16 %v30380_v10  ;;  %v21611_v55 = vunpack.i.l.bf16 %v30380_v10  ;;  %v30513_v60 = vld [vmem:[%s31474_s1 + $0x30] sm:$0xff] }
 0x830   : > { %v32773_v51 = vpack.c.bf16 %v30051_v26, %v30043_v15  ;;  %v13341_v37 = vsel %vm291_vm0, %v21592_v12, %v21522_v49  ;;  %v13340_v39 = vsel %vm291_vm0, %v21591_v7, %v21521_v41  ;;  %v32774_v40 = vunpack.i.h.bf16 %v30145_v59 }
 0x831   : > { %19083 = vmatprep.subr.bf16.mxu0 %v19082_v14  ;;  %v30480_v19 = vpop.permute.xlu0 %21664  ;;  %v30482_v53 = vpop.permute.xlu1 %21689  ;;  %v19090_v10 = vpack.c.bf16 %v13339_v61, %v13338_v30  ;;  %v21556_v15 = vunpack.i.l.bf16 %v30293_v44  ;;  %v32775_v26 = vunpack.i.l.bf16 %v30145_v59  ;;  %v13330_v41 = vsel %vm291_vm0, %v21611_v55, %v21636_v20 }
 0x832   : > { %19095 = vmatprep.subr.bf16.mxu1 %v32773_v51  ;;  %v13329_v1 = vsel %vm291_vm0, %v21637_v6, %v32774_v40  ;;  %19085 = vmatpush1.bf16.msra.mxu0 %v19084_v42  ;;  %v13331_v21 = vsel %vm291_vm0, %v21612_v35, %v21637_v6  ;;  %v21527_v63 = vunpack.i.h.bf16 %v30280_v36  ;;  %v32776_v23 = vunpack.i.h.bf16 %v30025_v11 }
 0x833   : > { %v13328_v49 = vsel %vm291_vm0, %v21636_v20, %v32775_v26  ;;  %18360 = vmatmul.mubr.msk.f32.vlgmr.msra.gmra.mrb[40].mxu1 %vm1765_vm8, %v30274_v0  ;;  %v21561_v42 = vunpack.i.l.bf16 %v30301_v9  ;;  %19091 = vmatprep.subr.bf16.mxu0 %v19090_v10  ;;  %v21526_v44 = vunpack.i.l.bf16 %v30280_v36  ;;  %v19092_v62 = vpack.c.bf16 %v13341_v37, %v13340_v39 }
 0x834   : > { %v30502_v59 = vsel %vm559_vm2, %v21562_v54, %v32776_v23  ;;  %19097 = vmatpush1.bf16.msra.mxu1 %v19096_v27  ;;  %v32777_v6 = vpack.c.bf16 %v30171_v32, %v30163_v50  ;;  %13982 = vmatprep.mubr.f32.mxu1 %v32135_v8  ;;  %v13318_v20 = vsel %vm291_vm0, %v21556_v15, %v21591_v7  ;;  %v32778_v36 = vunpack.i.h.bf16 %v30027_v5 }
 0x835   : > { %v13319_v27 = vsel %vm291_vm0, %v21557_v33, %v21592_v12  ;;  %v32779_v50 = vunpack.i.l.bf16 %v30027_v5  ;;  %v19104_v61 = vpack.c.bf16 %v13329_v1, %v13328_v49  ;;  %18359 = vmatmul.mubr.msk.f32.vlgmr.msra.gmra.mrb[40].mxu0 %vm1765_vm8, %v30274_v0  ;;  %v30529_v14 = vpop.permute.xlu0 %21669  ;;  %v21695_v7 = vpop.permute.xlu1 %21694  ;;  %v19098_v51 = vpack.c.bf16 %v13331_v21, %v13330_v41 }
 0x836   : > { %19103 = vmatprep.subr.bf16.mxu1 %v32777_v6  ;;  %v13333_v30 = vsel %vm291_vm0, %v32778_v36, %v21612_v35  ;;  %v21662_v12 = vunpack.i.h.bf16 %v30452_v17  ;;  %v21661_v37 = vunpack.i.l.bf16 %v30452_v17  ;;  %19093 = vmatpush1.bf16.msra.mxu0 %v19092_v62  ;;  %v21697_v39 = vunpack.i.h.bf16 %v21695_v7 }
 0x837   : > { %v13332_v32 = vsel %vm291_vm0, %v32779_v50, %v21611_v55  ;;  %v21696_v35 = vunpack.i.l.bf16 %v21695_v7  ;;  %13911 = vmatprep.mubr.f32.mxu0 %v32135_v8  ;;  %v32780_v5 = vunpack.i.l.bf16 %v30025_v11  ;;  %v21597_v0 = vunpack.i.h.bf16 %v30361_v22  ;;  %19099 = vmatprep.subr.bf16.mxu0 %v19098_v51 }
 0x838   : > { %18362 = vmatmul.mubr.msk.f32.vlgmr.msra.gmra.mrb[36].mxu1 %vm1765_vm8, %v30513_v60  ;;  %v19110_v40 = vpack.c.bf16 %v13319_v27, %v13318_v20  ;;  %v14342_v17 = vsel %vm559_vm2, %v21526_v44, %v21561_v42  ;;  %v21596_v1 = vunpack.i.l.bf16 %v30361_v22  ;;  %v19100_v10 = vpack.c.bf16 %v13333_v30, %v13332_v32 }
 0x839   : > { %v14340_v55 = vsel %vm559_vm2, %v21561_v42, %v32780_v5  ;;  %v13321_v26 = vsel %vm291_vm0, %v21697_v39, %v21557_v33  ;;  %v13320_v11 = vsel %vm291_vm0, %v21696_v35, %v21556_v15  ;;  %19105 = vmatpush1.bf16.msra.mxu1 %v19104_v61  ;;  %v21572_v49 = vunpack.i.h.bf16 %v30335_v48  ;;  %18361 = vmatmul.mubr.msk.f32.vlgmr.msra.gmra.mrb[36].mxu0 %vm1765_vm8, %v30513_v60  ;;  %v30551_v21 = vpop.permute.xlu0 %21684  ;;  %v30553_v23 = vpop.permute.xlu1 %21699 }
 0x83a   : > { %v19112_v41 = vpack.c.bf16 %v13321_v26, %v13320_v11  ;;  %19111 = vmatprep.subr.bf16.mxu1 %v19110_v40  ;;  %v13322_v22 = vsel %vm291_vm0, %v21661_v37, %v21696_v35  ;;  %v14343_v33 = vsel %vm559_vm2, %v21527_v63, %v21562_v54  ;;  %v21642_v15 = vunpack.i.h.bf16 %v30413_v18  ;;  %19101 = vmatpush1.bf16.msra.mxu0 %v19100_v10 }
 0x83b   : > { %v21641_v42 = vunpack.i.l.bf16 %v30413_v18  ;;  %v32781_v62 = vunpack.i.h.bf16 %v30147_v57  ;;  %v32782_v20 = vunpack.i.l.bf16 %v30147_v57  ;;  %14124 = vmatprep.mubr.f32.mxu1 %v32135_v8  ;;  %v21571_v9 = vunpack.i.l.bf16 %v30335_v48  ;;  %14053 = vmatprep.mubr.f32.mxu0 %v32135_v8 }
 0x83c   : > { %v14345_v54 = vsel %vm559_vm2, %v21597_v0, %v21527_v63  ;;  %18364 = vmatmul.mubr.msk.f32.vlgmr.msra.gmra.mrb[38].mxu1 %vm1765_vm8, %v30513_v60  ;;  %v13323_v18 = vsel %vm291_vm0, %v21662_v12, %v21697_v39  ;;  %v14344_v57 = vsel %vm559_vm2, %v21596_v1, %v21526_v44  ;;  %v21617_v36 = vunpack.i.h.bf16 %v30388_v47 }
 0x83d   : > { %v13325_v6 = vsel %vm291_vm0, %v32781_v62, %v21662_v12  ;;  %v13324_v27 = vsel %vm291_vm0, %v32782_v20, %v21661_v37  ;;  %v21616_v30 = vunpack.i.l.bf16 %v30388_v47  ;;  %v19106_v50 = vpack.c.bf16 %v13323_v18, %v13322_v22  ;;  %19113 = vmatpush1.bf16.msra.mxu1 %v19112_v41  ;;  %14266 = vmatprep.mubr.f32.mxu1 %v32135_v8  ;;  %v30592_v44 = vpop.permute.xlu0 %21704  ;;  %v30594_v51 = vpop.permute.xlu1 %21709 }
 0x83e   : > { %v19120_v63 = vpack.c.bf16 %v30502_v59, %v14340_v55  ;;  %v21566_v32 = vunpack.i.l.bf16 %v30307_v56  ;;  %v19108_v61 = vpack.c.bf16 %v13325_v6, %v13324_v27  ;;  %18363 = vmatmul.mubr.msk.f32.vlgmr.msra.gmra.mrb[38].mxu0 %vm1765_vm8, %v30513_v60  ;;  %v32783_v7 = vpack.c.bf16 %v30082_v16, %v30074_v34 }
 0x83f   : > { %v19114_v47 = vpack.c.bf16 %v14343_v33, %v14342_v17  ;;  %v21567_v12 = vunpack.i.h.bf16 %v30307_v56  ;;  %v32784_v37 = vunpack.i.h.bf16 %v30053_v3  ;;  %19107 = vmatprep.subr.bf16.mxu0 %v19106_v50  ;;  %14195 = vmatprep.mubr.f32.mxu0 %v32135_v8  ;;  %v14334_v34 = vsel %vm559_vm2, %v21616_v30, %v21641_v42 }
 0x840   : > { %19119 = vmatprep.subr.bf16.mxu1 %v32783_v7  ;;  %v14335_v16 = vsel %vm559_vm2, %v21617_v36, %v21642_v15  ;;  %v32785_v39 = vunpack.i.l.bf16 %v30053_v3  ;;  %v19116_v35 = vpack.c.bf16 %v14345_v54, %v14344_v57  ;;  %19109 = vmatpush1.bf16.msra.mxu0 %v19108_v61  ;;  %v14322_v5 = vsel %vm559_vm2, %v21566_v32, %v21596_v1 }
 0x841   : > { %v30603_v59 = vsel %vm705_vm3, %v21572_v49, %v32784_v37  ;;  %18366 = vmatmul.mubr.msk.f32.vlgmr.msra.gmra.mrb[40].mxu1 %vm1765_vm8, %v30513_v60  ;;  %v32786_v55 = vunpack.i.h.bf16 %v30173_v4  ;;  %v32787_v17 = vunpack.i.l.bf16 %v30173_v4  ;;  %19115 = vmatprep.subr.bf16.mxu0 %v19114_v47  ;;  %v14323_v10 = vsel %vm559_vm2, %v21567_v12, %v21597_v0  ;;  %v30642_v33 = vpop.permute.xlu0 %21714 }
 0x842   : > { %v30614_v56 = vsel %vm705_vm3, %v21571_v9, %v32785_v39  ;;  %19121 = vmatpush1.bf16.msra.mxu1 %v19120_v63  ;;  %v21531_v26 = vunpack.i.l.bf16 %v30291_v45  ;;  %v32788_v11 = vunpack.i.h.bf16 %v30055_v46  ;;  %v32789_v41 = vunpack.i.l.bf16 %v30055_v46  ;;  %14484 = vmatprep.mubr.f32.mxu1 %v32135_v8 }
 0x843   : > { %v14333_v40 = vsel %vm559_vm2, %v21642_v15, %v32786_v55  ;;  %v14332_v3 = vsel %vm559_vm2, %v21641_v42, %v32787_v17  ;;  %v32790_v22 = vpack.c.bf16 %v30201_v58, %v30193_v29  ;;  %v21720_v15 = vpop.permute.xlu1 %21719  ;;  %v19122_v0 = vpack.c.bf16 %v14335_v16, %v14334_v34  ;;  %v30648_v42 = vld [vmem:[%s31474_s1 + $0xc0] sm:$0xff]  ;;  %18365 = vmatmul.mubr.msk.f32.vlgmr.msra.gmra.mrb[40].mxu0 %vm1765_vm8, %v30513_v60 }
 0x844   : > { %v14337_v1 = vsel %vm559_vm2, %v32788_v11, %v21617_v36  ;;  %v14336_v4 = vsel %vm559_vm2, %v32789_v41, %v21616_v30  ;;  %v21667_v46 = vunpack.i.h.bf16 %v30480_v19  ;;  %v21666_v62 = vunpack.i.l.bf16 %v30480_v19  ;;  %19117 = vmatpush1.bf16.msra.mxu0 %v19116_v35  ;;  %14413 = vmatprep.mubr.f32.mxu0 %v32135_v8  ;;  %v32796_v41 = vld [vmem:[#allocation7_spill] sm:$0xff] }
 0x845   : > { %19127 = vmatprep.subr.bf16.mxu1 %v32790_v22  ;;  %v21722_v58 = vunpack.i.h.bf16 %v21720_v15  ;;  %v21721_v29 = vunpack.i.l.bf16 %v21720_v15  ;;  %v19128_v6 = vpack.c.bf16 %v14333_v40, %v14332_v3  ;;  %v19134_v20 = vpack.c.bf16 %v14323_v10, %v14322_v5  ;;  %19123 = vmatprep.subr.bf16.mxu0 %v19122_v0  ;;  %v30666_v30 = vpop.permute.xlu0 %21729 }
 0x846   : > { %v14856_v27 = vsel %vm705_vm3, %v21531_v26, %v21571_v9  ;;  %18369 = vmatmul.mubr.msk.f32.vlgmr.msra.gmra.mrb[36].mxu1 %vm1765_vm8, %v30648_v42  ;;  %v21532_v60 = vunpack.i.h.bf16 %v30291_v45  ;;  %v19124_v57 = vpack.c.bf16 %v14337_v1, %v14336_v4  ;;  %v21602_v63 = vunpack.i.h.bf16 %v30378_v13 }
 0x847   : > { %v14325_v54 = vsel %vm559_vm2, %v21722_v58, %v21567_v12  ;;  %v14324_v18 = vsel %vm559_vm2, %v21721_v29, %v21566_v32  ;;  %v14326_v19 = vsel %vm559_vm2, %v21666_v62, %v21721_v29  ;;  %19129 = vmatpush1.bf16.msra.mxu1 %v19128_v6  ;;  %v30668_v9 = vpop.permute.xlu1 %21724  ;;  %14626 = vmatprep.mubr.f32.mxu1 %v32135_v8  ;;  %v21601_v32 = vunpack.i.l.bf16 %v30378_v13  ;;  %v18374_v29 = vld [vmem:[%s31474_s1 + $0x108] sm:$0xff] }
 0x848   : > { %v19136_v36 = vpack.c.bf16 %v14325_v54, %v14324_v18  ;;  %v14327_v50 = vsel %vm559_vm2, %v21667_v46, %v21722_v58  ;;  %v32791_v61 = vunpack.i.h.bf16 %v30175_v24  ;;  %v32792_v7 = vunpack.i.l.bf16 %v30175_v24  ;;  %18368 = vmatmul.mubr.msk.f32.vlgmr.msra.gmra.mrb[36].mxu0 %vm1765_vm8, %v30648_v42  ;;  %19135 = vmatprep.subr.bf16.mxu1 %v19134_v20  ;;  %v32799_v20 = vld [vmem:[#allocation24_spill] sm:$0xff] }
 0x849   : > { %v21647_v12 = vunpack.i.h.bf16 %v30420_v38  ;;  %v21646_v37 = vunpack.i.l.bf16 %v30420_v38  ;;  %19125 = vmatpush1.bf16.msra.mxu0 %v19124_v57  ;;  %14555 = vmatprep.mubr.f32.mxu0 %v32135_v8  ;;  %v19130_v13 = vpack.c.bf16 %v14327_v50, %v14326_v19  ;;  %v14857_v24 = vsel %vm705_vm3, %v21532_v60, %v21572_v49  ;;  %v30699_v5 = vpop.permute.xlu0 %21739  ;;  %v32803_v50 = vld [vmem:[#allocation12_spill] sm:$0xff] }
 0x84a   : > { %v14329_v45 = vsel %vm559_vm2, %v32791_v61, %v21667_v46  ;;  %v14328_v47 = vsel %vm559_vm2, %v32792_v7, %v21666_v62  ;;  %v21622_v34 = vunpack.i.h.bf16 %v30402_v28  ;;  %v21621_v16 = vunpack.i.l.bf16 %v30402_v28  ;;  %18371 = vmatmul.mubr.msk.f32.vlgmr.msra.gmra.mrb[38].mxu1 %vm1765_vm8, %v30648_v42  ;;  %v32805_v61 = vld [vmem:[#allocation61_spill] sm:$0xff] }
 0x84b   : > { %v19144_v39 = vpack.c.bf16 %v30603_v59, %v30614_v56  ;;  %v21576_v38 = vunpack.i.l.bf16 %v30355_v25  ;;  %v19132_v35 = vpack.c.bf16 %v14329_v45, %v14328_v47  ;;  %19131 = vmatprep.subr.bf16.mxu0 %v19130_v13  ;;  %19137 = vmatpush1.bf16.msra.mxu1 %v19136_v36  ;;  %v21577_v48 = vunpack.i.h.bf16 %v30355_v25  ;;  %v30711_v56 = vpop.permute.xlu1 %21734 }
 0x84c   : > { %v14859_v49 = vsel %vm705_vm3, %v21602_v63, %v21532_v60  ;;  %v14858_v28 = vsel %vm705_vm3, %v21601_v32, %v21531_v26  ;;  %18370 = vmatmul.mubr.msk.f32.vlgmr.msra.gmra.mrb[38].mxu0 %vm1765_vm8, %v30648_v42  ;;  %v32793_v59 = vpack.c.bf16 %v30131_v2, %v30123_v31  ;;  %v19138_v55 = vpack.c.bf16 %v14857_v24, %v14856_v27  ;;  %v32800_v27 = vld [vmem:[#allocation25_spill] sm:$0xff] }
 0x84d   : > { %19133 = vmatpush1.bf16.msra.mxu0 %v19132_v35  ;;  %14768 = vmatprep.mubr.f32.mxu1 %v32135_v8  ;;  %v14848_v25 = vsel %vm705_vm3, %v21621_v16, %v21646_v37  ;;  %v14849_v40 = vsel %vm705_vm3, %v21622_v34, %v21647_v12  ;;  %v14836_v17 = vsel %vm705_vm3, %v21576_v38, %v21601_v32  ;;  %v32794_v3 = vunpack.i.h.bf16 %v30089_v52  ;;  %v30742_v0 = vpop.permute.xlu0 %21754  ;;  %v32807_v35 = vld [vmem:[#allocation122_spill] sm:$0xff] }
 0x84e   : > { %19143 = vmatprep.subr.bf16.mxu1 %v32793_v59  ;;  %v32795_v2 = vunpack.i.l.bf16 %v30089_v52  ;;  %v21672_v26 = vunpack.i.h.bf16 %v30529_v14  ;;  %19139 = vmatprep.subr.bf16.mxu0 %v19138_v55  ;;  %v14837_v11 = vsel %vm705_vm3, %v21577_v48, %v21602_v63  ;;  %v19140_v1 = vpack.c.bf16 %v14859_v49, %v14858_v28 }
 0x84f   : > { %v14851_v31 = vsel %vm705_vm3, %v32794_v3, %v21622_v34  ;;  %14697 = vmatprep.mubr.f32.mxu0 %v32135_v8  ;;  %v32797_v4 = vunpack.i.h.bf16 %v32796_v41  ;;  %v32798_v15 = vunpack.i.l.bf16 %v32796_v41  ;;  %18373 = vmatmul.mubr.msk.f32.vlgmr.msra.gmra.mrb[40].mxu1 %vm1765_vm8, %v30648_v42  ;;  %v21671_v46 = vunpack.i.l.bf16 %v30529_v14  ;;  %v21745_v62 = vpop.permute.xlu1 %21744  ;;  %v32802_v14 = vld [vmem:[#allocation92_spill] sm:$0xff] }
 0x850   : > { %v14850_v10 = vsel %vm705_vm3, %v32795_v2, %v21621_v16  ;;  %18372 = vmatmul.mubr.msk.f32.vlgmr.msra.gmra.mrb[40].mxu0 %vm1765_vm8, %v30648_v42  ;;  %19145 = vmatpush1.bf16.msra.mxu1 %v19144_v39  ;;  %v19146_v58 = vpack.c.bf16 %v14849_v40, %v14848_v25  ;;  %v32801_v54 = vpack.c.bf16 %v32799_v20, %v32800_v27  ;;  %v21747_v18 = vunpack.i.h.bf16 %v21745_v62  ;;  %v32808_v25 = vld [vmem:[#allocation28_spill] sm:$0xff]  ;;  %v32813_v20 = vld [vmem:[#allocation99_spill] sm:$0xff] }
 0x851   : > { %v14847_v22 = vsel %vm705_vm3, %v21647_v12, %v32797_v4  ;;  %v14846_v52 = vsel %vm705_vm3, %v21646_v37, %v32798_v15  ;;  %v19148_v6 = vpack.c.bf16 %v14851_v31, %v14850_v10  ;;  %19141 = vmatpush1.bf16.msra.mxu0 %v19140_v1  ;;  %v21746_v19 = vunpack.i.l.bf16 %v21745_v62  ;;  %14998 = vmatprep.mubr.f32.mxu1 %v32135_v8  ;;  %v30767_v12 = vpop.permute.xlu0 %21769  ;;  %v32811_v1 = vld [vmem:[#allocation118_spill] sm:$0xff]  ;;  %v32812_v15 = vld [vmem:[#allocation5_spill] sm:$0xff] }
 0x852   : > { %19151 = vmatprep.subr.bf16.mxu1 %v32801_v54  ;;  %v19158_v60 = vpack.c.bf16 %v14837_v11, %v14836_v17  ;;  %v21627_v57 = vunpack.i.h.bf16 %v32802_v14  ;;  %v21626_v42 = vunpack.i.l.bf16 %v32802_v14  ;;  %v19152_v36 = vpack.c.bf16 %v14847_v22, %v14846_v52  ;;  %19147 = vmatprep.subr.bf16.mxu0 %v19146_v58  ;;  %v30842_v54 = vld [vmem:[%s31474_s1 + $0x150] sm:$0xff] }
 0x853   : > { %v32804_v63 = vunpack.i.h.bf16 %v32803_v50  ;;  %v21652_v45 = vunpack.i.h.bf16 %v32805_v61  ;;  %v14839_v7 = vsel %vm705_vm3, %v21747_v18, %v21577_v48  ;;  %v14838_v47 = vsel %vm705_vm3, %v21746_v19, %v21576_v38  ;;  %14927 = vmatprep.mubr.f32.mxu0 %v32135_v8  ;;  %18376 = vmatmul.mubr.msk.f32.vlgmr.msra.gmra.mrb[36].mxu1 %vm1765_vm8, %v18374_v29  ;;  %v30777_v39 = vpop.permute.xlu1 %21749 }
 0x854   : > { %v14840_v37 = vsel %vm705_vm3, %v21671_v46, %v21746_v19  ;;  %v21651_v13 = vunpack.i.l.bf16 %v32805_v61  ;;  %v32806_v24 = vunpack.i.l.bf16 %v32803_v50  ;;  %v19160_v16 = vpack.c.bf16 %v14839_v7, %v14838_v47  ;;  %18375 = vmatmul.mubr.msk.f32.vlgmr.msra.gmra.mrb[36].mxu0 %vm1765_vm8, %v18374_v29  ;;  %19153 = vmatpush1.bf16.msra.mxu1 %v19152_v36 }
 0x855   : > { %v14843_v32 = vsel %vm705_vm3, %v32804_v63, %v21672_v26  ;;  %v14841_v38 = vsel %vm705_vm3, %v21672_v26, %v21747_v18  ;;  %v21682_v48 = vunpack.i.h.bf16 %v32807_v35  ;;  %v21681_v49 = vunpack.i.l.bf16 %v32807_v35  ;;  %19149 = vmatpush1.bf16.msra.mxu0 %v19148_v6  ;;  %19159 = vmatprep.subr.bf16.mxu1 %v19158_v60  ;;  %v30786_v55 = vpop.permute.xlu0 %21779  ;;  %v32818_v35 = vld [vmem:[#allocation110_spill] sm:$0xff] }
 0x856   : > { %v14842_v34 = vsel %vm705_vm3, %v32806_v24, %v21671_v46  ;;  %v19154_v28 = vpack.c.bf16 %v14841_v38, %v14840_v37  ;;  %15140 = vmatprep.mubr.f32.mxu1 %v32135_v8  ;;  %15069 = vmatprep.mubr.f32.mxu0 %v32135_v8  ;;  %v32809_v40 = vunpack.i.l.bf16 %v32808_v25  ;;  %v30796_v3 = vsel %vm912_vm4, %v21627_v57, %v21652_v45 }
 0x857   : > { %v19156_v59 = vpack.c.bf16 %v14843_v32, %v14842_v34  ;;  %18378 = vmatmul.mubr.msk.f32.vlgmr.msra.gmra.mrb[38].mxu1 %vm1765_vm8, %v18374_v29  ;;  %v30800_v31 = vsel %vm912_vm4, %v21626_v42, %v21651_v13  ;;  %v30803_v2 = vpop.permute.xlu1 %21759  ;;  %v32810_v10 = vunpack.i.h.bf16 %v32808_v25  ;;  %v21686_v11 = vunpack.i.l.bf16 %v30551_v21  ;;  %v32816_v32 = vld [vmem:[#allocation78_spill] sm:$0xff]  ;;  %v32817_v34 = vld [vmem:[#allocation108_spill] sm:$0xff] }
 0x858   : > { %19155 = vmatprep.subr.bf16.mxu0 %v19154_v28  ;;  %v30792_v17 = vsel %vm912_vm4, %v32809_v40, %v21626_v42  ;;  %18377 = vmatmul.mubr.msk.f32.vlgmr.msra.gmra.mrb[38].mxu0 %vm1765_vm8, %v18374_v29  ;;  %v30815_v41 = vsel %vm912_vm4, %v21651_v13, %v21681_v49  ;;  %v30819_v4 = vsel %vm912_vm4, %v21652_v45, %v21682_v48  ;;  %v21687_v22 = vunpack.i.h.bf16 %v30551_v21  ;;  %v32815_v42 = vld [vmem:[#allocation37_spill] sm:$0xff] }
 0x859   : > { %19161 = vmatpush1.bf16.msra.mxu1 %v19160_v16  ;;  %v30809_v26 = vsel %vm912_vm4, %v32810_v10, %v21627_v57  ;;  %19157 = vmatpush1.bf16.msra.mxu0 %v19156_v59  ;;  %v19196_v52 = vpack.c.bf16 %v30796_v3, %v30800_v31  ;;  %v30828_v46 = vpop.permute.xlu0 %21789  ;;  %v21692_v58 = vunpack.i.h.bf16 %v30482_v53  ;;  %v21691_v21 = vunpack.i.l.bf16 %v30482_v53  ;;  %v32814_v57 = vld [vmem:[#allocation107_spill] sm:$0xff]  ;;  %v32822_v10 = vld [vmem:[#allocation94_spill] sm:$0xff] }
 0x85a   : > { %19167 = vmatprep.subr.bf16.mxu1 %v32811_v1  ;;  %15282 = vmatprep.mubr.f32.mxu1 %v32135_v8  ;;  %v19190_v62 = vpack.c.bf16 %v30809_v26, %v30792_v17  ;;  %v21702_v6 = vunpack.i.h.bf16 %v30553_v23  ;;  %v19194_v18 = vpack.c.bf16 %v30819_v4, %v30815_v41  ;;  %v30848_v19 = vsel %vm912_vm4, %v21681_v49, %v21686_v11  ;;  %v32820_v49 = vld [vmem:[#allocation10_spill] sm:$0xff] }
 0x85b   : > { %19163 = vmatprep.subr.bf16.mxu0 %v32812_v15  ;;  %15211 = vmatprep.mubr.f32.mxu0 %v32135_v8  ;;  %v30837_v27 = vpop.permute.xlu1 %21764  ;;  %v21701_v60 = vunpack.i.l.bf16 %v30553_v23  ;;  %v21706_v14 = vunpack.i.l.bf16 %v30592_v44  ;;  %v30857_v36 = vsel %vm912_vm4, %v21682_v48, %v21687_v22  ;;  %v21716_v50 = vunpack.i.l.bf16 %v30642_v33  ;;  %v32819_v48 = vld [vmem:[#allocation121_spill] sm:$0xff] }
 0x85c   : > { %18380 = vmatmul.mubr.msk.f32.vlgmr.msra.gmra.mrb[40].mxu1 %vm1765_vm8, %v18374_v29  ;;  %18379 = vmatmul.mubr.msk.f32.vlgmr.msra.gmra.mrb[40].mxu0 %vm1765_vm8, %v18374_v29  ;;  %v21707_v29 = vunpack.i.h.bf16 %v30592_v44  ;;  %v21727_v63 = vunpack.i.h.bf16 %v30668_v9  ;;  %v30867_v44 = vsel %vm912_vm4, %v21686_v11, %v21691_v21  ;;  %v21732_v61 = vunpack.i.h.bf16 %v30666_v30 }
 0x85d   : > { %19169 = vmatpush1.bf16.msra.mxu1 %v32813_v20  ;;  %19165 = vmatpush1.bf16.msra.mxu0 %v32814_v57  ;;  %v21731_v45 = vunpack.i.l.bf16 %v30666_v30  ;;  %v21726_v7 = vunpack.i.l.bf16 %v30668_v9  ;;  %v30875_v47 = vpop.permute.xlu0 %21799  ;;  %v30881_v37 = vsel %vm912_vm4, %v21687_v22, %v21692_v58  ;;  %v21711_v13 = vunpack.i.l.bf16 %v30594_v51 }
 0x85e   : > { %19175 = vmatprep.subr.bf16.mxu1 %v32815_v42  ;;  %15440 = vmatprep.mubr.f32.mxu1 %v32135_v8  ;;  %v21717_v24 = vunpack.i.h.bf16 %v30642_v33  ;;  %v21742_v30 = vunpack.i.h.bf16 %v30699_v5  ;;  %v21741_v9 = vunpack.i.l.bf16 %v30699_v5  ;;  %v30896_v38 = vsel %vm912_vm4, %v21701_v60, %v21706_v14 }
 0x85f   : > { %19171 = vmatprep.subr.bf16.mxu0 %v32816_v32  ;;  %15369 = vmatprep.mubr.f32.mxu0 %v32135_v8  ;;  %v30890_v16 = vpop.permute.xlu1 %21774  ;;  %v30902_v33 = vsel %vm912_vm4, %v21702_v6, %v21707_v29  ;;  %v32821_v28 = vunpack.i.l.bf16 %v32820_v49  ;;  %v21712_v25 = vunpack.i.h.bf16 %v30594_v51  ;;  %v32823_v11 = vunpack.i.h.bf16 %v32820_v49  ;;  %v32824_v32 = vld [vmem:[#allocation98_spill] sm:$0xff] }
 0x860   : > { %18383 = vmatmul.mubr.msk.f32.vlgmr.msra.gmra.mrb[36].mxu1 %vm1765_vm8, %v30842_v54  ;;  %18382 = vmatmul.mubr.msk.f32.vlgmr.msra.gmra.mrb[36].mxu0 %vm1765_vm8, %v30842_v54  ;;  %v30915_v40 = vsel %vm1058_vm5, %v21717_v24, %v21727_v63  ;;  %v30927_v22 = vsel %vm1058_vm5, %v21711_v13, %v21716_v50  ;;  %v30931_v51 = vsel %vm1058_vm5, %v21716_v50, %v21726_v7  ;;  %v21736_v15 = vunpack.i.l.bf16 %v30711_v56 }
 0x861   : > { %19177 = vmatpush1.bf16.msra.mxu1 %v32817_v34  ;;  %19173 = vmatpush1.bf16.msra.mxu0 %v32818_v35  ;;  %v30910_v59 = vsel %vm912_vm4, %v21706_v14, %v32821_v28  ;;  %v30923_v1 = vsel %vm912_vm4, %v21707_v29, %v32823_v11  ;;  %v30937_v20 = vpop.permute.xlu0 %21809  ;;  %v30941_v29 = vsel %vm1058_vm5, %v21726_v7, %v21731_v45  ;;  %v21737_v50 = vunpack.i.h.bf16 %v30711_v56  ;;  %v32825_v56 = vld [vmem:[#allocation3_spill] sm:$0xff]  ;;  %v32830_v11 = vld [vmem:[#allocation20_spill] sm:$0xff] }
 0x862   : > { %19183 = vmatprep.subr.bf16.mxu1 %v32819_v48  ;;  %15582 = vmatprep.mubr.f32.mxu1 %v32135_v8  ;;  %v30945_v14 = vsel %vm1058_vm5, %v21727_v63, %v21732_v61  ;;  %v30951_v57 = vsel %vm1058_vm5, %v21731_v45, %v21741_v9  ;;  %v30957_v42 = vsel %vm1058_vm5, %v21732_v61, %v21742_v30  ;;  %v21771_v34 = vunpack.i.l.bf16 %v30767_v12 }
 0x863   : > { %19179 = vmatprep.subr.bf16.mxu0 %v32822_v10  ;;  %15511 = vmatprep.mubr.f32.mxu0 %v32135_v8  ;;  %v30963_v63 = vpop.permute.xlu1 %21784  ;;  %v30967_v7 = vsel %vm1058_vm5, %v21712_v25, %v21717_v24  ;;  %v19200_v45 = vpack.c.bf16 %v30857_v36, %v30848_v19  ;;  %v19208_v61 = vpack.c.bf16 %v30902_v33, %v30896_v38  ;;  %v21772_v48 = vunpack.i.h.bf16 %v30767_v12  ;;  %v32826_v19 = vld [vmem:[#allocation91_spill] sm:$0xff]  ;;  %v32833_v24 = vld [vmem:[#allocation8_spill] sm:$0xff] }
 0x864   : > { %18385 = vmatmul.mubr.msk.f32.vlgmr.msra.gmra.mrb[38].mxu1 %vm1765_vm8, %v30842_v54  ;;  %18384 = vmatmul.mubr.msk.f32.vlgmr.msra.gmra.mrb[38].mxu0 %vm1765_vm8, %v30842_v54  ;;  %v19198_v35 = vpack.c.bf16 %v30881_v37, %v30867_v44  ;;  %v32827_v36 = vld [vmem:[#allocation19_spill] sm:$0xff]  ;;  %v19206_v28 = vpack.c.bf16 %v30923_v1, %v30910_v59  ;;  %v19214_v17 = vpack.c.bf16 %v30945_v14, %v30941_v29  ;;  %v21752_v10 = vunpack.i.h.bf16 %v30777_v39 }
 0x865   : > { %19185 = vmatpush1.bf16.msra.mxu1 %v32824_v32  ;;  %19181 = vmatpush1.bf16.msra.mxu0 %v32825_v56  ;;  %v32828_v49 = vpack.c.bf16 %v32826_v19, %v32827_v36  ;;  %v21825_v44 = vpop.permute.xlu0 %21824  ;;  %v31004_v59 = vsel %vm1058_vm5, %v21737_v50, %v21712_v25  ;;  %v31017_v36 = vld [vmem:[%s31474_s1 + $0x198] sm:$0xff]  ;;  %v21757_v25 = vunpack.i.h.bf16 %v30742_v0  ;;  %v21751_v26 = vunpack.i.l.bf16 %v30777_v39 }
 0x866   : > { %19191 = vmatprep.subr.bf16.mxu1 %v19190_v62  ;;  %15724 = vmatprep.mubr.f32.mxu1 %v32135_v8  ;;  %v30995_v62 = vsel %vm1058_vm5, %v21736_v15, %v21711_v13  ;;  %v32829_v13 = vld [vmem:[#allocation9_spill] sm:$0xff]  ;;  %v21827_v32 = vunpack.i.h.bf16 %v21825_v44  ;;  %v21826_v56 = vunpack.i.l.bf16 %v21825_v44  ;;  %v31029_v44 = vsel %vm1058_vm5, %v21771_v34, %v21736_v15 }
 0x867   : > { %19187 = vmatprep.subr.bf16.mxu0 %v32828_v49  ;;  %15653 = vmatprep.mubr.f32.mxu0 %v32135_v8  ;;  %v32831_v1 = vpack.c.bf16 %v32829_v13, %v32830_v11  ;;  %v31012_v19 = vpop.permute.xlu1 %21794  ;;  %v21756_v49 = vunpack.i.l.bf16 %v30742_v0  ;;  %v21762_v13 = vunpack.i.h.bf16 %v30803_v2  ;;  %v31046_v15 = vsel %vm1058_vm5, %v21772_v48, %v21737_v50 }
 0x868   : > { %18387 = vmatmul.mubr.msk.f32.vlgmr.msra.gmra.mrb[40].mxu1 %vm1765_vm8, %v30842_v54  ;;  %18386 = vmatmul.mubr.msk.f32.vlgmr.msra.gmra.mrb[40].mxu0 %vm1765_vm8, %v30842_v54  ;;  %v32832_v54 = vld [vmem:[#allocation18_spill] sm:$0xff]  ;;  %v15796_v0 = vsel %vm912_vm4, %v21691_v21, %v21826_v56  ;;  %v15797_v39 = vsel %vm912_vm4, %v21692_v58, %v21827_v32  ;;  %v21766_v21 = vunpack.i.l.bf16 %v30837_v27  ;;  %v15794_v53 = vsel %vm912_vm4, %v21826_v56, %v21701_v60 }
 0x869   : > { %19193 = vmatpush1.bf16.msra.mxu1 %v32831_v1  ;;  %v32834_v37 = vpack.c.bf16 %v32832_v54, %v32833_v24  ;;  %15954 = vmatprep.mubr.f32.mxu1 %v32135_v8  ;;  %v21767_v24 = vunpack.i.h.bf16 %v30837_v27  ;;  %v31060_v41 = vsel %vm1058_vm5, %v21752_v10, %v21757_v25  ;;  %v21802_v4 = vunpack.i.h.bf16 %v30875_v47 }
 0x86a   : > { %19199 = vmatprep.subr.bf16.mxu1 %v19198_v35  ;;  %v21761_v35 = vunpack.i.l.bf16 %v30803_v2  ;;  %15883 = vmatprep.mubr.f32.mxu0 %v32135_v8  ;;  %v21801_v58 = vunpack.i.l.bf16 %v30875_v47  ;;  %v15795_v60 = vsel %vm912_vm4, %v21827_v32, %v21702_v6  ;;  %v19204_v11 = vpack.c.bf16 %v15797_v39, %v15796_v0  ;;  %v31186_v39 = vld [vmem:[%s31474_s1 + $0x1e0] sm:$0xff] }
 0x86b   : > { %19189 = vmatpush1.bf16.msra.mxu0 %v32834_v37  ;;  %v31068_v50 = vpop.permute.xlu1 %21804  ;;  %v31076_v37 = vsel %vm1058_vm5, %v21751_v26, %v21756_v49  ;;  %v21792_v23 = vunpack.i.h.bf16 %v30828_v46  ;;  %v21791_v1 = vunpack.i.l.bf16 %v30828_v46  ;;  %v19202_v6 = vpack.c.bf16 %v15795_v60, %v15794_v53 }
 0x86c   : > { %19195 = vmatprep.subr.bf16.mxu0 %v19194_v18  ;;  %18390 = vmatmul.mubr.msk.f32.vlgmr.msra.gmra.mrb[36].mxu1 %vm1765_vm8, %v31017_v36  ;;  %v31066_v18 = vpop.permute.xlu0 %21829  ;;  %v16317_v3 = vsel %vm1058_vm5, %v21742_v30, %v21752_v10  ;;  %v31097_v31 = vsel %vm1058_vm5, %v21767_v24, %v21772_v48  ;;  %v16312_v5 = vsel %vm1058_vm5, %v21756_v49, %v21761_v35  ;;  %v21782_v32 = vunpack.i.h.bf16 %v30786_v55 }
 0x86d   : > { %19201 = vmatpush1.bf16.msra.mxu1 %v19200_v45  ;;  %v16316_v45 = vsel %vm1058_vm5, %v21741_v9, %v21751_v26  ;;  %16096 = vmatprep.mubr.f32.mxu1 %v32135_v8  ;;  %v16313_v46 = vsel %vm1058_vm5, %v21757_v25, %v21762_v13  ;;  %v31121_v12 = vsel %vm1204_vm6, %v21791_v1, %v21801_v58  ;;  %v21777_v9 = vunpack.i.h.bf16 %v30890_v16 }
 0x86e   : > { %18389 = vmatmul.mubr.msk.f32.vlgmr.msra.gmra.mrb[36].mxu0 %vm1765_vm8, %v31017_v36  ;;  %19207 = vmatprep.subr.bf16.mxu1 %v19206_v28  ;;  %v31127_v30 = vsel %vm1204_vm6, %v21792_v23, %v21802_v4  ;;  %v19212_v26 = vpack.c.bf16 %v31004_v59, %v30995_v62  ;;  %v19224_v10 = vpack.c.bf16 %v31060_v41, %v31076_v37  ;;  %v21781_v56 = vunpack.i.l.bf16 %v30786_v55 }
 0x86f   : > { %19197 = vmatpush1.bf16.msra.mxu0 %v19196_v52  ;;  %16025 = vmatprep.mubr.f32.mxu0 %v32135_v8  ;;  %v31105_v52 = vsel %vm1058_vm5, %v21766_v21, %v21771_v34  ;;  %v21776_v34 = vunpack.i.l.bf16 %v30890_v16  ;;  %v31135_v28 = vpop.permute.xlu1 %21814  ;;  %v21787_v16 = vunpack.i.h.bf16 %v30963_v63  ;;  %v21786_v25 = vunpack.i.l.bf16 %v30963_v63 }
 0x870   : > { %18392 = vmatmul.mubr.msk.f32.vlgmr.msra.gmra.mrb[38].mxu1 %vm1765_vm8, %v31017_v36  ;;  %19203 = vmatprep.subr.bf16.mxu0 %v19202_v6  ;;  %v31133_v48 = vpop.permute.xlu0 %21839  ;;  %v19218_v62 = vpack.c.bf16 %v16317_v3, %v16316_v45  ;;  %v19230_v59 = vpack.c.bf16 %v31046_v15, %v31029_v44  ;;  %v19232_v55 = vpack.c.bf16 %v31097_v31, %v31105_v52  ;;  %v21797_v14 = vunpack.i.h.bf16 %v31012_v19 }
 0x871   : > { %19209 = vmatpush1.bf16.msra.mxu1 %v19208_v61  ;;  %16238 = vmatprep.mubr.f32.mxu1 %v32135_v8  ;;  %v19244_v38 = vpack.c.bf16 %v31127_v30, %v31121_v12  ;;  %v32835_v33 = vpack.c.bf16 %v30967_v7, %v30927_v22  ;;  %v19222_v29 = vpack.c.bf16 %v16313_v46, %v16312_v5  ;;  %v21796_v63 = vunpack.i.l.bf16 %v31012_v19 }
 0x872   : > { %18391 = vmatmul.mubr.msk.f32.vlgmr.msra.gmra.mrb[38].mxu0 %vm1765_vm8, %v31017_v36  ;;  %19215 = vmatprep.subr.bf16.mxu1 %v19214_v17  ;;  %v31172_v22 = vsel %vm1204_vm6, %v21776_v34, %v21781_v56  ;;  %v31176_v7 = vsel %vm1204_vm6, %v21777_v9, %v21782_v32  ;;  %v21807_v49 = vunpack.i.h.bf16 %v31068_v50  ;;  %v21806_v54 = vunpack.i.l.bf16 %v31068_v50 }
 0x873   : > { %19205 = vmatpush1.bf16.msra.mxu0 %v19204_v11  ;;  %16167 = vmatprep.mubr.f32.mxu0 %v32135_v8  ;;  %v31168_v17 = vpop.permute.xlu1 %21819  ;;  %v32836_v44 = vpack.c.bf16 %v30915_v40, %v30931_v51  ;;  %v21812_v15 = vunpack.i.h.bf16 %v30937_v20  ;;  %v21811_v53 = vunpack.i.l.bf16 %v30937_v20  ;;  %v31192_v41 = vsel %vm1204_vm6, %v21782_v32, %v21787_v16 }
 0x874   : > { %19211 = vmatprep.subr.bf16.mxu0 %v32835_v33  ;;  %18394 = vmatmul.mubr.msk.f32.vlgmr.msra.gmra.mrb[40].mxu1 %vm1765_vm8, %v31017_v36  ;;  %v21850_v61 = vpop.permute.xlu0 %21849  ;;  %v31196_v40 = vsel %vm1204_vm6, %v21781_v56, %v21786_v25  ;;  %v16834_v50 = vsel %vm1204_vm6, %v21786_v25, %v21791_v1  ;;  %v16835_v60 = vsel %vm1204_vm6, %v21787_v16, %v21792_v23  ;;  %v21817_v6 = vunpack.i.h.bf16 %v31135_v28 }
 0x875   : > { %19217 = vmatpush1.bf16.msra.mxu1 %v32836_v44  ;;  %v21851_v0 = vunpack.i.l.bf16 %v21850_v61  ;;  %16468 = vmatprep.mubr.f32.mxu1 %v32135_v8  ;;  %v31215_v37 = vsel %vm1204_vm6, %v21796_v63, %v21776_v34  ;;  %v31221_v2 = vsel %vm1204_vm6, %v21797_v14, %v21777_v9  ;;  %v31237_v23 = vsel %vm1204_vm6, %v21807_v49, %v21812_v15 }
 0x876   : > { %18393 = vmatmul.mubr.msk.f32.vlgmr.msra.gmra.mrb[40].mxu0 %vm1765_vm8, %v31017_v36  ;;  %v21852_v36 = vunpack.i.h.bf16 %v21850_v61  ;;  %19223 = vmatprep.subr.bf16.mxu1 %v19222_v29  ;;  %v31241_v1 = vsel %vm1204_vm6, %v21806_v54, %v21811_v53  ;;  %v21816_v3 = vunpack.i.l.bf16 %v31135_v28  ;;  %v21831_v5 = vunpack.i.l.bf16 %v31066_v18 }
 0x877   : > { %19213 = vmatpush1.bf16.msra.mxu0 %v19212_v26  ;;  %v16310_v51 = vsel %vm1058_vm5, %v21761_v35, %v21851_v0  ;;  %16397 = vmatprep.mubr.f32.mxu0 %v32135_v8  ;;  %v31229_v11 = vpop.permute.xlu1 %21834  ;;  %v16308_v45 = vsel %vm1058_vm5, %v21851_v0, %v21766_v21  ;;  %v32837_v21 = vpack.c.bf16 %v30957_v42, %v30951_v57  ;;  %v21822_v26 = vunpack.i.h.bf16 %v31168_v17 }
 0x878   : > { %v16311_v20 = vsel %vm1058_vm5, %v21762_v13, %v21852_v36  ;;  %19219 = vmatprep.subr.bf16.mxu0 %v19218_v62  ;;  %v21832_v13 = vunpack.i.h.bf16 %v31066_v18  ;;  %18397 = vmatmul.mubr.msk.f32.vlgmr.msra.gmra.mrb[36].mxu1 %vm1765_vm8, %v31186_v39  ;;  %v31227_v35 = vpop.permute.xlu0 %21854  ;;  %v16309_v9 = vsel %vm1058_vm5, %v21852_v36, %v21767_v24  ;;  %v16830_v34 = vsel %vm1204_vm6, %v21801_v58, %v21806_v54 }
 0x879   : > { %19225 = vmatpush1.bf16.msra.mxu1 %v19224_v10  ;;  %v19228_v46 = vpack.c.bf16 %v16311_v20, %v16310_v51  ;;  %v21821_v18 = vunpack.i.l.bf16 %v31168_v17  ;;  %16610 = vmatprep.mubr.f32.mxu1 %v32135_v8  ;;  %v19226_v57 = vpack.c.bf16 %v16309_v9, %v16308_v45  ;;  %v16831_v27 = vsel %vm1204_vm6, %v21802_v4, %v21807_v49 }
 0x87a   : > { %18396 = vmatmul.mubr.msk.f32.vlgmr.msra.gmra.mrb[36].mxu0 %vm1765_vm8, %v31186_v39  ;;  %19231 = vmatprep.subr.bf16.mxu1 %v19230_v59  ;;  %v19240_v42 = vpack.c.bf16 %v31192_v41, %v31196_v40  ;;  %v19236_v24 = vpack.c.bf16 %v31221_v2, %v31215_v37  ;;  %v19238_v58 = vpack.c.bf16 %v16835_v60, %v16834_v50  ;;  %v21836_v25 = vunpack.i.l.bf16 %v31229_v11 }
 0x87b   : > { %19221 = vmatpush1.bf16.msra.mxu0 %v32837_v21  ;;  %16539 = vmatprep.mubr.f32.mxu0 %v32135_v8  ;;  %v31275_v32 = vpop.permute.xlu1 %21844  ;;  %v19234_v47 = vpack.c.bf16 %v31176_v7, %v31172_v22  ;;  %v19248_v4 = vpack.c.bf16 %v31237_v23, %v31241_v1  ;;  %v16826_v56 = vsel %vm1204_vm6, %v21811_v53, %v21816_v3  ;;  %v21837_v52 = vunpack.i.h.bf16 %v31229_v11 }
 0x87c   : > { %18399 = vmatmul.mubr.msk.f32.vlgmr.msra.gmra.mrb[38].mxu1 %vm1765_vm8, %v31186_v39  ;;  %v31273_v10 = vpop.permute.xlu0 %21864  ;;  %19227 = vmatprep.subr.bf16.mxu0 %v19226_v57  ;;  %v16827_v16 = vsel %vm1204_vm6, %v21812_v15, %v21817_v6  ;;  %v19242_v62 = vpack.c.bf16 %v16831_v27, %v16830_v34  ;;  %v16842_v59 = vsel %vm1204_vm6, %v21831_v5, %v21796_v63  ;;  %v21842_v19 = vunpack.i.h.bf16 %v31133_v48  ;;  %v31334_v15 = vld [vmem:[%s31474_s1 + $0x228] sm:$0xff] }
 0x87d   : > { %19233 = vmatpush1.bf16.msra.mxu1 %v19232_v55  ;;  %v16843_v33 = vsel %vm1204_vm6, %v21832_v13, %v21797_v14  ;;  %v31307_v29 = vsel %vm1204_vm6, %v21822_v26, %v21832_v13  ;;  %v31311_v31 = vsel %vm1204_vm6, %v21821_v18, %v21831_v5  ;;  %v21866_v55 = vunpack.i.l.bf16 %v31273_v10  ;;  %16752 = vmatprep.mubr.f32.mxu1 %v32135_v8 }
 0x87e   : > { %18398 = vmatmul.mubr.msk.f32.vlgmr.msra.gmra.mrb[38].mxu0 %vm1765_vm8, %v31186_v39  ;;  %19239 = vmatprep.subr.bf16.mxu1 %v19238_v58  ;;  %v21841_v63 = vunpack.i.l.bf16 %v31133_v48  ;;  %v21856_v14 = vunpack.i.l.bf16 %v31227_v35  ;;  %v19246_v61 = vpack.c.bf16 %v16827_v16, %v16826_v56  ;;  %v21867_v7 = vunpack.i.h.bf16 %v31273_v10 }
 0x87f   : > { %19229 = vmatpush1.bf16.msra.mxu0 %v19228_v46  ;;  %v21847_v49 = vunpack.i.h.bf16 %v31275_v32  ;;  %16681 = vmatprep.mubr.f32.mxu0 %v32135_v8  ;;  %v31324_v36 = vpop.permute.xlu1 %21859  ;;  %v19256_v48 = vpack.c.bf16 %v31307_v29, %v31311_v31  ;;  %v21846_v0 = vunpack.i.l.bf16 %v31275_v32  ;;  %v19254_v53 = vpack.c.bf16 %v16843_v33, %v16842_v59 }
 0x880   : > { %19235 = vmatprep.subr.bf16.mxu0 %v19234_v47  ;;  %v21875_v22 = vpop.permute.xlu0 %21874  ;;  %18401 = vmatmul.mubr.msk.f32.vlgmr.msra.gmra.mrb[40].mxu1 %vm1765_vm8, %v31186_v39  ;;  %v17352_v41 = vsel %vm1350_vm7, %v21836_v25, %v21841_v63  ;;  %v21857_v40 = vunpack.i.h.bf16 %v31227_v35  ;;  %v31345_v51 = vsel %vm1350_vm7, %v21856_v14, %v21866_v55  ;;  %v17353_v20 = vsel %vm1350_vm7, %v21837_v52, %v21842_v19 }
 0x881   : > { %v21877_v54 = vunpack.i.h.bf16 %v21875_v22  ;;  %v21876_v44 = vunpack.i.l.bf16 %v21875_v22  ;;  %19241 = vmatpush1.bf16.msra.mxu1 %v19240_v42  ;;  %v21862_v37 = vunpack.i.h.bf16 %v31324_v36  ;;  %v21861_v2 = vunpack.i.l.bf16 %v31324_v36  ;;  %16982 = vmatprep.mubr.f32.mxu1 %v32135_v8 }
 0x882   : > { %18400 = vmatmul.mubr.msk.f32.vlgmr.msra.gmra.mrb[40].mxu0 %vm1765_vm8, %v31186_v39  ;;  %19247 = vmatprep.subr.bf16.mxu1 %v19246_v61  ;;  %v31366_v35 = vsel %vm1350_vm7, %v21857_v40, %v21867_v7  ;;  %v17351_v28 = vsel %vm1350_vm7, %v21842_v19, %v21847_v49  ;;  %v17350_v5 = vsel %vm1350_vm7, %v21841_v63, %v21846_v0  ;;  %v18409_v63 = vld [vmem:[%s31474_s1 + $0x270] sm:$0xff] }
 0x883   : > { %19237 = vmatpush1.bf16.msra.mxu0 %v19236_v24  ;;  %v16822_v39 = vsel %vm1204_vm6, %v21876_v44, %v21821_v18  ;;  %v16824_v50 = vsel %vm1204_vm6, %v21816_v3, %v21876_v44  ;;  %v16825_v60 = vsel %vm1204_vm6, %v21817_v6, %v21877_v54  ;;  %16911 = vmatprep.mubr.f32.mxu0 %v32135_v8  ;;  %v21870_v45 = vpop.permute.xlu1 %21869 }
 0x884   : > { %19243 = vmatprep.subr.bf16.mxu0 %v19242_v62  ;;  %v21880_v13 = vpop.permute.xlu0 %21879  ;;  %18404 = vmatmul.mubr.msk.f32.vlgmr.msra.gmra.mrb[36].mxu1 %vm1765_vm8, %v31334_v15  ;;  %v16823_v23 = vsel %vm1204_vm6, %v21877_v54, %v21822_v26  ;;  %v17348_v6 = vsel %vm1350_vm7, %v21846_v0, %v21856_v14  ;;  %v17349_v3 = vsel %vm1350_vm7, %v21847_v49, %v21857_v40  ;;  %v21872_v17 = vunpack.i.h.bf16 %v21870_v45 }
 0x885   : > { %19249 = vmatpush1.bf16.msra.mxu1 %v19248_v4  ;;  %v19250_v1 = vpack.c.bf16 %v16823_v23, %v16822_v39  ;;  %v19252_v46 = vpack.c.bf16 %v16825_v60, %v16824_v50  ;;  %v21871_v21 = vunpack.i.l.bf16 %v21870_v45  ;;  %v17354_v9 = vsel %vm1350_vm7, %v21861_v2, %v21836_v25  ;;  %17124 = vmatprep.mubr.f32.mxu1 %v32135_v8 }
 0x886   : > { %18403 = vmatmul.mubr.msk.f32.vlgmr.msra.gmra.mrb[36].mxu0 %vm1765_vm8, %v31334_v15  ;;  %19255 = vmatprep.subr.bf16.mxu1 %v19254_v53  ;;  %v17355_v34 = vsel %vm1350_vm7, %v21862_v37, %v21837_v52  ;;  %v21882_v26 = vunpack.i.h.bf16 %v21880_v13  ;;  %v21881_v18 = vunpack.i.l.bf16 %v21880_v13  ;;  %v19262_v30 = vpack.c.bf16 %v17349_v3, %v17348_v6 }
 0x887   : > { %19245 = vmatpush1.bf16.msra.mxu0 %v19244_v38  ;;  %17053 = vmatprep.mubr.f32.mxu0 %v32135_v8  ;;  %v21885_v38 = vpop.permute.xlu1 %21884  ;;  %v19258_v11 = vpack.c.bf16 %v17353_v20, %v17352_v41  ;;  %v19268_v57 = vpack.c.bf16 %v31366_v35, %v31345_v51  ;;  %v19264_v27 = vpack.c.bf16 %v17351_v28, %v17350_v5  ;;  %v17832_v51 = vunpack.c.l.s4 %v21931_v43  ;;  %v32838_v28 = vld [vmem:[#allocation2_spill] sm:$0xff] }
 0x888   : > { %v21895_v12 = vpop.permute.xlu0 %21894  ;;  %18406 = vmatmul.mubr.msk.f32.vlgmr.msra.gmra.mrb[38].mxu1 %vm1765_vm8, %v31334_v15  ;;  %19251 = vmatprep.subr.bf16.mxu0 %v19250_v1  ;;  %v21887_v42 = vunpack.i.h.bf16 %v21885_v38  ;;  %v21886_v24 = vunpack.i.l.bf16 %v21885_v38  ;;  %v19260_v58 = vpack.c.bf16 %v17355_v34, %v17354_v9  ;;  %v17344_v32 = vsel %vm1350_vm7, %v21866_v55, %v21871_v21 }
 0x889   : > { %19257 = vmatpush1.bf16.msra.mxu1 %v19256_v48  ;;  %v17345_v47 = vsel %vm1350_vm7, %v21867_v7, %v21872_v17  ;;  %v17343_v4 = vsel %vm1350_vm7, %v21872_v17, %v21882_v26  ;;  %v17342_v56 = vsel %vm1350_vm7, %v21871_v21, %v21881_v18  ;;  %v21897_v16 = vunpack.i.h.bf16 %v21895_v12  ;;  %17266 = vmatprep.mubr.f32.mxu1 %v32135_v8 }
 0x88a   : > { %18405 = vmatmul.mubr.msk.f32.vlgmr.msra.gmra.mrb[38].mxu0 %vm1765_vm8, %v31334_v15  ;;  %19263 = vmatprep.subr.bf16.mxu1 %v19262_v30  ;;  %v17340_v62 = vsel %vm1350_vm7, %v21881_v18, %v21886_v24  ;;  %v21896_v59 = vunpack.i.l.bf16 %v21895_v12  ;;  %v17341_v31 = vsel %vm1350_vm7, %v21882_v26, %v21887_v42  ;;  %v19266_v19 = vpack.c.bf16 %v17345_v47, %v17344_v32 }
 0x88b   : > { %19253 = vmatpush1.bf16.msra.mxu0 %v19252_v46  ;;  %17195 = vmatprep.mubr.f32.mxu0 %v32135_v8  ;;  %v21890_v29 = vpop.permute.xlu1 %21889  ;;  %v19270_v14 = vpack.c.bf16 %v17341_v31, %v17340_v62  ;;  %v19272_v61 = vpack.c.bf16 %v17343_v4, %v17342_v56  ;;  %v17339_v48 = vsel %vm1350_vm7, %v21887_v42, %v21897_v16  ;;  %v17833_v20 = vunpack.c.0.s8 %v17832_v51 }
 0x88c   : > { %19259 = vmatprep.subr.bf16.mxu0 %v19258_v11  ;;  %v21900_v25 = vpop.permute.xlu0 %21899  ;;  %18408 = vmatmul.mubr.msk.f32.vlgmr.msra.gmra.mrb[40].mxu1 %vm1765_vm8, %v31334_v15  ;;  %v21892_v52 = vunpack.i.h.bf16 %v21890_v29  ;;  %v21891_v55 = vunpack.i.l.bf16 %v21890_v29 }
 0x88d   : > { %v21902_v10 = vunpack.i.h.bf16 %v21900_v25  ;;  %v21901_v33 = vunpack.i.l.bf16 %v21900_v25  ;;  %19265 = vmatpush1.bf16.msra.mxu1 %v19264_v27  ;;  %17496 = vmatprep.mubr.f32.mxu1 %v32135_v8  ;;  %v17836_v45 = vsub.s32 %v17833_v20, %v32838_v28 }
 0x88e   : > { %18407 = vmatmul.mubr.msk.f32.vlgmr.msra.gmra.mrb[40].mxu0 %vm1765_vm8, %v31334_v15  ;;  %v17336_v44 = vsel %vm1350_vm7, %v21896_v59, %v21891_v55  ;;  %19271 = vmatprep.subr.bf16.mxu1 %v19270_v14  ;;  %v17337_v36 = vsel %vm1350_vm7, %v21897_v16, %v21892_v52  ;;  %v17338_v15 = vsel %vm1350_vm7, %v21886_v24, %v21896_v59 }
 0x88f   : > { %19261 = vmatpush1.bf16.msra.mxu0 %v19260_v58  ;;  %v17356_v22 = vsel %vm1350_vm7, %v21901_v33, %v21861_v2  ;;  %v17357_v7 = vsel %vm1350_vm7, %v21902_v10, %v21862_v37  ;;  %v17335_v49 = vsel %vm1350_vm7, %v21892_v52, %v21902_v10  ;;  %v17334_v54 = vsel %vm1350_vm7, %v21891_v55, %v21901_v33 }
 0x890   : > { %19267 = vmatprep.subr.bf16.mxu0 %v19266_v19  ;;  %17425 = vmatprep.mubr.f32.mxu0 %v32135_v8  ;;  %v19278_v0 = vpack.c.bf16 %v17357_v7, %v17356_v22  ;;  %v19280_v53 = vpack.c.bf16 %v17335_v49, %v17334_v54  ;;  %v19274_v41 = vpack.c.bf16 %v17337_v36, %v17336_v44  ;;  %v32839_v19 = vlaneseq }
 0x891   : > { %18411 = vmatmul.mubr.msk.f32.vlgmr.msra.gmra.mrb[36].mxu1 %vm1765_vm8, %v18409_v63  ;;  %v19276_v40 = vpack.c.bf16 %v17339_v48, %v17338_v15 }
 0x892   : > { %18410 = vmatmul.mubr.msk.f32.vlgmr.msra.gmra.mrb[36].mxu0 %vm1765_vm8, %v18409_v63  ;;  %19273 = vmatpush1.bf16.msra.mxu1 %v19272_v61  ;;  %vm17905_vm10 = vcmp.lt.s32.totalorder %v32839_v19, 512 }
 0x893   : > { %19269 = vmatpush1.bf16.msra.mxu0 %v19268_v57  ;;  %17567 = vmatprep.mubr.f32.mxu0 %v32135_v8 }
 0x894   : > { %17638 = vmatprep.mubr.f32.mxu1 %v32135_v8  ;;  %19275 = vmatprep.subr.bf16.mxu0 %v19274_v41 }
 0x895   : > { %18413 = vmatmul.mubr.msk.f32.vlgmr.msra.gmra.mrb[38].mxu1 %vm1765_vm8, %v18409_v63  ;;  %19279 = vmatprep.subr.bf16.mxu1 %v19278_v0 }
 0x896   : > { %18412 = vmatmul.mubr.msk.f32.vlgmr.msra.gmra.mrb[38].mxu0 %vm1765_vm8, %v18409_v63  ;;  %19281 = vmatpush1.bf16.msra.mxu1 %v19280_v53 }
 0x897   : > { %19277 = vmatpush1.bf16.msra.mxu0 %v19276_v40  ;;  %17709 = vmatprep.mubr.f32.mxu0 %v32135_v8 }
 0x898   : > { %17780 = vmatprep.mubr.f32.mxu1 %v32135_v8 }
 0x899   : > { %18415 = vmatmul.mubr.msk.f32.vlgmr.msra.gmra.mrb[40].mxu1 %vm1765_vm8, %v18409_v63 }
 0x89a   : > { %18414 = vmatmul.mubr.msk.f32.vlgmr.msra.gmra.mrb[40].mxu0 %vm1765_vm8, %v18409_v63 }
 0x89b   : > { %v17801_v39 = vpop.permute.xlu1 %17800 }
 0x964   : > { %v17498_v50 = vpop.f32.mrb[36].mxu1 }
 0x965   : > { %v17805_v60 = vadd.f32 %v17801_v39, %v17498_v50  ;;  %v17427_v37 = vpop.f32.mrb[36].mxu0  ;;  %v17500_v2 = vpop.f32.mrb[37].mxu1 }
 0x966   : > { %v17803_v13 = vadd.f32 %v17801_v39, %v17427_v37  ;;  %v17806_v35 = vadd.f32 %v17801_v39, %v17500_v2  ;;  %v17429_v23 = vpop.f32.mrb[37].mxu0 }
 0x967   : > { %v17804_v1 = vadd.f32 %v17801_v39, %v17429_v23 }
 0x968   : > { %v17828_v6 = vcombine.low %v17805_v60, %v17806_v35  ;;  %v17640_v8 = vpop.f32.mrb[38].mxu1 }
 0x969   : > { %v17827_v3 = vcombine.low %v17803_v13, %v17804_v1  ;;  %v17569_v5 = vpop.f32.mrb[38].mxu0  ;;  %v17809_v46 = vadd.f32 %v17801_v39, %v17640_v8  ;;  %v17642_v17 = vpop.f32.mrb[39].mxu1 }
 0x96a   : > { %v17844_v21 = vrot.slane %v17828_v6, %v17836_v45  ;;  %v17807_v9 = vadd.f32 %v17801_v39, %v17569_v5  ;;  %v17571_v34 = vpop.f32.mrb[39].mxu0  ;;  %v17810_v26 = vadd.f32 %v17801_v39, %v17642_v17 }
 0x96b   : > { %v17837_v18 = vrot.slane %v17827_v3, %v17836_v45  ;;  %v17808_v12 = vadd.f32 %v17801_v39, %v17571_v34 }
 0x96c   : > { %v17830_v30 = vcombine.low %v17809_v46, %v17810_v26  ;;  %v17782_v38 = vpop.f32.mrb[40].mxu1 }
 0x96d   : > { %v17859_v11 = vcombine.low %v17837_v18, %v17844_v21  ;;  %v17829_v57 = vcombine.low %v17807_v9, %v17808_v12  ;;  %v17711_v27 = vpop.f32.mrb[40].mxu0  ;;  %v17813_v42 = vadd.f32 %v17801_v39, %v17782_v38  ;;  %v17784_v24 = vpop.f32.mrb[41].mxu1 }
 0x96e   : > { %v17858_v58 = vrot.slane %v17830_v30, %v17836_v45  ;;  %v17811_v32 = vadd.f32 %v17801_v39, %v17711_v27  ;;  %v17713_v47 = vpop.f32.mrb[41].mxu0  ;;  %v17814_v4 = vadd.f32 %v17801_v39, %v17784_v24 }
 0x96f   : > { %v17851_v56 = vrot.slane %v17829_v57, %v17836_v45  ;;  %v17812_v16 = vadd.f32 %v17801_v39, %v17713_v47  ;;  %v17867_v33 = vrot.slane %v17859_v11, %v17836_v45 }
 0x970   : > { %v17877_v25 = vcombine.low %v17813_v42, %v17814_v4 }
 0x971   : > { %v17860_v62 = vcombine.low %v17851_v56, %v17858_v58  ;;  %v17876_v59 = vcombine.low %v17811_v32, %v17812_v16 }
 0x972   : > { %v17891_v10 = vrot.slane %v17877_v25, %v17836_v45 }
 0x973   : > { %v17874_v29 = vrot.slane %v17860_v62, %v17836_v45  ;;  %v17884_v31 = vrot.slane %v17876_v59, %v17836_v45 }
 0x975   : > { %v17875_v52 = vcombine.low %v17867_v33, %v17874_v29  ;;  %v17892_v55 = vcombine.low %v17884_v31, %v17891_v10 }
 0x977   : > { %17902 = vst [vmem:[%s192_s8] sm:$0xff] %v17875_v52  ;;  %v17899_v63 = vrot.slane %v17892_v55, %v17836_v45 }
 0x979   : > { %17907 = vst.msk [vmem:[%s192_s8 + $0x8] sm:$0xf] %vm17905_vm10, %v17899_v63 }
 0x97a PF: > { %s14_s15 = sadd.s32 1, %s21916_s15  }
 0x97b   : > { %p11_p4 = scmp.ge.s32.totalorder %s14_s15, 4  }
 0x97d   :  { %13 = sbr.rel (!%p11_p4) target bundleno = 1 (0x1), region = 74 }

</bundles_post_ra>
